<compile_context>
chip_gen: v7x
topology: tpu7x:2x2x1
jax: 0.10.0
libtpu: 0.0.40
codegen_flags: <defaults>
</compile_context>

<pallas_src>
import functools

import jax
import jax.numpy as jnp
from jax.experimental import pallas as pl
from jax.experimental.pallas import tpu as pltpu


# ----------------------------------------------------------------------------
# Pallas kernels
# ----------------------------------------------------------------------------
def _dyconv_gn_kernel(W, HW, Cin, Cout, num_groups=8, eps=1e-5, neg_slope=0.01):
    """Per-sample dynamic 3x3 conv (9 shifted dots) + GroupNorm(8) + LeakyReLU."""
    P = W + 1
    shifts = [(kh - 1) * W + (kw - 1) for kh in range(3) for kw in range(3)]
    inv_n = 1.0 / float((Cout // num_groups) * HW)

    def kernel(xp_ref, f_ref, mask_ref, m_ref, mt_ref, g_ref, b_ref, o_ref):
        xp = xp_ref[0]              # (Cin, HW + 2P)   bf16, zero-padded flattened image
        filt = f_ref[0]             # (9, Cout, Cin)   bf16 per-sample filter taps
        masks = mask_ref[...]       # (9, HW)          bf16 boundary masks (precomputed)

        acc = jnp.zeros((Cout, HW), jnp.float32)
        for t in range(9):
            s = P + shifts[t]
            tap = xp[:, s:s + HW] * masks[t:t + 1, :]            # (Cin, HW) bf16
            acc = acc + jnp.dot(filt[t], tap,
                                preferred_element_type=jnp.float32)

        # GroupNorm(8): per-channel lane sums + tiny group reduce (M/MT hoisted out)
        csum = jnp.sum(acc, axis=1, keepdims=True)               # (Cout, 1)
        csq = jnp.sum(acc * acc, axis=1, keepdims=True)
        gsum = jnp.dot(m_ref[...], csum, preferred_element_type=jnp.float32)   # (G,1)
        gsq = jnp.dot(m_ref[...], csq, preferred_element_type=jnp.float32)
        mean_g = gsum * inv_n
        var_g = gsq * inv_n - mean_g * mean_g
        rstd_g = jax.lax.rsqrt(var_g + eps)
        mean_c = jnp.dot(mt_ref[...], mean_g, preferred_element_type=jnp.float32)
        rstd_c = jnp.dot(mt_ref[...], rstd_g, preferred_element_type=jnp.float32)

        y = (acc - mean_c) * (rstd_c * g_ref[...]) + b_ref[...]
        y = jnp.where(y >= 0.0, y, neg_slope * y)                # LeakyReLU(0.01)
        o_ref[0] = y.astype(o_ref.dtype)

    return kernel


def _dec_stage_kernel(W, L, Cin, Cmid, nc):
    """Fused decoder stage, batch folded into the lane axis (width L = B*H*W):
       3x3 conv (Cin->Cmid)+ReLU, 3x3 conv (Cmid->Cmid)+ReLU, optional 1x1 conv->nc.
       The intermediate stays in a VMEM scratch (zero-padded for the 2nd conv)."""
    P = W + 1
    shifts = [(kh - 1) * W + (kw - 1) for kh in range(3) for kw in range(3)]

    def kernel(*refs):
        if nc is None:
            (xp_ref, w1_ref, b1_ref, w2_ref, b2_ref, mask_ref,
             o_ref, scr_ref) = refs
        else:
            (xp_ref, w1_ref, b1_ref, w2_ref, b2_ref, mask_ref,
             wout_ref, bout_ref, o_ref, scr_ref) = refs

        xp = xp_ref[...]            # (Cin, L + 2P)  bf16
        masks = mask_ref[...]       # (9, L)         bf16
        w1 = w1_ref[...]            # (9, Cmid, Cin) bf16
        w2 = w2_ref[...]            # (9, Cmid, Cmid) bf16

        acc = jnp.zeros((Cmid, L), jnp.float32)
        for t in range(9):
            s = P + shifts[t]
            tap = xp[:, s:s + L] * masks[t:t + 1, :]
            acc = acc + jnp.dot(w1[t], tap, preferred_element_type=jnp.float32)
        h1 = jnp.maximum(acc + b1_ref[...], 0.0)                 # (Cmid, L) f32

        # second conv reads the VMEM-resident intermediate (zero-padded borders)
        scr_ref[...] = jnp.zeros_like(scr_ref)
        scr_ref[:, pl.ds(P, L)] = h1.astype(jnp.bfloat16)
        h1p = scr_ref[...]                                        # (Cmid, L + 2P)

        acc2 = jnp.zeros((Cmid, L), jnp.float32)
        for t in range(9):
            s = P + shifts[t]
            tap = h1p[:, s:s + L] * masks[t:t + 1, :]
            acc2 = acc2 + jnp.dot(w2[t], tap, preferred_element_type=jnp.float32)
        h2 = jnp.maximum(acc2 + b2_ref[...], 0.0)

        if nc is None:
            o_ref[...] = h2.astype(o_ref.dtype)
        else:  # fused 1x1 OutputBlock
            y = jnp.dot(wout_ref[...], h2.astype(jnp.bfloat16),
                        preferred_element_type=jnp.float32) + bout_ref[...]
            o_ref[...] = y.astype(o_ref.dtype)

    return kernel


def _matmul_kernel(x_ref, w_ref, o_ref):
    """ConvTranspose2d(2,2) as a single matmul, bias folded via ones-row."""
    o_ref[...] = jnp.dot(w_ref[...], x_ref[...],
                         preferred_element_type=jnp.float32).astype(o_ref.dtype)


# ----------------------------------------------------------------------------
# Wrappers
# ----------------------------------------------------------------------------
def conv_masks(H, W, dtype=jnp.bfloat16):
    """(9, H*W) validity masks for a 3x3 'same' conv on a row-major flat image."""
    idx = jnp.arange(H * W, dtype=jnp.int32)
    hh = idx // W
    ww = idx % W
    rows = []
    for kh in range(3):
        for kw in range(3):
            ok = ((hh + (kh - 1) >= 0) & (hh + (kh - 1) < H) &
                  (ww + (kw - 1) >= 0) & (ww + (kw - 1) < W))
            rows.append(ok)
    return jnp.stack(rows, axis=0).astype(dtype)


def dyconv_block(x, p, M, MT, attn_temp=30.0):
    """DyConvBlock: dynamic per-sample 3x3 conv + GroupNorm(8) + LeakyReLU."""
    B, Cin, H, W = x.shape
    num_dy, Cout = p["weights"].shape[0], p["weights"].shape[1]
    HW = H * W
    P = W + 1

    # tiny attention branch (microscopic; plain JAX)
    xf = x.astype(jnp.float32)
    pooled = jnp.mean(xf, axis=(2, 3))                            # (B, Cin)
    h = jax.nn.relu(pooled @ p["attn_w1"].T)
    scores = h @ p["attn_w2"].T + p["attn_b2"]
    attn = jax.nn.softmax(scores / attn_temp, axis=1)
    filt = (attn @ p["weights"].reshape(num_dy, -1)).reshape(B, Cout, Cin, 3, 3)
    filt = jnp.transpose(filt, (0, 3, 4, 1, 2)).reshape(B, 9, Cout, Cin)
    filt = filt.astype(jnp.bfloat16)

    xflat = x.reshape(B, Cin, HW).astype(jnp.bfloat16)
    xpad = jnp.pad(xflat, ((0, 0), (0, 0), (P, P)))               # (B, Cin, HW+2P)
    masks = conv_masks(H, W)

    out = pl.pallas_call(
        _dyconv_gn_kernel(W, HW, Cin, Cout),
        out_shape=jax.ShapeDtypeStruct((B, Cout, HW), jnp.bfloat16),
        grid=(B,),
        in_specs=[
            pl.BlockSpec((1, Cin, HW + 2 * P), lambda b: (b, 0, 0)),
            pl.BlockSpec((1, 9, Cout, Cin), lambda b: (b, 0, 0, 0)),
            pl.BlockSpec((9, HW), lambda b: (0, 0)),
            pl.BlockSpec((8, Cout), lambda b: (0, 0)),
            pl.BlockSpec((Cout, 8), lambda b: (0, 0)),
            pl.BlockSpec((Cout, 1), lambda b: (0, 0)),
            pl.BlockSpec((Cout, 1), lambda b: (0, 0)),
        ],
        out_specs=pl.BlockSpec((1, Cout, HW), lambda b: (b, 0, 0)),
        compiler_params=pltpu.CompilerParams(dimension_semantics=("parallel",)),
    )(xpad, filt, masks, M, MT, p["gn_gamma"], p["gn_beta"])
    return out.reshape(B, Cout, H, W)


def conv_transpose_2x2(x, waug, Cout):
    """ConvTranspose2d(k=2, s=2) as one matmul with batch on the lane axis."""
    B, Cin, H, W = x.shape
    L = B * H * W
    xflat = jnp.transpose(x, (1, 0, 2, 3)).reshape(Cin, L).astype(jnp.bfloat16)
    xaug = jnp.concatenate([xflat, jnp.ones((1, L), jnp.bfloat16)], axis=0)
    y = pl.pallas_call(
        _matmul_kernel,
        out_shape=jax.ShapeDtypeStruct((4 * Cout, L), jnp.bfloat16),
        grid=(1,),
        in_specs=[pl.BlockSpec((Cin + 1, L), lambda i: (0, 0)),
                  pl.BlockSpec((4 * Cout, Cin + 1), lambda i: (0, 0))],
        out_specs=pl.BlockSpec((4 * Cout, L), lambda i: (0, 0)),
        compiler_params=pltpu.CompilerParams(dimension_semantics=("arbitrary",)),
    )(xaug, waug)
    # pixel-shuffle rearrangement back to NCHW (plain JAX glue)
    y = y.reshape(Cout, 2, 2, B, H, W)
    return jnp.transpose(y, (3, 0, 4, 1, 5, 2)).reshape(B, Cout, 2 * H, 2 * W)


def decoder_stage(xcat, d, out_w=None, out_b=None):
    """Fused MultiCNNBlock (+ optional OutputBlock), batch folded into lanes."""
    B, C2, H, W = xcat.shape
    C = C2 // 2
    HW = H * W
    L = B * HW
    P = W + 1

    xflat = jnp.transpose(xcat, (1, 0, 2, 3)).reshape(C2, L).astype(jnp.bfloat16)
    xpad = jnp.pad(xflat, ((0, 0), (P, P)))                       # (C2, L + 2P)
    masks = jnp.tile(conv_masks(H, W), (1, B))                    # (9, L)

    has_out = out_w is not None
    nc = out_w.shape[0] if has_out else None

    in_specs = [
        pl.BlockSpec((C2, L + 2 * P), lambda i: (0, 0)),
        pl.BlockSpec((9, C, C2), lambda i: (0, 0, 0)),
        pl.BlockSpec((C, 1), lambda i: (0, 0)),
        pl.BlockSpec((9, C, C), lambda i: (0, 0, 0)),
        pl.BlockSpec((C, 1), lambda i: (0, 0)),
        pl.BlockSpec((9, L), lambda i: (0, 0)),
    ]
    args = [xpad, d["conv1_w"], d["conv1_b"], d["conv2_w"], d["conv2_b"], masks]
    if has_out:
        in_specs += [pl.BlockSpec((nc, C), lambda i: (0, 0)),
                     pl.BlockSpec((nc, 1), lambda i: (0, 0))]
        args += [out_w, out_b]
        out_c, out_dtype = nc, jnp.float32
    else:
        out_c, out_dtype = C, jnp.bfloat16

    y = pl.pallas_call(
        _dec_stage_kernel(W, L, C2, C, nc),
        out_shape=jax.ShapeDtypeStruct((out_c, L), out_dtype),
        grid=(1,),
        in_specs=in_specs,
        out_specs=pl.BlockSpec((out_c, L), lambda i: (0, 0)),
        scratch_shapes=[pltpu.VMEM((C, L + 2 * P), jnp.bfloat16)],
        compiler_params=pltpu.CompilerParams(dimension_semantics=("arbitrary",)),
    )(*args)
    return jnp.transpose(y.reshape(out_c, B, H, W), (1, 0, 2, 3))


def max_pool_2x2(x):
    B, C, H, W = x.shape
    return x.reshape(B, C, H // 2, 2, W // 2, 2).max(axis=(3, 5))


def thin_dy_unet_forward(x, params):
    size = params["size"]
    C = params["C"]
    M, MT = params["gn_M"], params["gn_MT"]

    routes = []
    # ---- Encoder ----
    for i in range(size):
        x = dyconv_block(x, params["enc"][i], M, MT)
        routes.append(x)
        x = max_pool_2x2(x)
    x = dyconv_block(x, params["enc"][size], M, MT)   # bottleneck (skip is dropped)
    # ---- Decoder ----
    for i in range(size):
        d = params["dec"][i]
        x = conv_transpose_2x2(x, d["up_waug"], C)
        skip = routes.pop(-1)
        xcat = jnp.concatenate([x, skip], axis=1)
        last = (i == size - 1)
        x = decoder_stage(xcat, d,
                          out_w=params["out_w"] if last else None,
                          out_b=params["out_b"] if last else None)
    return x


# ----------------------------------------------------------------------------
# Deterministic parameter init (shapes follow the PyTorch module __init__)
# ----------------------------------------------------------------------------
def init_params(key, in_channels=4, C=16, num_class=3, size=2, num_dy=2, k=3):
    keys = jax.random.split(key, 64)
    it = iter(range(64))

    def nk():
        return keys[next(it)]

    # hoisted GroupNorm group-assignment matrices (feedback: no in-kernel iota)
    G = 8
    gs = C // G
    ch = jnp.arange(C)
    M = (ch[None, :] // gs == jnp.arange(G)[:, None]).astype(jnp.float32)   # (G, C)
    MT = jnp.transpose(M)                                                    # (C, G)

    def dyconv_params(cin, cout):
        hidden = num_dy if cin == 3 else int(cin * 0.25) + 1
        return dict(
            attn_w1=jax.random.normal(nk(), (hidden, cin), jnp.float32) * 0.1,
            attn_w2=jax.random.normal(nk(), (num_dy, hidden), jnp.float32) * 0.1,
            attn_b2=jax.random.normal(nk(), (num_dy,), jnp.float32) * 0.1,
            weights=jax.random.normal(nk(), (num_dy, cout, cin, k, k), jnp.float32),
            gn_gamma=jnp.ones((cout, 1), jnp.float32),
            gn_beta=jnp.zeros((cout, 1), jnp.float32),
        )

    enc = []
    cin = in_channels
    for _ in range(size):
        enc.append(dyconv_params(cin, C))
        cin = C
    enc.append(dyconv_params(C, C))

    def conv_taps(w):  # (co, ci, 3, 3) -> (9, co, ci) bf16
        return jnp.transpose(w, (2, 3, 0, 1)).reshape(
            9, w.shape[0], w.shape[1]).astype(jnp.bfloat16)

    dec = []
    for _ in range(size):
        up_w = jax.random.normal(nk(), (C, C, 2, 2), jnp.float32) * 0.1
        up_b = jax.random.normal(nk(), (C,), jnp.float32) * 0.1
        Wt = jnp.transpose(up_w, (1, 2, 3, 0)).reshape(4 * C, C)   # rows = (co,di,dj)
        waug = jnp.concatenate(
            [Wt, jnp.repeat(up_b, 4)[:, None]], axis=1).astype(jnp.bfloat16)
        # TODO(synk): MultiCNNBlock source not provided; using standard UNet block
        #             of n_conv x (Conv2d 3x3 + ReLU) with channels 2C -> C -> C.
        w1 = jax.random.normal(nk(), (C, 2 * C, 3, 3), jnp.float32) * 0.05
        b1 = jax.random.normal(nk(), (C,), jnp.float32) * 0.05
        w2 = jax.random.normal(nk(), (C, C, 3, 3), jnp.float32) * 0.05
        b2 = jax.random.normal(nk(), (C,), jnp.float32) * 0.05
        dec.append(dict(
            up_waug=waug,
            conv1_w=conv_taps(w1), conv1_b=b1[:, None],
            conv2_w=conv_taps(w2), conv2_b=b2[:, None],
        ))

    # TODO(synk): OutputBlock source not provided; using a plain 1x1 conv.
    out_w = jax.random.normal(nk(), (num_class, C, 1, 1), jnp.float32) * 0.1
    out_b = jax.random.normal(nk(), (num_class,), jnp.float32) * 0.1

    return dict(
        size=size, C=C, gn_M=M, gn_MT=MT, enc=enc, dec=dec,
        out_w=out_w[:, :, 0, 0].astype(jnp.bfloat16),
        out_b=out_b[:, None],
    )


# ----------------------------------------------------------------------------
if __name__ == "__main__":
    key = jax.random.PRNGKey(0)
    pkey, xkey = jax.random.split(key)

    # ThinDyUNet(in_channels=4, start_out_channels=16, num_class=3, size=2,
    #            padding=1, upsample=False)
    params = init_params(pkey, in_channels=4, C=16, num_class=3, size=2)
    x = jax.random.normal(xkey, (2, 4, 16, 16), jnp.float32)   # NCHW

    fwd = jax.jit(functools.partial(thin_dy_unet_forward, params=params))
    out = fwd(x)
    jax.block_until_ready(out)

    assert out.shape == (2, 3, 16, 16), out.shape
    assert jnp.all(jnp.isfinite(out))
    print("KERNEL_OK")
</pallas_src>

<mosaic_0001>
module attributes {stable_mosaic.version = 11 : i64} {
  func.func @kernel(%arg0: i32, %arg1: memref<1x4x290xbf16, #tpu.memory_space<vmem>>, %arg2: memref<1x9x16x4xbf16, #tpu.memory_space<vmem>>, %arg3: memref<9x256xbf16, #tpu.memory_space<vmem>>, %arg4: memref<8x16xf32, #tpu.memory_space<vmem>>, %arg5: memref<16x8xf32, #tpu.memory_space<vmem>>, %arg6: memref<16x1xf32, #tpu.memory_space<vmem>>, %arg7: memref<16x1xf32, #tpu.memory_space<vmem>>, %arg8: memref<1x16x256xbf16, #tpu.memory_space<vmem>>) attributes {dimension_semantics = [#tpu.dimension_semantics<parallel>], iteration_bounds = array<i64: 2>, scalar_prefetch = 0 : i64, scratch_operands = 0 : i64, tpu.core_type = #tpu.core_type<tc>, window_params = [{transform_indices = @transform_0, window_bounds = array<i64: 1, 4, 290>}, {transform_indices = @transform_1, window_bounds = array<i64: 1, 9, 16, 4>}, {pipeline_mode = #tpu.pipeline_mode<synchronous>, transform_indices = @transform_2, window_bounds = array<i64: 9, 256>}, {pipeline_mode = #tpu.pipeline_mode<synchronous>, transform_indices = @transform_3, window_bounds = array<i64: 8, 16>}, {pipeline_mode = #tpu.pipeline_mode<synchronous>, transform_indices = @transform_4, window_bounds = array<i64: 16, 8>}, {pipeline_mode = #tpu.pipeline_mode<synchronous>, transform_indices = @transform_5, window_bounds = array<i64: 16, 1>}, {pipeline_mode = #tpu.pipeline_mode<synchronous>, transform_indices = @transform_6, window_bounds = array<i64: 16, 1>}, {transform_indices = @transform_7, window_bounds = array<i64: 1, 16, 256>}]} {
    %c0 = arith.constant 0 : index
    %c0_0 = arith.constant 0 : index
    %c0_1 = arith.constant 0 : index
    %0 = vector.load %arg1[%c0, %c0_0, %c0_1] : memref<1x4x290xbf16, #tpu.memory_space<vmem>>, vector<1x4x290xbf16>
    %1 = vector.shape_cast %0 : vector<1x4x290xbf16> to vector<4x290xbf16>
    %c0_2 = arith.constant 0 : index
    %c0_3 = arith.constant 0 : index
    %c0_4 = arith.constant 0 : index
    %c0_5 = arith.constant 0 : index
    %2 = vector.load %arg2[%c0_2, %c0_3, %c0_4, %c0_5] : memref<1x9x16x4xbf16, #tpu.memory_space<vmem>>, vector<1x9x16x4xbf16>
    %3 = vector.shape_cast %2 : vector<1x9x16x4xbf16> to vector<9x16x4xbf16>
    %c0_6 = arith.constant 0 : index
    %c0_7 = arith.constant 0 : index
    %4 = vector.load %arg3[%c0_6, %c0_7] : memref<9x256xbf16, #tpu.memory_space<vmem>>, vector<9x256xbf16>
    %cst = arith.constant 0.000000e+00 : f32
    %5 = vector.broadcast %cst : f32 to vector<16x256xf32>
    %6 = vector.extract_strided_slice %1 {offsets = [0, 0], sizes = [4, 256], strides = [1, 1]} : vector<4x290xbf16> to vector<4x256xbf16>
    %7 = vector.extract_strided_slice %4 {offsets = [0, 0], sizes = [1, 256], strides = [1, 1]} : vector<9x256xbf16> to vector<1x256xbf16>
    %8 = vector.broadcast %7 : vector<1x256xbf16> to vector<4x256xbf16>
    %9 = arith.mulf %6, %8 : vector<4x256xbf16>
    %10 = vector.extract_strided_slice %3 {offsets = [0, 0, 0], sizes = [1, 16, 4], strides = [1, 1, 1]} : vector<9x16x4xbf16> to vector<1x16x4xbf16>
    %11 = vector.shape_cast %10 : vector<1x16x4xbf16> to vector<16x4xbf16>
    %cst_8 = arith.constant dense<0.000000e+00> : vector<16x256xf32>
    %12 = tpu.matmul %11, %9, %cst_8 {dimension_numbers = #tpu.dot_dimension_numbers<[1], [0], [0], [1], [0, 0, 1, 1], [], []>} : vector<16x4xbf16>, vector<4x256xbf16>, vector<16x256xf32> -> vector<16x256xf32>
    %13 = arith.addf %5, %12 : vector<16x256xf32>
    %14 = vector.extract_strided_slice %1 {offsets = [0, 1], sizes = [4, 256], strides = [1, 1]} : vector<4x290xbf16> to vector<4x256xbf16>
    %15 = vector.extract_strided_slice %4 {offsets = [1, 0], sizes = [1, 256], strides = [1, 1]} : vector<9x256xbf16> to vector<1x256xbf16>
    %16 = vector.broadcast %15 : vector<1x256xbf16> to vector<4x256xbf16>
    %17 = arith.mulf %14, %16 : vector<4x256xbf16>
    %18 = vector.extract_strided_slice %3 {offsets = [1, 0, 0], sizes = [1, 16, 4], strides = [1, 1, 1]} : vector<9x16x4xbf16> to vector<1x16x4xbf16>
    %19 = vector.shape_cast %18 : vector<1x16x4xbf16> to vector<16x4xbf16>
    %cst_9 = arith.constant dense<0.000000e+00> : vector<16x256xf32>
    %20 = tpu.matmul %19, %17, %cst_9 {dimension_numbers = #tpu.dot_dimension_numbers<[1], [0], [0], [1], [0, 0, 1, 1], [], []>} : vector<16x4xbf16>, vector<4x256xbf16>, vector<16x256xf32> -> vector<16x256xf32>
    %21 = arith.addf %13, %20 : vector<16x256xf32>
    %22 = vector.extract_strided_slice %1 {offsets = [0, 2], sizes = [4, 256], strides = [1, 1]} : vector<4x290xbf16> to vector<4x256xbf16>
    %23 = vector.extract_strided_slice %4 {offsets = [2, 0], sizes = [1, 256], strides = [1, 1]} : vector<9x256xbf16> to vector<1x256xbf16>
    %24 = vector.broadcast %23 : vector<1x256xbf16> to vector<4x256xbf16>
    %25 = arith.mulf %22, %24 : vector<4x256xbf16>
    %26 = vector.extract_strided_slice %3 {offsets = [2, 0, 0], sizes = [1, 16, 4], strides = [1, 1, 1]} : vector<9x16x4xbf16> to vector<1x16x4xbf16>
    %27 = vector.shape_cast %26 : vector<1x16x4xbf16> to vector<16x4xbf16>
    %cst_10 = arith.constant dense<0.000000e+00> : vector<16x256xf32>
    %28 = tpu.matmul %27, %25, %cst_10 {dimension_numbers = #tpu.dot_dimension_numbers<[1], [0], [0], [1], [0, 0, 1, 1], [], []>} : vector<16x4xbf16>, vector<4x256xbf16>, vector<16x256xf32> -> vector<16x256xf32>
    %29 = arith.addf %21, %28 : vector<16x256xf32>
    %30 = vector.extract_strided_slice %1 {offsets = [0, 16], sizes = [4, 256], strides = [1, 1]} : vector<4x290xbf16> to vector<4x256xbf16>
    %31 = vector.extract_strided_slice %4 {offsets = [3, 0], sizes = [1, 256], strides = [1, 1]} : vector<9x256xbf16> to vector<1x256xbf16>
    %32 = vector.broadcast %31 : vector<1x256xbf16> to vector<4x256xbf16>
    %33 = arith.mulf %30, %32 : vector<4x256xbf16>
    %34 = vector.extract_strided_slice %3 {offsets = [3, 0, 0], sizes = [1, 16, 4], strides = [1, 1, 1]} : vector<9x16x4xbf16> to vector<1x16x4xbf16>
    %35 = vector.shape_cast %34 : vector<1x16x4xbf16> to vector<16x4xbf16>
    %cst_11 = arith.constant dense<0.000000e+00> : vector<16x256xf32>
    %36 = tpu.matmul %35, %33, %cst_11 {dimension_numbers = #tpu.dot_dimension_numbers<[1], [0], [0], [1], [0, 0, 1, 1], [], []>} : vector<16x4xbf16>, vector<4x256xbf16>, vector<16x256xf32> -> vector<16x256xf32>
    %37 = arith.addf %29, %36 : vector<16x256xf32>
    %38 = vector.extract_strided_slice %1 {offsets = [0, 17], sizes = [4, 256], strides = [1, 1]} : vector<4x290xbf16> to vector<4x256xbf16>
    %39 = vector.extract_strided_slice %4 {offsets = [4, 0], sizes = [1, 256], strides = [1, 1]} : vector<9x256xbf16> to vector<1x256xbf16>
    %40 = vector.broadcast %39 : vector<1x256xbf16> to vector<4x256xbf16>
    %41 = arith.mulf %38, %40 : vector<4x256xbf16>
    %42 = vector.extract_strided_slice %3 {offsets = [4, 0, 0], sizes = [1, 16, 4], strides = [1, 1, 1]} : vector<9x16x4xbf16> to vector<1x16x4xbf16>
    %43 = vector.shape_cast %42 : vector<1x16x4xbf16> to vector<16x4xbf16>
    %cst_12 = arith.constant dense<0.000000e+00> : vector<16x256xf32>
    %44 = tpu.matmul %43, %41, %cst_12 {dimension_numbers = #tpu.dot_dimension_numbers<[1], [0], [0], [1], [0, 0, 1, 1], [], []>} : vector<16x4xbf16>, vector<4x256xbf16>, vector<16x256xf32> -> vector<16x256xf32>
    %45 = arith.addf %37, %44 : vector<16x256xf32>
    %46 = vector.extract_strided_slice %1 {offsets = [0, 18], sizes = [4, 256], strides = [1, 1]} : vector<4x290xbf16> to vector<4x256xbf16>
    %47 = vector.extract_strided_slice %4 {offsets = [5, 0], sizes = [1, 256], strides = [1, 1]} : vector<9x256xbf16> to vector<1x256xbf16>
    %48 = vector.broadcast %47 : vector<1x256xbf16> to vector<4x256xbf16>
    %49 = arith.mulf %46, %48 : vector<4x256xbf16>
    %50 = vector.extract_strided_slice %3 {offsets = [5, 0, 0], sizes = [1, 16, 4], strides = [1, 1, 1]} : vector<9x16x4xbf16> to vector<1x16x4xbf16>
    %51 = vector.shape_cast %50 : vector<1x16x4xbf16> to vector<16x4xbf16>
    %cst_13 = arith.constant dense<0.000000e+00> : vector<16x256xf32>
    %52 = tpu.matmul %51, %49, %cst_13 {dimension_numbers = #tpu.dot_dimension_numbers<[1], [0], [0], [1], [0, 0, 1, 1], [], []>} : vector<16x4xbf16>, vector<4x256xbf16>, vector<16x256xf32> -> vector<16x256xf32>
    %53 = arith.addf %45, %52 : vector<16x256xf32>
    %54 = vector.extract_strided_slice %1 {offsets = [0, 32], sizes = [4, 256], strides = [1, 1]} : vector<4x290xbf16> to vector<4x256xbf16>
    %55 = vector.extract_strided_slice %4 {offsets = [6, 0], sizes = [1, 256], strides = [1, 1]} : vector<9x256xbf16> to vector<1x256xbf16>
    %56 = vector.broadcast %55 : vector<1x256xbf16> to vector<4x256xbf16>
    %57 = arith.mulf %54, %56 : vector<4x256xbf16>
    %58 = vector.extract_strided_slice %3 {offsets = [6, 0, 0], sizes = [1, 16, 4], strides = [1, 1, 1]} : vector<9x16x4xbf16> to vector<1x16x4xbf16>
    %59 = vector.shape_cast %58 : vector<1x16x4xbf16> to vector<16x4xbf16>
    %cst_14 = arith.constant dense<0.000000e+00> : vector<16x256xf32>
    %60 = tpu.matmul %59, %57, %cst_14 {dimension_numbers = #tpu.dot_dimension_numbers<[1], [0], [0], [1], [0, 0, 1, 1], [], []>} : vector<16x4xbf16>, vector<4x256xbf16>, vector<16x256xf32> -> vector<16x256xf32>
    %61 = arith.addf %53, %60 : vector<16x256xf32>
    %62 = vector.extract_strided_slice %1 {offsets = [0, 33], sizes = [4, 256], strides = [1, 1]} : vector<4x290xbf16> to vector<4x256xbf16>
    %63 = vector.extract_strided_slice %4 {offsets = [7, 0], sizes = [1, 256], strides = [1, 1]} : vector<9x256xbf16> to vector<1x256xbf16>
    %64 = vector.broadcast %63 : vector<1x256xbf16> to vector<4x256xbf16>
    %65 = arith.mulf %62, %64 : vector<4x256xbf16>
    %66 = vector.extract_strided_slice %3 {offsets = [7, 0, 0], sizes = [1, 16, 4], strides = [1, 1, 1]} : vector<9x16x4xbf16> to vector<1x16x4xbf16>
    %67 = vector.shape_cast %66 : vector<1x16x4xbf16> to vector<16x4xbf16>
    %cst_15 = arith.constant dense<0.000000e+00> : vector<16x256xf32>
    %68 = tpu.matmul %67, %65, %cst_15 {dimension_numbers = #tpu.dot_dimension_numbers<[1], [0], [0], [1], [0, 0, 1, 1], [], []>} : vector<16x4xbf16>, vector<4x256xbf16>, vector<16x256xf32> -> vector<16x256xf32>
    %69 = arith.addf %61, %68 : vector<16x256xf32>
    %70 = vector.extract_strided_slice %1 {offsets = [0, 34], sizes = [4, 256], strides = [1, 1]} : vector<4x290xbf16> to vector<4x256xbf16>
    %71 = vector.extract_strided_slice %4 {offsets = [8, 0], sizes = [1, 256], strides = [1, 1]} : vector<9x256xbf16> to vector<1x256xbf16>
    %72 = vector.broadcast %71 : vector<1x256xbf16> to vector<4x256xbf16>
    %73 = arith.mulf %70, %72 : vector<4x256xbf16>
    %74 = vector.extract_strided_slice %3 {offsets = [8, 0, 0], sizes = [1, 16, 4], strides = [1, 1, 1]} : vector<9x16x4xbf16> to vector<1x16x4xbf16>
    %75 = vector.shape_cast %74 : vector<1x16x4xbf16> to vector<16x4xbf16>
    %cst_16 = arith.constant dense<0.000000e+00> : vector<16x256xf32>
    %76 = tpu.matmul %75, %73, %cst_16 {dimension_numbers = #tpu.dot_dimension_numbers<[1], [0], [0], [1], [0, 0, 1, 1], [], []>} : vector<16x4xbf16>, vector<4x256xbf16>, vector<16x256xf32> -> vector<16x256xf32>
    %77 = arith.addf %69, %76 : vector<16x256xf32>
    %cst_17 = arith.constant dense<0.000000e+00> : vector<16xf32>
    %78 = vector.multi_reduction <add>, %77, %cst_17 [1] : vector<16x256xf32> to vector<16xf32>
    %79 = vector.shape_cast %78 : vector<16xf32> to vector<16x1xf32>
    %80 = arith.mulf %77, %77 : vector<16x256xf32>
    %cst_18 = arith.constant dense<0.000000e+00> : vector<16xf32>
    %81 = vector.multi_reduction <add>, %80, %cst_18 [1] : vector<16x256xf32> to vector<16xf32>
    %82 = vector.shape_cast %81 : vector<16xf32> to vector<16x1xf32>
    %c0_19 = arith.constant 0 : index
    %c0_20 = arith.constant 0 : index
    %83 = vector.load %arg4[%c0_19, %c0_20] : memref<8x16xf32, #tpu.memory_space<vmem>>, vector<8x16xf32>
    %cst_21 = arith.constant dense<0.000000e+00> : vector<8x1xf32>
    %84 = tpu.matmul %83, %79, %cst_21 {dimension_numbers = #tpu.dot_dimension_numbers<[1], [0], [0], [1], [0, 0, 1, 1], [], []>} : vector<8x16xf32>, vector<16x1xf32>, vector<8x1xf32> -> vector<8x1xf32>
    %c0_22 = arith.constant 0 : index
    %c0_23 = arith.constant 0 : index
    %85 = vector.load %arg4[%c0_22, %c0_23] : memref<8x16xf32, #tpu.memory_space<vmem>>, vector<8x16xf32>
    %cst_24 = arith.constant dense<0.000000e+00> : vector<8x1xf32>
    %86 = tpu.matmul %85, %82, %cst_24 {dimension_numbers = #tpu.dot_dimension_numbers<[1], [0], [0], [1], [0, 0, 1, 1], [], []>} : vector<8x16xf32>, vector<16x1xf32>, vector<8x1xf32> -> vector<8x1xf32>
    %cst_25 = arith.constant 0.001953125 : f32
    %87 = vector.broadcast %cst_25 : f32 to vector<8x1xf32>
    %88 = arith.mulf %84, %87 : vector<8x1xf32>
    %cst_26 = arith.constant 0.001953125 : f32
    %89 = vector.broadcast %cst_26 : f32 to vector<8x1xf32>
    %90 = arith.mulf %86, %89 : vector<8x1xf32>
    %91 = arith.mulf %88, %88 : vector<8x1xf32>
    %92 = arith.subf %90, %91 : vector<8x1xf32>
    %cst_27 = arith.constant 9.99999974E-6 : f32
    %93 = vector.broadcast %cst_27 : f32 to vector<8x1xf32>
    %94 = arith.addf %92, %93 : vector<8x1xf32>
    %95 = math.rsqrt %94 : vector<8x1xf32>
    %c0_28 = arith.constant 0 : index
    %c0_29 = arith.constant 0 : index
    %96 = vector.load %arg5[%c0_28, %c0_29] : memref<16x8xf32, #tpu.memory_space<vmem>>, vector<16x8xf32>
    %cst_30 = arith.constant dense<0.000000e+00> : vector<16x1xf32>
    %97 = tpu.matmul %96, %88, %cst_30 {dimension_numbers = #tpu.dot_dimension_numbers<[1], [0], [0], [1], [0, 0, 1, 1], [], []>} : vector<16x8xf32>, vector<8x1xf32>, vector<16x1xf32> -> vector<16x1xf32>
    %c0_31 = arith.constant 0 : index
    %c0_32 = arith.constant 0 : index
    %98 = vector.load %arg5[%c0_31, %c0_32] : memref<16x8xf32, #tpu.memory_space<vmem>>, vector<16x8xf32>
    %cst_33 = arith.constant dense<0.000000e+00> : vector<16x1xf32>
    %99 = tpu.matmul %98, %95, %cst_33 {dimension_numbers = #tpu.dot_dimension_numbers<[1], [0], [0], [1], [0, 0, 1, 1], [], []>} : vector<16x8xf32>, vector<8x1xf32>, vector<16x1xf32> -> vector<16x1xf32>
    %100 = vector.broadcast %97 : vector<16x1xf32> to vector<16x256xf32>
    %101 = arith.subf %77, %100 : vector<16x256xf32>
    %c0_34 = arith.constant 0 : index
    %c0_35 = arith.constant 0 : index
    %102 = vector.load %arg6[%c0_34, %c0_35] : memref<16x1xf32, #tpu.memory_space<vmem>>, vector<16x1xf32>
    %103 = arith.mulf %99, %102 : vector<16x1xf32>
    %104 = vector.broadcast %103 : vector<16x1xf32> to vector<16x256xf32>
    %105 = arith.mulf %101, %104 : vector<16x256xf32>
    %c0_36 = arith.constant 0 : index
    %c0_37 = arith.constant 0 : index
    %106 = vector.load %arg7[%c0_36, %c0_37] : memref<16x1xf32, #tpu.memory_space<vmem>>, vector<16x1xf32>
    %107 = vector.broadcast %106 : vector<16x1xf32> to vector<16x256xf32>
    %108 = arith.addf %105, %107 : vector<16x256xf32>
    %cst_38 = arith.constant 0.000000e+00 : f32
    %109 = vector.broadcast %cst_38 : f32 to vector<16x256xf32>
    %110 = arith.cmpf oge, %108, %109 : vector<16x256xf32>
    %cst_39 = arith.constant 0.00999999977 : f32
    %111 = vector.broadcast %cst_39 : f32 to vector<16x256xf32>
    %112 = arith.mulf %111, %108 : vector<16x256xf32>
    %113 = arith.select %110, %108, %112 : vector<16x256xi1>, vector<16x256xf32>
    %114 = arith.truncf %113 : vector<16x256xf32> to vector<16x256xbf16>
    %c0_40 = arith.constant 0 : index
    %c0_41 = arith.constant 0 : index
    %c0_42 = arith.constant 0 : index
    %115 = vector.load %arg8[%c0_40, %c0_41, %c0_42] : memref<1x16x256xbf16, #tpu.memory_space<vmem>>, vector<1x16x256xbf16>
    %116 = vector.shape_cast %115 : vector<1x16x256xbf16> to vector<16x256xbf16>
    %117 = vector.shape_cast %114 : vector<16x256xbf16> to vector<1x16x256xbf16>
    tpu.vector_store %arg8[%c0_40, %c0_41, %c0_42], %117 {strides = array<i32>} : memref<1x16x256xbf16, #tpu.memory_space<vmem>>, vector<1x16x256xbf16>,
    return
  }
  func.func @transform_0(%arg0: i32) -> (i32, i32, i32) {
    %c0_i32 = arith.constant 0 : i32
    %c0_i32_0 = arith.constant 0 : i32
    %c0_i32_1 = arith.constant 0 : i32
    return %arg0, %c0_i32, %c0_i32_0 : i32, i32, i32
  }
  func.func @transform_1(%arg0: i32) -> (i32, i32, i32, i32) {
    %c0_i32 = arith.constant 0 : i32
    %c0_i32_0 = arith.constant 0 : i32
    %c0_i32_1 = arith.constant 0 : i32
    %c0_i32_2 = arith.constant 0 : i32
    return %arg0, %c0_i32, %c0_i32_0, %c0_i32_1 : i32, i32, i32, i32
  }
  func.func @transform_2(%arg0: i32) -> (i32, i32) {
    %c0_i32 = arith.constant 0 : i32
    %c0_i32_0 = arith.constant 0 : i32
    %c0_i32_1 = arith.constant 0 : i32
    return %c0_i32, %c0_i32_0 : i32, i32
  }
  func.func @transform_3(%arg0: i32) -> (i32, i32) {
    %c0_i32 = arith.constant 0 : i32
    %c0_i32_0 = arith.constant 0 : i32
    %c0_i32_1 = arith.constant 0 : i32
    return %c0_i32, %c0_i32_0 : i32, i32
  }
  func.func @transform_4(%arg0: i32) -> (i32, i32) {
    %c0_i32 = arith.constant 0 : i32
    %c0_i32_0 = arith.constant 0 : i32
    %c0_i32_1 = arith.constant 0 : i32
    return %c0_i32, %c0_i32_0 : i32, i32
  }
  func.func @transform_5(%arg0: i32) -> (i32, i32) {
    %c0_i32 = arith.constant 0 : i32
    %c0_i32_0 = arith.constant 0 : i32
    %c0_i32_1 = arith.constant 0 : i32
    return %c0_i32, %c0_i32_0 : i32, i32
  }
  func.func @transform_6(%arg0: i32) -> (i32, i32) {
    %c0_i32 = arith.constant 0 : i32
    %c0_i32_0 = arith.constant 0 : i32
    %c0_i32_1 = arith.constant 0 : i32
    return %c0_i32, %c0_i32_0 : i32, i32
  }
  func.func @transform_7(%arg0: i32) -> (i32, i32, i32) {
    %c0_i32 = arith.constant 0 : i32
    %c0_i32_0 = arith.constant 0 : i32
    %c0_i32_1 = arith.constant 0 : i32
    return %arg0, %c0_i32, %c0_i32_0 : i32, i32, i32
  }
}

module attributes {stable_mosaic.version = 11 : i64} {
  func.func @kernel(%arg0: i32, %arg1: memref<1x16x82xbf16, #tpu.memory_space<vmem>>, %arg2: memref<1x9x16x16xbf16, #tpu.memory_space<vmem>>, %arg3: memref<9x64xbf16, #tpu.memory_space<vmem>>, %arg4: memref<8x16xf32, #tpu.memory_space<vmem>>, %arg5: memref<16x8xf32, #tpu.memory_space<vmem>>, %arg6: memref<16x1xf32, #tpu.memory_space<vmem>>, %arg7: memref<16x1xf32, #tpu.memory_space<vmem>>, %arg8: memref<1x16x64xbf16, #tpu.memory_space<vmem>>) attributes {dimension_semantics = [#tpu.dimension_semantics<parallel>], iteration_bounds = array<i64: 2>, scalar_prefetch = 0 : i64, scratch_operands = 0 : i64, tpu.core_type = #tpu.core_type<tc>, window_params = [{transform_indices = @transform_0, window_bounds = array<i64: 1, 16, 82>}, {transform_indices = @transform_1, window_bounds = array<i64: 1, 9, 16, 16>}, {pipeline_mode = #tpu.pipeline_mode<synchronous>, transform_indices = @transform_2, window_bounds = array<i64: 9, 64>}, {pipeline_mode = #tpu.pipeline_mode<synchronous>, transform_indices = @transform_3, window_bounds = array<i64: 8, 16>}, {pipeline_mode = #tpu.pipeline_mode<synchronous>, transform_indices = @transform_4, window_bounds = array<i64: 16, 8>}, {pipeline_mode = #tpu.pipeline_mode<synchronous>, transform_indices = @transform_5, window_bounds = array<i64: 16, 1>}, {pipeline_mode = #tpu.pipeline_mode<synchronous>, transform_indices = @transform_6, window_bounds = array<i64: 16, 1>}, {transform_indices = @transform_7, window_bounds = array<i64: 1, 16, 64>}]} {
    %c0 = arith.constant 0 : index
    %c0_0 = arith.constant 0 : index
    %c0_1 = arith.constant 0 : index
    %0 = vector.load %arg1[%c0, %c0_0, %c0_1] : memref<1x16x82xbf16, #tpu.memory_space<vmem>>, vector<1x16x82xbf16>
    %1 = vector.shape_cast %0 : vector<1x16x82xbf16> to vector<16x82xbf16>
    %c0_2 = arith.constant 0 : index
    %c0_3 = arith.constant 0 : index
    %c0_4 = arith.constant 0 : index
    %c0_5 = arith.constant 0 : index
    %2 = vector.load %arg2[%c0_2, %c0_3, %c0_4, %c0_5] : memref<1x9x16x16xbf16, #tpu.memory_space<vmem>>, vector<1x9x16x16xbf16>
    %3 = vector.shape_cast %2 : vector<1x9x16x16xbf16> to vector<9x16x16xbf16>
    %c0_6 = arith.constant 0 : index
    %c0_7 = arith.constant 0 : index
    %4 = vector.load %arg3[%c0_6, %c0_7] : memref<9x64xbf16, #tpu.memory_space<vmem>>, vector<9x64xbf16>
    %cst = arith.constant 0.000000e+00 : f32
    %5 = vector.broadcast %cst : f32 to vector<16x64xf32>
    %6 = vector.extract_strided_slice %1 {offsets = [0, 0], sizes = [16, 64], strides = [1, 1]} : vector<16x82xbf16> to vector<16x64xbf16>
    %7 = vector.extract_strided_slice %4 {offsets = [0, 0], sizes = [1, 64], strides = [1, 1]} : vector<9x64xbf16> to vector<1x64xbf16>
    %8 = vector.broadcast %7 : vector<1x64xbf16> to vector<16x64xbf16>
    %9 = arith.mulf %6, %8 : vector<16x64xbf16>
    %10 = vector.extract_strided_slice %3 {offsets = [0, 0, 0], sizes = [1, 16, 16], strides = [1, 1, 1]} : vector<9x16x16xbf16> to vector<1x16x16xbf16>
    %11 = vector.shape_cast %10 : vector<1x16x16xbf16> to vector<16x16xbf16>
    %cst_8 = arith.constant dense<0.000000e+00> : vector<16x64xf32>
    %12 = tpu.matmul %11, %9, %cst_8 {dimension_numbers = #tpu.dot_dimension_numbers<[1], [0], [0], [1], [0, 0, 1, 1], [], []>} : vector<16x16xbf16>, vector<16x64xbf16>, vector<16x64xf32> -> vector<16x64xf32>
    %13 = arith.addf %5, %12 : vector<16x64xf32>
    %14 = vector.extract_strided_slice %1 {offsets = [0, 1], sizes = [16, 64], strides = [1, 1]} : vector<16x82xbf16> to vector<16x64xbf16>
    %15 = vector.extract_strided_slice %4 {offsets = [1, 0], sizes = [1, 64], strides = [1, 1]} : vector<9x64xbf16> to vector<1x64xbf16>
    %16 = vector.broadcast %15 : vector<1x64xbf16> to vector<16x64xbf16>
    %17 = arith.mulf %14, %16 : vector<16x64xbf16>
    %18 = vector.extract_strided_slice %3 {offsets = [1, 0, 0], sizes = [1, 16, 16], strides = [1, 1, 1]} : vector<9x16x16xbf16> to vector<1x16x16xbf16>
    %19 = vector.shape_cast %18 : vector<1x16x16xbf16> to vector<16x16xbf16>
    %cst_9 = arith.constant dense<0.000000e+00> : vector<16x64xf32>
    %20 = tpu.matmul %19, %17, %cst_9 {dimension_numbers = #tpu.dot_dimension_numbers<[1], [0], [0], [1], [0, 0, 1, 1], [], []>} : vector<16x16xbf16>, vector<16x64xbf16>, vector<16x64xf32> -> vector<16x64xf32>
    %21 = arith.addf %13, %20 : vector<16x64xf32>
    %22 = vector.extract_strided_slice %1 {offsets = [0, 2], sizes = [16, 64], strides = [1, 1]} : vector<16x82xbf16> to vector<16x64xbf16>
    %23 = vector.extract_strided_slice %4 {offsets = [2, 0], sizes = [1, 64], strides = [1, 1]} : vector<9x64xbf16> to vector<1x64xbf16>
    %24 = vector.broadcast %23 : vector<1x64xbf16> to vector<16x64xbf16>
    %25 = arith.mulf %22, %24 : vector<16x64xbf16>
    %26 = vector.extract_strided_slice %3 {offsets = [2, 0, 0], sizes = [1, 16, 16], strides = [1, 1, 1]} : vector<9x16x16xbf16> to vector<1x16x16xbf16>
    %27 = vector.shape_cast %26 : vector<1x16x16xbf16> to vector<16x16xbf16>
    %cst_10 = arith.constant dense<0.000000e+00> : vector<16x64xf32>
    %28 = tpu.matmul %27, %25, %cst_10 {dimension_numbers = #tpu.dot_dimension_numbers<[1], [0], [0], [1], [0, 0, 1, 1], [], []>} : vector<16x16xbf16>, vector<16x64xbf16>, vector<16x64xf32> -> vector<16x64xf32>
    %29 = arith.addf %21, %28 : vector<16x64xf32>
    %30 = vector.extract_strided_slice %1 {offsets = [0, 8], sizes = [16, 64], strides = [1, 1]} : vector<16x82xbf16> to vector<16x64xbf16>
    %31 = vector.extract_strided_slice %4 {offsets = [3, 0], sizes = [1, 64], strides = [1, 1]} : vector<9x64xbf16> to vector<1x64xbf16>
    %32 = vector.broadcast %31 : vector<1x64xbf16> to vector<16x64xbf16>
    %33 = arith.mulf %30, %32 : vector<16x64xbf16>
    %34 = vector.extract_strided_slice %3 {offsets = [3, 0, 0], sizes = [1, 16, 16], strides = [1, 1, 1]} : vector<9x16x16xbf16> to vector<1x16x16xbf16>
    %35 = vector.shape_cast %34 : vector<1x16x16xbf16> to vector<16x16xbf16>
    %cst_11 = arith.constant dense<0.000000e+00> : vector<16x64xf32>
    %36 = tpu.matmul %35, %33, %cst_11 {dimension_numbers = #tpu.dot_dimension_numbers<[1], [0], [0], [1], [0, 0, 1, 1], [], []>} : vector<16x16xbf16>, vector<16x64xbf16>, vector<16x64xf32> -> vector<16x64xf32>
    %37 = arith.addf %29, %36 : vector<16x64xf32>
    %38 = vector.extract_strided_slice %1 {offsets = [0, 9], sizes = [16, 64], strides = [1, 1]} : vector<16x82xbf16> to vector<16x64xbf16>
    %39 = vector.extract_strided_slice %4 {offsets = [4, 0], sizes = [1, 64], strides = [1, 1]} : vector<9x64xbf16> to vector<1x64xbf16>
    %40 = vector.broadcast %39 : vector<1x64xbf16> to vector<16x64xbf16>
    %41 = arith.mulf %38, %40 : vector<16x64xbf16>
    %42 = vector.extract_strided_slice %3 {offsets = [4, 0, 0], sizes = [1, 16, 16], strides = [1, 1, 1]} : vector<9x16x16xbf16> to vector<1x16x16xbf16>
    %43 = vector.shape_cast %42 : vector<1x16x16xbf16> to vector<16x16xbf16>
    %cst_12 = arith.constant dense<0.000000e+00> : vector<16x64xf32>
    %44 = tpu.matmul %43, %41, %cst_12 {dimension_numbers = #tpu.dot_dimension_numbers<[1], [0], [0], [1], [0, 0, 1, 1], [], []>} : vector<16x16xbf16>, vector<16x64xbf16>, vector<16x64xf32> -> vector<16x64xf32>
    %45 = arith.addf %37, %44 : vector<16x64xf32>
    %46 = vector.extract_strided_slice %1 {offsets = [0, 10], sizes = [16, 64], strides = [1, 1]} : vector<16x82xbf16> to vector<16x64xbf16>
    %47 = vector.extract_strided_slice %4 {offsets = [5, 0], sizes = [1, 64], strides = [1, 1]} : vector<9x64xbf16> to vector<1x64xbf16>
    %48 = vector.broadcast %47 : vector<1x64xbf16> to vector<16x64xbf16>
    %49 = arith.mulf %46, %48 : vector<16x64xbf16>
    %50 = vector.extract_strided_slice %3 {offsets = [5, 0, 0], sizes = [1, 16, 16], strides = [1, 1, 1]} : vector<9x16x16xbf16> to vector<1x16x16xbf16>
    %51 = vector.shape_cast %50 : vector<1x16x16xbf16> to vector<16x16xbf16>
    %cst_13 = arith.constant dense<0.000000e+00> : vector<16x64xf32>
    %52 = tpu.matmul %51, %49, %cst_13 {dimension_numbers = #tpu.dot_dimension_numbers<[1], [0], [0], [1], [0, 0, 1, 1], [], []>} : vector<16x16xbf16>, vector<16x64xbf16>, vector<16x64xf32> -> vector<16x64xf32>
    %53 = arith.addf %45, %52 : vector<16x64xf32>
    %54 = vector.extract_strided_slice %1 {offsets = [0, 16], sizes = [16, 64], strides = [1, 1]} : vector<16x82xbf16> to vector<16x64xbf16>
    %55 = vector.extract_strided_slice %4 {offsets = [6, 0], sizes = [1, 64], strides = [1, 1]} : vector<9x64xbf16> to vector<1x64xbf16>
    %56 = vector.broadcast %55 : vector<1x64xbf16> to vector<16x64xbf16>
    %57 = arith.mulf %54, %56 : vector<16x64xbf16>
    %58 = vector.extract_strided_slice %3 {offsets = [6, 0, 0], sizes = [1, 16, 16], strides = [1, 1, 1]} : vector<9x16x16xbf16> to vector<1x16x16xbf16>
    %59 = vector.shape_cast %58 : vector<1x16x16xbf16> to vector<16x16xbf16>
    %cst_14 = arith.constant dense<0.000000e+00> : vector<16x64xf32>
    %60 = tpu.matmul %59, %57, %cst_14 {dimension_numbers = #tpu.dot_dimension_numbers<[1], [0], [0], [1], [0, 0, 1, 1], [], []>} : vector<16x16xbf16>, vector<16x64xbf16>, vector<16x64xf32> -> vector<16x64xf32>
    %61 = arith.addf %53, %60 : vector<16x64xf32>
    %62 = vector.extract_strided_slice %1 {offsets = [0, 17], sizes = [16, 64], strides = [1, 1]} : vector<16x82xbf16> to vector<16x64xbf16>
    %63 = vector.extract_strided_slice %4 {offsets = [7, 0], sizes = [1, 64], strides = [1, 1]} : vector<9x64xbf16> to vector<1x64xbf16>
    %64 = vector.broadcast %63 : vector<1x64xbf16> to vector<16x64xbf16>
    %65 = arith.mulf %62, %64 : vector<16x64xbf16>
    %66 = vector.extract_strided_slice %3 {offsets = [7, 0, 0], sizes = [1, 16, 16], strides = [1, 1, 1]} : vector<9x16x16xbf16> to vector<1x16x16xbf16>
    %67 = vector.shape_cast %66 : vector<1x16x16xbf16> to vector<16x16xbf16>
    %cst_15 = arith.constant dense<0.000000e+00> : vector<16x64xf32>
    %68 = tpu.matmul %67, %65, %cst_15 {dimension_numbers = #tpu.dot_dimension_numbers<[1], [0], [0], [1], [0, 0, 1, 1], [], []>} : vector<16x16xbf16>, vector<16x64xbf16>, vector<16x64xf32> -> vector<16x64xf32>
    %69 = arith.addf %61, %68 : vector<16x64xf32>
    %70 = vector.extract_strided_slice %1 {offsets = [0, 18], sizes = [16, 64], strides = [1, 1]} : vector<16x82xbf16> to vector<16x64xbf16>
    %71 = vector.extract_strided_slice %4 {offsets = [8, 0], sizes = [1, 64], strides = [1, 1]} : vector<9x64xbf16> to vector<1x64xbf16>
    %72 = vector.broadcast %71 : vector<1x64xbf16> to vector<16x64xbf16>
    %73 = arith.mulf %70, %72 : vector<16x64xbf16>
    %74 = vector.extract_strided_slice %3 {offsets = [8, 0, 0], sizes = [1, 16, 16], strides = [1, 1, 1]} : vector<9x16x16xbf16> to vector<1x16x16xbf16>
    %75 = vector.shape_cast %74 : vector<1x16x16xbf16> to vector<16x16xbf16>
    %cst_16 = arith.constant dense<0.000000e+00> : vector<16x64xf32>
    %76 = tpu.matmul %75, %73, %cst_16 {dimension_numbers = #tpu.dot_dimension_numbers<[1], [0], [0], [1], [0, 0, 1, 1], [], []>} : vector<16x16xbf16>, vector<16x64xbf16>, vector<16x64xf32> -> vector<16x64xf32>
    %77 = arith.addf %69, %76 : vector<16x64xf32>
    %cst_17 = arith.constant dense<0.000000e+00> : vector<16xf32>
    %78 = vector.multi_reduction <add>, %77, %cst_17 [1] : vector<16x64xf32> to vector<16xf32>
    %79 = vector.shape_cast %78 : vector<16xf32> to vector<16x1xf32>
    %80 = arith.mulf %77, %77 : vector<16x64xf32>
    %cst_18 = arith.constant dense<0.000000e+00> : vector<16xf32>
    %81 = vector.multi_reduction <add>, %80, %cst_18 [1] : vector<16x64xf32> to vector<16xf32>
    %82 = vector.shape_cast %81 : vector<16xf32> to vector<16x1xf32>
    %c0_19 = arith.constant 0 : index
    %c0_20 = arith.constant 0 : index
    %83 = vector.load %arg4[%c0_19, %c0_20] : memref<8x16xf32, #tpu.memory_space<vmem>>, vector<8x16xf32>
    %cst_21 = arith.constant dense<0.000000e+00> : vector<8x1xf32>
    %84 = tpu.matmul %83, %79, %cst_21 {dimension_numbers = #tpu.dot_dimension_numbers<[1], [0], [0], [1], [0, 0, 1, 1], [], []>} : vector<8x16xf32>, vector<16x1xf32>, vector<8x1xf32> -> vector<8x1xf32>
    %c0_22 = arith.constant 0 : index
    %c0_23 = arith.constant 0 : index
    %85 = vector.load %arg4[%c0_22, %c0_23] : memref<8x16xf32, #tpu.memory_space<vmem>>, vector<8x16xf32>
    %cst_24 = arith.constant dense<0.000000e+00> : vector<8x1xf32>
    %86 = tpu.matmul %85, %82, %cst_24 {dimension_numbers = #tpu.dot_dimension_numbers<[1], [0], [0], [1], [0, 0, 1, 1], [], []>} : vector<8x16xf32>, vector<16x1xf32>, vector<8x1xf32> -> vector<8x1xf32>
    %cst_25 = arith.constant 7.812500e-03 : f32
    %87 = vector.broadcast %cst_25 : f32 to vector<8x1xf32>
    %88 = arith.mulf %84, %87 : vector<8x1xf32>
    %cst_26 = arith.constant 7.812500e-03 : f32
    %89 = vector.broadcast %cst_26 : f32 to vector<8x1xf32>
    %90 = arith.mulf %86, %89 : vector<8x1xf32>
    %91 = arith.mulf %88, %88 : vector<8x1xf32>
    %92 = arith.subf %90, %91 : vector<8x1xf32>
    %cst_27 = arith.constant 9.99999974E-6 : f32
    %93 = vector.broadcast %cst_27 : f32 to vector<8x1xf32>
    %94 = arith.addf %92, %93 : vector<8x1xf32>
    %95 = math.rsqrt %94 : vector<8x1xf32>
    %c0_28 = arith.constant 0 : index
    %c0_29 = arith.constant 0 : index
    %96 = vector.load %arg5[%c0_28, %c0_29] : memref<16x8xf32, #tpu.memory_space<vmem>>, vector<16x8xf32>
    %cst_30 = arith.constant dense<0.000000e+00> : vector<16x1xf32>
    %97 = tpu.matmul %96, %88, %cst_30 {dimension_numbers = #tpu.dot_dimension_numbers<[1], [0], [0], [1], [0, 0, 1, 1], [], []>} : vector<16x8xf32>, vector<8x1xf32>, vector<16x1xf32> -> vector<16x1xf32>
    %c0_31 = arith.constant 0 : index
    %c0_32 = arith.constant 0 : index
    %98 = vector.load %arg5[%c0_31, %c0_32] : memref<16x8xf32, #tpu.memory_space<vmem>>, vector<16x8xf32>
    %cst_33 = arith.constant dense<0.000000e+00> : vector<16x1xf32>
    %99 = tpu.matmul %98, %95, %cst_33 {dimension_numbers = #tpu.dot_dimension_numbers<[1], [0], [0], [1], [0, 0, 1, 1], [], []>} : vector<16x8xf32>, vector<8x1xf32>, vector<16x1xf32> -> vector<16x1xf32>
    %100 = vector.broadcast %97 : vector<16x1xf32> to vector<16x64xf32>
    %101 = arith.subf %77, %100 : vector<16x64xf32>
    %c0_34 = arith.constant 0 : index
    %c0_35 = arith.constant 0 : index
    %102 = vector.load %arg6[%c0_34, %c0_35] : memref<16x1xf32, #tpu.memory_space<vmem>>, vector<16x1xf32>
    %103 = arith.mulf %99, %102 : vector<16x1xf32>
    %104 = vector.broadcast %103 : vector<16x1xf32> to vector<16x64xf32>
    %105 = arith.mulf %101, %104 : vector<16x64xf32>
    %c0_36 = arith.constant 0 : index
    %c0_37 = arith.constant 0 : index
    %106 = vector.load %arg7[%c0_36, %c0_37] : memref<16x1xf32, #tpu.memory_space<vmem>>, vector<16x1xf32>
    %107 = vector.broadcast %106 : vector<16x1xf32> to vector<16x64xf32>
    %108 = arith.addf %105, %107 : vector<16x64xf32>
    %cst_38 = arith.constant 0.000000e+00 : f32
    %109 = vector.broadcast %cst_38 : f32 to vector<16x64xf32>
    %110 = arith.cmpf oge, %108, %109 : vector<16x64xf32>
    %cst_39 = arith.constant 0.00999999977 : f32
    %111 = vector.broadcast %cst_39 : f32 to vector<16x64xf32>
    %112 = arith.mulf %111, %108 : vector<16x64xf32>
    %113 = arith.select %110, %108, %112 : vector<16x64xi1>, vector<16x64xf32>
    %114 = arith.truncf %113 : vector<16x64xf32> to vector<16x64xbf16>
    %c0_40 = arith.constant 0 : index
    %c0_41 = arith.constant 0 : index
    %c0_42 = arith.constant 0 : index
    %115 = vector.load %arg8[%c0_40, %c0_41, %c0_42] : memref<1x16x64xbf16, #tpu.memory_space<vmem>>, vector<1x16x64xbf16>
    %116 = vector.shape_cast %115 : vector<1x16x64xbf16> to vector<16x64xbf16>
    %117 = vector.shape_cast %114 : vector<16x64xbf16> to vector<1x16x64xbf16>
    tpu.vector_store %arg8[%c0_40, %c0_41, %c0_42], %117 {strides = array<i32>} : memref<1x16x64xbf16, #tpu.memory_space<vmem>>, vector<1x16x64xbf16>,
    return
  }
  func.func @transform_0(%arg0: i32) -> (i32, i32, i32) {
    %c0_i32 = arith.constant 0 : i32
    %c0_i32_0 = arith.constant 0 : i32
    %c0_i32_1 = arith.constant 0 : i32
    return %arg0, %c0_i32, %c0_i32_0 : i32, i32, i32
  }
  func.func @transform_1(%arg0: i32) -> (i32, i32, i32, i32) {
    %c0_i32 = arith.constant 0 : i32
    %c0_i32_0 = arith.constant 0 : i32
    %c0_i32_1 = arith.constant 0 : i32
    %c0_i32_2 = arith.constant 0 : i32
    return %arg0, %c0_i32, %c0_i32_0, %c0_i32_1 : i32, i32, i32, i32
  }
  func.func @transform_2(%arg0: i32) -> (i32, i32) {
    %c0_i32 = arith.constant 0 : i32
    %c0_i32_0 = arith.constant 0 : i32
    %c0_i32_1 = arith.constant 0 : i32
    return %c0_i32, %c0_i32_0 : i32, i32
  }
  func.func @transform_3(%arg0: i32) -> (i32, i32) {
    %c0_i32 = arith.constant 0 : i32
    %c0_i32_0 = arith.constant 0 : i32
    %c0_i32_1 = arith.constant 0 : i32
    return %c0_i32, %c0_i32_0 : i32, i32
  }
  func.func @transform_4(%arg0: i32) -> (i32, i32) {
    %c0_i32 = arith.constant 0 : i32
    %c0_i32_0 = arith.constant 0 : i32
    %c0_i32_1 = arith.constant 0 : i32
    return %c0_i32, %c0_i32_0 : i32, i32
  }
  func.func @transform_5(%arg0: i32) -> (i32, i32) {
    %c0_i32 = arith.constant 0 : i32
    %c0_i32_0 = arith.constant 0 : i32
    %c0_i32_1 = arith.constant 0 : i32
    return %c0_i32, %c0_i32_0 : i32, i32
  }
  func.func @transform_6(%arg0: i32) -> (i32, i32) {
    %c0_i32 = arith.constant 0 : i32
    %c0_i32_0 = arith.constant 0 : i32
    %c0_i32_1 = arith.constant 0 : i32
    return %c0_i32, %c0_i32_0 : i32, i32
  }
  func.func @transform_7(%arg0: i32) -> (i32, i32, i32) {
    %c0_i32 = arith.constant 0 : i32
    %c0_i32_0 = arith.constant 0 : i32
    %c0_i32_1 = arith.constant 0 : i32
    return %arg0, %c0_i32, %c0_i32_0 : i32, i32, i32
  }
}

module attributes {stable_mosaic.version = 11 : i64} {
  func.func @kernel(%arg0: i32, %arg1: memref<1x16x26xbf16, #tpu.memory_space<vmem>>, %arg2: memref<1x9x16x16xbf16, #tpu.memory_space<vmem>>, %arg3: memref<9x16xbf16, #tpu.memory_space<vmem>>, %arg4: memref<8x16xf32, #tpu.memory_space<vmem>>, %arg5: memref<16x8xf32, #tpu.memory_space<vmem>>, %arg6: memref<16x1xf32, #tpu.memory_space<vmem>>, %arg7: memref<16x1xf32, #tpu.memory_space<vmem>>, %arg8: memref<1x16x16xbf16, #tpu.memory_space<vmem>>) attributes {dimension_semantics = [#tpu.dimension_semantics<parallel>], iteration_bounds = array<i64: 2>, scalar_prefetch = 0 : i64, scratch_operands = 0 : i64, tpu.core_type = #tpu.core_type<tc>, window_params = [{transform_indices = @transform_0, window_bounds = array<i64: 1, 16, 26>}, {transform_indices = @transform_1, window_bounds = array<i64: 1, 9, 16, 16>}, {pipeline_mode = #tpu.pipeline_mode<synchronous>, transform_indices = @transform_2, window_bounds = array<i64: 9, 16>}, {pipeline_mode = #tpu.pipeline_mode<synchronous>, transform_indices = @transform_3, window_bounds = array<i64: 8, 16>}, {pipeline_mode = #tpu.pipeline_mode<synchronous>, transform_indices = @transform_4, window_bounds = array<i64: 16, 8>}, {pipeline_mode = #tpu.pipeline_mode<synchronous>, transform_indices = @transform_5, window_bounds = array<i64: 16, 1>}, {pipeline_mode = #tpu.pipeline_mode<synchronous>, transform_indices = @transform_6, window_bounds = array<i64: 16, 1>}, {transform_indices = @transform_7, window_bounds = array<i64: 1, 16, 16>}]} {
    %c0 = arith.constant 0 : index
    %c0_0 = arith.constant 0 : index
    %c0_1 = arith.constant 0 : index
    %0 = vector.load %arg1[%c0, %c0_0, %c0_1] : memref<1x16x26xbf16, #tpu.memory_space<vmem>>, vector<1x16x26xbf16>
    %1 = vector.shape_cast %0 : vector<1x16x26xbf16> to vector<16x26xbf16>
    %c0_2 = arith.constant 0 : index
    %c0_3 = arith.constant 0 : index
    %c0_4 = arith.constant 0 : index
    %c0_5 = arith.constant 0 : index
    %2 = vector.load %arg2[%c0_2, %c0_3, %c0_4, %c0_5] : memref<1x9x16x16xbf16, #tpu.memory_space<vmem>>, vector<1x9x16x16xbf16>
    %3 = vector.shape_cast %2 : vector<1x9x16x16xbf16> to vector<9x16x16xbf16>
    %c0_6 = arith.constant 0 : index
    %c0_7 = arith.constant 0 : index
    %4 = vector.load %arg3[%c0_6, %c0_7] : memref<9x16xbf16, #tpu.memory_space<vmem>>, vector<9x16xbf16>
    %cst = arith.constant 0.000000e+00 : f32
    %5 = vector.broadcast %cst : f32 to vector<16x16xf32>
    %6 = vector.extract_strided_slice %1 {offsets = [0, 0], sizes = [16, 16], strides = [1, 1]} : vector<16x26xbf16> to vector<16x16xbf16>
    %7 = vector.extract_strided_slice %4 {offsets = [0, 0], sizes = [1, 16], strides = [1, 1]} : vector<9x16xbf16> to vector<1x16xbf16>
    %8 = vector.broadcast %7 : vector<1x16xbf16> to vector<16x16xbf16>
    %9 = arith.mulf %6, %8 : vector<16x16xbf16>
    %10 = vector.extract_strided_slice %3 {offsets = [0, 0, 0], sizes = [1, 16, 16], strides = [1, 1, 1]} : vector<9x16x16xbf16> to vector<1x16x16xbf16>
    %11 = vector.shape_cast %10 : vector<1x16x16xbf16> to vector<16x16xbf16>
    %cst_8 = arith.constant dense<0.000000e+00> : vector<16x16xf32>
    %12 = tpu.matmul %11, %9, %cst_8 {dimension_numbers = #tpu.dot_dimension_numbers<[1], [0], [0], [1], [0, 0, 1, 1], [], []>} : vector<16x16xbf16>, vector<16x16xbf16>, vector<16x16xf32> -> vector<16x16xf32>
    %13 = arith.addf %5, %12 : vector<16x16xf32>
    %14 = vector.extract_strided_slice %1 {offsets = [0, 1], sizes = [16, 16], strides = [1, 1]} : vector<16x26xbf16> to vector<16x16xbf16>
    %15 = vector.extract_strided_slice %4 {offsets = [1, 0], sizes = [1, 16], strides = [1, 1]} : vector<9x16xbf16> to vector<1x16xbf16>
    %16 = vector.broadcast %15 : vector<1x16xbf16> to vector<16x16xbf16>
    %17 = arith.mulf %14, %16 : vector<16x16xbf16>
    %18 = vector.extract_strided_slice %3 {offsets = [1, 0, 0], sizes = [1, 16, 16], strides = [1, 1, 1]} : vector<9x16x16xbf16> to vector<1x16x16xbf16>
    %19 = vector.shape_cast %18 : vector<1x16x16xbf16> to vector<16x16xbf16>
    %cst_9 = arith.constant dense<0.000000e+00> : vector<16x16xf32>
    %20 = tpu.matmul %19, %17, %cst_9 {dimension_numbers = #tpu.dot_dimension_numbers<[1], [0], [0], [1], [0, 0, 1, 1], [], []>} : vector<16x16xbf16>, vector<16x16xbf16>, vector<16x16xf32> -> vector<16x16xf32>
    %21 = arith.addf %13, %20 : vector<16x16xf32>
    %22 = vector.extract_strided_slice %1 {offsets = [0, 2], sizes = [16, 16], strides = [1, 1]} : vector<16x26xbf16> to vector<16x16xbf16>
    %23 = vector.extract_strided_slice %4 {offsets = [2, 0], sizes = [1, 16], strides = [1, 1]} : vector<9x16xbf16> to vector<1x16xbf16>
    %24 = vector.broadcast %23 : vector<1x16xbf16> to vector<16x16xbf16>
    %25 = arith.mulf %22, %24 : vector<16x16xbf16>
    %26 = vector.extract_strided_slice %3 {offsets = [2, 0, 0], sizes = [1, 16, 16], strides = [1, 1, 1]} : vector<9x16x16xbf16> to vector<1x16x16xbf16>
    %27 = vector.shape_cast %26 : vector<1x16x16xbf16> to vector<16x16xbf16>
    %cst_10 = arith.constant dense<0.000000e+00> : vector<16x16xf32>
    %28 = tpu.matmul %27, %25, %cst_10 {dimension_numbers = #tpu.dot_dimension_numbers<[1], [0], [0], [1], [0, 0, 1, 1], [], []>} : vector<16x16xbf16>, vector<16x16xbf16>, vector<16x16xf32> -> vector<16x16xf32>
    %29 = arith.addf %21, %28 : vector<16x16xf32>
    %30 = vector.extract_strided_slice %1 {offsets = [0, 4], sizes = [16, 16], strides = [1, 1]} : vector<16x26xbf16> to vector<16x16xbf16>
    %31 = vector.extract_strided_slice %4 {offsets = [3, 0], sizes = [1, 16], strides = [1, 1]} : vector<9x16xbf16> to vector<1x16xbf16>
    %32 = vector.broadcast %31 : vector<1x16xbf16> to vector<16x16xbf16>
    %33 = arith.mulf %30, %32 : vector<16x16xbf16>
    %34 = vector.extract_strided_slice %3 {offsets = [3, 0, 0], sizes = [1, 16, 16], strides = [1, 1, 1]} : vector<9x16x16xbf16> to vector<1x16x16xbf16>
    %35 = vector.shape_cast %34 : vector<1x16x16xbf16> to vector<16x16xbf16>
    %cst_11 = arith.constant dense<0.000000e+00> : vector<16x16xf32>
    %36 = tpu.matmul %35, %33, %cst_11 {dimension_numbers = #tpu.dot_dimension_numbers<[1], [0], [0], [1], [0, 0, 1, 1], [], []>} : vector<16x16xbf16>, vector<16x16xbf16>, vector<16x16xf32> -> vector<16x16xf32>
    %37 = arith.addf %29, %36 : vector<16x16xf32>
    %38 = vector.extract_strided_slice %1 {offsets = [0, 5], sizes = [16, 16], strides = [1, 1]} : vector<16x26xbf16> to vector<16x16xbf16>
    %39 = vector.extract_strided_slice %4 {offsets = [4, 0], sizes = [1, 16], strides = [1, 1]} : vector<9x16xbf16> to vector<1x16xbf16>
    %40 = vector.broadcast %39 : vector<1x16xbf16> to vector<16x16xbf16>
    %41 = arith.mulf %38, %40 : vector<16x16xbf16>
    %42 = vector.extract_strided_slice %3 {offsets = [4, 0, 0], sizes = [1, 16, 16], strides = [1, 1, 1]} : vector<9x16x16xbf16> to vector<1x16x16xbf16>
    %43 = vector.shape_cast %42 : vector<1x16x16xbf16> to vector<16x16xbf16>
    %cst_12 = arith.constant dense<0.000000e+00> : vector<16x16xf32>
    %44 = tpu.matmul %43, %41, %cst_12 {dimension_numbers = #tpu.dot_dimension_numbers<[1], [0], [0], [1], [0, 0, 1, 1], [], []>} : vector<16x16xbf16>, vector<16x16xbf16>, vector<16x16xf32> -> vector<16x16xf32>
    %45 = arith.addf %37, %44 : vector<16x16xf32>
    %46 = vector.extract_strided_slice %1 {offsets = [0, 6], sizes = [16, 16], strides = [1, 1]} : vector<16x26xbf16> to vector<16x16xbf16>
    %47 = vector.extract_strided_slice %4 {offsets = [5, 0], sizes = [1, 16], strides = [1, 1]} : vector<9x16xbf16> to vector<1x16xbf16>
    %48 = vector.broadcast %47 : vector<1x16xbf16> to vector<16x16xbf16>
    %49 = arith.mulf %46, %48 : vector<16x16xbf16>
    %50 = vector.extract_strided_slice %3 {offsets = [5, 0, 0], sizes = [1, 16, 16], strides = [1, 1, 1]} : vector<9x16x16xbf16> to vector<1x16x16xbf16>
    %51 = vector.shape_cast %50 : vector<1x16x16xbf16> to vector<16x16xbf16>
    %cst_13 = arith.constant dense<0.000000e+00> : vector<16x16xf32>
    %52 = tpu.matmul %51, %49, %cst_13 {dimension_numbers = #tpu.dot_dimension_numbers<[1], [0], [0], [1], [0, 0, 1, 1], [], []>} : vector<16x16xbf16>, vector<16x16xbf16>, vector<16x16xf32> -> vector<16x16xf32>
    %53 = arith.addf %45, %52 : vector<16x16xf32>
    %54 = vector.extract_strided_slice %1 {offsets = [0, 8], sizes = [16, 16], strides = [1, 1]} : vector<16x26xbf16> to vector<16x16xbf16>
    %55 = vector.extract_strided_slice %4 {offsets = [6, 0], sizes = [1, 16], strides = [1, 1]} : vector<9x16xbf16> to vector<1x16xbf16>
    %56 = vector.broadcast %55 : vector<1x16xbf16> to vector<16x16xbf16>
    %57 = arith.mulf %54, %56 : vector<16x16xbf16>
    %58 = vector.extract_strided_slice %3 {offsets = [6, 0, 0], sizes = [1, 16, 16], strides = [1, 1, 1]} : vector<9x16x16xbf16> to vector<1x16x16xbf16>
    %59 = vector.shape_cast %58 : vector<1x16x16xbf16> to vector<16x16xbf16>
    %cst_14 = arith.constant dense<0.000000e+00> : vector<16x16xf32>
    %60 = tpu.matmul %59, %57, %cst_14 {dimension_numbers = #tpu.dot_dimension_numbers<[1], [0], [0], [1], [0, 0, 1, 1], [], []>} : vector<16x16xbf16>, vector<16x16xbf16>, vector<16x16xf32> -> vector<16x16xf32>
    %61 = arith.addf %53, %60 : vector<16x16xf32>
    %62 = vector.extract_strided_slice %1 {offsets = [0, 9], sizes = [16, 16], strides = [1, 1]} : vector<16x26xbf16> to vector<16x16xbf16>
    %63 = vector.extract_strided_slice %4 {offsets = [7, 0], sizes = [1, 16], strides = [1, 1]} : vector<9x16xbf16> to vector<1x16xbf16>
    %64 = vector.broadcast %63 : vector<1x16xbf16> to vector<16x16xbf16>
    %65 = arith.mulf %62, %64 : vector<16x16xbf16>
    %66 = vector.extract_strided_slice %3 {offsets = [7, 0, 0], sizes = [1, 16, 16], strides = [1, 1, 1]} : vector<9x16x16xbf16> to vector<1x16x16xbf16>
    %67 = vector.shape_cast %66 : vector<1x16x16xbf16> to vector<16x16xbf16>
    %cst_15 = arith.constant dense<0.000000e+00> : vector<16x16xf32>
    %68 = tpu.matmul %67, %65, %cst_15 {dimension_numbers = #tpu.dot_dimension_numbers<[1], [0], [0], [1], [0, 0, 1, 1], [], []>} : vector<16x16xbf16>, vector<16x16xbf16>, vector<16x16xf32> -> vector<16x16xf32>
    %69 = arith.addf %61, %68 : vector<16x16xf32>
    %70 = vector.extract_strided_slice %1 {offsets = [0, 10], sizes = [16, 16], strides = [1, 1]} : vector<16x26xbf16> to vector<16x16xbf16>
    %71 = vector.extract_strided_slice %4 {offsets = [8, 0], sizes = [1, 16], strides = [1, 1]} : vector<9x16xbf16> to vector<1x16xbf16>
    %72 = vector.broadcast %71 : vector<1x16xbf16> to vector<16x16xbf16>
    %73 = arith.mulf %70, %72 : vector<16x16xbf16>
    %74 = vector.extract_strided_slice %3 {offsets = [8, 0, 0], sizes = [1, 16, 16], strides = [1, 1, 1]} : vector<9x16x16xbf16> to vector<1x16x16xbf16>
    %75 = vector.shape_cast %74 : vector<1x16x16xbf16> to vector<16x16xbf16>
    %cst_16 = arith.constant dense<0.000000e+00> : vector<16x16xf32>
    %76 = tpu.matmul %75, %73, %cst_16 {dimension_numbers = #tpu.dot_dimension_numbers<[1], [0], [0], [1], [0, 0, 1, 1], [], []>} : vector<16x16xbf16>, vector<16x16xbf16>, vector<16x16xf32> -> vector<16x16xf32>
    %77 = arith.addf %69, %76 : vector<16x16xf32>
    %cst_17 = arith.constant dense<0.000000e+00> : vector<16xf32>
    %78 = vector.multi_reduction <add>, %77, %cst_17 [1] : vector<16x16xf32> to vector<16xf32>
    %79 = vector.shape_cast %78 : vector<16xf32> to vector<16x1xf32>
    %80 = arith.mulf %77, %77 : vector<16x16xf32>
    %cst_18 = arith.constant dense<0.000000e+00> : vector<16xf32>
    %81 = vector.multi_reduction <add>, %80, %cst_18 [1] : vector<16x16xf32> to vector<16xf32>
    %82 = vector.shape_cast %81 : vector<16xf32> to vector<16x1xf32>
    %c0_19 = arith.constant 0 : index
    %c0_20 = arith.constant 0 : index
    %83 = vector.load %arg4[%c0_19, %c0_20] : memref<8x16xf32, #tpu.memory_space<vmem>>, vector<8x16xf32>
    %cst_21 = arith.constant dense<0.000000e+00> : vector<8x1xf32>
    %84 = tpu.matmul %83, %79, %cst_21 {dimension_numbers = #tpu.dot_dimension_numbers<[1], [0], [0], [1], [0, 0, 1, 1], [], []>} : vector<8x16xf32>, vector<16x1xf32>, vector<8x1xf32> -> vector<8x1xf32>
    %c0_22 = arith.constant 0 : index
    %c0_23 = arith.constant 0 : index
    %85 = vector.load %arg4[%c0_22, %c0_23] : memref<8x16xf32, #tpu.memory_space<vmem>>, vector<8x16xf32>
    %cst_24 = arith.constant dense<0.000000e+00> : vector<8x1xf32>
    %86 = tpu.matmul %85, %82, %cst_24 {dimension_numbers = #tpu.dot_dimension_numbers<[1], [0], [0], [1], [0, 0, 1, 1], [], []>} : vector<8x16xf32>, vector<16x1xf32>, vector<8x1xf32> -> vector<8x1xf32>
    %cst_25 = arith.constant 3.125000e-02 : f32
    %87 = vector.broadcast %cst_25 : f32 to vector<8x1xf32>
    %88 = arith.mulf %84, %87 : vector<8x1xf32>
    %cst_26 = arith.constant 3.125000e-02 : f32
    %89 = vector.broadcast %cst_26 : f32 to vector<8x1xf32>
    %90 = arith.mulf %86, %89 : vector<8x1xf32>
    %91 = arith.mulf %88, %88 : vector<8x1xf32>
    %92 = arith.subf %90, %91 : vector<8x1xf32>
    %cst_27 = arith.constant 9.99999974E-6 : f32
    %93 = vector.broadcast %cst_27 : f32 to vector<8x1xf32>
    %94 = arith.addf %92, %93 : vector<8x1xf32>
    %95 = math.rsqrt %94 : vector<8x1xf32>
    %c0_28 = arith.constant 0 : index
    %c0_29 = arith.constant 0 : index
    %96 = vector.load %arg5[%c0_28, %c0_29] : memref<16x8xf32, #tpu.memory_space<vmem>>, vector<16x8xf32>
    %cst_30 = arith.constant dense<0.000000e+00> : vector<16x1xf32>
    %97 = tpu.matmul %96, %88, %cst_30 {dimension_numbers = #tpu.dot_dimension_numbers<[1], [0], [0], [1], [0, 0, 1, 1], [], []>} : vector<16x8xf32>, vector<8x1xf32>, vector<16x1xf32> -> vector<16x1xf32>
    %c0_31 = arith.constant 0 : index
    %c0_32 = arith.constant 0 : index
    %98 = vector.load %arg5[%c0_31, %c0_32] : memref<16x8xf32, #tpu.memory_space<vmem>>, vector<16x8xf32>
    %cst_33 = arith.constant dense<0.000000e+00> : vector<16x1xf32>
    %99 = tpu.matmul %98, %95, %cst_33 {dimension_numbers = #tpu.dot_dimension_numbers<[1], [0], [0], [1], [0, 0, 1, 1], [], []>} : vector<16x8xf32>, vector<8x1xf32>, vector<16x1xf32> -> vector<16x1xf32>
    %100 = vector.broadcast %97 : vector<16x1xf32> to vector<16x16xf32>
    %101 = arith.subf %77, %100 : vector<16x16xf32>
    %c0_34 = arith.constant 0 : index
    %c0_35 = arith.constant 0 : index
    %102 = vector.load %arg6[%c0_34, %c0_35] : memref<16x1xf32, #tpu.memory_space<vmem>>, vector<16x1xf32>
    %103 = arith.mulf %99, %102 : vector<16x1xf32>
    %104 = vector.broadcast %103 : vector<16x1xf32> to vector<16x16xf32>
    %105 = arith.mulf %101, %104 : vector<16x16xf32>
    %c0_36 = arith.constant 0 : index
    %c0_37 = arith.constant 0 : index
    %106 = vector.load %arg7[%c0_36, %c0_37] : memref<16x1xf32, #tpu.memory_space<vmem>>, vector<16x1xf32>
    %107 = vector.broadcast %106 : vector<16x1xf32> to vector<16x16xf32>
    %108 = arith.addf %105, %107 : vector<16x16xf32>
    %cst_38 = arith.constant 0.000000e+00 : f32
    %109 = vector.broadcast %cst_38 : f32 to vector<16x16xf32>
    %110 = arith.cmpf oge, %108, %109 : vector<16x16xf32>
    %cst_39 = arith.constant 0.00999999977 : f32
    %111 = vector.broadcast %cst_39 : f32 to vector<16x16xf32>
    %112 = arith.mulf %111, %108 : vector<16x16xf32>
    %113 = arith.select %110, %108, %112 : vector<16x16xi1>, vector<16x16xf32>
    %114 = arith.truncf %113 : vector<16x16xf32> to vector<16x16xbf16>
    %c0_40 = arith.constant 0 : index
    %c0_41 = arith.constant 0 : index
    %c0_42 = arith.constant 0 : index
    %115 = vector.load %arg8[%c0_40, %c0_41, %c0_42] : memref<1x16x16xbf16, #tpu.memory_space<vmem>>, vector<1x16x16xbf16>
    %116 = vector.shape_cast %115 : vector<1x16x16xbf16> to vector<16x16xbf16>
    %117 = vector.shape_cast %114 : vector<16x16xbf16> to vector<1x16x16xbf16>
    tpu.vector_store %arg8[%c0_40, %c0_41, %c0_42], %117 {strides = array<i32>} : memref<1x16x16xbf16, #tpu.memory_space<vmem>>, vector<1x16x16xbf16>,
    return
  }
  func.func @transform_0(%arg0: i32) -> (i32, i32, i32) {
    %c0_i32 = arith.constant 0 : i32
    %c0_i32_0 = arith.constant 0 : i32
    %c0_i32_1 = arith.constant 0 : i32
    return %arg0, %c0_i32, %c0_i32_0 : i32, i32, i32
  }
  func.func @transform_1(%arg0: i32) -> (i32, i32, i32, i32) {
    %c0_i32 = arith.constant 0 : i32
    %c0_i32_0 = arith.constant 0 : i32
    %c0_i32_1 = arith.constant 0 : i32
    %c0_i32_2 = arith.constant 0 : i32
    return %arg0, %c0_i32, %c0_i32_0, %c0_i32_1 : i32, i32, i32, i32
  }
  func.func @transform_2(%arg0: i32) -> (i32, i32) {
    %c0_i32 = arith.constant 0 : i32
    %c0_i32_0 = arith.constant 0 : i32
    %c0_i32_1 = arith.constant 0 : i32
    return %c0_i32, %c0_i32_0 : i32, i32
  }
  func.func @transform_3(%arg0: i32) -> (i32, i32) {
    %c0_i32 = arith.constant 0 : i32
    %c0_i32_0 = arith.constant 0 : i32
    %c0_i32_1 = arith.constant 0 : i32
    return %c0_i32, %c0_i32_0 : i32, i32
  }
  func.func @transform_4(%arg0: i32) -> (i32, i32) {
    %c0_i32 = arith.constant 0 : i32
    %c0_i32_0 = arith.constant 0 : i32
    %c0_i32_1 = arith.constant 0 : i32
    return %c0_i32, %c0_i32_0 : i32, i32
  }
  func.func @transform_5(%arg0: i32) -> (i32, i32) {
    %c0_i32 = arith.constant 0 : i32
    %c0_i32_0 = arith.constant 0 : i32
    %c0_i32_1 = arith.constant 0 : i32
    return %c0_i32, %c0_i32_0 : i32, i32
  }
  func.func @transform_6(%arg0: i32) -> (i32, i32) {
    %c0_i32 = arith.constant 0 : i32
    %c0_i32_0 = arith.constant 0 : i32
    %c0_i32_1 = arith.constant 0 : i32
    return %c0_i32, %c0_i32_0 : i32, i32
  }
  func.func @transform_7(%arg0: i32) -> (i32, i32, i32) {
    %c0_i32 = arith.constant 0 : i32
    %c0_i32_0 = arith.constant 0 : i32
    %c0_i32_1 = arith.constant 0 : i32
    return %arg0, %c0_i32, %c0_i32_0 : i32, i32, i32
  }
}

module attributes {stable_mosaic.version = 11 : i64} {
  func.func @_matmul_kernel(%arg0: i32, %arg1: memref<17x32xbf16, #tpu.memory_space<vmem>>, %arg2: memref<64x17xbf16, #tpu.memory_space<vmem>>, %arg3: memref<64x32xbf16, #tpu.memory_space<vmem>>) attributes {dimension_semantics = [#tpu.dimension_semantics<arbitrary>], iteration_bounds = array<i64: 1>, scalar_prefetch = 0 : i64, scratch_operands = 0 : i64, tpu.core_type = #tpu.core_type<tc>, window_params = [{pipeline_mode = #tpu.pipeline_mode<synchronous>, transform_indices = @transform_0, window_bounds = array<i64: 17, 32>}, {pipeline_mode = #tpu.pipeline_mode<synchronous>, transform_indices = @transform_1, window_bounds = array<i64: 64, 17>}, {pipeline_mode = #tpu.pipeline_mode<synchronous>, transform_indices = @transform_2, window_bounds = array<i64: 64, 32>}]} {
    %c0 = arith.constant 0 : index
    %c0_0 = arith.constant 0 : index
    %0 = vector.load %arg2[%c0, %c0_0] : memref<64x17xbf16, #tpu.memory_space<vmem>>, vector<64x17xbf16>
    %c0_1 = arith.constant 0 : index
    %c0_2 = arith.constant 0 : index
    %1 = vector.load %arg1[%c0_1, %c0_2] : memref<17x32xbf16, #tpu.memory_space<vmem>>, vector<17x32xbf16>
    %cst = arith.constant dense<0.000000e+00> : vector<64x32xf32>
    %2 = tpu.matmul %0, %1, %cst {dimension_numbers = #tpu.dot_dimension_numbers<[1], [0], [0], [1], [0, 0, 1, 1], [], []>} : vector<64x17xbf16>, vector<17x32xbf16>, vector<64x32xf32> -> vector<64x32xf32>
    %3 = arith.truncf %2 : vector<64x32xf32> to vector<64x32xbf16>
    %c0_3 = arith.constant 0 : index
    %c0_4 = arith.constant 0 : index
    %4 = vector.load %arg3[%c0_3, %c0_4] : memref<64x32xbf16, #tpu.memory_space<vmem>>, vector<64x32xbf16>
    tpu.vector_store %arg3[%c0_3, %c0_4], %3 {strides = array<i32>} : memref<64x32xbf16, #tpu.memory_space<vmem>>, vector<64x32xbf16>,
    return
  }
  func.func @transform_0(%arg0: i32) -> (i32, i32) {
    %c0_i32 = arith.constant 0 : i32
    %c0_i32_0 = arith.constant 0 : i32
    %c0_i32_1 = arith.constant 0 : i32
    return %c0_i32, %c0_i32_0 : i32, i32
  }
  func.func @transform_1(%arg0: i32) -> (i32, i32) {
    %c0_i32 = arith.constant 0 : i32
    %c0_i32_0 = arith.constant 0 : i32
    %c0_i32_1 = arith.constant 0 : i32
    return %c0_i32, %c0_i32_0 : i32, i32
  }
  func.func @transform_2(%arg0: i32) -> (i32, i32) {
    %c0_i32 = arith.constant 0 : i32
    %c0_i32_0 = arith.constant 0 : i32
    %c0_i32_1 = arith.constant 0 : i32
    return %c0_i32, %c0_i32_0 : i32, i32
  }
}

module attributes {stable_mosaic.version = 11 : i64} {
  func.func @_matmul_kernel(%arg0: i32, %arg1: memref<17x128xbf16, #tpu.memory_space<vmem>>, %arg2: memref<64x17xbf16, #tpu.memory_space<vmem>>, %arg3: memref<64x128xbf16, #tpu.memory_space<vmem>>) attributes {dimension_semantics = [#tpu.dimension_semantics<arbitrary>], iteration_bounds = array<i64: 1>, scalar_prefetch = 0 : i64, scratch_operands = 0 : i64, tpu.core_type = #tpu.core_type<tc>, window_params = [{pipeline_mode = #tpu.pipeline_mode<synchronous>, transform_indices = @transform_0, window_bounds = array<i64: 17, 128>}, {pipeline_mode = #tpu.pipeline_mode<synchronous>, transform_indices = @transform_1, window_bounds = array<i64: 64, 17>}, {pipeline_mode = #tpu.pipeline_mode<synchronous>, transform_indices = @transform_2, window_bounds = array<i64: 64, 128>}]} {
    %c0 = arith.constant 0 : index
    %c0_0 = arith.constant 0 : index
    %0 = vector.load %arg2[%c0, %c0_0] : memref<64x17xbf16, #tpu.memory_space<vmem>>, vector<64x17xbf16>
    %c0_1 = arith.constant 0 : index
    %c0_2 = arith.constant 0 : index
    %1 = vector.load %arg1[%c0_1, %c0_2] : memref<17x128xbf16, #tpu.memory_space<vmem>>, vector<17x128xbf16>
    %cst = arith.constant dense<0.000000e+00> : vector<64x128xf32>
    %2 = tpu.matmul %0, %1, %cst {dimension_numbers = #tpu.dot_dimension_numbers<[1], [0], [0], [1], [0, 0, 1, 1], [], []>} : vector<64x17xbf16>, vector<17x128xbf16>, vector<64x128xf32> -> vector<64x128xf32>
    %3 = arith.truncf %2 : vector<64x128xf32> to vector<64x128xbf16>
    %c0_3 = arith.constant 0 : index
    %c0_4 = arith.constant 0 : index
    %4 = vector.load %arg3[%c0_3, %c0_4] : memref<64x128xbf16, #tpu.memory_space<vmem>>, vector<64x128xbf16>
    tpu.vector_store %arg3[%c0_3, %c0_4], %3 {strides = array<i32>} : memref<64x128xbf16, #tpu.memory_space<vmem>>, vector<64x128xbf16>,
    return
  }
  func.func @transform_0(%arg0: i32) -> (i32, i32) {
    %c0_i32 = arith.constant 0 : i32
    %c0_i32_0 = arith.constant 0 : i32
    %c0_i32_1 = arith.constant 0 : i32
    return %c0_i32, %c0_i32_0 : i32, i32
  }
  func.func @transform_1(%arg0: i32) -> (i32, i32) {
    %c0_i32 = arith.constant 0 : i32
    %c0_i32_0 = arith.constant 0 : i32
    %c0_i32_1 = arith.constant 0 : i32
    return %c0_i32, %c0_i32_0 : i32, i32
  }
  func.func @transform_2(%arg0: i32) -> (i32, i32) {
    %c0_i32 = arith.constant 0 : i32
    %c0_i32_0 = arith.constant 0 : i32
    %c0_i32_1 = arith.constant 0 : i32
    return %c0_i32, %c0_i32_0 : i32, i32
  }
}

module attributes {stable_mosaic.version = 11 : i64} {
  func.func @kernel(%arg0: i32, %arg1: memref<32x146xbf16, #tpu.memory_space<vmem>>, %arg2: memref<9x16x32xbf16, #tpu.memory_space<vmem>>, %arg3: memref<16x1xf32, #tpu.memory_space<vmem>>, %arg4: memref<9x16x16xbf16, #tpu.memory_space<vmem>>, %arg5: memref<16x1xf32, #tpu.memory_space<vmem>>, %arg6: memref<9x128xbf16, #tpu.memory_space<vmem>>, %arg7: memref<16x128xbf16, #tpu.memory_space<vmem>>, %arg8: memref<16x146xbf16, #tpu.memory_space<vmem>>) attributes {dimension_semantics = [#tpu.dimension_semantics<arbitrary>], iteration_bounds = array<i64: 1>, scalar_prefetch = 0 : i64, scratch_operands = 1 : i64, tpu.core_type = #tpu.core_type<tc>, window_params = [{pipeline_mode = #tpu.pipeline_mode<synchronous>, transform_indices = @transform_0, window_bounds = array<i64: 32, 146>}, {pipeline_mode = #tpu.pipeline_mode<synchronous>, transform_indices = @transform_1, window_bounds = array<i64: 9, 16, 32>}, {pipeline_mode = #tpu.pipeline_mode<synchronous>, transform_indices = @transform_2, window_bounds = array<i64: 16, 1>}, {pipeline_mode = #tpu.pipeline_mode<synchronous>, transform_indices = @transform_3, window_bounds = array<i64: 9, 16, 16>}, {pipeline_mode = #tpu.pipeline_mode<synchronous>, transform_indices = @transform_4, window_bounds = array<i64: 16, 1>}, {pipeline_mode = #tpu.pipeline_mode<synchronous>, transform_indices = @transform_5, window_bounds = array<i64: 9, 128>}, {pipeline_mode = #tpu.pipeline_mode<synchronous>, transform_indices = @transform_6, window_bounds = array<i64: 16, 128>}]} {
    %c0 = arith.constant 0 : index
    %c0_0 = arith.constant 0 : index
    %0 = vector.load %arg1[%c0, %c0_0] : memref<32x146xbf16, #tpu.memory_space<vmem>>, vector<32x146xbf16>
    %c0_1 = arith.constant 0 : index
    %c0_2 = arith.constant 0 : index
    %1 = vector.load %arg6[%c0_1, %c0_2] : memref<9x128xbf16, #tpu.memory_space<vmem>>, vector<9x128xbf16>
    %c0_3 = arith.constant 0 : index
    %c0_4 = arith.constant 0 : index
    %c0_5 = arith.constant 0 : index
    %2 = vector.load %arg2[%c0_3, %c0_4, %c0_5] : memref<9x16x32xbf16, #tpu.memory_space<vmem>>, vector<9x16x32xbf16>
    %c0_6 = arith.constant 0 : index
    %c0_7 = arith.constant 0 : index
    %c0_8 = arith.constant 0 : index
    %3 = vector.load %arg4[%c0_6, %c0_7, %c0_8] : memref<9x16x16xbf16, #tpu.memory_space<vmem>>, vector<9x16x16xbf16>
    %cst = arith.constant 0.000000e+00 : f32
    %4 = vector.broadcast %cst : f32 to vector<16x128xf32>
    %5 = vector.extract_strided_slice %0 {offsets = [0, 0], sizes = [32, 128], strides = [1, 1]} : vector<32x146xbf16> to vector<32x128xbf16>
    %6 = vector.extract_strided_slice %1 {offsets = [0, 0], sizes = [1, 128], strides = [1, 1]} : vector<9x128xbf16> to vector<1x128xbf16>
    %7 = vector.broadcast %6 : vector<1x128xbf16> to vector<32x128xbf16>
    %8 = arith.mulf %5, %7 : vector<32x128xbf16>
    %9 = vector.extract_strided_slice %2 {offsets = [0, 0, 0], sizes = [1, 16, 32], strides = [1, 1, 1]} : vector<9x16x32xbf16> to vector<1x16x32xbf16>
    %10 = vector.shape_cast %9 : vector<1x16x32xbf16> to vector<16x32xbf16>
    %cst_9 = arith.constant dense<0.000000e+00> : vector<16x128xf32>
    %11 = tpu.matmul %10, %8, %cst_9 {dimension_numbers = #tpu.dot_dimension_numbers<[1], [0], [0], [1], [0, 0, 1, 1], [], []>} : vector<16x32xbf16>, vector<32x128xbf16>, vector<16x128xf32> -> vector<16x128xf32>
    %12 = arith.addf %4, %11 : vector<16x128xf32>
    %13 = vector.extract_strided_slice %0 {offsets = [0, 1], sizes = [32, 128], strides = [1, 1]} : vector<32x146xbf16> to vector<32x128xbf16>
    %14 = vector.extract_strided_slice %1 {offsets = [1, 0], sizes = [1, 128], strides = [1, 1]} : vector<9x128xbf16> to vector<1x128xbf16>
    %15 = vector.broadcast %14 : vector<1x128xbf16> to vector<32x128xbf16>
    %16 = arith.mulf %13, %15 : vector<32x128xbf16>
    %17 = vector.extract_strided_slice %2 {offsets = [1, 0, 0], sizes = [1, 16, 32], strides = [1, 1, 1]} : vector<9x16x32xbf16> to vector<1x16x32xbf16>
    %18 = vector.shape_cast %17 : vector<1x16x32xbf16> to vector<16x32xbf16>
    %cst_10 = arith.constant dense<0.000000e+00> : vector<16x128xf32>
    %19 = tpu.matmul %18, %16, %cst_10 {dimension_numbers = #tpu.dot_dimension_numbers<[1], [0], [0], [1], [0, 0, 1, 1], [], []>} : vector<16x32xbf16>, vector<32x128xbf16>, vector<16x128xf32> -> vector<16x128xf32>
    %20 = arith.addf %12, %19 : vector<16x128xf32>
    %21 = vector.extract_strided_slice %0 {offsets = [0, 2], sizes = [32, 128], strides = [1, 1]} : vector<32x146xbf16> to vector<32x128xbf16>
    %22 = vector.extract_strided_slice %1 {offsets = [2, 0], sizes = [1, 128], strides = [1, 1]} : vector<9x128xbf16> to vector<1x128xbf16>
    %23 = vector.broadcast %22 : vector<1x128xbf16> to vector<32x128xbf16>
    %24 = arith.mulf %21, %23 : vector<32x128xbf16>
    %25 = vector.extract_strided_slice %2 {offsets = [2, 0, 0], sizes = [1, 16, 32], strides = [1, 1, 1]} : vector<9x16x32xbf16> to vector<1x16x32xbf16>
    %26 = vector.shape_cast %25 : vector<1x16x32xbf16> to vector<16x32xbf16>
    %cst_11 = arith.constant dense<0.000000e+00> : vector<16x128xf32>
    %27 = tpu.matmul %26, %24, %cst_11 {dimension_numbers = #tpu.dot_dimension_numbers<[1], [0], [0], [1], [0, 0, 1, 1], [], []>} : vector<16x32xbf16>, vector<32x128xbf16>, vector<16x128xf32> -> vector<16x128xf32>
    %28 = arith.addf %20, %27 : vector<16x128xf32>
    %29 = vector.extract_strided_slice %0 {offsets = [0, 8], sizes = [32, 128], strides = [1, 1]} : vector<32x146xbf16> to vector<32x128xbf16>
    %30 = vector.extract_strided_slice %1 {offsets = [3, 0], sizes = [1, 128], strides = [1, 1]} : vector<9x128xbf16> to vector<1x128xbf16>
    %31 = vector.broadcast %30 : vector<1x128xbf16> to vector<32x128xbf16>
    %32 = arith.mulf %29, %31 : vector<32x128xbf16>
    %33 = vector.extract_strided_slice %2 {offsets = [3, 0, 0], sizes = [1, 16, 32], strides = [1, 1, 1]} : vector<9x16x32xbf16> to vector<1x16x32xbf16>
    %34 = vector.shape_cast %33 : vector<1x16x32xbf16> to vector<16x32xbf16>
    %cst_12 = arith.constant dense<0.000000e+00> : vector<16x128xf32>
    %35 = tpu.matmul %34, %32, %cst_12 {dimension_numbers = #tpu.dot_dimension_numbers<[1], [0], [0], [1], [0, 0, 1, 1], [], []>} : vector<16x32xbf16>, vector<32x128xbf16>, vector<16x128xf32> -> vector<16x128xf32>
    %36 = arith.addf %28, %35 : vector<16x128xf32>
    %37 = vector.extract_strided_slice %0 {offsets = [0, 9], sizes = [32, 128], strides = [1, 1]} : vector<32x146xbf16> to vector<32x128xbf16>
    %38 = vector.extract_strided_slice %1 {offsets = [4, 0], sizes = [1, 128], strides = [1, 1]} : vector<9x128xbf16> to vector<1x128xbf16>
    %39 = vector.broadcast %38 : vector<1x128xbf16> to vector<32x128xbf16>
    %40 = arith.mulf %37, %39 : vector<32x128xbf16>
    %41 = vector.extract_strided_slice %2 {offsets = [4, 0, 0], sizes = [1, 16, 32], strides = [1, 1, 1]} : vector<9x16x32xbf16> to vector<1x16x32xbf16>
    %42 = vector.shape_cast %41 : vector<1x16x32xbf16> to vector<16x32xbf16>
    %cst_13 = arith.constant dense<0.000000e+00> : vector<16x128xf32>
    %43 = tpu.matmul %42, %40, %cst_13 {dimension_numbers = #tpu.dot_dimension_numbers<[1], [0], [0], [1], [0, 0, 1, 1], [], []>} : vector<16x32xbf16>, vector<32x128xbf16>, vector<16x128xf32> -> vector<16x128xf32>
    %44 = arith.addf %36, %43 : vector<16x128xf32>
    %45 = vector.extract_strided_slice %0 {offsets = [0, 10], sizes = [32, 128], strides = [1, 1]} : vector<32x146xbf16> to vector<32x128xbf16>
    %46 = vector.extract_strided_slice %1 {offsets = [5, 0], sizes = [1, 128], strides = [1, 1]} : vector<9x128xbf16> to vector<1x128xbf16>
    %47 = vector.broadcast %46 : vector<1x128xbf16> to vector<32x128xbf16>
    %48 = arith.mulf %45, %47 : vector<32x128xbf16>
    %49 = vector.extract_strided_slice %2 {offsets = [5, 0, 0], sizes = [1, 16, 32], strides = [1, 1, 1]} : vector<9x16x32xbf16> to vector<1x16x32xbf16>
    %50 = vector.shape_cast %49 : vector<1x16x32xbf16> to vector<16x32xbf16>
    %cst_14 = arith.constant dense<0.000000e+00> : vector<16x128xf32>
    %51 = tpu.matmul %50, %48, %cst_14 {dimension_numbers = #tpu.dot_dimension_numbers<[1], [0], [0], [1], [0, 0, 1, 1], [], []>} : vector<16x32xbf16>, vector<32x128xbf16>, vector<16x128xf32> -> vector<16x128xf32>
    %52 = arith.addf %44, %51 : vector<16x128xf32>
    %53 = vector.extract_strided_slice %0 {offsets = [0, 16], sizes = [32, 128], strides = [1, 1]} : vector<32x146xbf16> to vector<32x128xbf16>
    %54 = vector.extract_strided_slice %1 {offsets = [6, 0], sizes = [1, 128], strides = [1, 1]} : vector<9x128xbf16> to vector<1x128xbf16>
    %55 = vector.broadcast %54 : vector<1x128xbf16> to vector<32x128xbf16>
    %56 = arith.mulf %53, %55 : vector<32x128xbf16>
    %57 = vector.extract_strided_slice %2 {offsets = [6, 0, 0], sizes = [1, 16, 32], strides = [1, 1, 1]} : vector<9x16x32xbf16> to vector<1x16x32xbf16>
    %58 = vector.shape_cast %57 : vector<1x16x32xbf16> to vector<16x32xbf16>
    %cst_15 = arith.constant dense<0.000000e+00> : vector<16x128xf32>
    %59 = tpu.matmul %58, %56, %cst_15 {dimension_numbers = #tpu.dot_dimension_numbers<[1], [0], [0], [1], [0, 0, 1, 1], [], []>} : vector<16x32xbf16>, vector<32x128xbf16>, vector<16x128xf32> -> vector<16x128xf32>
    %60 = arith.addf %52, %59 : vector<16x128xf32>
    %61 = vector.extract_strided_slice %0 {offsets = [0, 17], sizes = [32, 128], strides = [1, 1]} : vector<32x146xbf16> to vector<32x128xbf16>
    %62 = vector.extract_strided_slice %1 {offsets = [7, 0], sizes = [1, 128], strides = [1, 1]} : vector<9x128xbf16> to vector<1x128xbf16>
    %63 = vector.broadcast %62 : vector<1x128xbf16> to vector<32x128xbf16>
    %64 = arith.mulf %61, %63 : vector<32x128xbf16>
    %65 = vector.extract_strided_slice %2 {offsets = [7, 0, 0], sizes = [1, 16, 32], strides = [1, 1, 1]} : vector<9x16x32xbf16> to vector<1x16x32xbf16>
    %66 = vector.shape_cast %65 : vector<1x16x32xbf16> to vector<16x32xbf16>
    %cst_16 = arith.constant dense<0.000000e+00> : vector<16x128xf32>
    %67 = tpu.matmul %66, %64, %cst_16 {dimension_numbers = #tpu.dot_dimension_numbers<[1], [0], [0], [1], [0, 0, 1, 1], [], []>} : vector<16x32xbf16>, vector<32x128xbf16>, vector<16x128xf32> -> vector<16x128xf32>
    %68 = arith.addf %60, %67 : vector<16x128xf32>
    %69 = vector.extract_strided_slice %0 {offsets = [0, 18], sizes = [32, 128], strides = [1, 1]} : vector<32x146xbf16> to vector<32x128xbf16>
    %70 = vector.extract_strided_slice %1 {offsets = [8, 0], sizes = [1, 128], strides = [1, 1]} : vector<9x128xbf16> to vector<1x128xbf16>
    %71 = vector.broadcast %70 : vector<1x128xbf16> to vector<32x128xbf16>
    %72 = arith.mulf %69, %71 : vector<32x128xbf16>
    %73 = vector.extract_strided_slice %2 {offsets = [8, 0, 0], sizes = [1, 16, 32], strides = [1, 1, 1]} : vector<9x16x32xbf16> to vector<1x16x32xbf16>
    %74 = vector.shape_cast %73 : vector<1x16x32xbf16> to vector<16x32xbf16>
    %cst_17 = arith.constant dense<0.000000e+00> : vector<16x128xf32>
    %75 = tpu.matmul %74, %72, %cst_17 {dimension_numbers = #tpu.dot_dimension_numbers<[1], [0], [0], [1], [0, 0, 1, 1], [], []>} : vector<16x32xbf16>, vector<32x128xbf16>, vector<16x128xf32> -> vector<16x128xf32>
    %76 = arith.addf %68, %75 : vector<16x128xf32>
    %c0_18 = arith.constant 0 : index
    %c0_19 = arith.constant 0 : index
    %77 = vector.load %arg3[%c0_18, %c0_19] : memref<16x1xf32, #tpu.memory_space<vmem>>, vector<16x1xf32>
    %78 = vector.broadcast %77 : vector<16x1xf32> to vector<16x128xf32>
    %79 = arith.addf %76, %78 : vector<16x128xf32>
    %cst_20 = arith.constant 0.000000e+00 : f32
    %80 = vector.broadcast %cst_20 : f32 to vector<16x128xf32>
    %81 = arith.maximumf %79, %80 : vector<16x128xf32>
    %cst_21 = arith.constant 0.000000e+00 : bf16
    %82 = vector.broadcast %cst_21 : bf16 to vector<16x146xbf16>
    %c0_22 = arith.constant 0 : index
    %c0_23 = arith.constant 0 : index
    %83 = vector.load %arg8[%c0_22, %c0_23] : memref<16x146xbf16, #tpu.memory_space<vmem>>, vector<16x146xbf16>
    tpu.vector_store %arg8[%c0_22, %c0_23], %82 {strides = array<i32>} : memref<16x146xbf16, #tpu.memory_space<vmem>>, vector<16x146xbf16>,
    %84 = arith.truncf %81 : vector<16x128xf32> to vector<16x128xbf16>
    %c0_24 = arith.constant 0 : index
    %c9 = arith.constant 9 : index
    %85 = vector.load %arg8[%c0_24, %c9] : memref<16x146xbf16, #tpu.memory_space<vmem>>, vector<16x128xbf16>
    tpu.vector_store %arg8[%c0_24, %c9], %84 {strides = array<i32>} : memref<16x146xbf16, #tpu.memory_space<vmem>>, vector<16x128xbf16>,
    %c0_25 = arith.constant 0 : index
    %c0_26 = arith.constant 0 : index
    %86 = vector.load %arg8[%c0_25, %c0_26] : memref<16x146xbf16, #tpu.memory_space<vmem>>, vector<16x146xbf16>
    %cst_27 = arith.constant 0.000000e+00 : f32
    %87 = vector.broadcast %cst_27 : f32 to vector<16x128xf32>
    %88 = vector.extract_strided_slice %86 {offsets = [0, 0], sizes = [16, 128], strides = [1, 1]} : vector<16x146xbf16> to vector<16x128xbf16>
    %89 = vector.extract_strided_slice %1 {offsets = [0, 0], sizes = [1, 128], strides = [1, 1]} : vector<9x128xbf16> to vector<1x128xbf16>
    %90 = vector.broadcast %89 : vector<1x128xbf16> to vector<16x128xbf16>
    %91 = arith.mulf %88, %90 : vector<16x128xbf16>
    %92 = vector.extract_strided_slice %3 {offsets = [0, 0, 0], sizes = [1, 16, 16], strides = [1, 1, 1]} : vector<9x16x16xbf16> to vector<1x16x16xbf16>
    %93 = vector.shape_cast %92 : vector<1x16x16xbf16> to vector<16x16xbf16>
    %cst_28 = arith.constant dense<0.000000e+00> : vector<16x128xf32>
    %94 = tpu.matmul %93, %91, %cst_28 {dimension_numbers = #tpu.dot_dimension_numbers<[1], [0], [0], [1], [0, 0, 1, 1], [], []>} : vector<16x16xbf16>, vector<16x128xbf16>, vector<16x128xf32> -> vector<16x128xf32>
    %95 = arith.addf %87, %94 : vector<16x128xf32>
    %96 = vector.extract_strided_slice %86 {offsets = [0, 1], sizes = [16, 128], strides = [1, 1]} : vector<16x146xbf16> to vector<16x128xbf16>
    %97 = vector.extract_strided_slice %1 {offsets = [1, 0], sizes = [1, 128], strides = [1, 1]} : vector<9x128xbf16> to vector<1x128xbf16>
    %98 = vector.broadcast %97 : vector<1x128xbf16> to vector<16x128xbf16>
    %99 = arith.mulf %96, %98 : vector<16x128xbf16>
    %100 = vector.extract_strided_slice %3 {offsets = [1, 0, 0], sizes = [1, 16, 16], strides = [1, 1, 1]} : vector<9x16x16xbf16> to vector<1x16x16xbf16>
    %101 = vector.shape_cast %100 : vector<1x16x16xbf16> to vector<16x16xbf16>
    %cst_29 = arith.constant dense<0.000000e+00> : vector<16x128xf32>
    %102 = tpu.matmul %101, %99, %cst_29 {dimension_numbers = #tpu.dot_dimension_numbers<[1], [0], [0], [1], [0, 0, 1, 1], [], []>} : vector<16x16xbf16>, vector<16x128xbf16>, vector<16x128xf32> -> vector<16x128xf32>
    %103 = arith.addf %95, %102 : vector<16x128xf32>
    %104 = vector.extract_strided_slice %86 {offsets = [0, 2], sizes = [16, 128], strides = [1, 1]} : vector<16x146xbf16> to vector<16x128xbf16>
    %105 = vector.extract_strided_slice %1 {offsets = [2, 0], sizes = [1, 128], strides = [1, 1]} : vector<9x128xbf16> to vector<1x128xbf16>
    %106 = vector.broadcast %105 : vector<1x128xbf16> to vector<16x128xbf16>
    %107 = arith.mulf %104, %106 : vector<16x128xbf16>
    %108 = vector.extract_strided_slice %3 {offsets = [2, 0, 0], sizes = [1, 16, 16], strides = [1, 1, 1]} : vector<9x16x16xbf16> to vector<1x16x16xbf16>
    %109 = vector.shape_cast %108 : vector<1x16x16xbf16> to vector<16x16xbf16>
    %cst_30 = arith.constant dense<0.000000e+00> : vector<16x128xf32>
    %110 = tpu.matmul %109, %107, %cst_30 {dimension_numbers = #tpu.dot_dimension_numbers<[1], [0], [0], [1], [0, 0, 1, 1], [], []>} : vector<16x16xbf16>, vector<16x128xbf16>, vector<16x128xf32> -> vector<16x128xf32>
    %111 = arith.addf %103, %110 : vector<16x128xf32>
    %112 = vector.extract_strided_slice %86 {offsets = [0, 8], sizes = [16, 128], strides = [1, 1]} : vector<16x146xbf16> to vector<16x128xbf16>
    %113 = vector.extract_strided_slice %1 {offsets = [3, 0], sizes = [1, 128], strides = [1, 1]} : vector<9x128xbf16> to vector<1x128xbf16>
    %114 = vector.broadcast %113 : vector<1x128xbf16> to vector<16x128xbf16>
    %115 = arith.mulf %112, %114 : vector<16x128xbf16>
    %116 = vector.extract_strided_slice %3 {offsets = [3, 0, 0], sizes = [1, 16, 16], strides = [1, 1, 1]} : vector<9x16x16xbf16> to vector<1x16x16xbf16>
    %117 = vector.shape_cast %116 : vector<1x16x16xbf16> to vector<16x16xbf16>
    %cst_31 = arith.constant dense<0.000000e+00> : vector<16x128xf32>
    %118 = tpu.matmul %117, %115, %cst_31 {dimension_numbers = #tpu.dot_dimension_numbers<[1], [0], [0], [1], [0, 0, 1, 1], [], []>} : vector<16x16xbf16>, vector<16x128xbf16>, vector<16x128xf32> -> vector<16x128xf32>
    %119 = arith.addf %111, %118 : vector<16x128xf32>
    %120 = vector.extract_strided_slice %86 {offsets = [0, 9], sizes = [16, 128], strides = [1, 1]} : vector<16x146xbf16> to vector<16x128xbf16>
    %121 = vector.extract_strided_slice %1 {offsets = [4, 0], sizes = [1, 128], strides = [1, 1]} : vector<9x128xbf16> to vector<1x128xbf16>
    %122 = vector.broadcast %121 : vector<1x128xbf16> to vector<16x128xbf16>
    %123 = arith.mulf %120, %122 : vector<16x128xbf16>
    %124 = vector.extract_strided_slice %3 {offsets = [4, 0, 0], sizes = [1, 16, 16], strides = [1, 1, 1]} : vector<9x16x16xbf16> to vector<1x16x16xbf16>
    %125 = vector.shape_cast %124 : vector<1x16x16xbf16> to vector<16x16xbf16>
    %cst_32 = arith.constant dense<0.000000e+00> : vector<16x128xf32>
    %126 = tpu.matmul %125, %123, %cst_32 {dimension_numbers = #tpu.dot_dimension_numbers<[1], [0], [0], [1], [0, 0, 1, 1], [], []>} : vector<16x16xbf16>, vector<16x128xbf16>, vector<16x128xf32> -> vector<16x128xf32>
    %127 = arith.addf %119, %126 : vector<16x128xf32>
    %128 = vector.extract_strided_slice %86 {offsets = [0, 10], sizes = [16, 128], strides = [1, 1]} : vector<16x146xbf16> to vector<16x128xbf16>
    %129 = vector.extract_strided_slice %1 {offsets = [5, 0], sizes = [1, 128], strides = [1, 1]} : vector<9x128xbf16> to vector<1x128xbf16>
    %130 = vector.broadcast %129 : vector<1x128xbf16> to vector<16x128xbf16>
    %131 = arith.mulf %128, %130 : vector<16x128xbf16>
    %132 = vector.extract_strided_slice %3 {offsets = [5, 0, 0], sizes = [1, 16, 16], strides = [1, 1, 1]} : vector<9x16x16xbf16> to vector<1x16x16xbf16>
    %133 = vector.shape_cast %132 : vector<1x16x16xbf16> to vector<16x16xbf16>
    %cst_33 = arith.constant dense<0.000000e+00> : vector<16x128xf32>
    %134 = tpu.matmul %133, %131, %cst_33 {dimension_numbers = #tpu.dot_dimension_numbers<[1], [0], [0], [1], [0, 0, 1, 1], [], []>} : vector<16x16xbf16>, vector<16x128xbf16>, vector<16x128xf32> -> vector<16x128xf32>
    %135 = arith.addf %127, %134 : vector<16x128xf32>
    %136 = vector.extract_strided_slice %86 {offsets = [0, 16], sizes = [16, 128], strides = [1, 1]} : vector<16x146xbf16> to vector<16x128xbf16>
    %137 = vector.extract_strided_slice %1 {offsets = [6, 0], sizes = [1, 128], strides = [1, 1]} : vector<9x128xbf16> to vector<1x128xbf16>
    %138 = vector.broadcast %137 : vector<1x128xbf16> to vector<16x128xbf16>
    %139 = arith.mulf %136, %138 : vector<16x128xbf16>
    %140 = vector.extract_strided_slice %3 {offsets = [6, 0, 0], sizes = [1, 16, 16], strides = [1, 1, 1]} : vector<9x16x16xbf16> to vector<1x16x16xbf16>
    %141 = vector.shape_cast %140 : vector<1x16x16xbf16> to vector<16x16xbf16>
    %cst_34 = arith.constant dense<0.000000e+00> : vector<16x128xf32>
    %142 = tpu.matmul %141, %139, %cst_34 {dimension_numbers = #tpu.dot_dimension_numbers<[1], [0], [0], [1], [0, 0, 1, 1], [], []>} : vector<16x16xbf16>, vector<16x128xbf16>, vector<16x128xf32> -> vector<16x128xf32>
    %143 = arith.addf %135, %142 : vector<16x128xf32>
    %144 = vector.extract_strided_slice %86 {offsets = [0, 17], sizes = [16, 128], strides = [1, 1]} : vector<16x146xbf16> to vector<16x128xbf16>
    %145 = vector.extract_strided_slice %1 {offsets = [7, 0], sizes = [1, 128], strides = [1, 1]} : vector<9x128xbf16> to vector<1x128xbf16>
    %146 = vector.broadcast %145 : vector<1x128xbf16> to vector<16x128xbf16>
    %147 = arith.mulf %144, %146 : vector<16x128xbf16>
    %148 = vector.extract_strided_slice %3 {offsets = [7, 0, 0], sizes = [1, 16, 16], strides = [1, 1, 1]} : vector<9x16x16xbf16> to vector<1x16x16xbf16>
    %149 = vector.shape_cast %148 : vector<1x16x16xbf16> to vector<16x16xbf16>
    %cst_35 = arith.constant dense<0.000000e+00> : vector<16x128xf32>
    %150 = tpu.matmul %149, %147, %cst_35 {dimension_numbers = #tpu.dot_dimension_numbers<[1], [0], [0], [1], [0, 0, 1, 1], [], []>} : vector<16x16xbf16>, vector<16x128xbf16>, vector<16x128xf32> -> vector<16x128xf32>
    %151 = arith.addf %143, %150 : vector<16x128xf32>
    %152 = vector.extract_strided_slice %86 {offsets = [0, 18], sizes = [16, 128], strides = [1, 1]} : vector<16x146xbf16> to vector<16x128xbf16>
    %153 = vector.extract_strided_slice %1 {offsets = [8, 0], sizes = [1, 128], strides = [1, 1]} : vector<9x128xbf16> to vector<1x128xbf16>
    %154 = vector.broadcast %153 : vector<1x128xbf16> to vector<16x128xbf16>
    %155 = arith.mulf %152, %154 : vector<16x128xbf16>
    %156 = vector.extract_strided_slice %3 {offsets = [8, 0, 0], sizes = [1, 16, 16], strides = [1, 1, 1]} : vector<9x16x16xbf16> to vector<1x16x16xbf16>
    %157 = vector.shape_cast %156 : vector<1x16x16xbf16> to vector<16x16xbf16>
    %cst_36 = arith.constant dense<0.000000e+00> : vector<16x128xf32>
    %158 = tpu.matmul %157, %155, %cst_36 {dimension_numbers = #tpu.dot_dimension_numbers<[1], [0], [0], [1], [0, 0, 1, 1], [], []>} : vector<16x16xbf16>, vector<16x128xbf16>, vector<16x128xf32> -> vector<16x128xf32>
    %159 = arith.addf %151, %158 : vector<16x128xf32>
    %c0_37 = arith.constant 0 : index
    %c0_38 = arith.constant 0 : index
    %160 = vector.load %arg5[%c0_37, %c0_38] : memref<16x1xf32, #tpu.memory_space<vmem>>, vector<16x1xf32>
    %161 = vector.broadcast %160 : vector<16x1xf32> to vector<16x128xf32>
    %162 = arith.addf %159, %161 : vector<16x128xf32>
    %cst_39 = arith.constant 0.000000e+00 : f32
    %163 = vector.broadcast %cst_39 : f32 to vector<16x128xf32>
    %164 = arith.maximumf %162, %163 : vector<16x128xf32>
    %165 = arith.truncf %164 : vector<16x128xf32> to vector<16x128xbf16>
    %c0_40 = arith.constant 0 : index
    %c0_41 = arith.constant 0 : index
    %166 = vector.load %arg7[%c0_40, %c0_41] : memref<16x128xbf16, #tpu.memory_space<vmem>>, vector<16x128xbf16>
    tpu.vector_store %arg7[%c0_40, %c0_41], %165 {strides = array<i32>} : memref<16x128xbf16, #tpu.memory_space<vmem>>, vector<16x128xbf16>,
    return
  }
  func.func @transform_0(%arg0: i32) -> (i32, i32) {
    %c0_i32 = arith.constant 0 : i32
    %c0_i32_0 = arith.constant 0 : i32
    %c0_i32_1 = arith.constant 0 : i32
    return %c0_i32, %c0_i32_0 : i32, i32
  }
  func.func @transform_1(%arg0: i32) -> (i32, i32, i32) {
    %c0_i32 = arith.constant 0 : i32
    %c0_i32_0 = arith.constant 0 : i32
    %c0_i32_1 = arith.constant 0 : i32
    %c0_i32_2 = arith.constant 0 : i32
    return %c0_i32, %c0_i32_0, %c0_i32_1 : i32, i32, i32
  }
  func.func @transform_2(%arg0: i32) -> (i32, i32) {
    %c0_i32 = arith.constant 0 : i32
    %c0_i32_0 = arith.constant 0 : i32
    %c0_i32_1 = arith.constant 0 : i32
    return %c0_i32, %c0_i32_0 : i32, i32
  }
  func.func @transform_3(%arg0: i32) -> (i32, i32, i32) {
    %c0_i32 = arith.constant 0 : i32
    %c0_i32_0 = arith.constant 0 : i32
    %c0_i32_1 = arith.constant 0 : i32
    %c0_i32_2 = arith.constant 0 : i32
    return %c0_i32, %c0_i32_0, %c0_i32_1 : i32, i32, i32
  }
  func.func @transform_4(%arg0: i32) -> (i32, i32) {
    %c0_i32 = arith.constant 0 : i32
    %c0_i32_0 = arith.constant 0 : i32
    %c0_i32_1 = arith.constant 0 : i32
    return %c0_i32, %c0_i32_0 : i32, i32
  }
  func.func @transform_5(%arg0: i32) -> (i32, i32) {
    %c0_i32 = arith.constant 0 : i32
    %c0_i32_0 = arith.constant 0 : i32
    %c0_i32_1 = arith.constant 0 : i32
    return %c0_i32, %c0_i32_0 : i32, i32
  }
  func.func @transform_6(%arg0: i32) -> (i32, i32) {
    %c0_i32 = arith.constant 0 : i32
    %c0_i32_0 = arith.constant 0 : i32
    %c0_i32_1 = arith.constant 0 : i32
    return %c0_i32, %c0_i32_0 : i32, i32
  }
}

module attributes {stable_mosaic.version = 11 : i64} {
  func.func @kernel(%arg0: i32, %arg1: memref<32x546xbf16, #tpu.memory_space<vmem>>, %arg2: memref<9x16x32xbf16, #tpu.memory_space<vmem>>, %arg3: memref<16x1xf32, #tpu.memory_space<vmem>>, %arg4: memref<9x16x16xbf16, #tpu.memory_space<vmem>>, %arg5: memref<16x1xf32, #tpu.memory_space<vmem>>, %arg6: memref<9x512xbf16, #tpu.memory_space<vmem>>, %arg7: memref<3x16xbf16, #tpu.memory_space<vmem>>, %arg8: memref<3x1xf32, #tpu.memory_space<vmem>>, %arg9: memref<3x512xf32, #tpu.memory_space<vmem>>, %arg10: memref<16x546xbf16, #tpu.memory_space<vmem>>) attributes {dimension_semantics = [#tpu.dimension_semantics<arbitrary>], iteration_bounds = array<i64: 1>, scalar_prefetch = 0 : i64, scratch_operands = 1 : i64, tpu.core_type = #tpu.core_type<tc>, window_params = [{pipeline_mode = #tpu.pipeline_mode<synchronous>, transform_indices = @transform_0, window_bounds = array<i64: 32, 546>}, {pipeline_mode = #tpu.pipeline_mode<synchronous>, transform_indices = @transform_1, window_bounds = array<i64: 9, 16, 32>}, {pipeline_mode = #tpu.pipeline_mode<synchronous>, transform_indices = @transform_2, window_bounds = array<i64: 16, 1>}, {pipeline_mode = #tpu.pipeline_mode<synchronous>, transform_indices = @transform_3, window_bounds = array<i64: 9, 16, 16>}, {pipeline_mode = #tpu.pipeline_mode<synchronous>, transform_indices = @transform_4, window_bounds = array<i64: 16, 1>}, {pipeline_mode = #tpu.pipeline_mode<synchronous>, transform_indices = @transform_5, window_bounds = array<i64: 9, 512>}, {pipeline_mode = #tpu.pipeline_mode<synchronous>, transform_indices = @transform_6, window_bounds = array<i64: 3, 16>}, {pipeline_mode = #tpu.pipeline_mode<synchronous>, transform_indices = @transform_7, window_bounds = array<i64: 3, 1>}, {pipeline_mode = #tpu.pipeline_mode<synchronous>, transform_indices = @transform_8, window_bounds = array<i64: 3, 512>}]} {
    %c0 = arith.constant 0 : index
    %c0_0 = arith.constant 0 : index
    %0 = vector.load %arg1[%c0, %c0_0] : memref<32x546xbf16, #tpu.memory_space<vmem>>, vector<32x546xbf16>
    %c0_1 = arith.constant 0 : index
    %c0_2 = arith.constant 0 : index
    %1 = vector.load %arg6[%c0_1, %c0_2] : memref<9x512xbf16, #tpu.memory_space<vmem>>, vector<9x512xbf16>
    %c0_3 = arith.constant 0 : index
    %c0_4 = arith.constant 0 : index
    %c0_5 = arith.constant 0 : index
    %2 = vector.load %arg2[%c0_3, %c0_4, %c0_5] : memref<9x16x32xbf16, #tpu.memory_space<vmem>>, vector<9x16x32xbf16>
    %c0_6 = arith.constant 0 : index
    %c0_7 = arith.constant 0 : index
    %c0_8 = arith.constant 0 : index
    %3 = vector.load %arg4[%c0_6, %c0_7, %c0_8] : memref<9x16x16xbf16, #tpu.memory_space<vmem>>, vector<9x16x16xbf16>
    %cst = arith.constant 0.000000e+00 : f32
    %4 = vector.broadcast %cst : f32 to vector<16x512xf32>
    %5 = vector.extract_strided_slice %0 {offsets = [0, 0], sizes = [32, 512], strides = [1, 1]} : vector<32x546xbf16> to vector<32x512xbf16>
    %6 = vector.extract_strided_slice %1 {offsets = [0, 0], sizes = [1, 512], strides = [1, 1]} : vector<9x512xbf16> to vector<1x512xbf16>
    %7 = vector.broadcast %6 : vector<1x512xbf16> to vector<32x512xbf16>
    %8 = arith.mulf %5, %7 : vector<32x512xbf16>
    %9 = vector.extract_strided_slice %2 {offsets = [0, 0, 0], sizes = [1, 16, 32], strides = [1, 1, 1]} : vector<9x16x32xbf16> to vector<1x16x32xbf16>
    %10 = vector.shape_cast %9 : vector<1x16x32xbf16> to vector<16x32xbf16>
    %cst_9 = arith.constant dense<0.000000e+00> : vector<16x512xf32>
    %11 = tpu.matmul %10, %8, %cst_9 {dimension_numbers = #tpu.dot_dimension_numbers<[1], [0], [0], [1], [0, 0, 1, 1], [], []>} : vector<16x32xbf16>, vector<32x512xbf16>, vector<16x512xf32> -> vector<16x512xf32>
    %12 = arith.addf %4, %11 : vector<16x512xf32>
    %13 = vector.extract_strided_slice %0 {offsets = [0, 1], sizes = [32, 512], strides = [1, 1]} : vector<32x546xbf16> to vector<32x512xbf16>
    %14 = vector.extract_strided_slice %1 {offsets = [1, 0], sizes = [1, 512], strides = [1, 1]} : vector<9x512xbf16> to vector<1x512xbf16>
    %15 = vector.broadcast %14 : vector<1x512xbf16> to vector<32x512xbf16>
    %16 = arith.mulf %13, %15 : vector<32x512xbf16>
    %17 = vector.extract_strided_slice %2 {offsets = [1, 0, 0], sizes = [1, 16, 32], strides = [1, 1, 1]} : vector<9x16x32xbf16> to vector<1x16x32xbf16>
    %18 = vector.shape_cast %17 : vector<1x16x32xbf16> to vector<16x32xbf16>
    %cst_10 = arith.constant dense<0.000000e+00> : vector<16x512xf32>
    %19 = tpu.matmul %18, %16, %cst_10 {dimension_numbers = #tpu.dot_dimension_numbers<[1], [0], [0], [1], [0, 0, 1, 1], [], []>} : vector<16x32xbf16>, vector<32x512xbf16>, vector<16x512xf32> -> vector<16x512xf32>
    %20 = arith.addf %12, %19 : vector<16x512xf32>
    %21 = vector.extract_strided_slice %0 {offsets = [0, 2], sizes = [32, 512], strides = [1, 1]} : vector<32x546xbf16> to vector<32x512xbf16>
    %22 = vector.extract_strided_slice %1 {offsets = [2, 0], sizes = [1, 512], strides = [1, 1]} : vector<9x512xbf16> to vector<1x512xbf16>
    %23 = vector.broadcast %22 : vector<1x512xbf16> to vector<32x512xbf16>
    %24 = arith.mulf %21, %23 : vector<32x512xbf16>
    %25 = vector.extract_strided_slice %2 {offsets = [2, 0, 0], sizes = [1, 16, 32], strides = [1, 1, 1]} : vector<9x16x32xbf16> to vector<1x16x32xbf16>
    %26 = vector.shape_cast %25 : vector<1x16x32xbf16> to vector<16x32xbf16>
    %cst_11 = arith.constant dense<0.000000e+00> : vector<16x512xf32>
    %27 = tpu.matmul %26, %24, %cst_11 {dimension_numbers = #tpu.dot_dimension_numbers<[1], [0], [0], [1], [0, 0, 1, 1], [], []>} : vector<16x32xbf16>, vector<32x512xbf16>, vector<16x512xf32> -> vector<16x512xf32>
    %28 = arith.addf %20, %27 : vector<16x512xf32>
    %29 = vector.extract_strided_slice %0 {offsets = [0, 16], sizes = [32, 512], strides = [1, 1]} : vector<32x546xbf16> to vector<32x512xbf16>
    %30 = vector.extract_strided_slice %1 {offsets = [3, 0], sizes = [1, 512], strides = [1, 1]} : vector<9x512xbf16> to vector<1x512xbf16>
    %31 = vector.broadcast %30 : vector<1x512xbf16> to vector<32x512xbf16>
    %32 = arith.mulf %29, %31 : vector<32x512xbf16>
    %33 = vector.extract_strided_slice %2 {offsets = [3, 0, 0], sizes = [1, 16, 32], strides = [1, 1, 1]} : vector<9x16x32xbf16> to vector<1x16x32xbf16>
    %34 = vector.shape_cast %33 : vector<1x16x32xbf16> to vector<16x32xbf16>
    %cst_12 = arith.constant dense<0.000000e+00> : vector<16x512xf32>
    %35 = tpu.matmul %34, %32, %cst_12 {dimension_numbers = #tpu.dot_dimension_numbers<[1], [0], [0], [1], [0, 0, 1, 1], [], []>} : vector<16x32xbf16>, vector<32x512xbf16>, vector<16x512xf32> -> vector<16x512xf32>
    %36 = arith.addf %28, %35 : vector<16x512xf32>
    %37 = vector.extract_strided_slice %0 {offsets = [0, 17], sizes = [32, 512], strides = [1, 1]} : vector<32x546xbf16> to vector<32x512xbf16>
    %38 = vector.extract_strided_slice %1 {offsets = [4, 0], sizes = [1, 512], strides = [1, 1]} : vector<9x512xbf16> to vector<1x512xbf16>
    %39 = vector.broadcast %38 : vector<1x512xbf16> to vector<32x512xbf16>
    %40 = arith.mulf %37, %39 : vector<32x512xbf16>
    %41 = vector.extract_strided_slice %2 {offsets = [4, 0, 0], sizes = [1, 16, 32], strides = [1, 1, 1]} : vector<9x16x32xbf16> to vector<1x16x32xbf16>
    %42 = vector.shape_cast %41 : vector<1x16x32xbf16> to vector<16x32xbf16>
    %cst_13 = arith.constant dense<0.000000e+00> : vector<16x512xf32>
    %43 = tpu.matmul %42, %40, %cst_13 {dimension_numbers = #tpu.dot_dimension_numbers<[1], [0], [0], [1], [0, 0, 1, 1], [], []>} : vector<16x32xbf16>, vector<32x512xbf16>, vector<16x512xf32> -> vector<16x512xf32>
    %44 = arith.addf %36, %43 : vector<16x512xf32>
    %45 = vector.extract_strided_slice %0 {offsets = [0, 18], sizes = [32, 512], strides = [1, 1]} : vector<32x546xbf16> to vector<32x512xbf16>
    %46 = vector.extract_strided_slice %1 {offsets = [5, 0], sizes = [1, 512], strides = [1, 1]} : vector<9x512xbf16> to vector<1x512xbf16>
    %47 = vector.broadcast %46 : vector<1x512xbf16> to vector<32x512xbf16>
    %48 = arith.mulf %45, %47 : vector<32x512xbf16>
    %49 = vector.extract_strided_slice %2 {offsets = [5, 0, 0], sizes = [1, 16, 32], strides = [1, 1, 1]} : vector<9x16x32xbf16> to vector<1x16x32xbf16>
    %50 = vector.shape_cast %49 : vector<1x16x32xbf16> to vector<16x32xbf16>
    %cst_14 = arith.constant dense<0.000000e+00> : vector<16x512xf32>
    %51 = tpu.matmul %50, %48, %cst_14 {dimension_numbers = #tpu.dot_dimension_numbers<[1], [0], [0], [1], [0, 0, 1, 1], [], []>} : vector<16x32xbf16>, vector<32x512xbf16>, vector<16x512xf32> -> vector<16x512xf32>
    %52 = arith.addf %44, %51 : vector<16x512xf32>
    %53 = vector.extract_strided_slice %0 {offsets = [0, 32], sizes = [32, 512], strides = [1, 1]} : vector<32x546xbf16> to vector<32x512xbf16>
    %54 = vector.extract_strided_slice %1 {offsets = [6, 0], sizes = [1, 512], strides = [1, 1]} : vector<9x512xbf16> to vector<1x512xbf16>
    %55 = vector.broadcast %54 : vector<1x512xbf16> to vector<32x512xbf16>
    %56 = arith.mulf %53, %55 : vector<32x512xbf16>
    %57 = vector.extract_strided_slice %2 {offsets = [6, 0, 0], sizes = [1, 16, 32], strides = [1, 1, 1]} : vector<9x16x32xbf16> to vector<1x16x32xbf16>
    %58 = vector.shape_cast %57 : vector<1x16x32xbf16> to vector<16x32xbf16>
    %cst_15 = arith.constant dense<0.000000e+00> : vector<16x512xf32>
    %59 = tpu.matmul %58, %56, %cst_15 {dimension_numbers = #tpu.dot_dimension_numbers<[1], [0], [0], [1], [0, 0, 1, 1], [], []>} : vector<16x32xbf16>, vector<32x512xbf16>, vector<16x512xf32> -> vector<16x512xf32>
    %60 = arith.addf %52, %59 : vector<16x512xf32>
    %61 = vector.extract_strided_slice %0 {offsets = [0, 33], sizes = [32, 512], strides = [1, 1]} : vector<32x546xbf16> to vector<32x512xbf16>
    %62 = vector.extract_strided_slice %1 {offsets = [7, 0], sizes = [1, 512], strides = [1, 1]} : vector<9x512xbf16> to vector<1x512xbf16>
    %63 = vector.broadcast %62 : vector<1x512xbf16> to vector<32x512xbf16>
    %64 = arith.mulf %61, %63 : vector<32x512xbf16>
    %65 = vector.extract_strided_slice %2 {offsets = [7, 0, 0], sizes = [1, 16, 32], strides = [1, 1, 1]} : vector<9x16x32xbf16> to vector<1x16x32xbf16>
    %66 = vector.shape_cast %65 : vector<1x16x32xbf16> to vector<16x32xbf16>
    %cst_16 = arith.constant dense<0.000000e+00> : vector<16x512xf32>
    %67 = tpu.matmul %66, %64, %cst_16 {dimension_numbers = #tpu.dot_dimension_numbers<[1], [0], [0], [1], [0, 0, 1, 1], [], []>} : vector<16x32xbf16>, vector<32x512xbf16>, vector<16x512xf32> -> vector<16x512xf32>
    %68 = arith.addf %60, %67 : vector<16x512xf32>
    %69 = vector.extract_strided_slice %0 {offsets = [0, 34], sizes = [32, 512], strides = [1, 1]} : vector<32x546xbf16> to vector<32x512xbf16>
    %70 = vector.extract_strided_slice %1 {offsets = [8, 0], sizes = [1, 512], strides = [1, 1]} : vector<9x512xbf16> to vector<1x512xbf16>
    %71 = vector.broadcast %70 : vector<1x512xbf16> to vector<32x512xbf16>
    %72 = arith.mulf %69, %71 : vector<32x512xbf16>
    %73 = vector.extract_strided_slice %2 {offsets = [8, 0, 0], sizes = [1, 16, 32], strides = [1, 1, 1]} : vector<9x16x32xbf16> to vector<1x16x32xbf16>
    %74 = vector.shape_cast %73 : vector<1x16x32xbf16> to vector<16x32xbf16>
    %cst_17 = arith.constant dense<0.000000e+00> : vector<16x512xf32>
    %75 = tpu.matmul %74, %72, %cst_17 {dimension_numbers = #tpu.dot_dimension_numbers<[1], [0], [0], [1], [0, 0, 1, 1], [], []>} : vector<16x32xbf16>, vector<32x512xbf16>, vector<16x512xf32> -> vector<16x512xf32>
    %76 = arith.addf %68, %75 : vector<16x512xf32>
    %c0_18 = arith.constant 0 : index
    %c0_19 = arith.constant 0 : index
    %77 = vector.load %arg3[%c0_18, %c0_19] : memref<16x1xf32, #tpu.memory_space<vmem>>, vector<16x1xf32>
    %78 = vector.broadcast %77 : vector<16x1xf32> to vector<16x512xf32>
    %79 = arith.addf %76, %78 : vector<16x512xf32>
    %cst_20 = arith.constant 0.000000e+00 : f32
    %80 = vector.broadcast %cst_20 : f32 to vector<16x512xf32>
    %81 = arith.maximumf %79, %80 : vector<16x512xf32>
    %cst_21 = arith.constant 0.000000e+00 : bf16
    %82 = vector.broadcast %cst_21 : bf16 to vector<16x546xbf16>
    %c0_22 = arith.constant 0 : index
    %c0_23 = arith.constant 0 : index
    %83 = vector.load %arg10[%c0_22, %c0_23] : memref<16x546xbf16, #tpu.memory_space<vmem>>, vector<16x546xbf16>
    tpu.vector_store %arg10[%c0_22, %c0_23], %82 {strides = array<i32>} : memref<16x546xbf16, #tpu.memory_space<vmem>>, vector<16x546xbf16>,
    %84 = arith.truncf %81 : vector<16x512xf32> to vector<16x512xbf16>
    %c0_24 = arith.constant 0 : index
    %c17 = arith.constant 17 : index
    %85 = vector.load %arg10[%c0_24, %c17] : memref<16x546xbf16, #tpu.memory_space<vmem>>, vector<16x512xbf16>
    tpu.vector_store %arg10[%c0_24, %c17], %84 {strides = array<i32>} : memref<16x546xbf16, #tpu.memory_space<vmem>>, vector<16x512xbf16>,
    %c0_25 = arith.constant 0 : index
    %c0_26 = arith.constant 0 : index
    %86 = vector.load %arg10[%c0_25, %c0_26] : memref<16x546xbf16, #tpu.memory_space<vmem>>, vector<16x546xbf16>
    %cst_27 = arith.constant 0.000000e+00 : f32
    %87 = vector.broadcast %cst_27 : f32 to vector<16x512xf32>
    %88 = vector.extract_strided_slice %86 {offsets = [0, 0], sizes = [16, 512], strides = [1, 1]} : vector<16x546xbf16> to vector<16x512xbf16>
    %89 = vector.extract_strided_slice %1 {offsets = [0, 0], sizes = [1, 512], strides = [1, 1]} : vector<9x512xbf16> to vector<1x512xbf16>
    %90 = vector.broadcast %89 : vector<1x512xbf16> to vector<16x512xbf16>
    %91 = arith.mulf %88, %90 : vector<16x512xbf16>
    %92 = vector.extract_strided_slice %3 {offsets = [0, 0, 0], sizes = [1, 16, 16], strides = [1, 1, 1]} : vector<9x16x16xbf16> to vector<1x16x16xbf16>
    %93 = vector.shape_cast %92 : vector<1x16x16xbf16> to vector<16x16xbf16>
    %cst_28 = arith.constant dense<0.000000e+00> : vector<16x512xf32>
    %94 = tpu.matmul %93, %91, %cst_28 {dimension_numbers = #tpu.dot_dimension_numbers<[1], [0], [0], [1], [0, 0, 1, 1], [], []>} : vector<16x16xbf16>, vector<16x512xbf16>, vector<16x512xf32> -> vector<16x512xf32>
    %95 = arith.addf %87, %94 : vector<16x512xf32>
    %96 = vector.extract_strided_slice %86 {offsets = [0, 1], sizes = [16, 512], strides = [1, 1]} : vector<16x546xbf16> to vector<16x512xbf16>
    %97 = vector.extract_strided_slice %1 {offsets = [1, 0], sizes = [1, 512], strides = [1, 1]} : vector<9x512xbf16> to vector<1x512xbf16>
    %98 = vector.broadcast %97 : vector<1x512xbf16> to vector<16x512xbf16>
    %99 = arith.mulf %96, %98 : vector<16x512xbf16>
    %100 = vector.extract_strided_slice %3 {offsets = [1, 0, 0], sizes = [1, 16, 16], strides = [1, 1, 1]} : vector<9x16x16xbf16> to vector<1x16x16xbf16>
    %101 = vector.shape_cast %100 : vector<1x16x16xbf16> to vector<16x16xbf16>
    %cst_29 = arith.constant dense<0.000000e+00> : vector<16x512xf32>
    %102 = tpu.matmul %101, %99, %cst_29 {dimension_numbers = #tpu.dot_dimension_numbers<[1], [0], [0], [1], [0, 0, 1, 1], [], []>} : vector<16x16xbf16>, vector<16x512xbf16>, vector<16x512xf32> -> vector<16x512xf32>
    %103 = arith.addf %95, %102 : vector<16x512xf32>
    %104 = vector.extract_strided_slice %86 {offsets = [0, 2], sizes = [16, 512], strides = [1, 1]} : vector<16x546xbf16> to vector<16x512xbf16>
    %105 = vector.extract_strided_slice %1 {offsets = [2, 0], sizes = [1, 512], strides = [1, 1]} : vector<9x512xbf16> to vector<1x512xbf16>
    %106 = vector.broadcast %105 : vector<1x512xbf16> to vector<16x512xbf16>
    %107 = arith.mulf %104, %106 : vector<16x512xbf16>
    %108 = vector.extract_strided_slice %3 {offsets = [2, 0, 0], sizes = [1, 16, 16], strides = [1, 1, 1]} : vector<9x16x16xbf16> to vector<1x16x16xbf16>
    %109 = vector.shape_cast %108 : vector<1x16x16xbf16> to vector<16x16xbf16>
    %cst_30 = arith.constant dense<0.000000e+00> : vector<16x512xf32>
    %110 = tpu.matmul %109, %107, %cst_30 {dimension_numbers = #tpu.dot_dimension_numbers<[1], [0], [0], [1], [0, 0, 1, 1], [], []>} : vector<16x16xbf16>, vector<16x512xbf16>, vector<16x512xf32> -> vector<16x512xf32>
    %111 = arith.addf %103, %110 : vector<16x512xf32>
    %112 = vector.extract_strided_slice %86 {offsets = [0, 16], sizes = [16, 512], strides = [1, 1]} : vector<16x546xbf16> to vector<16x512xbf16>
    %113 = vector.extract_strided_slice %1 {offsets = [3, 0], sizes = [1, 512], strides = [1, 1]} : vector<9x512xbf16> to vector<1x512xbf16>
    %114 = vector.broadcast %113 : vector<1x512xbf16> to vector<16x512xbf16>
    %115 = arith.mulf %112, %114 : vector<16x512xbf16>
    %116 = vector.extract_strided_slice %3 {offsets = [3, 0, 0], sizes = [1, 16, 16], strides = [1, 1, 1]} : vector<9x16x16xbf16> to vector<1x16x16xbf16>
    %117 = vector.shape_cast %116 : vector<1x16x16xbf16> to vector<16x16xbf16>
    %cst_31 = arith.constant dense<0.000000e+00> : vector<16x512xf32>
    %118 = tpu.matmul %117, %115, %cst_31 {dimension_numbers = #tpu.dot_dimension_numbers<[1], [0], [0], [1], [0, 0, 1, 1], [], []>} : vector<16x16xbf16>, vector<16x512xbf16>, vector<16x512xf32> -> vector<16x512xf32>
    %119 = arith.addf %111, %118 : vector<16x512xf32>
    %120 = vector.extract_strided_slice %86 {offsets = [0, 17], sizes = [16, 512], strides = [1, 1]} : vector<16x546xbf16> to vector<16x512xbf16>
    %121 = vector.extract_strided_slice %1 {offsets = [4, 0], sizes = [1, 512], strides = [1, 1]} : vector<9x512xbf16> to vector<1x512xbf16>
    %122 = vector.broadcast %121 : vector<1x512xbf16> to vector<16x512xbf16>
    %123 = arith.mulf %120, %122 : vector<16x512xbf16>
    %124 = vector.extract_strided_slice %3 {offsets = [4, 0, 0], sizes = [1, 16, 16], strides = [1, 1, 1]} : vector<9x16x16xbf16> to vector<1x16x16xbf16>
    %125 = vector.shape_cast %124 : vector<1x16x16xbf16> to vector<16x16xbf16>
    %cst_32 = arith.constant dense<0.000000e+00> : vector<16x512xf32>
    %126 = tpu.matmul %125, %123, %cst_32 {dimension_numbers = #tpu.dot_dimension_numbers<[1], [0], [0], [1], [0, 0, 1, 1], [], []>} : vector<16x16xbf16>, vector<16x512xbf16>, vector<16x512xf32> -> vector<16x512xf32>
    %127 = arith.addf %119, %126 : vector<16x512xf32>
    %128 = vector.extract_strided_slice %86 {offsets = [0, 18], sizes = [16, 512], strides = [1, 1]} : vector<16x546xbf16> to vector<16x512xbf16>
    %129 = vector.extract_strided_slice %1 {offsets = [5, 0], sizes = [1, 512], strides = [1, 1]} : vector<9x512xbf16> to vector<1x512xbf16>
    %130 = vector.broadcast %129 : vector<1x512xbf16> to vector<16x512xbf16>
    %131 = arith.mulf %128, %130 : vector<16x512xbf16>
    %132 = vector.extract_strided_slice %3 {offsets = [5, 0, 0], sizes = [1, 16, 16], strides = [1, 1, 1]} : vector<9x16x16xbf16> to vector<1x16x16xbf16>
    %133 = vector.shape_cast %132 : vector<1x16x16xbf16> to vector<16x16xbf16>
    %cst_33 = arith.constant dense<0.000000e+00> : vector<16x512xf32>
    %134 = tpu.matmul %133, %131, %cst_33 {dimension_numbers = #tpu.dot_dimension_numbers<[1], [0], [0], [1], [0, 0, 1, 1], [], []>} : vector<16x16xbf16>, vector<16x512xbf16>, vector<16x512xf32> -> vector<16x512xf32>
    %135 = arith.addf %127, %134 : vector<16x512xf32>
    %136 = vector.extract_strided_slice %86 {offsets = [0, 32], sizes = [16, 512], strides = [1, 1]} : vector<16x546xbf16> to vector<16x512xbf16>
    %137 = vector.extract_strided_slice %1 {offsets = [6, 0], sizes = [1, 512], strides = [1, 1]} : vector<9x512xbf16> to vector<1x512xbf16>
    %138 = vector.broadcast %137 : vector<1x512xbf16> to vector<16x512xbf16>
    %139 = arith.mulf %136, %138 : vector<16x512xbf16>
    %140 = vector.extract_strided_slice %3 {offsets = [6, 0, 0], sizes = [1, 16, 16], strides = [1, 1, 1]} : vector<9x16x16xbf16> to vector<1x16x16xbf16>
    %141 = vector.shape_cast %140 : vector<1x16x16xbf16> to vector<16x16xbf16>
    %cst_34 = arith.constant dense<0.000000e+00> : vector<16x512xf32>
    %142 = tpu.matmul %141, %139, %cst_34 {dimension_numbers = #tpu.dot_dimension_numbers<[1], [0], [0], [1], [0, 0, 1, 1], [], []>} : vector<16x16xbf16>, vector<16x512xbf16>, vector<16x512xf32> -> vector<16x512xf32>
    %143 = arith.addf %135, %142 : vector<16x512xf32>
    %144 = vector.extract_strided_slice %86 {offsets = [0, 33], sizes = [16, 512], strides = [1, 1]} : vector<16x546xbf16> to vector<16x512xbf16>
    %145 = vector.extract_strided_slice %1 {offsets = [7, 0], sizes = [1, 512], strides = [1, 1]} : vector<9x512xbf16> to vector<1x512xbf16>
    %146 = vector.broadcast %145 : vector<1x512xbf16> to vector<16x512xbf16>
    %147 = arith.mulf %144, %146 : vector<16x512xbf16>
    %148 = vector.extract_strided_slice %3 {offsets = [7, 0, 0], sizes = [1, 16, 16], strides = [1, 1, 1]} : vector<9x16x16xbf16> to vector<1x16x16xbf16>
    %149 = vector.shape_cast %148 : vector<1x16x16xbf16> to vector<16x16xbf16>
    %cst_35 = arith.constant dense<0.000000e+00> : vector<16x512xf32>
    %150 = tpu.matmul %149, %147, %cst_35 {dimension_numbers = #tpu.dot_dimension_numbers<[1], [0], [0], [1], [0, 0, 1, 1], [], []>} : vector<16x16xbf16>, vector<16x512xbf16>, vector<16x512xf32> -> vector<16x512xf32>
    %151 = arith.addf %143, %150 : vector<16x512xf32>
    %152 = vector.extract_strided_slice %86 {offsets = [0, 34], sizes = [16, 512], strides = [1, 1]} : vector<16x546xbf16> to vector<16x512xbf16>
    %153 = vector.extract_strided_slice %1 {offsets = [8, 0], sizes = [1, 512], strides = [1, 1]} : vector<9x512xbf16> to vector<1x512xbf16>
    %154 = vector.broadcast %153 : vector<1x512xbf16> to vector<16x512xbf16>
    %155 = arith.mulf %152, %154 : vector<16x512xbf16>
    %156 = vector.extract_strided_slice %3 {offsets = [8, 0, 0], sizes = [1, 16, 16], strides = [1, 1, 1]} : vector<9x16x16xbf16> to vector<1x16x16xbf16>
    %157 = vector.shape_cast %156 : vector<1x16x16xbf16> to vector<16x16xbf16>
    %cst_36 = arith.constant dense<0.000000e+00> : vector<16x512xf32>
    %158 = tpu.matmul %157, %155, %cst_36 {dimension_numbers = #tpu.dot_dimension_numbers<[1], [0], [0], [1], [0, 0, 1, 1], [], []>} : vector<16x16xbf16>, vector<16x512xbf16>, vector<16x512xf32> -> vector<16x512xf32>
    %159 = arith.addf %151, %158 : vector<16x512xf32>
    %c0_37 = arith.constant 0 : index
    %c0_38 = arith.constant 0 : index
    %160 = vector.load %arg5[%c0_37, %c0_38] : memref<16x1xf32, #tpu.memory_space<vmem>>, vector<16x1xf32>
    %161 = vector.broadcast %160 : vector<16x1xf32> to vector<16x512xf32>
    %162 = arith.addf %159, %161 : vector<16x512xf32>
    %cst_39 = arith.constant 0.000000e+00 : f32
    %163 = vector.broadcast %cst_39 : f32 to vector<16x512xf32>
    %164 = arith.maximumf %162, %163 : vector<16x512xf32>
    %c0_40 = arith.constant 0 : index
    %c0_41 = arith.constant 0 : index
    %165 = vector.load %arg7[%c0_40, %c0_41] : memref<3x16xbf16, #tpu.memory_space<vmem>>, vector<3x16xbf16>
    %166 = arith.truncf %164 : vector<16x512xf32> to vector<16x512xbf16>
    %cst_42 = arith.constant dense<0.000000e+00> : vector<3x512xf32>
    %167 = tpu.matmul %165, %166, %cst_42 {dimension_numbers = #tpu.dot_dimension_numbers<[1], [0], [0], [1], [0, 0, 1, 1], [], []>} : vector<3x16xbf16>, vector<16x512xbf16>, vector<3x512xf32> -> vector<3x512xf32>
    %c0_43 = arith.constant 0 : index
    %c0_44 = arith.constant 0 : index
    %168 = vector.load %arg8[%c0_43, %c0_44] : memref<3x1xf32, #tpu.memory_space<vmem>>, vector<3x1xf32>
    %169 = vector.broadcast %168 : vector<3x1xf32> to vector<3x512xf32>
    %170 = arith.addf %167, %169 : vector<3x512xf32>
    %c0_45 = arith.constant 0 : index
    %c0_46 = arith.constant 0 : index
    %171 = vector.load %arg9[%c0_45, %c0_46] : memref<3x512xf32, #tpu.memory_space<vmem>>, vector<3x512xf32>
    tpu.vector_store %arg9[%c0_45, %c0_46], %170 {strides = array<i32>} : memref<3x512xf32, #tpu.memory_space<vmem>>, vector<3x512xf32>,
    return
  }
  func.func @transform_0(%arg0: i32) -> (i32, i32) {
    %c0_i32 = arith.constant 0 : i32
    %c0_i32_0 = arith.constant 0 : i32
    %c0_i32_1 = arith.constant 0 : i32
    return %c0_i32, %c0_i32_0 : i32, i32
  }
  func.func @transform_1(%arg0: i32) -> (i32, i32, i32) {
    %c0_i32 = arith.constant 0 : i32
    %c0_i32_0 = arith.constant 0 : i32
    %c0_i32_1 = arith.constant 0 : i32
    %c0_i32_2 = arith.constant 0 : i32
    return %c0_i32, %c0_i32_0, %c0_i32_1 : i32, i32, i32
  }
  func.func @transform_2(%arg0: i32) -> (i32, i32) {
    %c0_i32 = arith.constant 0 : i32
    %c0_i32_0 = arith.constant 0 : i32
    %c0_i32_1 = arith.constant 0 : i32
    return %c0_i32, %c0_i32_0 : i32, i32
  }
  func.func @transform_3(%arg0: i32) -> (i32, i32, i32) {
    %c0_i32 = arith.constant 0 : i32
    %c0_i32_0 = arith.constant 0 : i32
    %c0_i32_1 = arith.constant 0 : i32
    %c0_i32_2 = arith.constant 0 : i32
    return %c0_i32, %c0_i32_0, %c0_i32_1 : i32, i32, i32
  }
  func.func @transform_4(%arg0: i32) -> (i32, i32) {
    %c0_i32 = arith.constant 0 : i32
    %c0_i32_0 = arith.constant 0 : i32
    %c0_i32_1 = arith.constant 0 : i32
    return %c0_i32, %c0_i32_0 : i32, i32
  }
  func.func @transform_5(%arg0: i32) -> (i32, i32) {
    %c0_i32 = arith.constant 0 : i32
    %c0_i32_0 = arith.constant 0 : i32
    %c0_i32_1 = arith.constant 0 : i32
    return %c0_i32, %c0_i32_0 : i32, i32
  }
  func.func @transform_6(%arg0: i32) -> (i32, i32) {
    %c0_i32 = arith.constant 0 : i32
    %c0_i32_0 = arith.constant 0 : i32
    %c0_i32_1 = arith.constant 0 : i32
    return %c0_i32, %c0_i32_0 : i32, i32
  }
  func.func @transform_7(%arg0: i32) -> (i32, i32) {
    %c0_i32 = arith.constant 0 : i32
    %c0_i32_0 = arith.constant 0 : i32
    %c0_i32_1 = arith.constant 0 : i32
    return %c0_i32, %c0_i32_0 : i32, i32
  }
  func.func @transform_8(%arg0: i32) -> (i32, i32) {
    %c0_i32 = arith.constant 0 : i32
    %c0_i32_0 = arith.constant 0 : i32
    %c0_i32_1 = arith.constant 0 : i32
    return %c0_i32, %c0_i32_0 : i32, i32
  }
}

</mosaic_0001>

<bundles_post_ra>
// kernel: thin_dy_unet_forward.7
= control target key start
LH: loop header
LB: loop body
LE: loop exit
PB: predicated region body
PF: predicated region fallthrough
CT: control target
= control target key end

     0   :  { %s2040_s24 = smov 0   ;;  %s2235_s0 = inlined_call_operand.vmem [shape: bf16[2,4,290], index: 0, kind: input, shape index: {}]   ;;  %s2236_s1 = inlined_call_operand.vmem [shape: bf16[2,9,16,4], index: 1, kind: input, shape index: {}]   ;;  %s2237_s2 = inlined_call_operand.vmem [shape: bf16[9,256], index: 2, kind: input, shape index: {}]   ;;  %s2238_s3 = inlined_call_operand.vmem [shape: f32[8,16], index: 3, kind: input, shape index: {}]   ;;  %s2239_s4 = inlined_call_operand.vmem [shape: f32[16,8], index: 4, kind: input, shape index: {}]   ;;  %s2240_s5 = inlined_call_operand.vmem [shape: f32[16,1], index: 5, kind: input, shape index: {}]   ;;  %s2241_s6 = inlined_call_operand.vmem [shape: f32[16,1], index: 6, kind: input, shape index: {}]   ;;  %s2242_s7 = inlined_call_operand.vmem [shape: bf16[2,16,256], index: 7, kind: output, shape index: {}]  }
   0x1 LB: > { %s1796_s25 = sadd.s32 4294967295, %s1977_s24   ;;  %p1800_p0 = scmp.ge.s32.totalorder %s1977_s24, 1  ;;  %s1977_s24 = sphi %s2040_s24, %s17_s24  }
   0x2   : > { %p247_p1 = scmp.lt.s32.totalorder %s1977_s24, 3 }
   0x4   : > { %p248_p2 = pnand %p1800_p0, %p247_p1 }
   0x5   : > { %v319_v0 = vld [vmem:[%s2237_s2] sm:$0xff] (!%p248_p2)  ;;  %v329_v1 = vlaneseq (!%p248_p2)  ;;  %v1979_v4 = vmov (!%p248_p2), 1983009808   ;;  %v320_v7 = vld [vmem:[%s2237_s2 + $0x8] sm:$0x11] (!%p248_p2)  ;;  %p284_p3 = scmp.lt.s32.totalorder (!%p248_p2), %s1796_s25, 1 }
   0x6   : > { %251 = sbr.rel (%p248_p2) target bundleno = 1287 (0x507), region = 48  ;;  %v1805_v2 = vcombine.low (!%p248_p2), %v319_v0, %v319_v0  ;;  %v1806_v3 = vcombine.high (!%p248_p2), %v319_v0, %v319_v0  ;;  %v344_v5 = vunpack.c.l.s4 (!%p248_p2), %v1979_v4  ;;  %v1831_v19 = vcombine.low (!%p248_p2), %v320_v7, %v320_v7  ;;  %s1980_s11 = smov (!%p248_p2), 16  }
   0x7   : > { %v330_v6 = vshrl.u32 (!%p248_p2), %v329_v1, 7  ;;  %v1832_v23 = vcombine.high (!%p248_p2), %v320_v7, %v320_v7  ;;  %s1981_s12 = smov (!%p248_p2), 18   ;;  %s1982_s13 = smov (!%p248_p2), 17   ;;  %vm667_vm0 = vcmask (!%p248_p2), 130048   ;;  %v1988_v61 = vmov (!%p248_p2), 0  }
   0x8   : > { %v345_v8 = vunpack.c.0.s8 (!%p248_p2), %v344_v5  ;;  %v352_v9 = vshrl.u32 (!%p248_p2), %v1805_v2, 16  ;;  %v359_v10 = vshrl.u32 (!%p248_p2), %v1806_v3, 16  ;;  %v2054_v11 = vpack.i.b16 (!%p248_p2), %v1805_v2, %v1805_v2  ;;  %s1983_s14 = smov (!%p248_p2), 1   ;;  %s1984_s15 = smov (!%p248_p2), 32   ;;  %743 = vmatprep.mubr.bf16.mxu0 (!%p248_p2), %v1988_v61  ;;  %457 = vmatprep.mubr.bf16.mxu1 (!%p248_p2), %v1988_v61 }
   0x9   : > { %v536_v12 = vsub.s32 (!%p248_p2), 1, %v330_v6  ;;  %v2056_v13 = vpack.i.b16 (!%p248_p2), %v1806_v3, %v1806_v3  ;;  %v760_v14 = vsub.s32 (!%p248_p2), 2, %v330_v6  ;;  %v2058_v15 = vsub.s32 (!%p248_p2), 0, %v330_v6  ;;  %s1985_s16 = smov (!%p248_p2), 33   ;;  %s1986_s17 = smov (!%p248_p2), 2   ;;  %1955 = vset.pattern.permute.xlu1 (!%p248_p2), %v1988_v61  ;;  %1954 = vset.pattern.permute.xlu0 (!%p248_p2), %v1988_v61 }
   0xa   : > { %v353_v16 = vpack.i.b16 (!%p248_p2), %v352_v9, %v352_v9  ;;  %v360_v17 = vpack.i.b16 (!%p248_p2), %v359_v10, %v359_v10  ;;  %v984_v18 = vsub.s32 (!%p248_p2), 3, %v330_v6  ;;  %v2062_v20 = vsub.s32 (!%p248_p2), %v345_v8, %v330_v6  ;;  %s1987_s18 = smov (!%p248_p2), 34   ;;  %s1989_s23 = smov (!%p248_p2), 112  }
   0xb   : > { %v761_v21 = vrot.slane (!%p248_p2), %v2054_v11, %v760_v14  ;;  %v765_v22 = vrot.slane (!%p248_p2), %v2056_v13, %v760_v14  ;;  %v537_v40 = vrot.slane (!%p248_p2), %v2054_v11, %v536_v12  ;;  %v1212_v41 = vpack.i.b16 (!%p248_p2), %v1831_v19, %v1831_v19  ;;  %s1990_s26 = smov (!%p248_p2), 111   ;;  %s1991_s27 = smov (!%p248_p2), 110  }
   0xc   : > { %v649_v24 = vrot.slane (!%p248_p2), %v353_v16, %v536_v12  ;;  %v653_v25 = vrot.slane (!%p248_p2), %v360_v17, %v536_v12  ;;  %v873_v26 = vrot.slane (!%p248_p2), %v353_v16, %v760_v14  ;;  %v877_v27 = vrot.slane (!%p248_p2), %v360_v17, %v760_v14  ;;  %s1992_s28 = smov (!%p248_p2), 127   ;;  %s1993_s29 = smov (!%p248_p2), 96  }
   0xd   : > { %s2244_s25 = smov (!%p284_p3, %s1796_s25), 1  ;;  %v768_v28 = vcombine.low %v761_v21, %v765_v22  ;;  %v358_v29 = vrot.slane %v353_v16, %v2058_v15  ;;  %v365_v30 = vrot.slane %v360_v17, %v2058_v15  ;;  %v985_v31 = vrot.slane %v2054_v11, %v984_v18  ;;  %s1995_s8 = smov 126  }
   0xe   : > { %v656_v32 = vcombine.low %v649_v24, %v653_v25  ;;  %v880_v33 = vcombine.low %v873_v26, %v877_v27  ;;  %v989_v34 = vrot.slane %v2056_v13, %v984_v18  ;;  %v1097_v35 = vrot.slane %v353_v16, %v984_v18  ;;  %s1924_s30 = smul.u32 72, %s2244_s25  ;;  %s1996_s9 = smov 94  }
   0xf   : > { %v368_v36 = vcombine.low %v358_v29, %v365_v30  ;;  %v1101_v37 = vrot.slane %v360_v17, %v984_v18  ;;  %v775_v42 = vrot.slane %v768_v28, %v2062_v20  ;;  %v541_v44 = vrot.slane %v2056_v13, %v536_v12  ;;  %s1923_s19 = smul.u32 6, %s2244_s25 }
  0x10   : > { %v663_v38 = vrot.slane %v656_v32, %v2062_v20  ;;  %v887_v39 = vrot.slane %v880_v33, %v2062_v20  ;;  %s2081_s10 = scalar_lea.vmem %s2236_s1, %s1924_s30  ;;  %v992_v43 = vcombine.low %v985_v31, %v989_v34  ;;  %v1219_v45 = vpack.i.b16 %v1832_v23, %v1832_v23  ;;  %s1994_s30 = smov 95  }
  0x11   : > { %v375_v46 = vrot.slane %v368_v36, %v2062_v20  ;;  %v1104_v47 = vcombine.low %v1097_v35, %v1101_v37  ;;  %v1217_v48 = vrot.slane %v1212_v41, %v2058_v15  ;;  %v544_v50 = vcombine.low %v537_v40, %v541_v44  ;;  %s288_s22 = scalar_lea.vmem %s2235_s0, %s1923_s19 }
  0x12   : > { %664 = vrot.lane.b32.xlu0 %v663_v38, %s1980_s11  ;;  %888 = vrot.lane.b32.xlu1 %v887_v39, %s1981_s12  ;;  %v1224_v49 = vrot.slane %v1219_v45, %v2058_v15  ;;  %v999_v51 = vrot.slane %v992_v43, %v2062_v20  ;;  %v2096_v57 = vld [vmem:[%s288_s22] sm:$0x3f]  ;;  %vm779_vm1 = vcmask 138240   ;;  %vm891_vm2 = vcmask 146432  }
  0x13   : > { %v1111_v52 = vrot.slane %v1104_v47, %v2062_v20  ;;  %v551_v54 = vrot.slane %v544_v50, %v2062_v20  ;;  %vm379_vm3 = vcmask 7168   ;;  %vm1003_vm4 = vcmask 261120  }
  0x14   : > { %v1227_v53 = vcombine.low %v1217_v48, %v1224_v49  ;;  %vm1115_vm5 = vcmask 269312   ;;  %vm555_vm6 = vcmask 15360   ;;  %vm1238_vm7 = vcmask 277504  }
  0x15   : > { %vm699_vm8 = vcmask 916480   ;;  %vm418_vm9 = vcmask 1041408   ;;  %vm811_vm10 = vcmask 908288   ;;  %vm414_vm11 = vcmask 31744  }
  0x16   : > { %776 = vrot.lane.b32.xlu0 %v775_v42, %s1982_s13  ;;  %376 = vrot.lane.b32.xlu1 %v375_v46, %s1983_s14  ;;  %v1234_v55 = vrot.slane %v1227_v53, %v2062_v20  ;;  %vm923_vm12 = vcmask 900096   ;;  %vm411_vm13 = vcmask 1039360   ;;  %vm1035_vm14 = vcmask 785408  }
  0x17   : > { %vm1147_vm15 = vcmask 777216  }
  0x1a   : > { %1000 = vrot.lane.b32.xlu0 %v999_v51, %s1984_s15  ;;  %1112 = vrot.lane.b32.xlu1 %v1111_v52, %s1985_s16 }
  0x1e   : > { %552 = vrot.lane.b32.xlu0 %v551_v54, %s1986_s17  ;;  %1235 = vrot.lane.b32.xlu1 %v1234_v55, %s1987_s18 }
  0x84   : > { %v665_v56 = vpop.permute.xlu0 %664  ;;  %v889_v59 = vpop.permute.xlu1 %888 }
  0x85   : > { %v666_v58 = vrot.slane %v665_v56, 6  ;;  %v890_v1 = vrot.slane %v889_v59, 6 }
  0x87   : > { %v668_v60 = vsel %vm667_vm0, %v666_v58, %v665_v56  ;;  %v892_v8 = vsel %vm891_vm2, %v890_v1, %v889_v59  ;;  %vm1270_vm2 = vcmask 769024  }
  0x88   : > { %v670_v62 = vmul.bf16 %v668_v60, %v2096_v57  ;;  %v777_v63 = vpop.permute.xlu0 %776  ;;  %v377_v7 = vpop.permute.xlu1 %376  ;;  %v894_v17 = vmul.bf16 %v892_v8, %v2096_v57 }
  0x89   : > { %v778_v0 = vrot.slane %v777_v63, 6  ;;  %v378_v16 = vrot.slane %v377_v7, 6 }
  0x8a   : > { %v677_v2 = vcombine.high %v670_v62, %v670_v62  ;;  %v684_v3 = vrot.slane %v670_v62, %v2062_v20  ;;  %v901_v23 = vcombine.high %v894_v17, %v894_v17  ;;  %v908_v24 = vrot.slane %v894_v17, %v2062_v20 }
  0x8b   : > { %v780_v4 = vsel %vm779_vm1, %v778_v0, %v777_v63  ;;  %v380_v22 = vsel %vm379_vm3, %v378_v16, %v377_v7  ;;  %vm587_vm1 = vcmask 1031168   ;;  %vm1998_vm3 = vmmov 0  }
  0x8c   : > { %v782_v5 = vmul.bf16 %v780_v4, %v2096_v57  ;;  %693 = vrot.lane.b32.xlu0 %v684_v3, %s1989_s23  ;;  %v692_v6 = vcombine.high %v684_v3, %v684_v3  ;;  %v691_v10 = vrot.slane %v677_v2, %v2062_v20  ;;  %v1001_v14 = vpop.permute.xlu0 %1000  ;;  %v382_v26 = vmul.bf16 %v380_v22, %v2096_v57  ;;  %v1113_v28 = vpop.permute.xlu1 %1112 }
  0x8d   : > { %v1002_v19 = vrot.slane %v1001_v14, 6  ;;  %v916_v27 = vcombine.high %v908_v24, %v908_v24  ;;  %v915_v30 = vrot.slane %v901_v23, %v2062_v20  ;;  %v1114_v31 = vrot.slane %v1113_v28, 6 }
  0x8e   : > { %v789_v9 = vcombine.high %v782_v5, %v782_v5  ;;  %695 = vrot.lane.b32.xlu1 %v692_v6, %s1989_s23  ;;  %v796_v12 = vrot.slane %v782_v5, %v2062_v20  ;;  %v389_v32 = vcombine.high %v382_v26, %v382_v26  ;;  %v396_v33 = vrot.slane %v382_v26, %v2062_v20 }
  0x8f   : > { %v1004_v25 = vsel %vm1003_vm4, %v1002_v19, %v1001_v14  ;;  %v1116_v35 = vsel %vm1115_vm5, %v1114_v31, %v1113_v28  ;;  %v332_v4 = vrot.slane %v2054_v11, %v2058_v15  ;;  %v339_v5 = vrot.slane %v2056_v13, %v2058_v15 }
  0x90   : > { %697 = vrot.lane.b32.xlu0 %v691_v10, %s1989_s23  ;;  %v804_v18 = vcombine.high %v796_v12, %v796_v12  ;;  %v803_v21 = vrot.slane %v789_v9, %v2062_v20  ;;  %v1006_v29 = vmul.bf16 %v1004_v25, %v2096_v57  ;;  %v403_v36 = vrot.slane %v389_v32, %v2062_v20  ;;  %v553_v37 = vpop.permute.xlu0 %552  ;;  %v1236_v45 = vpop.permute.xlu1 %1235  ;;  %v1960_v9 = vld [vmem:[%s2081_s10 + $0x18] sm:$0xff]   ;;  %v1961_v25 = vld [vmem:[%s2081_s10 + $0x20] sm:$0xff]  }
  0x91   : > { %v404_v39 = vcombine.high %v396_v33, %v396_v33  ;;  %v1118_v40 = vmul.bf16 %v1116_v35, %v2096_v57  ;;  %v554_v41 = vrot.slane %v553_v37, 6  ;;  %v1237_v48 = vrot.slane %v1236_v45, 6  ;;  %v1962_v35 = vld [vmem:[%s2081_s10 + $0x8] sm:$0xff]  }
  0x92   : > { %805 = vrot.lane.b32.xlu1 %v796_v12, %s1990_s26  ;;  %v1020_v34 = vrot.slane %v1006_v29, %v2062_v20  ;;  %v1013_v38 = vcombine.high %v1006_v29, %v1006_v29  ;;  %v342_v12 = vcombine.low %v332_v4, %v339_v5  ;;  %vm1498_vm4 = vcmask 64512  }
  0x93   : > { %v1132_v43 = vrot.slane %v1118_v40, %v2062_v20  ;;  %v556_v46 = vsel %vm555_vm6, %v554_v41, %v553_v37  ;;  %v1125_v47 = vcombine.high %v1118_v40, %v1118_v40  ;;  %v1239_v52 = vsel %vm1238_vm7, %v1237_v48, %v1236_v45 }
  0x94   : > { %807 = vrot.lane.b32.xlu0 %v804_v18, %s1990_s26  ;;  %v1028_v42 = vcombine.high %v1020_v34, %v1020_v34  ;;  %v1027_v44 = vrot.slane %v1013_v38, %v2062_v20  ;;  %v558_v49 = vmul.bf16 %v556_v46, %v2096_v57  ;;  %v1241_v55 = vmul.bf16 %v1239_v52, %v2096_v57  ;;  %v1964_v46 = vld [vmem:[%s2081_s10] sm:$0xff]  }
  0x95   : > { %v1140_v50 = vcombine.high %v1132_v43, %v1132_v43  ;;  %v1139_v51 = vrot.slane %v1125_v47, %v2062_v20  ;;  %v349_v15 = vrot.slane %v342_v12, %v2062_v20 }
  0x96   : > { %809 = vrot.lane.b32.xlu1 %v803_v21, %s1990_s26  ;;  %v565_v53 = vcombine.high %v558_v49, %v558_v49  ;;  %v572_v54 = vrot.slane %v558_v49, %v2062_v20  ;;  %v1248_v59 = vcombine.high %v1241_v55, %v1241_v55  ;;  %v1255_v60 = vrot.slane %v1241_v55, %v2062_v20  ;;  %s1846_s26 = sshll.u32 %s2244_s25, 4 }
  0x97   : > { %v351_v21 = vmul.bf16 %v349_v15, %v2096_v57 }
  0x98   : > { %917 = vrot.lane.b32.xlu0 %v908_v24, %s1991_s27  ;;  %v580_v56 = vcombine.high %v572_v54, %v572_v54  ;;  %v579_v58 = vrot.slane %v565_v53, %v2062_v20  ;;  %v1263_v62 = vcombine.high %v1255_v60, %v1255_v60  ;;  %v1262_v63 = vrot.slane %v1248_v59, %v2062_v20  ;;  %v1965_v53 = vld [vmem:[%s2081_s10 + $0x30] sm:$0xff]  }
  0x99   : > { %v480_v28 = vrot.slane %v351_v21, %v2062_v20 }
  0x9a   : > { %919 = vrot.lane.b32.xlu1 %v916_v27, %s1991_s27 }
  0x9c   : > { %921 = vrot.lane.b32.xlu0 %v915_v30, %s1991_s27  ;;  %v481_v30 = vcombine.high %v480_v28, %v480_v28 }
  0x9e   : > { %405 = vrot.lane.b32.xlu1 %v396_v33, %s1992_s28 }
  0xa0   : > { %1029 = vrot.lane.b32.xlu0 %v1020_v34, %s1993_s29 }
  0xa2   : > { %409 = vrot.lane.b32.xlu1 %v403_v36, %s1992_s28  ;;  %v486_v36 = vsel %vm418_vm9, %v480_v28, 0  ;;  %v1345_v28 = vld [vmem:[%s2238_s3] sm:$0xff] }
  0xa4   : > { %407 = vrot.lane.b32.xlu0 %v404_v39, %s1992_s28  ;;  %v1963_v39 = vld [vmem:[%s2081_s10 + $0x28] sm:$0xff]  }
  0xa6   : > { %1031 = vrot.lane.b32.xlu1 %v1028_v42, %s1993_s29 }
  0xa8   : > { %1033 = vrot.lane.b32.xlu0 %v1027_v44, %s1993_s29  ;;  %s298_s29 = scalar_lea.vmem %s2242_s7, %s1846_s26 }
  0xaa   : > { %1141 = vrot.lane.b32.xlu1 %v1132_v43, %s1994_s30 }
  0xac   : > { %1143 = vrot.lane.b32.xlu0 %v1140_v50, %s1994_s30 }
  0xae   : > { %1145 = vrot.lane.b32.xlu1 %v1139_v51, %s1994_s30 }
  0xb0   : > { %581 = vrot.lane.b32.xlu0 %v572_v54, %s1995_s8 }
  0xb2   : > { %583 = vrot.lane.b32.xlu1 %v580_v56, %s1995_s8 }
  0xb4   : > { %585 = vrot.lane.b32.xlu0 %v579_v58, %s1995_s8 }
  0xb6   : > { %1264 = vrot.lane.b32.xlu1 %v1255_v60, %s1996_s9  ;;  %v1966_v60 = vld [vmem:[%s2081_s10 + $0x10] sm:$0xff]  }
  0xb8   : > { %1266 = vrot.lane.b32.xlu0 %v1263_v62, %s1996_s9 }
  0xba   : > { %1268 = vrot.lane.b32.xlu1 %v1262_v63, %s1996_s9  ;;  %v1967_v63 = vld [vmem:[%s2081_s10 + $0x38] sm:$0xff]  }
  0xfe   : > { %v694_v0 = vpop.permute.xlu0 %693 }
 0x100   : > { %v696_v1 = vpop.permute.xlu1 %695 }
 0x101   : > { %v700_v2 = vsel %vm699_vm8, %v694_v0, %v696_v1 }
 0x102   : > { %v698_v3 = vpop.permute.xlu0 %697  ;;  %v706_v8 = vsel %vm418_vm9, %v700_v2, 0 }
 0x103   : > { %v701_v6 = vsel %vm699_vm8, %v696_v1, %v698_v3  ;;  %v1968_v1 = vld [vmem:[%s2081_s10 + $0x40] sm:$0xff]  }
 0x104   : > { %v806_v7 = vpop.permute.xlu1 %805  ;;  %1817 = vmatprep.subr.msk.bf16.mxu0 %vm418_vm9, %v701_v6 }
 0x105   : > { %712 = vmatpush1.bf16.msra.mxu0 %v706_v8 }
 0x106   : > { %v808_v10 = vpop.permute.xlu0 %807 }
 0x107   : > { %v812_v14 = vsel %vm811_vm10, %v806_v7, %v808_v10 }
 0x108   : > { %v818_v16 = vsel %vm418_vm9, %v812_v14, 0  ;;  %v810_v17 = vpop.permute.xlu1 %809  ;;  %1818 = vmatmul.mubr.msk.bf16.vlgmr.msra.gmra.mrb[0].mxu0 %vm414_vm11, %v1960_v9 }
 0x109   : > { %v813_v11 = vsel %vm811_vm10, %v808_v10, %v810_v17  ;;  %855 = vmatprep.mubr.bf16.mxu0 %v1988_v61 }
 0x10a   : > { %1820 = vmatprep.subr.msk.bf16.mxu0 %vm418_vm9, %v813_v11  ;;  %v918_v13 = vpop.permute.xlu0 %917 }
 0x10b   : > { %824 = vmatpush1.bf16.msra.mxu0 %v818_v16 }
 0x10c   : > { %v920_v18 = vpop.permute.xlu1 %919 }
 0x10d   : > { %v924_v22 = vsel %vm923_vm12, %v918_v13, %v920_v18 }
 0x10e   : > { %v922_v19 = vpop.permute.xlu0 %921  ;;  %v930_v26 = vsel %vm418_vm9, %v924_v22, 0  ;;  %v1997_v22 = vmov 0.0|0.0  }
 0x10f   : > { %v925_v23 = vsel %vm923_vm12, %v920_v18, %v922_v19 }
 0x110   : > { %v406_v24 = vpop.permute.xlu1 %405  ;;  %1823 = vmatprep.subr.msk.bf16.mxu0 %vm418_vm9, %v925_v23  ;;  %v1999_v23 = vmov 0.0  }
 0x112   : > { %v1030_v27 = vpop.permute.xlu0 %1029 }
 0x114   : > { %1821 = vmatmul.mubr.msk.bf16.vlgmr.msra.gmra.mrb[0].mxu0 %vm414_vm11, %v1961_v25  ;;  %v410_v29 = vpop.permute.xlu1 %409 }
 0x115   : > { %936 = vmatpush1.bf16.msra.mxu0 %v930_v26  ;;  %967 = vmatprep.mubr.bf16.mxu0 %v1988_v61 }
 0x116   : > { %v408_v57 = vpop.permute.xlu0 %407 }
 0x117   : > { %v413_v31 = vsel %vm411_vm13, %v408_v57, %v410_v29  ;;  %v412_v32 = vsel %vm411_vm13, %v406_v24, %v408_v57 }
 0x118   : > { %1808 = vmatprep.subr.msk.bf16.mxu1 %vm418_vm9, %v413_v31  ;;  %v1032_v33 = vpop.permute.xlu1 %1031  ;;  %v420_v34 = vsel %vm418_vm9, %v412_v32, 0  ;;  %v1687_v31 = vld [vmem:[%s2241_s6] sm:$0xff] }
 0x119   : > { %426 = vmatpush1.bf16.msra.mxu1 %v420_v34  ;;  %v1036_v37 = vsel %vm1035_vm14, %v1030_v27, %v1032_v33 }
 0x11a   : > { %v1034_v20 = vpop.permute.xlu0 %1033  ;;  %1811 = vmatprep.subr.msk.bf16.mxu1 %vm418_vm9, %v481_v30  ;;  %v1042_v41 = vsel %vm418_vm9, %v1036_v37, 0  ;;  %v1496_v30 = vld [vmem:[%s2239_s4] sm:$0xff] }
 0x11b   : > { %v1037_v38 = vsel %vm1035_vm14, %v1032_v33, %v1034_v20 }
 0x11c   : > { %1809 = vmatmul.mubr.msk.bf16.vlgmr.msra.gmra.mrb[0].mxu1 %vm414_vm11, %v1962_v35  ;;  %1826 = vmatprep.subr.msk.bf16.mxu0 %vm418_vm9, %v1037_v38  ;;  %v1142_v40 = vpop.permute.xlu1 %1141  ;;  %v1497_v35 = vld [vmem:[%s2239_s4 + $0x8] sm:$0xff] }
 0x11d   : > { %492 = vmatpush1.bf16.msra.mxu1 %v486_v36  ;;  %523 = vmatprep.mubr.bf16.mxu1 %v1988_v61 }
 0x11e   : > { %v1144_v42 = vpop.permute.xlu0 %1143 }
 0x11f   : > { %v1148_v51 = vsel %vm1147_vm15, %v1142_v40, %v1144_v42 }
 0x120   : > { %1824 = vmatmul.mubr.msk.bf16.vlgmr.msra.gmra.mrb[0].mxu0 %vm414_vm11, %v1963_v39  ;;  %v1146_v43 = vpop.permute.xlu1 %1145  ;;  %v1154_v55 = vsel %vm418_vm9, %v1148_v51, 0 }
 0x121   : > { %1048 = vmatpush1.bf16.msra.mxu0 %v1042_v41  ;;  %v1149_v44 = vsel %vm1147_vm15, %v1144_v42, %v1146_v43  ;;  %1079 = vmatprep.mubr.bf16.mxu0 %v1988_v61 }
 0x122   : > { %v582_v45 = vpop.permute.xlu0 %581  ;;  %1829 = vmatprep.subr.msk.bf16.mxu0 %vm418_vm9, %v1149_v44  ;;  %v1670_v44 = vld [vmem:[%s2240_s5 + $0x8] sm:$0xff] }
 0x124   : > { %v584_v47 = vpop.permute.xlu1 %583 }
 0x125   : > { %v588_v48 = vsel %vm587_vm1, %v582_v45, %v584_v47 }
 0x126   : > { %v586_v49 = vpop.permute.xlu0 %585  ;;  %v594_v50 = vsel %vm418_vm9, %v588_v48, 0  ;;  %v1669_v48 = vld [vmem:[%s2240_s5] sm:$0xff] }
 0x127   : > { %v589_v52 = vsel %vm587_vm1, %v584_v47, %v586_v49 }
 0x128   : > { %1812 = vmatmul.mubr.msk.bf16.vlgmr.msra.gmra.mrb[0].mxu1 %vm414_vm11, %v1964_v46  ;;  %1814 = vmatprep.subr.msk.bf16.mxu1 %vm418_vm9, %v589_v52  ;;  %v1265_v54 = vpop.permute.xlu1 %1264 }
 0x129   : > { %600 = vmatpush1.bf16.msra.mxu1 %v594_v50  ;;  %631 = vmatprep.mubr.bf16.mxu1 %v1988_v61  ;;  %v1688_v50 = vld [vmem:[%s2241_s6 + $0x8] sm:$0xff] }
 0x12a   : > { %v1267_v56 = vpop.permute.xlu0 %1266  ;;  %1885 = vmatprep.subr.bf16.mxu1 %v1997_v22 }
 0x12b   : > { %v1271_v62 = vsel %vm1270_vm2, %v1265_v54, %v1267_v56 }
 0x12c   : > { %1827 = vmatmul.mubr.msk.bf16.vlgmr.msra.gmra.mrb[0].mxu0 %vm414_vm11, %v1965_v53  ;;  %v1269_v58 = vpop.permute.xlu1 %1268  ;;  %v1277_v0 = vsel %vm418_vm9, %v1271_v62, 0 }
 0x12d   : > { %1160 = vmatpush1.bf16.msra.mxu0 %v1154_v55  ;;  %v1272_v59 = vsel %vm1270_vm2, %v1267_v56, %v1269_v58  ;;  %1191 = vmatprep.mubr.bf16.mxu0 %v1988_v61 }
 0x12e   : > { %1834 = vmatprep.subr.msk.bf16.mxu0 %vm418_vm9, %v1272_v59 }
 0x134   : > { %1815 = vmatmul.mubr.msk.bf16.vlgmr.msra.gmra.mrb[0].mxu1 %vm414_vm11, %v1966_v60 }
 0x135   : > { %1865 = vmatprep.mubr.msk.f32.mxu1 %vm1998_vm3, %v1999_v23 }
 0x138   : > { %1830 = vmatmul.mubr.msk.bf16.vlgmr.msra.gmra.mrb[0].mxu0 %vm414_vm11, %v1967_v63 }
 0x139   : > { %1283 = vmatpush1.bf16.msra.mxu0 %v1277_v0  ;;  %1314 = vmatprep.mubr.bf16.mxu0 %v1988_v61 }
 0x144   : > { %1835 = vmatmul.mubr.msk.bf16.vlgmr.msra.gmra.mrb[0].mxu0 %vm414_vm11, %v1968_v1 }
 0x207   : > { %v633_v2 = vpop.f32.mrb[0].mxu1 }
 0x208   : > { %v635_v3 = vpop.f32.mrb[1].mxu1 }
 0x209   : > { %v637_v4 = vpop.f32.mrb[2].mxu1 }
 0x20a   : > { %v639_v5 = vpop.f32.mrb[3].mxu1 }
 0x217   : > { %v1316_v6 = vpop.f32.mrb[0].mxu0 }
 0x218   : > { %v2177_v7 = vadd.f32 %v1316_v6, %v633_v2  ;;  %v1318_v8 = vpop.f32.mrb[1].mxu0 }
 0x219   : > { %v2179_v9 = vadd.f32 %v1318_v8, %v635_v3  ;;  %v1320_v10 = vpop.f32.mrb[2].mxu0 }
 0x21a   : > { %v2181_v12 = vadd.f32 %v1320_v10, %v637_v4  ;;  %v1322_v14 = vpop.f32.mrb[3].mxu0  ;;  %v1335_v17 = vmul.f32 %v2177_v7, %v2177_v7 }
 0x21b   : > { %v2183_v16 = vadd.f32 %v1322_v14, %v639_v5  ;;  %v1329_v61 = vadd.f32 %v2179_v9, %v2177_v7  ;;  %v1336_v11 = vmul.f32 %v2179_v9, %v2179_v9 }
 0x21c   : > { %v1337_v18 = vmul.f32 %v2181_v12, %v2181_v12 }
 0x21d   : > { %1330 = vadd.xlane.f32.xlu0 %v1329_v61  ;;  %v1332_v13 = vadd.f32 %v2183_v16, %v2181_v12  ;;  %v1339_v15 = vadd.f32 %v1336_v11, %v1335_v17  ;;  %v1338_v19 = vmul.f32 %v2183_v16, %v2183_v16 }
 0x21f   : > { %1333 = vadd.xlane.f32.xlu1 %v1332_v13  ;;  %v1342_v21 = vadd.f32 %v1338_v19, %v1337_v18 }
 0x221   : > { %1340 = vadd.xlane.f32.xlu0 %v1339_v15 }
 0x225   : > { %1343 = vadd.xlane.f32.xlu0 %v1342_v21 }
 0x230   : > { %1691 = vperm.xlu1 %1955, %v1687_v31  }
 0x2aa   : > { %v1331_v24 = vpop.xlane.xlu0 %1330 }
 0x2ac   : > { %v1334_v25 = vpop.xlane.xlu1 %1333 }
 0x2ad   : > { %v1886_v26 = vpack.c.bf16 %v1334_v25, %v1331_v24 }
 0x2ae   : > { %v1341_v27 = vpop.xlane.xlu0 %1340 }
 0x2af   : > { %1887 = vmatpush3.bf16.msra.mxu1 %v1886_v26 }
 0x2b0   : > { %1888 = vmatprep.subr.bf16.mxu1 %v1997_v22  ;;  %v1692_v51 = vpop.permute.xlu1 %1691 }
 0x2b2   : > { %v1344_v29 = vpop.xlane.xlu0 %1343  ;;  %1866 = vmatmul.mubr.msk.f32.vlgmr.msra.gmra.mrb[4].mxu1 %vm667_vm0, %v1345_v28 }
 0x2b3   : > { %v1889_v57 = vpack.c.bf16 %v1344_v29, %v1341_v27  ;;  %1872 = vmatprep.mubr.msk.f32.mxu1 %vm1998_vm3, %v1999_v23 }
 0x2b5   : > { %1890 = vmatpush3.bf16.msra.mxu1 %v1889_v57 }
 0x2b8   : > { %1873 = vmatmul.mubr.msk.f32.vlgmr.msra.gmra.mrb[6].mxu1 %vm667_vm0, %v1345_v28 }
 0x2b9   : > { %1877 = vmatprep.mubr.msk.f32.mxu1 %vm1498_vm4, %v1496_v30 }
 0x385   : > { %v1416_v32 = vpop.f32.mrb[4].mxu1 }
 0x386   : > { %v1490_v33 = vmul.f32 0.001953125, %v1416_v32  ;;  %v1867_v34 = vpop.f32.mrb[5].mxu1 }
 0x388   : > { %1875 = vmatprep.subr.mxu1 %v1490_v33  ;;  %v1492_v37 = vmul.f32 %v1490_v33, %v1490_v33 }
 0x389   : > { %1876 = vmatpush3.msra.mxu1 %v1490_v33 }
 0x38a   : > { %1878 = vmatmul.mubr.msk.f32.vlgmr.msra.gmra.mrb[8].mxu1 %vm1498_vm4, %v1497_v35 }
 0x38b   : > { %v1486_v20 = vpop.f32.mrb[6].mxu1  ;;  %1882 = vmatprep.mubr.msk.f32.mxu1 %vm1498_vm4, %v1496_v30 }
 0x38c   : > { %v1491_v36 = vmul.f32 0.001953125, %v1486_v20  ;;  %v1874_v38 = vpop.f32.mrb[7].mxu1 }
 0x38e   : > { %v1493_v39 = vsub.f32 %v1491_v36, %v1492_v37 }
 0x390   : > { %v1494_v40 = vadd.f32 1e-05, %v1493_v39 }
 0x392   : > { %1969 = vrsqrt.f32 %v1494_v40 }
 0x39c   : > { %v1970_v41 = vpop.eup %1969 }
 0x39d   : > { %1880 = vmatprep.subr.mxu1 %v1970_v41 }
 0x39e   : > { %1881 = vmatpush3.msra.mxu1 %v1970_v41 }
 0x39f   : > { %1883 = vmatmul.mubr.msk.f32.vlgmr.msra.gmra.mrb[10].mxu1 %vm1498_vm4, %v1497_v35 }
 0x45d   : > { %v1879_v42 = vpop.f32.mrb[8].mxu1 }
 0x45e   : > { %1662 = vperm.xlu0 %1954, %v1879_v42   ;;  %v1571_v43 = vpop.f32.mrb[9].mxu1 }
 0x45f   : > { %1657 = vperm.xlu1 %1955, %v1571_v43  }
 0x472   : > { %v1884_v45 = vpop.f32.mrb[10].mxu1 }
 0x473   : > { %v1672_v46 = vmul.f32 %v1884_v45, %v1670_v44  ;;  %v1646_v47 = vpop.f32.mrb[11].mxu1 }
 0x474   : > { %v1671_v49 = vmul.f32 %v1669_v48, %v1646_v47 }
 0x475   : > { %1680 = vperm.xlu1 %1955, %v1672_v46  }
 0x479   : > { %1675 = vperm.xlu1 %1955, %v1671_v49  }
 0x47d   : > { %1696 = vperm.xlu1 %1955, %v1688_v50  }
 0x4dd   : > { %v1663_v54 = vpop.permute.xlu0 %1662 }
 0x4de   : > { %v1658_v52 = vpop.permute.xlu1 %1657  ;;  %v1667_v62 = vsub.f32 %v2181_v12, %v1663_v54  ;;  %v1668_v63 = vsub.f32 %v2183_v16, %v1663_v54 }
 0x4df   : > { %v1665_v55 = vsub.f32 %v2177_v7, %v1658_v52  ;;  %v1666_v56 = vsub.f32 %v2179_v9, %v1658_v52 }
 0x4f4   : > { %v1681_v53 = vpop.permute.xlu1 %1680 }
 0x4f5   : > { %v1685_v2 = vmul.f32 %v1681_v53, %v1667_v62  ;;  %v1686_v3 = vmul.f32 %v1681_v53, %v1668_v63 }
 0x4f8   : > { %v1676_v58 = vpop.permute.xlu1 %1675 }
 0x4f9   : > { %v1683_v59 = vmul.f32 %v1676_v58, %v1665_v55  ;;  %v1684_v60 = vmul.f32 %v1676_v58, %v1666_v56 }
 0x4fb   : > { %v1699_v0 = vadd.f32 %v1692_v51, %v1683_v59  ;;  %v1700_v1 = vadd.f32 %v1692_v51, %v1684_v60 }
 0x4fc   : > { %v1697_v4 = vpop.permute.xlu1 %1696 }
 0x4fd   : > { %vm1703_vm0 = vcmp.ge.f32.partialorder %v1699_v0, 0.0  ;;  %vm1704_vm5 = vcmp.ge.f32.partialorder %v1700_v1, 0.0  ;;  %v1707_v5 = vmul.f32 0.01, %v1699_v0  ;;  %v1708_v6 = vmul.f32 0.01, %v1700_v1 }
 0x4fe   : > { %v1701_v7 = vadd.f32 %v1697_v4, %v1685_v2  ;;  %v1702_v8 = vadd.f32 %v1697_v4, %v1686_v3 }
 0x4ff   : > { %v1711_v9 = vsel %vm1703_vm0, %v1699_v0, %v1707_v5  ;;  %v1712_v10 = vsel %vm1704_vm5, %v1700_v1, %v1708_v6 }
 0x500   : > { %v1847_v12 = vpack.c.bf16 %v1712_v10, %v1711_v9  ;;  %vm1705_vm6 = vcmp.ge.f32.partialorder %v1701_v7, 0.0  ;;  %vm1706_vm7 = vcmp.ge.f32.partialorder %v1702_v8, 0.0  ;;  %v1709_v14 = vmul.f32 0.01, %v1701_v7 }
 0x501   : > { %v1710_v16 = vmul.f32 0.01, %v1702_v8 }
 0x502   : > { %1727 = vst [vmem:[%s298_s29] sm:$0xff] %v1847_v12  ;;  %v1713_v61 = vsel %vm1705_vm6, %v1701_v7, %v1709_v14 }
 0x503   : > { %v1714_v17 = vsel %vm1706_vm7, %v1702_v8, %v1710_v16 }
 0x504   : > { %v1848_v11 = vpack.c.bf16 %v1714_v17, %v1713_v61 }
 0x506   : > { %1728 = vst [vmem:[%s298_s29 + $0x8] sm:$0xff] %v1848_v11 }
 0x507 PF: > { %s17_s24 = sadd.s32 1, %s1977_s24  }
 0x508   : > { %p14_p4 = scmp.ge.s32.totalorder %s17_s24, 4  }
 0x50a   :  { %16 = sbr.rel (!%p14_p4) target bundleno = 1 (0x1), region = 81 }

// kernel: thin_dy_unet_forward.8
= control target key start
LH: loop header
LB: loop body
LE: loop exit
PB: predicated region body
PF: predicated region fallthrough
CT: control target
= control target key end

     0   :  { %s1727_s24 = smov 0   ;;  %s1862_s0 = inlined_call_operand.vmem [shape: bf16[2,16,82], index: 0, kind: input, shape index: {}]   ;;  %s1863_s1 = inlined_call_operand.vmem [shape: bf16[2,9,16,16], index: 1, kind: input, shape index: {}]   ;;  %s1864_s2 = inlined_call_operand.vmem [shape: bf16[9,64], index: 2, kind: input, shape index: {}]   ;;  %s1865_s3 = inlined_call_operand.vmem [shape: f32[8,16], index: 3, kind: input, shape index: {}]   ;;  %s1866_s4 = inlined_call_operand.vmem [shape: f32[16,8], index: 4, kind: input, shape index: {}]   ;;  %s1867_s5 = inlined_call_operand.vmem [shape: f32[16,1], index: 5, kind: input, shape index: {}]   ;;  %s1868_s6 = inlined_call_operand.vmem [shape: f32[16,1], index: 6, kind: input, shape index: {}]   ;;  %s1869_s7 = inlined_call_operand.vmem [shape: bf16[2,16,64], index: 7, kind: output, shape index: {}]  }
   0x1 LB: > { %s1413_s25 = sadd.s32 4294967295, %s1665_s24   ;;  %p1417_p0 = scmp.ge.s32.totalorder %s1665_s24, 1  ;;  %s1665_s24 = sphi %s1727_s24, %s17_s24  }
   0x2   : > { %p247_p1 = scmp.lt.s32.totalorder %s1665_s24, 3 }
   0x4   : > { %p248_p2 = pnand %p1417_p0, %p247_p1 }
   0x5   : > { %v320_v0 = vld [vmem:[%s1864_s2] sm:$0xf] (!%p248_p2)  ;;  %v325_v1 = vlaneseq (!%p248_p2)  ;;  %p284_p3 = scmp.lt.s32.totalorder (!%p248_p2), %s1413_s25, 1  ;;  %v321_v14 = vld [vmem:[%s1864_s2 + $0x4] sm:$0x1] (!%p248_p2)  ;;  %s1667_s8 = smov (!%p248_p2), 8  }
   0x6   : > { %251 = sbr.rel (%p248_p2) target bundleno = 1271 (0x4f7), region = 48  ;;  %v335_v2 = vshrl.u32 (!%p248_p2), %v320_v0, 16  ;;  %v1738_v4 = vpack.i.b16 (!%p248_p2), %v320_v0, %v320_v0  ;;  %v890_v18 = vpack.i.b16 (!%p248_p2), %v321_v14, %v321_v14  ;;  %s1668_s9 = smov (!%p248_p2), 10   ;;  %v1673_v28 = vmov (!%p248_p2), 0.0  }
   0x7   : > { %v326_v3 = vshrl.u32 (!%p248_p2), %v325_v1, 7  ;;  %s1669_s13 = smov (!%p248_p2), 9   ;;  %s1670_s14 = smov (!%p248_p2), 1   ;;  %1521 = vmatprep.subr.bf16.mxu0 (!%p248_p2), %v1673_v28  ;;  %1503 = vmatprep.subr.bf16.mxu1 (!%p248_p2), %v1673_v28  ;;  %vm1676_vm0 = vmmov (!%p248_p2), 0   ;;  %vm363_vm1 = vcmask (!%p248_p2), 130048   ;;  %vm963_vm2 = vcmask (!%p248_p2), 523264  }
   0x8   : > { %v336_v5 = vpack.i.b16 (!%p248_p2), %v335_v2, %v335_v2  ;;  %s1671_s15 = smov (!%p248_p2), 16   ;;  %s1672_s16 = smov (!%p248_p2), 17   ;;  %1523 = vmatprep.mubr.msk.bf16.mxu0 (!%p248_p2), %vm1676_vm0, %v1673_v28  ;;  %1505 = vmatprep.mubr.msk.bf16.mxu1 (!%p248_p2), %vm1676_vm0, %v1673_v28  ;;  %vm1130_vm3 = vcmask (!%p248_p2), 64512   ;;  %vm1343_vm5 = vcmask (!%p248_p2), 519168  }
   0x9   : > { %v465_v6 = vsub.s32 (!%p248_p2), 1, %v326_v3  ;;  %v607_v7 = vsub.s32 (!%p248_p2), 2, %v326_v3  ;;  %v1740_v8 = vsub.s32 (!%p248_p2), 0, %v326_v3  ;;  %v749_v9 = vsub.s32 (!%p248_p2), 3, %v326_v3  ;;  %s1674_s17 = smov (!%p248_p2), 2   ;;  %s1675_s18 = smov (!%p248_p2), 18  }
   0xa   : > { %s1677_s23 = smov (!%p248_p2), 120   ;;  %s1678_s26 = smov (!%p248_p2), 119  }
   0xb   : > { %v537_v10 = vrot.slane (!%p248_p2), %v336_v5, %v465_v6  ;;  %v679_v11 = vrot.slane (!%p248_p2), %v336_v5, %v607_v7  ;;  %v608_v12 = vrot.slane (!%p248_p2), %v1738_v4, %v607_v7  ;;  %v341_v13 = vrot.slane (!%p248_p2), %v336_v5, %v1740_v8  ;;  %s1679_s27 = smov (!%p248_p2), 118   ;;  %s1680_s28 = smov (!%p248_p2), 127  }
   0xc   : > { %v750_v17 = vrot.slane (!%p248_p2), %v1738_v4, %v749_v9  ;;  %v821_v21 = vrot.slane (!%p248_p2), %v336_v5, %v749_v9  ;;  %v466_v22 = vrot.slane (!%p248_p2), %v1738_v4, %v465_v6  ;;  %v895_v25 = vrot.slane (!%p248_p2), %v890_v18, %v1740_v8  ;;  %s1681_s29 = smov (!%p248_p2), 112  }
   0xd   : > { %s1871_s25 = smov (!%p284_p3, %s1413_s25), 1  ;;  %v1435_v15 = vcombine.low %v537_v10, %v537_v10  ;;  %v1443_v16 = vcombine.low %v679_v11, %v679_v11  ;;  %v1439_v19 = vcombine.low %v608_v12, %v608_v12  ;;  %v1424_v20 = vcombine.low %v341_v13, %v341_v13 }
   0xe   : > { %s1617_s30 = smul.u32 72, %s1871_s25  ;;  %v1447_v23 = vcombine.low %v750_v17, %v750_v17  ;;  %v1451_v24 = vcombine.low %v821_v21, %v821_v21  ;;  %v1431_v26 = vcombine.low %v466_v22, %v466_v22  ;;  %v1455_v27 = vcombine.low %v895_v25, %v895_v25  ;;  %s1469_s19 = sshll.u32 %s1871_s25, 3 }
   0xf   : > { %541 = vrot.lane.b32.xlu0 %v1435_v15, %s1667_s8  ;;  %683 = vrot.lane.b32.xlu1 %v1443_v16, %s1668_s9  ;;  %s288_s22 = scalar_lea.vmem %s1862_s0, %s1469_s19  ;;  %v328_v45 = vrot.slane %v1738_v4, %v1740_v8  ;;  %s1683_s8 = smov 111  }
  0x10   : > { %s1754_s12 = scalar_lea.vmem %s1863_s1, %s1617_s30  ;;  %v300_v29 = vld [vmem:[%s288_s22] sm:$0xf]  ;;  %v301_v30 = vld [vmem:[%s288_s22 + $0x4] sm:$0xf]  ;;  %s1682_s30 = smov 126  }
  0x11   : > { %v1423_v50 = vcombine.low %v328_v45, %v328_v45  ;;  %s1684_s9 = smov 110   ;;  %v1648_v5 = vld [vmem:[%s1754_s12 + $0x18] sm:$0xff]   ;;  %v1649_v8 = vld [vmem:[%s1754_s12 + $0x8] sm:$0xff]   ;;  %v1650_v10 = vld [vmem:[%s1754_s12 + $0x20] sm:$0xff]  }
  0x12   : > { %v1651_v12 = vld [vmem:[%s1754_s12] sm:$0xff]   ;;  %v1652_v14 = vld [vmem:[%s1754_s12 + $0x28] sm:$0xff]   ;;  %v1653_v15 = vld [vmem:[%s1754_s12 + $0x10] sm:$0xff]  }
  0x13   : > { %612 = vrot.lane.b32.xlu0 %v1439_v19, %s1669_s13  ;;  %345 = vrot.lane.b32.xlu1 %v1424_v20, %s1670_s14  ;;  %v333_v55 = vmul.bf16 %v1423_v50, %v300_v29  ;;  %v334_v56 = vmul.bf16 %v1423_v50, %v301_v30  ;;  %v1654_v16 = vld [vmem:[%s1754_s12 + $0x30] sm:$0xff]   ;;  %v1655_v18 = vld [vmem:[%s1754_s12 + $0x38] sm:$0xff]  }
  0x14   : > { %v1656_v20 = vld [vmem:[%s1754_s12 + $0x40] sm:$0xff]  }
  0x15   : > { %v1429_v61 = vcombine.low %v333_v55, %v334_v56 }
  0x17   : > { %754 = vrot.lane.b32.xlu0 %v1447_v23, %s1671_s15  ;;  %825 = vrot.lane.b32.xlu1 %v1451_v24, %s1672_s16 }
  0x1b   : > { %470 = vrot.lane.b32.xlu0 %v1431_v26, %s1674_s17  ;;  %899 = vrot.lane.b32.xlu1 %v1455_v27, %s1675_s18 }
  0x81   : > { %v542_v31 = vpop.permute.xlu0 %541  ;;  %v684_v32 = vpop.permute.xlu1 %683 }
  0x82   : > { %v544_v33 = vmul.bf16 %v542_v31, %v300_v29  ;;  %v545_v34 = vmul.bf16 %v542_v31, %v301_v30  ;;  %v686_v35 = vmul.bf16 %v684_v32, %v300_v29  ;;  %v687_v36 = vmul.bf16 %v684_v32, %v301_v30 }
  0x84   : > { %v1437_v37 = vcombine.low %v544_v33, %v545_v34  ;;  %v1445_v38 = vcombine.low %v686_v35, %v687_v36 }
  0x85   : > { %v613_v39 = vpop.permute.xlu0 %612  ;;  %v346_v40 = vpop.permute.xlu1 %345 }
  0x86   : > { %v615_v41 = vmul.bf16 %v613_v39, %v300_v29  ;;  %v616_v42 = vmul.bf16 %v613_v39, %v301_v30  ;;  %556 = vrot.lane.b32.xlu0 %v1437_v37, %s1677_s23  ;;  %v348_v43 = vmul.bf16 %v346_v40, %v300_v29  ;;  %v349_v44 = vmul.bf16 %v346_v40, %v301_v30 }
  0x88   : > { %v1441_v46 = vcombine.low %v615_v41, %v616_v42  ;;  %v1426_v47 = vcombine.low %v348_v43, %v349_v44  ;;  %v978_v43 = vld [vmem:[%s1865_s3] sm:$0xff] }
  0x89   : > { %v755_v48 = vpop.permute.xlu0 %754  ;;  %v826_v49 = vpop.permute.xlu1 %825 }
  0x8a   : > { %627 = vrot.lane.b32.xlu1 %v1441_v46, %s1678_s26  ;;  %698 = vrot.lane.b32.xlu0 %v1445_v38, %s1679_s27  ;;  %v757_v51 = vmul.bf16 %v755_v48, %v300_v29  ;;  %v758_v52 = vmul.bf16 %v755_v48, %v301_v30  ;;  %v828_v53 = vmul.bf16 %v826_v49, %v300_v29  ;;  %v1685_v38 = vmov 0.0|0.0   ;;  %v1128_v46 = vld [vmem:[%s1866_s4] sm:$0xff] }
  0x8b   : > { %v829_v54 = vmul.bf16 %v826_v49, %v301_v30  ;;  %v1686_v48 = vmov 0  }
  0x8c   : > { %v1449_v57 = vcombine.low %v757_v51, %v758_v52  ;;  %1647 = vset.pattern.permute.xlu1 %v1686_v48  ;;  %1646 = vset.pattern.permute.xlu0 %v1686_v48  ;;  %v1129_v51 = vld [vmem:[%s1866_s4 + $0x8] sm:$0xff] }
  0x8d   : > { %v471_v58 = vpop.permute.xlu0 %470  ;;  %v1453_v59 = vcombine.low %v828_v53, %v829_v54  ;;  %v900_v60 = vpop.permute.xlu1 %899 }
  0x8e   : > { %360 = vrot.lane.b32.xlu1 %v1426_v47, %s1680_s28  ;;  %v473_v62 = vmul.bf16 %v471_v58, %v300_v29  ;;  %v474_v63 = vmul.bf16 %v471_v58, %v301_v30  ;;  %769 = vrot.lane.b32.xlu0 %v1449_v57, %s1681_s29  ;;  %v902_v0 = vmul.bf16 %v900_v60, %v300_v29  ;;  %v1315_v47 = vld [vmem:[%s1868_s6] sm:$0xff]  ;;  %s298_s29 = scalar_lea.vmem %s1869_s7, %s1469_s19 }
  0x8f   : > { %v903_v1 = vmul.bf16 %v900_v60, %v301_v30 }
  0x90   : > { %v1433_v2 = vcombine.low %v473_v62, %v474_v63 }
  0x91   : > { %v1457_v3 = vcombine.low %v902_v0, %v903_v1  ;;  %v1299_v1 = vld [vmem:[%s1867_s5] sm:$0xff] }
  0x92   : > { %485 = vrot.lane.b32.xlu0 %v1433_v2, %s1682_s30  ;;  %840 = vrot.lane.b32.xlu1 %v1453_v59, %s1683_s8 }
  0x96   : > { %914 = vrot.lane.b32.xlu1 %v1457_v3, %s1684_s9  ;;  %v1316_v3 = vld [vmem:[%s1868_s6 + $0x8] sm:$0xff] }
  0xf8   : > { %v557_v4 = vpop.permute.xlu0 %556 }
  0xf9   : > { %1522 = vmatpush3.bf16.msra.mxu0 %v557_v4 }
  0xfa   : > { %1527 = vmatprep.subr.bf16.mxu0 %v1673_v28 }
  0xfc   : > { %1524 = vmatmul.mubr.msk.bf16.vlgmr.msra.gmra.mrb[0].mxu0 %vm363_vm1, %v1648_v5  ;;  %v628_v6 = vpop.permute.xlu1 %627  ;;  %v699_v9 = vpop.permute.xlu0 %698 }
  0xfd   : > { %1528 = vmatpush3.bf16.msra.mxu0 %v628_v6  ;;  %1529 = vmatprep.mubr.msk.bf16.mxu0 %vm1676_vm0, %v1673_v28 }
  0xfe   : > { %1533 = vmatprep.subr.bf16.mxu0 %v1673_v28 }
 0x100   : > { %v361_v7 = vpop.permute.xlu1 %360  ;;  %v770_v11 = vpop.permute.xlu0 %769 }
 0x101   : > { %1504 = vmatpush3.bf16.msra.mxu1 %v361_v7 }
 0x102   : > { %1509 = vmatprep.subr.bf16.mxu1 %v1673_v28 }
 0x104   : > { %1506 = vmatmul.mubr.msk.bf16.vlgmr.msra.gmra.mrb[0].mxu1 %vm363_vm1, %v1649_v8  ;;  %v486_v13 = vpop.permute.xlu0 %485  ;;  %v841_v17 = vpop.permute.xlu1 %840 }
 0x105   : > { %1510 = vmatpush3.bf16.msra.mxu1 %v1429_v61  ;;  %1511 = vmatprep.mubr.msk.bf16.mxu1 %vm1676_vm0, %v1673_v28  ;;  %v1300_v61 = vld [vmem:[%s1867_s5 + $0x8] sm:$0xff] }
 0x106   : > { %1515 = vmatprep.subr.bf16.mxu1 %v1673_v28 }
 0x108   : > { %1530 = vmatmul.mubr.msk.bf16.vlgmr.msra.gmra.mrb[0].mxu0 %vm363_vm1, %v1650_v10  ;;  %v915_v19 = vpop.permute.xlu1 %914 }
 0x109   : > { %1534 = vmatpush3.bf16.msra.mxu0 %v699_v9  ;;  %1535 = vmatprep.mubr.msk.bf16.mxu0 %vm1676_vm0, %v1673_v28 }
 0x10a   : > { %1539 = vmatprep.subr.bf16.mxu0 %v1673_v28 }
 0x110   : > { %1512 = vmatmul.mubr.msk.bf16.vlgmr.msra.gmra.mrb[0].mxu1 %vm363_vm1, %v1651_v12 }
 0x111   : > { %1516 = vmatpush3.bf16.msra.mxu1 %v486_v13  ;;  %1517 = vmatprep.mubr.msk.bf16.mxu1 %vm1676_vm0, %v1673_v28 }
 0x112   : > { %1581 = vmatprep.subr.bf16.mxu1 %v1685_v38 }
 0x114   : > { %1536 = vmatmul.mubr.msk.bf16.vlgmr.msra.gmra.mrb[0].mxu0 %vm363_vm1, %v1652_v14 }
 0x115   : > { %1540 = vmatpush3.bf16.msra.mxu0 %v770_v11  ;;  %1541 = vmatprep.mubr.msk.bf16.mxu0 %vm1676_vm0, %v1673_v28 }
 0x116   : > { %1545 = vmatprep.subr.bf16.mxu0 %v1673_v28 }
 0x11c   : > { %1518 = vmatmul.mubr.msk.bf16.vlgmr.msra.gmra.mrb[0].mxu1 %vm363_vm1, %v1653_v15 }
 0x11d   : > { %1561 = vmatprep.mubr.msk.f32.mxu1 %vm1676_vm0, %v1673_v28 }
 0x120   : > { %1542 = vmatmul.mubr.msk.bf16.vlgmr.msra.gmra.mrb[0].mxu0 %vm363_vm1, %v1654_v16 }
 0x121   : > { %1546 = vmatpush3.bf16.msra.mxu0 %v841_v17  ;;  %1547 = vmatprep.mubr.msk.bf16.mxu0 %vm1676_vm0, %v1673_v28 }
 0x122   : > { %1551 = vmatprep.subr.bf16.mxu0 %v1673_v28 }
 0x12c   : > { %1548 = vmatmul.mubr.msk.bf16.vlgmr.msra.gmra.mrb[0].mxu0 %vm363_vm1, %v1655_v18 }
 0x12d   : > { %1552 = vmatpush3.bf16.msra.mxu0 %v915_v19  ;;  %1553 = vmatprep.mubr.msk.bf16.mxu0 %vm1676_vm0, %v1673_v28 }
 0x138   : > { %1554 = vmatmul.mubr.msk.bf16.vlgmr.msra.gmra.mrb[0].mxu0 %vm363_vm1, %v1656_v20 }
 0x1ef   : > { %v525_v21 = vpop.f32.mrb[0].mxu1 }
 0x1f0   : > { %v1519_v22 = vpop.f32.mrb[1].mxu1 }
 0x1f1   : > { %v528_v23 = vpop.f32.mrb[2].mxu1 }
 0x1f2   : > { %v1520_v24 = vpop.f32.mrb[3].mxu1 }
 0x20b   : > { %v954_v25 = vpop.f32.mrb[0].mxu0 }
 0x20c   : > { %v1813_v26 = vadd.f32 %v954_v25, %v525_v21  ;;  %v1555_v27 = vpop.f32.mrb[1].mxu0 }
 0x20d   : > { %v957_v29 = vpop.f32.mrb[2].mxu0 }
 0x20e   : > { %v1815_v30 = vadd.f32 %v957_v29, %v528_v23  ;;  %v1556_v31 = vpop.f32.mrb[3].mxu0  ;;  %v964_v32 = vsel %vm963_vm2, %v1813_v26, 0.0  ;;  %v970_v33 = vmul.f32 %v1813_v26, %v1813_v26 }
 0x20f   : > { %965 = vadd.xlane.f32.xlu0 %v964_v32 }
 0x210   : > { %v967_v34 = vsel %vm963_vm2, %v1815_v30, 0.0  ;;  %v972_v35 = vsel %vm963_vm2, %v970_v33, 0.0  ;;  %v971_v36 = vmul.f32 %v1815_v30, %v1815_v30 }
 0x211   : > { %968 = vadd.xlane.f32.xlu1 %v967_v34 }
 0x212   : > { %v975_v37 = vsel %vm963_vm2, %v971_v36, 0.0 }
 0x213   : > { %973 = vadd.xlane.f32.xlu0 %v972_v35 }
 0x217   : > { %976 = vadd.xlane.f32.xlu0 %v975_v37 }
 0x222   : > { %1319 = vperm.xlu1 %1647, %v1315_v47  }
 0x29c   : > { %v966_v39 = vpop.xlane.xlu0 %965 }
 0x29e   : > { %v969_v40 = vpop.xlane.xlu1 %968 }
 0x29f   : > { %v1582_v41 = vpack.c.bf16 %v969_v40, %v966_v39 }
 0x2a0   : > { %v974_v42 = vpop.xlane.xlu0 %973 }
 0x2a1   : > { %1583 = vmatpush3.bf16.msra.mxu1 %v1582_v41 }
 0x2a2   : > { %1584 = vmatprep.subr.bf16.mxu1 %v1685_v38  ;;  %v1320_v4 = vpop.permute.xlu1 %1319 }
 0x2a4   : > { %v977_v44 = vpop.xlane.xlu0 %976  ;;  %1562 = vmatmul.mubr.msk.f32.vlgmr.msra.gmra.mrb[4].mxu1 %vm363_vm1, %v978_v43 }
 0x2a5   : > { %v1585_v45 = vpack.c.bf16 %v977_v44, %v974_v42  ;;  %1568 = vmatprep.mubr.msk.f32.mxu1 %vm1676_vm0, %v1673_v28 }
 0x2a7   : > { %1586 = vmatpush3.bf16.msra.mxu1 %v1585_v45 }
 0x2aa   : > { %1569 = vmatmul.mubr.msk.f32.vlgmr.msra.gmra.mrb[6].mxu1 %vm363_vm1, %v978_v43 }
 0x2ab   : > { %1573 = vmatprep.mubr.msk.f32.mxu1 %vm1130_vm3, %v1128_v46 }
 0x377   : > { %v1048_v49 = vpop.f32.mrb[4].mxu1 }
 0x378   : > { %v1122_v28 = vmul.f32 0.0078125, %v1048_v49  ;;  %v1563_v50 = vpop.f32.mrb[5].mxu1 }
 0x37a   : > { %1571 = vmatprep.subr.mxu1 %v1122_v28  ;;  %v1124_v54 = vmul.f32 %v1122_v28, %v1122_v28 }
 0x37b   : > { %1572 = vmatpush3.msra.mxu1 %v1122_v28 }
 0x37c   : > { %1574 = vmatmul.mubr.msk.f32.vlgmr.msra.gmra.mrb[8].mxu1 %vm1130_vm3, %v1129_v51 }
 0x37d   : > { %v1118_v52 = vpop.f32.mrb[6].mxu1  ;;  %1578 = vmatprep.mubr.msk.f32.mxu1 %vm1130_vm3, %v1128_v46 }
 0x37e   : > { %v1123_v53 = vmul.f32 0.0078125, %v1118_v52  ;;  %v1570_v55 = vpop.f32.mrb[7].mxu1 }
 0x380   : > { %v1125_v56 = vsub.f32 %v1123_v53, %v1124_v54 }
 0x382   : > { %v1126_v57 = vadd.f32 1e-05, %v1125_v56 }
 0x384   : > { %1657 = vrsqrt.f32 %v1126_v57 }
 0x38e   : > { %v1658_v58 = vpop.eup %1657 }
 0x38f   : > { %1576 = vmatprep.subr.mxu1 %v1658_v58 }
 0x390   : > { %1577 = vmatpush3.msra.mxu1 %v1658_v58 }
 0x391   : > { %1579 = vmatmul.mubr.msk.f32.vlgmr.msra.gmra.mrb[10].mxu1 %vm1130_vm3, %v1129_v51 }
 0x44f   : > { %v1575_v59 = vpop.f32.mrb[8].mxu1 }
 0x450   : > { %1294 = vperm.xlu0 %1646, %v1575_v59   ;;  %v1203_v60 = vpop.f32.mrb[9].mxu1 }
 0x451   : > { %1289 = vperm.xlu1 %1647, %v1203_v60  }
 0x464   : > { %v1580_v62 = vpop.f32.mrb[10].mxu1 }
 0x465   : > { %v1302_v63 = vmul.f32 %v1580_v62, %v1300_v61  ;;  %v1278_v0 = vpop.f32.mrb[11].mxu1 }
 0x466   : > { %v1301_v2 = vmul.f32 %v1299_v1, %v1278_v0 }
 0x467   : > { %1310 = vperm.xlu1 %1647, %v1302_v63  }
 0x46b   : > { %1305 = vperm.xlu1 %1647, %v1301_v2  }
 0x46f   : > { %1324 = vperm.xlu1 %1647, %v1316_v3  }
 0x4cf   : > { %v1295_v7 = vpop.permute.xlu0 %1294 }
 0x4d0   : > { %v1290_v5 = vpop.permute.xlu1 %1289  ;;  %v1298_v10 = vsub.f32 %v1815_v30, %v1295_v7 }
 0x4d1   : > { %v1297_v8 = vsub.f32 %v1813_v26, %v1290_v5 }
 0x4e6   : > { %v1311_v6 = vpop.permute.xlu1 %1310 }
 0x4e7   : > { %v1314_v12 = vmul.f32 %v1311_v6, %v1298_v10 }
 0x4ea   : > { %v1306_v9 = vpop.permute.xlu1 %1305 }
 0x4eb   : > { %v1313_v11 = vmul.f32 %v1306_v9, %v1297_v8 }
 0x4ed   : > { %v1327_v13 = vadd.f32 %v1320_v4, %v1313_v11 }
 0x4ee   : > { %v1325_v14 = vpop.permute.xlu1 %1324 }
 0x4ef   : > { %vm1329_vm4 = vcmp.ge.f32.partialorder %v1327_v13, 0.0  ;;  %v1331_v15 = vmul.f32 0.01, %v1327_v13  ;;  %v1328_v16 = vadd.f32 %v1325_v14, %v1314_v12 }
 0x4f1   : > { %v1333_v17 = vsel %vm1329_vm4, %v1327_v13, %v1331_v15  ;;  %vm1330_vm6 = vcmp.ge.f32.partialorder %v1328_v16, 0.0  ;;  %v1332_v18 = vmul.f32 0.01, %v1328_v16 }
 0x4f2   : > { %v1471_v19 = vpack.c.bf16 %v1333_v17, %v1333_v17 }
 0x4f3   : > { %v1334_v20 = vsel %vm1330_vm6, %v1328_v16, %v1332_v18 }
 0x4f4   : > { %1344 = vst.msk [vmem:[%s298_s29] sm:$0xf] %vm1343_vm5, %v1471_v19  ;;  %v1472_v21 = vpack.c.bf16 %v1334_v20, %v1334_v20 }
 0x4f6   : > { %1345 = vst.msk [vmem:[%s298_s29 + $0x4] sm:$0xf] %vm1343_vm5, %v1472_v21 }
 0x4f7 PF: > { %s17_s24 = sadd.s32 1, %s1665_s24  }
 0x4f8   : > { %p14_p4 = scmp.ge.s32.totalorder %s17_s24, 4  }
 0x4fa   :  { %16 = sbr.rel (!%p14_p4) target bundleno = 1 (0x1), region = 81 }

// kernel: thin_dy_unet_forward.10
= control target key start
LH: loop header
LB: loop body
LE: loop exit
PB: predicated region body
PF: predicated region fallthrough
CT: control target
= control target key end

     0   :  { %vm65_vm0 = vcmask 1040384   ;;  %vm52_vm1 = vcmask 138240   ;;  %v236_v1 = vmov 0   ;;  %vm168_vm2 = vcmask 257024   ;;  %s306_s0 = inlined_call_operand.vmem [shape: bf16[17,32], index: 0, kind: input, shape index: {}]   ;;  %s307_s1 = inlined_call_operand.vmem [shape: bf16[64,17], index: 1, kind: input, shape index: {}]   ;;  %s308_s2 = inlined_call_operand.vmem [shape: bf16[64,32], index: 2, kind: output, shape index: {}]  }
   0x1   :  { %v230_v0 = vld [vmem:[%s306_s0] sm:$0xff]   ;;  %v67_v2 = vsel %vm65_vm0, 65535, %v236_v1  ;;  %v231_v3 = vld [vmem:[%s306_s0 + $0x8] ss:$0 sps:$4 sm:$0x11]   ;;  %v233_v6 = vld [vmem:[%s307_s1 + $0x10] sm:$0xff]  }
   0x2   :  { %v232_v4 = vld [vmem:[%s307_s1] sm:$0xff]   ;;  %213 = vmatprep.subr.bf16.mxu0 %v230_v0  ;;  %225 = vmatprep.subr.bf16.mxu1 %v230_v0  ;;  %v69_v5 = vand.u32 %v231_v3, %v67_v2  ;;  %v234_v7 = vld [vmem:[%s307_s1 + $0x8] sm:$0xff]   ;;  %v235_v8 = vld [vmem:[%s307_s1 + $0x18] sm:$0xff]  }
   0x3   :  { %214 = vmatpush3.bf16.msra.mxu0 %v230_v0  ;;  %227 = vmatpush3.bf16.msra.mxu1 %v230_v0 }
   0x4   :  { %217 = vmatprep.mubr.msk.bf16.mxu0 %vm52_vm1, %v232_v4  ;;  %215 = vmatprep.subr.bf16.mxu0 %v69_v5 }
   0x5   :  { %226 = vmatprep.subr.bf16.mxu1 %v69_v5  ;;  %221 = vmatprep.mubr.msk.bf16.mxu1 %vm52_vm1, %v233_v6 }
   0x7   :  { %216 = vmatpush3.bf16.msra.mxu0 %v69_v5  ;;  %228 = vmatpush3.bf16.msra.mxu1 %v69_v5 }
   0xa   :  { %218 = vmatmul.mubr.msk.bf16.vlgmr.msra.gmra.mrb[0].mxu0 %vm52_vm1, %v234_v7  ;;  %222 = vmatmul.mubr.msk.bf16.vlgmr.msra.gmra.mrb[0].mxu1 %vm52_vm1, %v235_v8 }
  0xdd   :  { %v219_v9 = vpop.f32.mrb[0].mxu0  ;;  %v223_v10 = vpop.f32.mrb[0].mxu1 }
  0xde   :  { %v201_v11 = vpack.c.bf16 %v219_v9, %v219_v9  ;;  %v205_v12 = vpack.c.bf16 %v223_v10, %v223_v10  ;;  %v105_v13 = vpop.f32.mrb[1].mxu0  ;;  %v121_v14 = vpop.f32.mrb[1].mxu1 }
  0xdf   :  { %v199_v15 = vpack.c.bf16 %v105_v13, %v105_v13  ;;  %v203_v16 = vpack.c.bf16 %v121_v14, %v121_v14  ;;  %v220_v17 = vpop.f32.mrb[2].mxu0  ;;  %v224_v18 = vpop.f32.mrb[2].mxu1 }
  0xe0   :  { %171 = vst.msk [vmem:[%s308_s2 + $0x8] sm:$0xf] %vm168_vm2, %v201_v11  ;;  %175 = vst.msk [vmem:[%s308_s2 + $0x18] sm:$0xf] %vm168_vm2, %v205_v12  ;;  %v202_v19 = vpack.c.bf16 %v220_v17, %v220_v17  ;;  %v206_v20 = vpack.c.bf16 %v224_v18, %v224_v18  ;;  %v108_v21 = vpop.f32.mrb[3].mxu0  ;;  %v124_v22 = vpop.f32.mrb[3].mxu1 }
  0xe1   :  { %169 = vst.msk [vmem:[%s308_s2] sm:$0xf] %vm168_vm2, %v199_v15  ;;  %173 = vst.msk [vmem:[%s308_s2 + $0x10] sm:$0xf] %vm168_vm2, %v203_v16  ;;  %v200_v23 = vpack.c.bf16 %v108_v21, %v108_v21  ;;  %v204_v24 = vpack.c.bf16 %v124_v22, %v124_v22 }
  0xe2   :  { %172 = vst.msk [vmem:[%s308_s2 + $0xc] sm:$0xf] %vm168_vm2, %v202_v19  ;;  %176 = vst.msk [vmem:[%s308_s2 + $0x1c] sm:$0xf] %vm168_vm2, %v206_v20 }
  0xe3   :  { %170 = vst.msk [vmem:[%s308_s2 + $0x4] sm:$0xf] %vm168_vm2, %v200_v23  ;;  %174 = vst.msk [vmem:[%s308_s2 + $0x14] sm:$0xf] %vm168_vm2, %v204_v24 }

// kernel: thin_dy_unet_forward.9
= control target key start
LH: loop header
LB: loop body
LE: loop exit
PB: predicated region body
PF: predicated region fallthrough
CT: control target
= control target key end

     0   :  { %s1726_s24 = smov 0   ;;  %s1865_s0 = inlined_call_operand.vmem [shape: bf16[2,16,26], index: 0, kind: input, shape index: {}]   ;;  %s1866_s1 = inlined_call_operand.vmem [shape: bf16[2,9,16,16], index: 1, kind: input, shape index: {}]   ;;  %s1867_s2 = inlined_call_operand.vmem [shape: bf16[9,16], index: 2, kind: input, shape index: {}]   ;;  %s1868_s3 = inlined_call_operand.vmem [shape: f32[8,16], index: 3, kind: input, shape index: {}]   ;;  %s1869_s4 = inlined_call_operand.vmem [shape: f32[16,8], index: 4, kind: input, shape index: {}]   ;;  %s1870_s5 = inlined_call_operand.vmem [shape: f32[16,1], index: 5, kind: input, shape index: {}]   ;;  %s1871_s6 = inlined_call_operand.vmem [shape: f32[16,1], index: 6, kind: input, shape index: {}]   ;;  %s1872_s7 = inlined_call_operand.vmem [shape: bf16[2,16,16], index: 7, kind: output, shape index: {}]  }
   0x1 LB: > { %s1412_s25 = sadd.s32 4294967295, %s1664_s24   ;;  %p1416_p0 = scmp.ge.s32.totalorder %s1664_s24, 1  ;;  %s1664_s24 = sphi %s1726_s24, %s17_s24  }
   0x2   : > { %p247_p1 = scmp.lt.s32.totalorder %s1664_s24, 3 }
   0x4   : > { %p248_p2 = pnand %p1416_p0, %p247_p1 }
   0x5   : > { %v320_v0 = vld [vmem:[%s1867_s2] sm:$0xf] (!%p248_p2)  ;;  %v325_v1 = vlaneseq (!%p248_p2)  ;;  %p284_p3 = scmp.lt.s32.totalorder (!%p248_p2), %s1412_s25, 1  ;;  %v321_v14 = vld [vmem:[%s1867_s2 + $0x4] sm:$0x1] (!%p248_p2)  ;;  %s1666_s8 = smov (!%p248_p2), 4  }
   0x6   : > { %251 = sbr.rel (%p248_p2) target bundleno = 1271 (0x4f7), region = 48  ;;  %v335_v2 = vshrl.u32 (!%p248_p2), %v320_v0, 16  ;;  %v1737_v4 = vpack.i.b16 (!%p248_p2), %v320_v0, %v320_v0  ;;  %v890_v18 = vpack.i.b16 (!%p248_p2), %v321_v14, %v321_v14  ;;  %s1667_s9 = smov (!%p248_p2), 6   ;;  %v1672_v28 = vmov (!%p248_p2), 0.0  }
   0x7   : > { %v326_v3 = vshrl.u32 (!%p248_p2), %v325_v1, 7  ;;  %s1668_s13 = smov (!%p248_p2), 5   ;;  %s1669_s14 = smov (!%p248_p2), 1   ;;  %1520 = vmatprep.subr.bf16.mxu0 (!%p248_p2), %v1672_v28  ;;  %1502 = vmatprep.subr.bf16.mxu1 (!%p248_p2), %v1672_v28  ;;  %vm1675_vm0 = vmmov (!%p248_p2), 0   ;;  %vm363_vm1 = vcmask (!%p248_p2), 130048   ;;  %vm1129_vm2 = vcmask (!%p248_p2), 64512  }
   0x8   : > { %v336_v5 = vpack.i.b16 (!%p248_p2), %v335_v2, %v335_v2  ;;  %s1670_s15 = smov (!%p248_p2), 8   ;;  %s1671_s16 = smov (!%p248_p2), 9   ;;  %1522 = vmatprep.mubr.msk.bf16.mxu0 (!%p248_p2), %vm1675_vm0, %v1672_v28  ;;  %1504 = vmatprep.mubr.msk.bf16.mxu1 (!%p248_p2), %vm1675_vm0, %v1672_v28  ;;  %vm1342_vm4 = vcmask (!%p248_p2), 125952  }
   0x9   : > { %v465_v6 = vsub.s32 (!%p248_p2), 1, %v326_v3  ;;  %v607_v7 = vsub.s32 (!%p248_p2), 2, %v326_v3  ;;  %v1739_v8 = vsub.s32 (!%p248_p2), 0, %v326_v3  ;;  %v749_v9 = vsub.s32 (!%p248_p2), 3, %v326_v3  ;;  %s1673_s17 = smov (!%p248_p2), 2   ;;  %s1674_s18 = smov (!%p248_p2), 10  }
   0xa   : > { %s1676_s23 = smov (!%p248_p2), 124   ;;  %s1677_s26 = smov (!%p248_p2), 123  }
   0xb   : > { %v537_v10 = vrot.slane (!%p248_p2), %v336_v5, %v465_v6  ;;  %v679_v11 = vrot.slane (!%p248_p2), %v336_v5, %v607_v7  ;;  %v608_v12 = vrot.slane (!%p248_p2), %v1737_v4, %v607_v7  ;;  %v341_v13 = vrot.slane (!%p248_p2), %v336_v5, %v1739_v8  ;;  %s1678_s27 = smov (!%p248_p2), 122   ;;  %s1679_s28 = smov (!%p248_p2), 127  }
   0xc   : > { %v750_v17 = vrot.slane (!%p248_p2), %v1737_v4, %v749_v9  ;;  %v821_v21 = vrot.slane (!%p248_p2), %v336_v5, %v749_v9  ;;  %v466_v22 = vrot.slane (!%p248_p2), %v1737_v4, %v465_v6  ;;  %v895_v25 = vrot.slane (!%p248_p2), %v890_v18, %v1739_v8  ;;  %s1680_s29 = smov (!%p248_p2), 120  }
   0xd   : > { %s1874_s25 = smov (!%p284_p3, %s1412_s25), 1  ;;  %v1434_v15 = vcombine.low %v537_v10, %v537_v10  ;;  %v1442_v16 = vcombine.low %v679_v11, %v679_v11  ;;  %v1438_v19 = vcombine.low %v608_v12, %v608_v12  ;;  %v1423_v20 = vcombine.low %v341_v13, %v341_v13 }
   0xe   : > { %s1616_s30 = smul.u32 72, %s1874_s25  ;;  %v1446_v23 = vcombine.low %v750_v17, %v750_v17  ;;  %v1450_v24 = vcombine.low %v821_v21, %v821_v21  ;;  %v1430_v26 = vcombine.low %v466_v22, %v466_v22  ;;  %v1454_v27 = vcombine.low %v895_v25, %v895_v25  ;;  %s1468_s19 = sshll.u32 %s1874_s25, 3 }
   0xf   : > { %541 = vrot.lane.b32.xlu0 %v1434_v15, %s1666_s8  ;;  %683 = vrot.lane.b32.xlu1 %v1442_v16, %s1667_s9  ;;  %s288_s22 = scalar_lea.vmem %s1865_s0, %s1468_s19  ;;  %v328_v45 = vrot.slane %v1737_v4, %v1739_v8  ;;  %s1682_s8 = smov 119  }
  0x10   : > { %s1753_s12 = scalar_lea.vmem %s1866_s1, %s1616_s30  ;;  %v300_v29 = vld [vmem:[%s288_s22] sm:$0xf]  ;;  %v301_v30 = vld [vmem:[%s288_s22 + $0x4] sm:$0xf]  ;;  %s1681_s30 = smov 126  }
  0x11   : > { %v1422_v50 = vcombine.low %v328_v45, %v328_v45  ;;  %s1683_s9 = smov 118   ;;  %v1647_v5 = vld [vmem:[%s1753_s12 + $0x18] sm:$0xff]   ;;  %v1648_v8 = vld [vmem:[%s1753_s12 + $0x8] sm:$0xff]   ;;  %v1649_v10 = vld [vmem:[%s1753_s12 + $0x20] sm:$0xff]  }
  0x12   : > { %v1650_v12 = vld [vmem:[%s1753_s12] sm:$0xff]   ;;  %v1651_v14 = vld [vmem:[%s1753_s12 + $0x28] sm:$0xff]   ;;  %v1652_v15 = vld [vmem:[%s1753_s12 + $0x10] sm:$0xff]  }
  0x13   : > { %612 = vrot.lane.b32.xlu0 %v1438_v19, %s1668_s13  ;;  %345 = vrot.lane.b32.xlu1 %v1423_v20, %s1669_s14  ;;  %v333_v55 = vmul.bf16 %v1422_v50, %v300_v29  ;;  %v334_v56 = vmul.bf16 %v1422_v50, %v301_v30  ;;  %v1653_v16 = vld [vmem:[%s1753_s12 + $0x30] sm:$0xff]   ;;  %v1654_v18 = vld [vmem:[%s1753_s12 + $0x38] sm:$0xff]  }
  0x14   : > { %v1655_v20 = vld [vmem:[%s1753_s12 + $0x40] sm:$0xff]  }
  0x15   : > { %v1428_v61 = vcombine.low %v333_v55, %v334_v56 }
  0x17   : > { %754 = vrot.lane.b32.xlu0 %v1446_v23, %s1670_s15  ;;  %825 = vrot.lane.b32.xlu1 %v1450_v24, %s1671_s16 }
  0x1b   : > { %470 = vrot.lane.b32.xlu0 %v1430_v26, %s1673_s17  ;;  %899 = vrot.lane.b32.xlu1 %v1454_v27, %s1674_s18 }
  0x81   : > { %v542_v31 = vpop.permute.xlu0 %541  ;;  %v684_v32 = vpop.permute.xlu1 %683 }
  0x82   : > { %v544_v33 = vmul.bf16 %v542_v31, %v300_v29  ;;  %v545_v34 = vmul.bf16 %v542_v31, %v301_v30  ;;  %v686_v35 = vmul.bf16 %v684_v32, %v300_v29  ;;  %v687_v36 = vmul.bf16 %v684_v32, %v301_v30 }
  0x84   : > { %v1436_v37 = vcombine.low %v544_v33, %v545_v34  ;;  %v1444_v38 = vcombine.low %v686_v35, %v687_v36 }
  0x85   : > { %v613_v39 = vpop.permute.xlu0 %612  ;;  %v346_v40 = vpop.permute.xlu1 %345 }
  0x86   : > { %v615_v41 = vmul.bf16 %v613_v39, %v300_v29  ;;  %v616_v42 = vmul.bf16 %v613_v39, %v301_v30  ;;  %556 = vrot.lane.b32.xlu0 %v1436_v37, %s1676_s23  ;;  %v348_v43 = vmul.bf16 %v346_v40, %v300_v29  ;;  %v349_v44 = vmul.bf16 %v346_v40, %v301_v30 }
  0x88   : > { %v1440_v46 = vcombine.low %v615_v41, %v616_v42  ;;  %v1425_v47 = vcombine.low %v348_v43, %v349_v44  ;;  %v977_v43 = vld [vmem:[%s1868_s3] sm:$0xff] }
  0x89   : > { %v755_v48 = vpop.permute.xlu0 %754  ;;  %v826_v49 = vpop.permute.xlu1 %825 }
  0x8a   : > { %627 = vrot.lane.b32.xlu1 %v1440_v46, %s1677_s26  ;;  %698 = vrot.lane.b32.xlu0 %v1444_v38, %s1678_s27  ;;  %v757_v51 = vmul.bf16 %v755_v48, %v300_v29  ;;  %v758_v52 = vmul.bf16 %v755_v48, %v301_v30  ;;  %v828_v53 = vmul.bf16 %v826_v49, %v300_v29  ;;  %v1684_v38 = vmov 0.0|0.0   ;;  %v1127_v46 = vld [vmem:[%s1869_s4] sm:$0xff] }
  0x8b   : > { %v829_v54 = vmul.bf16 %v826_v49, %v301_v30  ;;  %v1685_v48 = vmov 0  }
  0x8c   : > { %v1448_v57 = vcombine.low %v757_v51, %v758_v52  ;;  %1646 = vset.pattern.permute.xlu1 %v1685_v48  ;;  %1645 = vset.pattern.permute.xlu0 %v1685_v48  ;;  %v1128_v51 = vld [vmem:[%s1869_s4 + $0x8] sm:$0xff] }
  0x8d   : > { %v471_v58 = vpop.permute.xlu0 %470  ;;  %v1452_v59 = vcombine.low %v828_v53, %v829_v54  ;;  %v900_v60 = vpop.permute.xlu1 %899 }
  0x8e   : > { %360 = vrot.lane.b32.xlu1 %v1425_v47, %s1679_s28  ;;  %v473_v62 = vmul.bf16 %v471_v58, %v300_v29  ;;  %v474_v63 = vmul.bf16 %v471_v58, %v301_v30  ;;  %769 = vrot.lane.b32.xlu0 %v1448_v57, %s1680_s29  ;;  %v902_v0 = vmul.bf16 %v900_v60, %v300_v29  ;;  %v1314_v47 = vld [vmem:[%s1871_s6] sm:$0xff]  ;;  %s298_s29 = scalar_lea.vmem %s1872_s7, %s1468_s19 }
  0x8f   : > { %v903_v1 = vmul.bf16 %v900_v60, %v301_v30 }
  0x90   : > { %v1432_v2 = vcombine.low %v473_v62, %v474_v63 }
  0x91   : > { %v1456_v3 = vcombine.low %v902_v0, %v903_v1  ;;  %v1298_v1 = vld [vmem:[%s1870_s5] sm:$0xff] }
  0x92   : > { %485 = vrot.lane.b32.xlu0 %v1432_v2, %s1681_s30  ;;  %840 = vrot.lane.b32.xlu1 %v1452_v59, %s1682_s8 }
  0x96   : > { %914 = vrot.lane.b32.xlu1 %v1456_v3, %s1683_s9  ;;  %v1315_v3 = vld [vmem:[%s1871_s6 + $0x8] sm:$0xff] }
  0xf8   : > { %v557_v4 = vpop.permute.xlu0 %556 }
  0xf9   : > { %1521 = vmatpush3.bf16.msra.mxu0 %v557_v4 }
  0xfa   : > { %1526 = vmatprep.subr.bf16.mxu0 %v1672_v28 }
  0xfc   : > { %1523 = vmatmul.mubr.msk.bf16.vlgmr.msra.gmra.mrb[0].mxu0 %vm363_vm1, %v1647_v5  ;;  %v628_v6 = vpop.permute.xlu1 %627  ;;  %v699_v9 = vpop.permute.xlu0 %698 }
  0xfd   : > { %1527 = vmatpush3.bf16.msra.mxu0 %v628_v6  ;;  %1528 = vmatprep.mubr.msk.bf16.mxu0 %vm1675_vm0, %v1672_v28 }
  0xfe   : > { %1532 = vmatprep.subr.bf16.mxu0 %v1672_v28 }
 0x100   : > { %v361_v7 = vpop.permute.xlu1 %360  ;;  %v770_v11 = vpop.permute.xlu0 %769 }
 0x101   : > { %1503 = vmatpush3.bf16.msra.mxu1 %v361_v7 }
 0x102   : > { %1508 = vmatprep.subr.bf16.mxu1 %v1672_v28 }
 0x104   : > { %1505 = vmatmul.mubr.msk.bf16.vlgmr.msra.gmra.mrb[0].mxu1 %vm363_vm1, %v1648_v8  ;;  %v486_v13 = vpop.permute.xlu0 %485  ;;  %v841_v17 = vpop.permute.xlu1 %840 }
 0x105   : > { %1509 = vmatpush3.bf16.msra.mxu1 %v1428_v61  ;;  %1510 = vmatprep.mubr.msk.bf16.mxu1 %vm1675_vm0, %v1672_v28  ;;  %v1299_v61 = vld [vmem:[%s1870_s5 + $0x8] sm:$0xff] }
 0x106   : > { %1514 = vmatprep.subr.bf16.mxu1 %v1672_v28 }
 0x108   : > { %1529 = vmatmul.mubr.msk.bf16.vlgmr.msra.gmra.mrb[0].mxu0 %vm363_vm1, %v1649_v10  ;;  %v915_v19 = vpop.permute.xlu1 %914 }
 0x109   : > { %1533 = vmatpush3.bf16.msra.mxu0 %v699_v9  ;;  %1534 = vmatprep.mubr.msk.bf16.mxu0 %vm1675_vm0, %v1672_v28 }
 0x10a   : > { %1538 = vmatprep.subr.bf16.mxu0 %v1672_v28 }
 0x110   : > { %1511 = vmatmul.mubr.msk.bf16.vlgmr.msra.gmra.mrb[0].mxu1 %vm363_vm1, %v1650_v12 }
 0x111   : > { %1515 = vmatpush3.bf16.msra.mxu1 %v486_v13  ;;  %1516 = vmatprep.mubr.msk.bf16.mxu1 %vm1675_vm0, %v1672_v28 }
 0x112   : > { %1580 = vmatprep.subr.bf16.mxu1 %v1684_v38 }
 0x114   : > { %1535 = vmatmul.mubr.msk.bf16.vlgmr.msra.gmra.mrb[0].mxu0 %vm363_vm1, %v1651_v14 }
 0x115   : > { %1539 = vmatpush3.bf16.msra.mxu0 %v770_v11  ;;  %1540 = vmatprep.mubr.msk.bf16.mxu0 %vm1675_vm0, %v1672_v28 }
 0x116   : > { %1544 = vmatprep.subr.bf16.mxu0 %v1672_v28 }
 0x11c   : > { %1517 = vmatmul.mubr.msk.bf16.vlgmr.msra.gmra.mrb[0].mxu1 %vm363_vm1, %v1652_v15 }
 0x11d   : > { %1560 = vmatprep.mubr.msk.f32.mxu1 %vm1675_vm0, %v1672_v28 }
 0x120   : > { %1541 = vmatmul.mubr.msk.bf16.vlgmr.msra.gmra.mrb[0].mxu0 %vm363_vm1, %v1653_v16 }
 0x121   : > { %1545 = vmatpush3.bf16.msra.mxu0 %v841_v17  ;;  %1546 = vmatprep.mubr.msk.bf16.mxu0 %vm1675_vm0, %v1672_v28 }
 0x122   : > { %1550 = vmatprep.subr.bf16.mxu0 %v1672_v28 }
 0x12c   : > { %1547 = vmatmul.mubr.msk.bf16.vlgmr.msra.gmra.mrb[0].mxu0 %vm363_vm1, %v1654_v18 }
 0x12d   : > { %1551 = vmatpush3.bf16.msra.mxu0 %v915_v19  ;;  %1552 = vmatprep.mubr.msk.bf16.mxu0 %vm1675_vm0, %v1672_v28 }
 0x138   : > { %1553 = vmatmul.mubr.msk.bf16.vlgmr.msra.gmra.mrb[0].mxu0 %vm363_vm1, %v1655_v20 }
 0x1ef   : > { %v525_v21 = vpop.f32.mrb[0].mxu1 }
 0x1f0   : > { %v1518_v22 = vpop.f32.mrb[1].mxu1 }
 0x1f1   : > { %v528_v23 = vpop.f32.mrb[2].mxu1 }
 0x1f2   : > { %v1519_v24 = vpop.f32.mrb[3].mxu1 }
 0x20b   : > { %v954_v25 = vpop.f32.mrb[0].mxu0 }
 0x20c   : > { %v1812_v26 = vadd.f32 %v954_v25, %v525_v21  ;;  %v1554_v27 = vpop.f32.mrb[1].mxu0 }
 0x20d   : > { %v957_v29 = vpop.f32.mrb[2].mxu0 }
 0x20e   : > { %v1814_v30 = vadd.f32 %v957_v29, %v528_v23  ;;  %v1555_v31 = vpop.f32.mrb[3].mxu0  ;;  %v963_v32 = vsel %vm363_vm1, %v1812_v26, 0.0  ;;  %v969_v33 = vmul.f32 %v1812_v26, %v1812_v26 }
 0x20f   : > { %964 = vadd.xlane.f32.xlu0 %v963_v32 }
 0x210   : > { %v966_v34 = vsel %vm363_vm1, %v1814_v30, 0.0  ;;  %v971_v35 = vsel %vm363_vm1, %v969_v33, 0.0  ;;  %v970_v36 = vmul.f32 %v1814_v30, %v1814_v30 }
 0x211   : > { %967 = vadd.xlane.f32.xlu1 %v966_v34 }
 0x212   : > { %v974_v37 = vsel %vm363_vm1, %v970_v36, 0.0 }
 0x213   : > { %972 = vadd.xlane.f32.xlu0 %v971_v35 }
 0x217   : > { %975 = vadd.xlane.f32.xlu0 %v974_v37 }
 0x222   : > { %1318 = vperm.xlu1 %1646, %v1314_v47  }
 0x29c   : > { %v965_v39 = vpop.xlane.xlu0 %964 }
 0x29e   : > { %v968_v40 = vpop.xlane.xlu1 %967 }
 0x29f   : > { %v1581_v41 = vpack.c.bf16 %v968_v40, %v965_v39 }
 0x2a0   : > { %v973_v42 = vpop.xlane.xlu0 %972 }
 0x2a1   : > { %1582 = vmatpush3.bf16.msra.mxu1 %v1581_v41 }
 0x2a2   : > { %1583 = vmatprep.subr.bf16.mxu1 %v1684_v38  ;;  %v1319_v4 = vpop.permute.xlu1 %1318 }
 0x2a4   : > { %v976_v44 = vpop.xlane.xlu0 %975  ;;  %1561 = vmatmul.mubr.msk.f32.vlgmr.msra.gmra.mrb[4].mxu1 %vm363_vm1, %v977_v43 }
 0x2a5   : > { %v1584_v45 = vpack.c.bf16 %v976_v44, %v973_v42  ;;  %1567 = vmatprep.mubr.msk.f32.mxu1 %vm1675_vm0, %v1672_v28 }
 0x2a7   : > { %1585 = vmatpush3.bf16.msra.mxu1 %v1584_v45 }
 0x2aa   : > { %1568 = vmatmul.mubr.msk.f32.vlgmr.msra.gmra.mrb[6].mxu1 %vm363_vm1, %v977_v43 }
 0x2ab   : > { %1572 = vmatprep.mubr.msk.f32.mxu1 %vm1129_vm2, %v1127_v46 }
 0x377   : > { %v1047_v49 = vpop.f32.mrb[4].mxu1 }
 0x378   : > { %v1121_v28 = vmul.f32 0.03125, %v1047_v49  ;;  %v1562_v50 = vpop.f32.mrb[5].mxu1 }
 0x37a   : > { %1570 = vmatprep.subr.mxu1 %v1121_v28  ;;  %v1123_v54 = vmul.f32 %v1121_v28, %v1121_v28 }
 0x37b   : > { %1571 = vmatpush3.msra.mxu1 %v1121_v28 }
 0x37c   : > { %1573 = vmatmul.mubr.msk.f32.vlgmr.msra.gmra.mrb[8].mxu1 %vm1129_vm2, %v1128_v51 }
 0x37d   : > { %v1117_v52 = vpop.f32.mrb[6].mxu1  ;;  %1577 = vmatprep.mubr.msk.f32.mxu1 %vm1129_vm2, %v1127_v46 }
 0x37e   : > { %v1122_v53 = vmul.f32 0.03125, %v1117_v52  ;;  %v1569_v55 = vpop.f32.mrb[7].mxu1 }
 0x380   : > { %v1124_v56 = vsub.f32 %v1122_v53, %v1123_v54 }
 0x382   : > { %v1125_v57 = vadd.f32 1e-05, %v1124_v56 }
 0x384   : > { %1656 = vrsqrt.f32 %v1125_v57 }
 0x38e   : > { %v1657_v58 = vpop.eup %1656 }
 0x38f   : > { %1575 = vmatprep.subr.mxu1 %v1657_v58 }
 0x390   : > { %1576 = vmatpush3.msra.mxu1 %v1657_v58 }
 0x391   : > { %1578 = vmatmul.mubr.msk.f32.vlgmr.msra.gmra.mrb[10].mxu1 %vm1129_vm2, %v1128_v51 }
 0x44f   : > { %v1574_v59 = vpop.f32.mrb[8].mxu1 }
 0x450   : > { %1293 = vperm.xlu0 %1645, %v1574_v59   ;;  %v1202_v60 = vpop.f32.mrb[9].mxu1 }
 0x451   : > { %1288 = vperm.xlu1 %1646, %v1202_v60  }
 0x464   : > { %v1579_v62 = vpop.f32.mrb[10].mxu1 }
 0x465   : > { %v1301_v63 = vmul.f32 %v1579_v62, %v1299_v61  ;;  %v1277_v0 = vpop.f32.mrb[11].mxu1 }
 0x466   : > { %v1300_v2 = vmul.f32 %v1298_v1, %v1277_v0 }
 0x467   : > { %1309 = vperm.xlu1 %1646, %v1301_v63  }
 0x46b   : > { %1304 = vperm.xlu1 %1646, %v1300_v2  }
 0x46f   : > { %1323 = vperm.xlu1 %1646, %v1315_v3  }
 0x4cf   : > { %v1294_v7 = vpop.permute.xlu0 %1293 }
 0x4d0   : > { %v1289_v5 = vpop.permute.xlu1 %1288  ;;  %v1297_v10 = vsub.f32 %v1814_v30, %v1294_v7 }
 0x4d1   : > { %v1296_v8 = vsub.f32 %v1812_v26, %v1289_v5 }
 0x4e6   : > { %v1310_v6 = vpop.permute.xlu1 %1309 }
 0x4e7   : > { %v1313_v12 = vmul.f32 %v1310_v6, %v1297_v10 }
 0x4ea   : > { %v1305_v9 = vpop.permute.xlu1 %1304 }
 0x4eb   : > { %v1312_v11 = vmul.f32 %v1305_v9, %v1296_v8 }
 0x4ed   : > { %v1326_v13 = vadd.f32 %v1319_v4, %v1312_v11 }
 0x4ee   : > { %v1324_v14 = vpop.permute.xlu1 %1323 }
 0x4ef   : > { %vm1328_vm3 = vcmp.ge.f32.partialorder %v1326_v13, 0.0  ;;  %v1330_v15 = vmul.f32 0.01, %v1326_v13  ;;  %v1327_v16 = vadd.f32 %v1324_v14, %v1313_v12 }
 0x4f1   : > { %v1332_v17 = vsel %vm1328_vm3, %v1326_v13, %v1330_v15  ;;  %vm1329_vm5 = vcmp.ge.f32.partialorder %v1327_v16, 0.0  ;;  %v1331_v18 = vmul.f32 0.01, %v1327_v16 }
 0x4f2   : > { %v1470_v19 = vpack.c.bf16 %v1332_v17, %v1332_v17 }
 0x4f3   : > { %v1333_v20 = vsel %vm1329_vm5, %v1327_v16, %v1331_v18 }
 0x4f4   : > { %1343 = vst.msk [vmem:[%s298_s29] sm:$0xf] %vm1342_vm4, %v1470_v19  ;;  %v1471_v21 = vpack.c.bf16 %v1333_v20, %v1333_v20 }
 0x4f6   : > { %1344 = vst.msk [vmem:[%s298_s29 + $0x4] sm:$0xf] %vm1342_vm4, %v1471_v21 }
 0x4f7 PF: > { %s17_s24 = sadd.s32 1, %s1664_s24  }
 0x4f8   : > { %p14_p4 = scmp.ge.s32.totalorder %s17_s24, 4  }
 0x4fa   :  { %16 = sbr.rel (!%p14_p4) target bundleno = 1 (0x1), region = 81 }

// kernel: tile.14
= control target key start
LH: loop header
LB: loop body
LE: loop exit
PB: predicated region body
PF: predicated region fallthrough
CT: control target
= control target key end

     0   :  { %vm149_vm0 = vcmask 523264   ;;  %vm147_vm1 = vcmask 1047556   ;;  %vm164_vm2 = vcmask 1048064   ;;  %s255_s0 = inlined_call_operand.vmem [shape: bf16[9,2,64], index: 0, kind: input, shape index: {}]   ;;  %s256_s1 = inlined_call_operand.vmem [shape: bf16[9,128], index: 1, kind: output, shape index: {}]  }
   0x1   :  { %v194_v0 = vld [vmem:[%s255_s0 + $0x8] sm:$0x1]  ;;  %v195_v1 = vld [vmem:[%s255_s0 + $0x7] sm:$0x1]  ;;  %v196_v2 = vld [vmem:[%s255_s0 + $0x6] sm:$0x1] }
   0x2   :  { %v17_v3 = vunpack.c.l.bf16 %v194_v0  ;;  %v33_v4 = vunpack.c.l.bf16 %v195_v1  ;;  %v49_v5 = vunpack.c.l.bf16 %v196_v2  ;;  %v197_v6 = vld [vmem:[%s255_s0 + $0x5] sm:$0x1]  ;;  %v198_v7 = vld [vmem:[%s255_s0 + $0x4] sm:$0x1]  ;;  %v199_v8 = vld [vmem:[%s255_s0 + $0x3] sm:$0x1] }
   0x3   :  { %v65_v9 = vunpack.c.l.bf16 %v197_v6  ;;  %v81_v10 = vunpack.c.l.bf16 %v198_v7  ;;  %v97_v11 = vunpack.c.l.bf16 %v199_v8  ;;  %v200_v12 = vld [vmem:[%s255_s0 + $0x2] sm:$0x1]  ;;  %v201_v13 = vld [vmem:[%s255_s0 + $0x1] sm:$0x1]  ;;  %v141_v14 = vld [vmem:[%s255_s0] sm:$0x1] }
   0x4   :  { %20 = vst [vmem:[#allocation1 + $0x40] sm:$0x3] %v17_v3  ;;  %36 = vst [vmem:[#allocation1 + $0x38] sm:$0x3] %v33_v4  ;;  %v113_v15 = vunpack.c.l.bf16 %v200_v12  ;;  %v128_v16 = vunpack.c.l.bf16 %v201_v13  ;;  %v142_v17 = vunpack.c.l.bf16 %v141_v14  ;;  %s214_s0 = smov 64  }
   0x5   :  { %52 = vst [vmem:[#allocation1 + $0x30] sm:$0x3] %v49_v5  ;;  %68 = vst [vmem:[#allocation1 + $0x28] sm:$0x3] %v65_v9 }
   0x6   :  { %84 = vst [vmem:[#allocation1 + $0x20] sm:$0x3] %v81_v10  ;;  %100 = vst [vmem:[#allocation1 + $0x18] sm:$0x3] %v97_v11 }
   0x7   :  { %116 = vst [vmem:[#allocation1 + $0x10] sm:$0x3] %v113_v15  ;;  %131 = vst [vmem:[#allocation1 + $0x8] sm:$0x3] %v128_v16 }
   0x8   :  { %144 = vst [vmem:[#allocation1] sm:$0x3] %v142_v17 }
   0xb   :  { %v167_v18 = vld [vmem:[#allocation1 + $0x41] sm:$0x1]   ;;  %v152_v19 = vld [vmem:[#allocation1 + $0x40] sm:$0x1]  }
   0xc   :  { %155 = vst.msk [vmem:[#allocation0 + $0x8] sm:$0x1] %vm149_vm0, %v152_v19  }
   0xd   :  { %v146_v20 = vld [vmem:[#allocation1] ss:$8 sm:$0xf0]   ;;  %v159_v21 = vld [vmem:[#allocation1 + $0x1] ss:$8 sm:$0xf0]  }
   0xf   :  { %v145_v22 = vld [vmem:[#allocation1] ss:$8 sm:$0xf]   ;;  %v157_v23 = vld [vmem:[#allocation1 + $0x1] ss:$8 sm:$0xf]  }
  0x10   :  { %v148_v24 = vsel %vm147_vm1, %v146_v20, %v145_v22  ;;  %v161_v25 = vsel %vm147_vm1, %v159_v21, %v157_v23 }
  0x11   :  { %v209_v26 = vpack.i.bf16 %v167_v18, %v161_v25  ;;  %150 = vst.msk [vmem:[#allocation0] sm:$0xff] %vm149_vm0, %v148_v24  }
  0x13   :  { %210 = vrot.lane.b32.xlu0 %v209_v26, %s214_s0 }
  0x85   :  { %v211_v27 = vpop.permute.xlu0 %210 }
  0x86   :  { %v213_v28 = vunpack.i.h.bf16 %v211_v27  ;;  %v212_v29 = vunpack.i.l.bf16 %v211_v27 }
  0x88   :  { %165 = vst.msk [vmem:[#allocation0] sm:$0xff] %vm164_vm2, %v212_v29   ;;  %172 = vst.msk [vmem:[#allocation0 + $0x8] sm:$0x1] %vm164_vm2, %v213_v28  }
  0x8f   :  { %v177_v30 = vld [vmem:[#allocation0] sm:$0xff]  ;;  %v182_v31 = vld [vmem:[#allocation0 + $0x8] sm:$0xff] }
  0x90   :  { %v206_v32 = vpack.c.bf16 %v182_v31, %v177_v30 }
  0x92   :  { %207 = vst [vmem:[%s256_s1] sm:$0xff] %v206_v32  }

// kernel: thin_dy_unet_forward.12
= control target key start
LH: loop header
LB: loop body
LE: loop exit
PB: predicated region body
PF: predicated region fallthrough
CT: control target
= control target key end

     0   :  { %vm65_vm0 = vcmask 1040384   ;;  %vm52_vm1 = vcmask 138240   ;;  %v258_v1 = vmov 0   ;;  %s308_s0 = inlined_call_operand.vmem [shape: bf16[17,128], index: 0, kind: input, shape index: {}]   ;;  %s309_s1 = inlined_call_operand.vmem [shape: bf16[64,17], index: 1, kind: input, shape index: {}]   ;;  %s310_s2 = inlined_call_operand.vmem [shape: bf16[64,128], index: 2, kind: output, shape index: {}]  }
   0x1   :  { %v252_v0 = vld [vmem:[%s308_s0] sm:$0xff]   ;;  %v67_v2 = vsel %vm65_vm0, 65535, %v258_v1  ;;  %v253_v3 = vld [vmem:[%s308_s0 + $0x8] ss:$0 sps:$4 sm:$0x11]   ;;  %v255_v6 = vld [vmem:[%s309_s1 + $0x10] sm:$0xff]  }
   0x2   :  { %v254_v4 = vld [vmem:[%s309_s1] sm:$0xff]   ;;  %235 = vmatprep.subr.bf16.mxu0 %v252_v0  ;;  %247 = vmatprep.subr.bf16.mxu1 %v252_v0  ;;  %v69_v5 = vand.u32 %v253_v3, %v67_v2  ;;  %v256_v7 = vld [vmem:[%s309_s1 + $0x8] sm:$0xff]   ;;  %v257_v8 = vld [vmem:[%s309_s1 + $0x18] sm:$0xff]  }
   0x3   :  { %236 = vmatpush3.bf16.msra.mxu0 %v252_v0  ;;  %249 = vmatpush3.bf16.msra.mxu1 %v252_v0 }
   0x4   :  { %239 = vmatprep.mubr.msk.bf16.mxu0 %vm52_vm1, %v254_v4  ;;  %237 = vmatprep.subr.bf16.mxu0 %v69_v5 }
   0x5   :  { %248 = vmatprep.subr.bf16.mxu1 %v69_v5  ;;  %243 = vmatprep.mubr.msk.bf16.mxu1 %vm52_vm1, %v255_v6 }
   0x7   :  { %238 = vmatpush3.bf16.msra.mxu0 %v69_v5  ;;  %250 = vmatpush3.bf16.msra.mxu1 %v69_v5 }
   0xa   :  { %240 = vmatmul.mubr.msk.bf16.vlgmr.msra.gmra.mrb[0].mxu0 %vm52_vm1, %v256_v7  ;;  %244 = vmatmul.mubr.msk.bf16.vlgmr.msra.gmra.mrb[0].mxu1 %vm52_vm1, %v257_v8 }
  0xdd   :  { %v241_v9 = vpop.f32.mrb[0].mxu0  ;;  %v245_v10 = vpop.f32.mrb[0].mxu1 }
  0xde   :  { %v105_v11 = vpop.f32.mrb[1].mxu0  ;;  %v121_v12 = vpop.f32.mrb[1].mxu1 }
  0xdf   :  { %v242_v13 = vpop.f32.mrb[2].mxu0  ;;  %v246_v14 = vpop.f32.mrb[2].mxu1 }
  0xe0   :  { %v214_v15 = vpack.c.bf16 %v242_v13, %v241_v9  ;;  %v224_v16 = vpack.c.bf16 %v246_v14, %v245_v10  ;;  %v108_v17 = vpop.f32.mrb[3].mxu0  ;;  %v124_v18 = vpop.f32.mrb[3].mxu1 }
  0xe1   :  { %v209_v19 = vpack.c.bf16 %v108_v17, %v105_v11  ;;  %v219_v20 = vpack.c.bf16 %v124_v18, %v121_v12 }
  0xe2   :  { %226 = vst [vmem:[%s310_s2 + $0x8] sm:$0xff] %v214_v15   ;;  %228 = vst [vmem:[%s310_s2 + $0x18] sm:$0xff] %v224_v16  }
  0xe3   :  { %210 = vst [vmem:[%s310_s2] sm:$0xff] %v209_v19   ;;  %227 = vst [vmem:[%s310_s2 + $0x10] sm:$0xff] %v219_v20  }

// kernel: thin_dy_unet_forward.11
= control target key start
LH: loop header
LB: loop body
LE: loop exit
PB: predicated region body
PF: predicated region fallthrough
CT: control target
= control target key end

     0   :  { %v69_v0 = vlaneseq  ;;  %s1842_s25 = smov 1   ;;  %s1843_s26 = smov 8   ;;  %v1850_v29 = vmov 0.0   ;;  %vm94_vm0 = vcmask 7168   ;;  %vm251_vm1 = vcmask 15360   ;;  %s2254_s5 = inlined_call_operand.vmem [shape: bf16[9,128], index: 5, kind: input, shape index: {}]   ;;  %s2255_s0 = inlined_call_operand.vmem [shape: bf16[32,146], index: 0, kind: input, shape index: {}]   ;;  %s2256_s1 = inlined_call_operand.vmem [shape: bf16[9,16,32], index: 1, kind: input, shape index: {}]   ;;  %s2257_s2 = inlined_call_operand.vmem [shape: f32[16,1], index: 2, kind: input, shape index: {}]   ;;  %s2258_s3 = inlined_call_operand.vmem [shape: bf16[9,16,16], index: 3, kind: input, shape index: {}]   ;;  %s2259_s4 = inlined_call_operand.vmem [shape: f32[16,1], index: 4, kind: input, shape index: {}]   ;;  %s2260_s6 = inlined_call_operand.vmem [shape: bf16[16,128], index: 6, kind: output, shape index: {}]  }
   0x1   :  { %v28_v1 = vld [vmem:[%s2254_s5] sm:$0xf]  ;;  %v29_v14 = vld [vmem:[%s2254_s5 + $0x4] sm:$0x1]  ;;  %s1844_s5 = smov 2   ;;  %s1845_s27 = smov 9   ;;  %1677 = vmatprep.subr.bf16.mxu0 %v1850_v29  ;;  %1685 = vmatprep.subr.bf16.mxu1 %v1850_v29 }
   0x2   :  { %v70_v2 = vshrl.u32 %v69_v0, 7  ;;  %v81_v3 = vshrl.u32 %v28_v1, 16  ;;  %v67_v4 = vpack.i.b16 %v28_v1, %v28_v1  ;;  %v824_v19 = vpack.i.b16 %v29_v14, %v29_v14  ;;  %s1846_s28 = smov 10   ;;  %s1847_s29 = smov 16   ;;  %v1953_v32 = vld [vmem:[%s2255_s0] sm:$0xff]  ;;  %v1958_v33 = vld [vmem:[%s2255_s0 + $0x8] sm:$0xff] }
   0x3   :  { %s1848_s30 = smov 17   ;;  %s1849_s7 = smov 18   ;;  %v1967_v37 = vld [vmem:[%s2255_s0 + $0x10] sm:$0xff]  ;;  %v1972_v38 = vld [vmem:[%s2255_s0 + $0x18] sm:$0xff]  ;;  %vm1851_vm2 = vmmov 0   ;;  %vm348_vm3 = vcmask 64512  }
   0x4   :  { %v71_v5 = vsub.s32 0, %v70_v2  ;;  %v82_v6 = vpack.i.b16 %v81_v3, %v81_v3  ;;  %v243_v7 = vsub.s32 1, %v70_v2  ;;  %v437_v8 = vsub.s32 2, %v70_v2  ;;  %1681 = vmatprep.mubr.msk.bf16.mxu0 %vm1851_vm2, %v1850_v29  ;;  %1689 = vmatprep.mubr.msk.bf16.mxu1 %vm1851_vm2, %v1850_v29  ;;  %s1852_s0 = smov 127   ;;  %s1853_s16 = smov 126  }
   0x5   :  { %v631_v9 = vsub.s32 3, %v70_v2  ;;  %vm445_vm4 = vcmask 72704   ;;  %s1854_s17 = smov 120   ;;  %s1855_s20 = smov 119   ;;  %vm542_vm5 = vcmask 80896   ;;  %vm135_vm6 = vcmask 261120  }
   0x6   :  { %v1899_v10 = vrot.slane %v82_v6, %v71_v5  ;;  %v1901_v11 = vrot.slane %v67_v4, %v71_v5  ;;  %v1903_v12 = vrot.slane %v67_v4, %v243_v7  ;;  %v1905_v13 = vrot.slane %v82_v6, %v243_v7  ;;  %s1856_s21 = smov 118   ;;  %s1857_s22 = smov 112  }
   0x7   :  { %v1910_v15 = vrot.slane %v67_v4, %v437_v8  ;;  %v1916_v18 = vrot.slane %v82_v6, %v437_v8  ;;  %v1924_v22 = vrot.slane %v67_v4, %v631_v9  ;;  %v1926_v23 = vrot.slane %v82_v6, %v631_v9  ;;  %s1858_s23 = smov 111   ;;  %s1859_s24 = smov 110  }
   0x8   :  { %v1545_v16 = vcombine.low %v1899_v10, %v1899_v10  ;;  %v1563_v17 = vcombine.low %v1905_v13, %v1905_v13  ;;  %v1556_v20 = vcombine.low %v1903_v12, %v1903_v12  ;;  %v1934_v26 = vrot.slane %v824_v19, %v71_v5 }
   0x9   :  { %v1570_v21 = vcombine.low %v1910_v15, %v1910_v15  ;;  %v1577_v24 = vcombine.low %v1916_v18, %v1916_v18  ;;  %v1584_v25 = vcombine.low %v1924_v22, %v1924_v22  ;;  %v1591_v27 = vcombine.low %v1926_v23, %v1926_v23 }
   0xa   :  { %91 = vrot.lane.b32.xlu0 %v1545_v16, %s1842_s25  ;;  %345 = vrot.lane.b32.xlu1 %v1563_v17, %s1843_s26  ;;  %v1598_v28 = vcombine.low %v1934_v26, %v1934_v26  ;;  %v1948_v30 = vcombine.low %v1901_v11, %v1901_v11  ;;  %vm639_vm7 = vcmask 130048   ;;  %vm736_vm8 = vcmask 138240  }
   0xb   :  { %vm836_vm9 = vcmask 146432   ;;  %vm130_vm10 = vcmask 1039360   ;;  %vm287_vm11 = vcmask 1031168   ;;  %vm384_vm12 = vcmask 982016  }
   0xc   :  { %v77_v35 = vmul.bf16 %v1948_v30, %v1953_v32  ;;  %v78_v36 = vmul.bf16 %v1948_v30, %v1958_v33  ;;  %v79_v8 = vmul.bf16 %v1948_v30, %v1967_v37  ;;  %v80_v9 = vmul.bf16 %v1948_v30, %v1972_v38 }
   0xd   :  { %vm481_vm13 = vcmask 973824   ;;  %vm578_vm14 = vcmask 965632   ;;  %vm675_vm15 = vcmask 916480  }
   0xe   :  { %248 = vrot.lane.b32.xlu0 %v1556_v20, %s1844_s5  ;;  %442 = vrot.lane.b32.xlu1 %v1570_v21, %s1845_s27  ;;  %v1553_v40 = vcombine.low %v77_v35, %v78_v36  ;;  %v1554_v16 = vcombine.low %v79_v8, %v80_v9  ;;  %v1825_v21 = vld [vmem:[%s2256_s1] sm:$0xff]  }
  0x10   :  { %1686 = vmatpush3.bf16.msra.mxu1 %v1553_v40 }
  0x11   :  { %1687 = vmatprep.subr.bf16.mxu1 %v1850_v29 }
  0x12   :  { %539 = vrot.lane.b32.xlu0 %v1577_v24, %s1846_s28  ;;  %636 = vrot.lane.b32.xlu1 %v1584_v25, %s1847_s29 }
  0x14   :  { %1688 = vmatpush3.bf16.msra.mxu1 %v1554_v16 }
  0x15   :  { %1701 = vmatprep.subr.bf16.mxu1 %v1850_v29 }
  0x16   :  { %733 = vrot.lane.b32.xlu0 %v1591_v27, %s1848_s30  ;;  %833 = vrot.lane.b32.xlu1 %v1598_v28, %s1849_s7 }
  0x17   :  { %1690 = vmatmul.mubr.msk.bf16.vlgmr.msra.gmra.mrb[0].mxu1 %vm135_vm6, %v1825_v21  ;;  %v924_v21 = vld [vmem:[%s2257_s2 + $0x8] sm:$0xff] }
  0x18   :  { %1705 = vmatprep.mubr.msk.bf16.mxu1 %vm1851_vm2, %v1850_v29 }
  0x7c   :  { %v92_v31 = vpop.permute.xlu0 %91  ;;  %v346_v49 = vpop.permute.xlu1 %345 }
  0x7d   :  { %v93_v34 = vrot.slane %v92_v31, 4  ;;  %v347_v55 = vrot.slane %v346_v49, 4 }
  0x7f   :  { %v95_v39 = vsel %vm94_vm0, %v93_v34, %v92_v31  ;;  %v349_v60 = vsel %vm348_vm3, %v347_v55, %v346_v49  ;;  %vm772_vm0 = vcmask 908288   ;;  %vm947_vm3 = vcmask 1047624  }
  0x80   :  { %v97_v41 = vmul.bf16 %v95_v39, %v1953_v32  ;;  %v98_v42 = vmul.bf16 %v95_v39, %v1958_v33  ;;  %v249_v43 = vpop.permute.xlu0 %248  ;;  %v99_v45 = vmul.bf16 %v95_v39, %v1967_v37  ;;  %v100_v46 = vmul.bf16 %v95_v39, %v1972_v38  ;;  %v443_v56 = vpop.permute.xlu1 %442 }
  0x81   :  { %v250_v44 = vrot.slane %v249_v43, 4  ;;  %v444_v62 = vrot.slane %v443_v56, 4  ;;  %v351_v63 = vmul.bf16 %v349_v60, %v1953_v32  ;;  %v352_v0 = vmul.bf16 %v349_v60, %v1958_v33 }
  0x82   :  { %v1548_v47 = vcombine.high %v97_v41, %v98_v42  ;;  %v1547_v48 = vcombine.low %v97_v41, %v98_v42  ;;  %v1550_v53 = vcombine.high %v99_v45, %v100_v46  ;;  %v1549_v54 = vcombine.low %v99_v45, %v100_v46 }
  0x83   :  { %v252_v50 = vsel %vm251_vm1, %v250_v44, %v249_v43  ;;  %v446_v2 = vsel %vm445_vm4, %v444_v62, %v443_v56  ;;  %v1566_v6 = vcombine.high %v351_v63, %v352_v0  ;;  %v1565_v7 = vcombine.low %v351_v63, %v352_v0 }
  0x84   :  { %124 = vrot.lane.b32.xlu1 %v1548_v47, %s1852_s0  ;;  %122 = vrot.lane.b32.xlu0 %v1547_v48, %s1852_s0  ;;  %v254_v51 = vmul.bf16 %v252_v50, %v1953_v32  ;;  %v255_v52 = vmul.bf16 %v252_v50, %v1958_v33  ;;  %v256_v57 = vmul.bf16 %v252_v50, %v1967_v37  ;;  %v540_v14 = vpop.permute.xlu0 %539  ;;  %v637_v27 = vpop.permute.xlu1 %636  ;;  %vm872_vm1 = vcmask 900096  }
  0x85   :  { %v257_v58 = vmul.bf16 %v252_v50, %v1972_v38  ;;  %v448_v4 = vmul.bf16 %v446_v2, %v1953_v32  ;;  %v449_v5 = vmul.bf16 %v446_v2, %v1958_v33  ;;  %v353_v17 = vmul.bf16 %v349_v60, %v1967_v37 }
  0x86   :  { %v1559_v59 = vcombine.high %v254_v51, %v255_v52  ;;  %v1558_v61 = vcombine.low %v254_v51, %v255_v52  ;;  %v354_v19 = vmul.bf16 %v349_v60, %v1972_v38  ;;  %v541_v25 = vrot.slane %v540_v14, 4 }
  0x87   :  { %v1561_v1 = vcombine.high %v256_v57, %v257_v58  ;;  %v1560_v3 = vcombine.low %v256_v57, %v257_v58  ;;  %v1573_v20 = vcombine.high %v448_v4, %v449_v5  ;;  %v1572_v24 = vcombine.low %v448_v4, %v449_v5 }
  0x88   :  { %128 = vrot.lane.b32.xlu1 %v1550_v53, %s1852_s0  ;;  %126 = vrot.lane.b32.xlu0 %v1549_v54, %s1852_s0  ;;  %v450_v28 = vmul.bf16 %v446_v2, %v1967_v37  ;;  %v451_v30 = vmul.bf16 %v446_v2, %v1972_v38  ;;  %v1568_v31 = vcombine.high %v353_v17, %v354_v19  ;;  %v638_v36 = vrot.slane %v637_v27, 4  ;;  %v734_v48 = vpop.permute.xlu0 %733  ;;  %v834_v54 = vpop.permute.xlu1 %833 }
  0x89   :  { %v543_v34 = vsel %vm542_vm5, %v541_v25, %v540_v14  ;;  %v1567_v35 = vcombine.low %v353_v17, %v354_v19  ;;  %v735_v53 = vrot.slane %v734_v48, 4  ;;  %v835_v60 = vrot.slane %v834_v54, 4 }
  0x8a   :  { %v545_v39 = vmul.bf16 %v543_v34, %v1953_v32  ;;  %v546_v40 = vmul.bf16 %v543_v34, %v1958_v33  ;;  %v1575_v41 = vcombine.high %v450_v28, %v451_v30  ;;  %v640_v42 = vsel %vm639_vm7, %v638_v36, %v637_v27  ;;  %v1826_v36 = vld [vmem:[%s2256_s1 + $0x10] sm:$0xff]  }
  0x8b   :  { %v1574_v43 = vcombine.low %v450_v28, %v451_v30  ;;  %v642_v44 = vmul.bf16 %v640_v42, %v1953_v32  ;;  %v643_v45 = vmul.bf16 %v640_v42, %v1958_v33  ;;  %v547_v49 = vmul.bf16 %v543_v34, %v1967_v37 }
  0x8c   :  { %281 = vrot.lane.b32.xlu1 %v1559_v59, %s1853_s16  ;;  %279 = vrot.lane.b32.xlu0 %v1558_v61, %s1853_s16  ;;  %v1580_v46 = vcombine.high %v545_v39, %v546_v40  ;;  %v1579_v47 = vcombine.low %v545_v39, %v546_v40  ;;  %v548_v50 = vmul.bf16 %v543_v34, %v1972_v38 }
  0x8d   :  { %v1587_v51 = vcombine.high %v642_v44, %v643_v45  ;;  %v1586_v52 = vcombine.low %v642_v44, %v643_v45  ;;  %v644_v55 = vmul.bf16 %v640_v42, %v1967_v37  ;;  %v645_v56 = vmul.bf16 %v640_v42, %v1972_v38 }
  0x8e   :  { %v1582_v57 = vcombine.high %v547_v49, %v548_v50  ;;  %v737_v58 = vsel %vm736_vm8, %v735_v53, %v734_v48  ;;  %v1581_v59 = vcombine.low %v547_v49, %v548_v50  ;;  %v837_v0 = vsel %vm836_vm9, %v835_v60, %v834_v54  ;;  %v1827_v48 = vld [vmem:[%s2256_s1 + $0x18] sm:$0xff]  }
  0x8f   :  { %v739_v61 = vmul.bf16 %v737_v58, %v1953_v32  ;;  %v740_v62 = vmul.bf16 %v737_v58, %v1958_v33  ;;  %v1589_v63 = vcombine.high %v644_v55, %v645_v56  ;;  %v839_v2 = vmul.bf16 %v837_v0, %v1953_v32 }
  0x90   :  { %285 = vrot.lane.b32.xlu1 %v1561_v1, %s1853_s16  ;;  %283 = vrot.lane.b32.xlu0 %v1560_v3, %s1853_s16  ;;  %v1588_v1 = vcombine.low %v644_v55, %v645_v56  ;;  %v840_v3 = vmul.bf16 %v837_v0, %v1958_v33  ;;  %v1860_v32 = vmov 0   ;;  %v841_v33 = vmul.bf16 %v837_v0, %v1967_v37 }
  0x91   :  { %v1594_v4 = vcombine.high %v739_v61, %v740_v62  ;;  %v1593_v5 = vcombine.low %v739_v61, %v740_v62  ;;  %939 = vst [vmem:[#allocation2] sm:$0xff] %v1860_v32  ;;  %941 = vst.msk [vmem:[#allocation2 + $0x8] sm:$0xff] %vm836_vm9, %v1860_v32  ;;  %1823 = vset.pattern.permute.xlu1 %v1860_v32  ;;  %v842_v14 = vmul.bf16 %v837_v0, %v1972_v38  ;;  %v1829_v62 = vld [vmem:[%s2256_s1 + $0x28] sm:$0xff]  }
  0x92   :  { %v1601_v8 = vcombine.high %v839_v2, %v840_v3  ;;  %v1600_v9 = vcombine.low %v839_v2, %v840_v3  ;;  %1822 = vset.pattern.permute.xlu0 %v1860_v32  ;;  %v1830_v2 = vld [vmem:[%s2256_s1 + $0x30] sm:$0xff]  }
  0x93   :  { %v1603_v19 = vcombine.high %v841_v33, %v842_v14 }
  0x94   :  { %378 = vrot.lane.b32.xlu1 %v1566_v6, %s1854_s17  ;;  %376 = vrot.lane.b32.xlu0 %v1565_v7, %s1854_s17  ;;  %v741_v6 = vmul.bf16 %v737_v58, %v1967_v37  ;;  %v742_v7 = vmul.bf16 %v737_v58, %v1972_v38  ;;  %v923_v37 = vld [vmem:[%s2257_s2] sm:$0xff] }
  0x96   :  { %v1596_v16 = vcombine.high %v741_v6, %v742_v7  ;;  %v1595_v17 = vcombine.low %v741_v6, %v742_v7 }
  0x98   :  { %475 = vrot.lane.b32.xlu1 %v1573_v20, %s1855_s20  ;;  %473 = vrot.lane.b32.xlu0 %v1572_v24, %s1855_s20  ;;  %v1602_v20 = vcombine.low %v841_v33, %v842_v14  ;;  %v1831_v14 = vld [vmem:[%s2256_s1 + $0x38] sm:$0xff]  }
  0x9c   :  { %382 = vrot.lane.b32.xlu1 %v1568_v31, %s1854_s17  ;;  %380 = vrot.lane.b32.xlu0 %v1567_v35, %s1854_s17 }
  0xa0   :  { %479 = vrot.lane.b32.xlu1 %v1575_v41, %s1855_s20  ;;  %477 = vrot.lane.b32.xlu0 %v1574_v43, %s1855_s20 }
  0xa4   :  { %572 = vrot.lane.b32.xlu1 %v1580_v46, %s1856_s21  ;;  %570 = vrot.lane.b32.xlu0 %v1579_v47, %s1856_s21 }
  0xa8   :  { %669 = vrot.lane.b32.xlu1 %v1587_v51, %s1857_s22  ;;  %667 = vrot.lane.b32.xlu0 %v1586_v52, %s1857_s22  ;;  %v1828_v52 = vld [vmem:[%s2256_s1 + $0x20] sm:$0xff]  }
  0xac   :  { %576 = vrot.lane.b32.xlu1 %v1582_v57, %s1856_s21  ;;  %574 = vrot.lane.b32.xlu0 %v1581_v59, %s1856_s21 }
  0xb0   :  { %673 = vrot.lane.b32.xlu1 %v1589_v63, %s1857_s22  ;;  %671 = vrot.lane.b32.xlu0 %v1588_v1, %s1857_s22 }
  0xb4   :  { %766 = vrot.lane.b32.xlu1 %v1594_v4, %s1858_s23  ;;  %764 = vrot.lane.b32.xlu0 %v1593_v5, %s1858_s23 }
  0xb8   :  { %866 = vrot.lane.b32.xlu1 %v1601_v8, %s1859_s24  ;;  %864 = vrot.lane.b32.xlu0 %v1600_v9, %s1859_s24 }
  0xbc   :  { %770 = vrot.lane.b32.xlu1 %v1596_v16, %s1858_s23  ;;  %768 = vrot.lane.b32.xlu0 %v1595_v17, %s1858_s23 }
  0xc0   :  { %870 = vrot.lane.b32.xlu1 %v1603_v19, %s1859_s24  ;;  %868 = vrot.lane.b32.xlu0 %v1602_v20, %s1859_s24  ;;  %v1832_v20 = vld [vmem:[%s2256_s1 + $0x40] sm:$0xff]  }
  0xc4   :  { %932 = vperm.xlu1 %1823, %v924_v21   ;;  %927 = vperm.xlu0 %1822, %v923_v37  }
  0xc8   :  { %954 = vrot.lane.b32.xlu0 %v1899_v10, %s1842_s25 }
  0xcc   :  { %1130 = vrot.lane.b32.xlu0 %v1905_v13, %s1843_s26  ;;  %v1824_v13 = vld [vmem:[%s2256_s1 + $0x8] sm:$0xff]  }
  0xd0   :  { %1258 = vrot.lane.b32.xlu0 %v1916_v18, %s1846_s28 }
  0xd4   :  { %1386 = vrot.lane.b32.xlu0 %v1926_v23, %s1848_s30 }
  0xea   :  { %v234_v21 = vpop.f32.mrb[0].mxu1 }
  0xeb   :  { %v1691_v37 = vpop.f32.mrb[1].mxu1 }
  0xf6   :  { %v125_v38 = vpop.permute.xlu1 %124  ;;  %v123_v24 = vpop.permute.xlu0 %122 }
  0xf7   :  { %v131_v25 = vsel %vm130_vm10, %v123_v24, %v125_v38  ;;  %v237_v38 = vpop.f32.mrb[2].mxu1 }
  0xf8   :  { %1678 = vmatpush3.bf16.msra.mxu0 %v131_v25  ;;  %v1692_v24 = vpop.f32.mrb[3].mxu1 }
  0xf9   :  { %1679 = vmatprep.subr.bf16.mxu0 %v1850_v29 }
  0xfa   :  { %v129_v27 = vpop.permute.xlu1 %128  ;;  %v127_v28 = vpop.permute.xlu0 %126 }
  0xfb   :  { %v132_v10 = vsel %vm130_vm10, %v127_v28, %v129_v27 }
  0xfc   :  { %1680 = vmatpush3.bf16.msra.mxu0 %v132_v10 }
  0xfd   :  { %1693 = vmatprep.subr.bf16.mxu0 %v1850_v29 }
  0xfe   :  { %v282_v18 = vpop.permute.xlu1 %281  ;;  %v280_v23 = vpop.permute.xlu0 %279 }
  0xff   :  { %v288_v30 = vsel %vm287_vm11, %v280_v23, %v282_v18  ;;  %1682 = vmatmul.mubr.msk.bf16.vlgmr.msra.gmra.mrb[0].mxu0 %vm135_vm6, %v1824_v13 }
 0x100   :  { %1694 = vmatpush3.bf16.msra.mxu0 %v288_v30  ;;  %1697 = vmatprep.mubr.msk.bf16.mxu0 %vm1851_vm2, %v1850_v29 }
 0x101   :  { %1695 = vmatprep.subr.bf16.mxu0 %v1850_v29 }
 0x102   :  { %v286_v31 = vpop.permute.xlu1 %285  ;;  %v284_v34 = vpop.permute.xlu0 %283 }
 0x103   :  { %v289_v35 = vsel %vm287_vm11, %v284_v34, %v286_v31 }
 0x104   :  { %1696 = vmatpush3.bf16.msra.mxu0 %v289_v35 }
 0x105   :  { %1709 = vmatprep.subr.bf16.mxu0 %v1850_v29 }
 0x106   :  { %v379_v39 = vpop.permute.xlu1 %378  ;;  %v377_v40 = vpop.permute.xlu0 %376 }
 0x107   :  { %v385_v41 = vsel %vm384_vm12, %v377_v40, %v379_v39  ;;  %1698 = vmatmul.mubr.msk.bf16.vlgmr.msra.gmra.mrb[4].mxu0 %vm135_vm6, %v1826_v36 }
 0x108   :  { %1702 = vmatpush3.bf16.msra.mxu1 %v385_v41  ;;  %1713 = vmatprep.mubr.msk.bf16.mxu0 %vm1851_vm2, %v1850_v29 }
 0x109   :  { %1703 = vmatprep.subr.bf16.mxu1 %v1850_v29 }
 0x10a   :  { %v476_v42 = vpop.permute.xlu1 %475  ;;  %v474_v43 = vpop.permute.xlu0 %473 }
 0x10b   :  { %v482_v44 = vsel %vm481_vm13, %v474_v43, %v476_v42 }
 0x10c   :  { %1710 = vmatpush3.bf16.msra.mxu0 %v482_v44 }
 0x10d   :  { %1711 = vmatprep.subr.bf16.mxu0 %v1850_v29 }
 0x10e   :  { %v383_v45 = vpop.permute.xlu1 %382  ;;  %v381_v46 = vpop.permute.xlu0 %380 }
 0x10f   :  { %v386_v47 = vsel %vm384_vm12, %v381_v46, %v383_v45 }
 0x110   :  { %1704 = vmatpush3.bf16.msra.mxu1 %v386_v47 }
 0x111   :  { %1717 = vmatprep.subr.bf16.mxu1 %v1850_v29 }
 0x112   :  { %v480_v49 = vpop.permute.xlu1 %479  ;;  %v478_v50 = vpop.permute.xlu0 %477 }
 0x113   :  { %v483_v51 = vsel %vm481_vm13, %v478_v50, %v480_v49  ;;  %1706 = vmatmul.mubr.msk.bf16.vlgmr.msra.gmra.mrb[4].mxu1 %vm135_vm6, %v1827_v48 }
 0x114   :  { %1712 = vmatpush3.bf16.msra.mxu0 %v483_v51  ;;  %1721 = vmatprep.mubr.msk.bf16.mxu1 %vm1851_vm2, %v1850_v29 }
 0x115   :  { %1725 = vmatprep.subr.bf16.mxu0 %v1850_v29 }
 0x116   :  { %v573_v53 = vpop.permute.xlu1 %572  ;;  %v571_v54 = vpop.permute.xlu0 %570 }
 0x117   :  { %v579_v55 = vsel %vm578_vm14, %v571_v54, %v573_v53  ;;  %1714 = vmatmul.mubr.msk.bf16.vlgmr.msra.gmra.mrb[8].mxu0 %vm135_vm6, %v1828_v52 }
 0x118   :  { %1718 = vmatpush3.bf16.msra.mxu1 %v579_v55  ;;  %1729 = vmatprep.mubr.msk.bf16.mxu0 %vm1851_vm2, %v1850_v29 }
 0x119   :  { %1719 = vmatprep.subr.bf16.mxu1 %v1850_v29 }
 0x11a   :  { %v670_v56 = vpop.permute.xlu1 %669  ;;  %v668_v57 = vpop.permute.xlu0 %667 }
 0x11b   :  { %v676_v58 = vsel %vm675_vm15, %v668_v57, %v670_v56 }
 0x11c   :  { %1726 = vmatpush3.bf16.msra.mxu0 %v676_v58 }
 0x11d   :  { %1727 = vmatprep.subr.bf16.mxu0 %v1850_v29 }
 0x11e   :  { %v577_v59 = vpop.permute.xlu1 %576  ;;  %v575_v60 = vpop.permute.xlu0 %574 }
 0x11f   :  { %v580_v61 = vsel %vm578_vm14, %v575_v60, %v577_v59 }
 0x120   :  { %1720 = vmatpush3.bf16.msra.mxu1 %v580_v61 }
 0x121   :  { %1733 = vmatprep.subr.bf16.mxu1 %v1850_v29 }
 0x122   :  { %v674_v63 = vpop.permute.xlu1 %673  ;;  %v672_v0 = vpop.permute.xlu0 %671 }
 0x123   :  { %v677_v1 = vsel %vm675_vm15, %v672_v0, %v674_v63  ;;  %1722 = vmatmul.mubr.msk.bf16.vlgmr.msra.gmra.mrb[8].mxu1 %vm135_vm6, %v1829_v62 }
 0x124   :  { %1728 = vmatpush3.bf16.msra.mxu0 %v677_v1  ;;  %1737 = vmatprep.mubr.msk.bf16.mxu1 %vm1851_vm2, %v1850_v29 }
 0x125   :  { %1741 = vmatprep.subr.bf16.mxu0 %v1850_v29 }
 0x126   :  { %v767_v3 = vpop.permute.xlu1 %766  ;;  %v765_v4 = vpop.permute.xlu0 %764 }
 0x127   :  { %v773_v5 = vsel %vm772_vm0, %v765_v4, %v767_v3  ;;  %1730 = vmatmul.mubr.msk.bf16.vlgmr.msra.gmra.mrb[12].mxu0 %vm135_vm6, %v1830_v2 }
 0x128   :  { %1734 = vmatpush3.bf16.msra.mxu1 %v773_v5  ;;  %1745 = vmatprep.mubr.msk.bf16.mxu0 %vm1851_vm2, %v1850_v29 }
 0x129   :  { %1735 = vmatprep.subr.bf16.mxu1 %v1850_v29 }
 0x12a   :  { %v867_v6 = vpop.permute.xlu1 %866  ;;  %v865_v7 = vpop.permute.xlu0 %864 }
 0x12b   :  { %v873_v8 = vsel %vm872_vm1, %v865_v7, %v867_v6 }
 0x12c   :  { %1742 = vmatpush3.bf16.msra.mxu0 %v873_v8 }
 0x12d   :  { %1743 = vmatprep.subr.bf16.mxu0 %v1850_v29 }
 0x12e   :  { %v771_v9 = vpop.permute.xlu1 %770  ;;  %v769_v32 = vpop.permute.xlu0 %768 }
 0x12f   :  { %v774_v33 = vsel %vm772_vm0, %v769_v32, %v771_v9 }
 0x130   :  { %1736 = vmatpush3.bf16.msra.mxu1 %v774_v33 }
 0x131   :  { %1749 = vmatprep.subr.bf16.mxu1 %v1850_v29 }
 0x132   :  { %v871_v16 = vpop.permute.xlu1 %870  ;;  %v869_v17 = vpop.permute.xlu0 %868 }
 0x133   :  { %v874_v19 = vsel %vm872_vm1, %v869_v17, %v871_v16  ;;  %1738 = vmatmul.mubr.msk.bf16.vlgmr.msra.gmra.mrb[12].mxu1 %vm135_vm6, %v1831_v14 }
 0x134   :  { %1744 = vmatpush3.bf16.msra.mxu0 %v874_v19  ;;  %1751 = vmatprep.mubr.msk.bf16.mxu1 %vm1851_vm2, %v1850_v29 }
 0x135   :  { %1755 = vmatprep.subr.bf16.mxu0 %v1850_v29 }
 0x137   :  { %1746 = vmatmul.mubr.msk.bf16.vlgmr.msra.gmra.mrb[16].mxu0 %vm135_vm6, %v1832_v20 }
 0x138   :  { %1757 = vmatprep.mubr.msk.bf16.mxu0 %vm1851_vm2, %v1850_v29 }
 0x143   :  { %v928_v6 = vpop.permute.xlu0 %927  ;;  %v933_v32 = vpop.permute.xlu1 %932 }
 0x1d2   :  { %v173_v25 = vpop.f32.mrb[0].mxu0 }
 0x1d3   :  { %v1683_v27 = vpop.f32.mrb[1].mxu0  ;;  %v235_v28 = vadd.f32 %v234_v21, %v173_v25  ;;  %v955_v25 = vpop.permute.xlu0 %954 }
 0x1d4   :  { %v176_v10 = vpop.f32.mrb[2].mxu0 }
 0x1d5   :  { %v1684_v13 = vpop.f32.mrb[3].mxu0  ;;  %v238_v18 = vadd.f32 %v237_v38, %v176_v10 }
 0x1d7   :  { %v1131_v13 = vpop.permute.xlu0 %1130 }
 0x1da   :  { %v329_v23 = vpop.f32.mrb[4].mxu0 }
 0x1db   :  { %v336_v30 = vadd.f32 %v329_v23, %v235_v28  ;;  %v1699_v31 = vpop.f32.mrb[5].mxu0 }
 0x1dc   :  { %v332_v34 = vpop.f32.mrb[6].mxu0 }
 0x1dd   :  { %v337_v35 = vadd.f32 %v332_v34, %v238_v18  ;;  %v1700_v36 = vpop.f32.mrb[7].mxu0  ;;  %v1259_v34 = vpop.permute.xlu0 %1258 }
 0x1e6   :  { %v426_v39 = vpop.f32.mrb[4].mxu1 }
 0x1e7   :  { %v433_v40 = vadd.f32 %v426_v39, %v336_v30  ;;  %v1707_v41 = vpop.f32.mrb[5].mxu1 }
 0x1e8   :  { %v429_v42 = vpop.f32.mrb[6].mxu1 }
 0x1e9   :  { %v434_v43 = vadd.f32 %v429_v42, %v337_v35  ;;  %v1708_v44 = vpop.f32.mrb[7].mxu1  ;;  %v1387_v42 = vpop.permute.xlu0 %1386 }
 0x1ea   :  { %v523_v45 = vpop.f32.mrb[8].mxu0 }
 0x1eb   :  { %v530_v46 = vadd.f32 %v523_v45, %v433_v40  ;;  %v1715_v47 = vpop.f32.mrb[9].mxu0 }
 0x1ec   :  { %v526_v48 = vpop.f32.mrb[10].mxu0 }
 0x1ed   :  { %v531_v49 = vadd.f32 %v526_v48, %v434_v43  ;;  %v1716_v50 = vpop.f32.mrb[11].mxu0  ;;  %v1515_v48 = vld [vmem:[%s2259_s4 + $0x8] sm:$0xff] }
 0x1f6   :  { %v620_v51 = vpop.f32.mrb[8].mxu1 }
 0x1f7   :  { %v627_v52 = vadd.f32 %v620_v51, %v530_v46  ;;  %v1723_v53 = vpop.f32.mrb[9].mxu1 }
 0x1f8   :  { %v623_v54 = vpop.f32.mrb[10].mxu1  ;;  %v1833_v53 = vld [vmem:[%s2258_s3 + $0x8] sm:$0xff]  }
 0x1f9   :  { %v628_v55 = vadd.f32 %v623_v54, %v531_v49  ;;  %v1724_v56 = vpop.f32.mrb[11].mxu1  ;;  %v1514_v49 = vld [vmem:[%s2259_s4] sm:$0xff] }
 0x1fa   :  { %v717_v57 = vpop.f32.mrb[12].mxu0 }
 0x1fb   :  { %v724_v58 = vadd.f32 %v717_v57, %v627_v52  ;;  %v1731_v59 = vpop.f32.mrb[13].mxu0 }
 0x1fc   :  { %v720_v60 = vpop.f32.mrb[14].mxu0 }
 0x1fd   :  { %v725_v61 = vadd.f32 %v720_v60, %v628_v55  ;;  %v1732_v62 = vpop.f32.mrb[15].mxu0  ;;  %v1835_v60 = vld [vmem:[%s2258_s3 + $0x10] sm:$0xff]  }
 0x206   :  { %v814_v63 = vpop.f32.mrb[12].mxu1 }
 0x207   :  { %v821_v0 = vadd.f32 %v814_v63, %v724_v58  ;;  %v1739_v1 = vpop.f32.mrb[13].mxu1 }
 0x208   :  { %v817_v2 = vpop.f32.mrb[14].mxu1 }
 0x209   :  { %v822_v3 = vadd.f32 %v817_v2, %v725_v61  ;;  %v1740_v4 = vpop.f32.mrb[15].mxu1  ;;  %v1836_v61 = vld [vmem:[%s2258_s3 + $0x18] sm:$0xff]  }
 0x20a   :  { %v914_v5 = vpop.f32.mrb[16].mxu0  ;;  %v1837_v4 = vld [vmem:[%s2258_s3 + $0x20] sm:$0xff]  }
 0x20b   :  { %v921_v7 = vadd.f32 %v914_v5, %v821_v0  ;;  %v1747_v8 = vpop.f32.mrb[17].mxu0  ;;  %v1838_v5 = vld [vmem:[%s2258_s3 + $0x28] sm:$0xff]  }
 0x20c   :  { %v917_v9 = vpop.f32.mrb[18].mxu0 }
 0x20d   :  { %v922_v33 = vadd.f32 %v917_v9, %v822_v3  ;;  %v935_v14 = vadd.f32 %v928_v6, %v921_v7  ;;  %v1748_v16 = vpop.f32.mrb[19].mxu0 }
 0x20e   :  { %v1840_v16 = vld [vmem:[%s2258_s3 + $0x38] sm:$0xff]  }
 0x20f   :  { %v936_v17 = vadd.f32 %v933_v32, %v922_v33  ;;  %v937_v19 = vmax.f32 %v935_v14, 0.0  ;;  %v1839_v14 = vld [vmem:[%s2258_s3 + $0x30] sm:$0xff]  }
 0x211   :  { %v938_v20 = vmax.f32 %v936_v17, 0.0 }
 0x213   :  { %v942_v21 = vpack.c.bf16 %v938_v20, %v937_v19 }
 0x215   :  { %944 = vrot.lane.b32.xlu1 %v942_v21, %s1845_s27  ;;  %v1841_v21 = vld [vmem:[%s2258_s3 + $0x40] sm:$0xff]  }
 0x219   :  { %1066 = vrot.lane.b32.xlu1 %v1903_v12, %s1844_s5 }
 0x21d   :  { %1194 = vrot.lane.b32.xlu1 %v1910_v15, %s1845_s27 }
 0x221   :  { %1322 = vrot.lane.b32.xlu1 %v1924_v22, %s1847_s29  ;;  %v1834_v22 = vld [vmem:[%s2258_s3] sm:$0xff]  }
 0x225   :  { %1450 = vrot.lane.b32.xlu1 %v1934_v26, %s1849_s7 }
 0x287   :  { %v945_v37 = vpop.permute.xlu1 %944 }
 0x288   :  { %948 = vst.msk [vmem:[#allocation2] sm:$0xff] %vm947_vm3, %v945_v37 }
 0x289   :  { %950 = vst.msk [vmem:[#allocation2 + $0x8] sm:$0xff] %vm445_vm4, %v945_v37 }
 0x28b   :  { %v1067_v15 = vpop.permute.xlu1 %1066 }
 0x28f   :  { %v951_v38 = vld [vmem:[#allocation2] sm:$0xff]  ;;  %v1195_v23 = vpop.permute.xlu1 %1194 }
 0x290   :  { %v952_v24 = vld [vmem:[#allocation2 + $0x8] sm:$0xff]  ;;  %v957_v28 = vmul.bf16 %v955_v25, %v951_v38  ;;  %v953_v12 = vmul.bf16 %v951_v38, %v1901_v11  ;;  %v1069_v26 = vmul.bf16 %v1067_v15, %v951_v38  ;;  %v1133_v18 = vmul.bf16 %v1131_v13, %v951_v38 }
 0x291   :  { %v958_v27 = vmul.bf16 %v955_v25, %v952_v24  ;;  %v1070_v10 = vmul.bf16 %v1067_v15, %v952_v24  ;;  %v1134_v11 = vmul.bf16 %v1131_v13, %v952_v24  ;;  %v1197_v30 = vmul.bf16 %v1195_v23, %v951_v38 }
 0x292   :  { %966 = vrot.lane.b32.xlu0 %v957_v28, %s1852_s0  ;;  %1756 = vmatpush3.bf16.msra.mxu0 %v953_v12  ;;  %v1198_v31 = vmul.bf16 %v1195_v23, %v952_v24  ;;  %v1261_v35 = vmul.bf16 %v1259_v34, %v951_v38  ;;  %v1262_v36 = vmul.bf16 %v1259_v34, %v952_v24 }
 0x293   :  { %968 = vrot.lane.b32.xlu1 %v958_v27, %s1852_s0  ;;  %1767 = vmatprep.subr.bf16.mxu0 %v1850_v29  ;;  %v1323_v39 = vpop.permute.xlu1 %1322  ;;  %v1389_v43 = vmul.bf16 %v1387_v42, %v951_v38  ;;  %v1390_v44 = vmul.bf16 %v1387_v42, %v952_v24 }
 0x294   :  { %v1325_v40 = vmul.bf16 %v1323_v39, %v951_v38  ;;  %v1326_v41 = vmul.bf16 %v1323_v39, %v952_v24 }
 0x295   :  { %1758 = vmatmul.mubr.msk.bf16.vlgmr.msra.gmra.mrb[20].mxu0 %vm639_vm7, %v1834_v22 }
 0x296   :  { %1078 = vrot.lane.b32.xlu0 %v1069_v26, %s1853_s16  ;;  %1769 = vmatprep.mubr.msk.bf16.mxu0 %vm1851_vm2, %v1850_v29 }
 0x297   :  { %1080 = vrot.lane.b32.xlu1 %v1070_v10, %s1853_s16  ;;  %v1451_v45 = vpop.permute.xlu1 %1450 }
 0x298   :  { %v1453_v46 = vmul.bf16 %v1451_v45, %v951_v38  ;;  %v1454_v47 = vmul.bf16 %v1451_v45, %v952_v24 }
 0x29a   :  { %1142 = vrot.lane.b32.xlu0 %v1133_v18, %s1854_s17 }
 0x29b   :  { %1144 = vrot.lane.b32.xlu1 %v1134_v11, %s1854_s17 }
 0x29e   :  { %1206 = vrot.lane.b32.xlu0 %v1197_v30, %s1855_s20 }
 0x29f   :  { %1208 = vrot.lane.b32.xlu1 %v1198_v31, %s1855_s20 }
 0x2a2   :  { %1270 = vrot.lane.b32.xlu0 %v1261_v35, %s1856_s21 }
 0x2a3   :  { %1272 = vrot.lane.b32.xlu1 %v1262_v36, %s1856_s21 }
 0x2a6   :  { %1334 = vrot.lane.b32.xlu0 %v1325_v40, %s1857_s22 }
 0x2a7   :  { %1336 = vrot.lane.b32.xlu1 %v1326_v41, %s1857_s22 }
 0x2aa   :  { %1398 = vrot.lane.b32.xlu0 %v1389_v43, %s1858_s23 }
 0x2ab   :  { %1400 = vrot.lane.b32.xlu1 %v1390_v44, %s1858_s23 }
 0x2ae   :  { %1462 = vrot.lane.b32.xlu0 %v1453_v46, %s1859_s24 }
 0x2af   :  { %1464 = vrot.lane.b32.xlu1 %v1454_v47, %s1859_s24 }
 0x2b2   :  { %1518 = vperm.xlu0 %1822, %v1514_v49  }
 0x2b3   :  { %1523 = vperm.xlu1 %1823, %v1515_v48  }
 0x304   :  { %v967_v50 = vpop.permute.xlu0 %966 }
 0x305   :  { %v969_v51 = vpop.permute.xlu1 %968 }
 0x306   :  { %v970_v52 = vsel %vm130_vm10, %v967_v50, %v969_v51 }
 0x307   :  { %1750 = vmatpush3.bf16.msra.mxu1 %v970_v52 }
 0x308   :  { %1761 = vmatprep.subr.bf16.mxu1 %v1850_v29  ;;  %v1079_v54 = vpop.permute.xlu0 %1078 }
 0x309   :  { %v1081_v55 = vpop.permute.xlu1 %1080 }
 0x30a   :  { %v1082_v56 = vsel %vm287_vm11, %v1079_v54, %v1081_v55  ;;  %1752 = vmatmul.mubr.msk.bf16.vlgmr.msra.gmra.mrb[16].mxu1 %vm639_vm7, %v1833_v53 }
 0x30b   :  { %1762 = vmatpush3.bf16.msra.mxu1 %v1082_v56  ;;  %1763 = vmatprep.mubr.msk.bf16.mxu1 %vm1851_vm2, %v1850_v29 }
 0x30c   :  { %1773 = vmatprep.subr.bf16.mxu1 %v1850_v29  ;;  %v1143_v57 = vpop.permute.xlu0 %1142 }
 0x30d   :  { %v1145_v58 = vpop.permute.xlu1 %1144 }
 0x30e   :  { %v1146_v59 = vsel %vm384_vm12, %v1143_v57, %v1145_v58 }
 0x30f   :  { %1768 = vmatpush3.bf16.msra.mxu0 %v1146_v59 }
 0x310   :  { %1779 = vmatprep.subr.bf16.mxu0 %v1850_v29  ;;  %v1207_v62 = vpop.permute.xlu0 %1206 }
 0x311   :  { %v1209_v63 = vpop.permute.xlu1 %1208 }
 0x312   :  { %v1210_v0 = vsel %vm481_vm13, %v1207_v62, %v1209_v63  ;;  %1764 = vmatmul.mubr.msk.bf16.vlgmr.msra.gmra.mrb[20].mxu1 %vm639_vm7, %v1835_v60  ;;  %1770 = vmatmul.mubr.msk.bf16.vlgmr.msra.gmra.mrb[24].mxu0 %vm639_vm7, %v1836_v61 }
 0x313   :  { %1774 = vmatpush3.bf16.msra.mxu1 %v1210_v0  ;;  %1775 = vmatprep.mubr.msk.bf16.mxu1 %vm1851_vm2, %v1850_v29 }
 0x314   :  { %1785 = vmatprep.subr.bf16.mxu1 %v1850_v29  ;;  %1781 = vmatprep.mubr.msk.bf16.mxu0 %vm1851_vm2, %v1850_v29  ;;  %v1271_v1 = vpop.permute.xlu0 %1270 }
 0x315   :  { %v1273_v2 = vpop.permute.xlu1 %1272 }
 0x316   :  { %v1274_v3 = vsel %vm578_vm14, %v1271_v1, %v1273_v2 }
 0x317   :  { %1780 = vmatpush3.bf16.msra.mxu0 %v1274_v3 }
 0x318   :  { %1791 = vmatprep.subr.bf16.mxu0 %v1850_v29  ;;  %v1335_v6 = vpop.permute.xlu0 %1334 }
 0x319   :  { %v1337_v7 = vpop.permute.xlu1 %1336 }
 0x31a   :  { %v1338_v8 = vsel %vm675_vm15, %v1335_v6, %v1337_v7  ;;  %1776 = vmatmul.mubr.msk.bf16.vlgmr.msra.gmra.mrb[24].mxu1 %vm639_vm7, %v1837_v4  ;;  %1782 = vmatmul.mubr.msk.bf16.vlgmr.msra.gmra.mrb[28].mxu0 %vm639_vm7, %v1838_v5 }
 0x31b   :  { %1786 = vmatpush3.bf16.msra.mxu1 %v1338_v8  ;;  %1787 = vmatprep.mubr.msk.bf16.mxu1 %vm1851_vm2, %v1850_v29 }
 0x31c   :  { %1797 = vmatprep.subr.bf16.mxu1 %v1850_v29  ;;  %1793 = vmatprep.mubr.msk.bf16.mxu0 %vm1851_vm2, %v1850_v29  ;;  %v1399_v9 = vpop.permute.xlu0 %1398 }
 0x31d   :  { %v1401_v32 = vpop.permute.xlu1 %1400 }
 0x31e   :  { %v1402_v33 = vsel %vm772_vm0, %v1399_v9, %v1401_v32 }
 0x31f   :  { %1792 = vmatpush3.bf16.msra.mxu0 %v1402_v33 }
 0x320   :  { %v1463_v17 = vpop.permute.xlu0 %1462 }
 0x321   :  { %v1465_v19 = vpop.permute.xlu1 %1464 }
 0x322   :  { %v1466_v20 = vsel %vm872_vm1, %v1463_v17, %v1465_v19  ;;  %1788 = vmatmul.mubr.msk.bf16.vlgmr.msra.gmra.mrb[28].mxu1 %vm639_vm7, %v1839_v14  ;;  %1794 = vmatmul.mubr.msk.bf16.vlgmr.msra.gmra.mrb[32].mxu0 %vm639_vm7, %v1840_v16 }
 0x323   :  { %1798 = vmatpush3.bf16.msra.mxu1 %v1466_v20  ;;  %1799 = vmatprep.mubr.msk.bf16.mxu1 %vm1851_vm2, %v1850_v29 }
 0x32a   :  { %1800 = vmatmul.mubr.msk.bf16.vlgmr.msra.gmra.mrb[32].mxu1 %vm639_vm7, %v1841_v21 }
 0x331   :  { %v1519_v3 = vpop.permute.xlu0 %1518 }
 0x332   :  { %v1524_v8 = vpop.permute.xlu1 %1523 }
 0x368   :  { %v1059_v37 = vpop.f32.mrb[20].mxu0 }
 0x369   :  { %v1759_v38 = vpop.f32.mrb[21].mxu0 }
 0x36a   :  { %v1062_v24 = vpop.f32.mrb[22].mxu0 }
 0x36b   :  { %v1760_v25 = vpop.f32.mrb[23].mxu0 }
 0x3dd   :  { %v1010_v27 = vpop.f32.mrb[16].mxu1 }
 0x3de   :  { %v1753_v28 = vpop.f32.mrb[17].mxu1  ;;  %v1060_v12 = vadd.f32 %v1059_v37, %v1010_v27 }
 0x3df   :  { %v1013_v15 = vpop.f32.mrb[18].mxu1 }
 0x3e0   :  { %v1754_v22 = vpop.f32.mrb[19].mxu1  ;;  %v1063_v26 = vadd.f32 %v1062_v24, %v1013_v15 }
 0x3e5   :  { %v1121_v10 = vpop.f32.mrb[20].mxu1  ;;  %v1185_v13 = vpop.f32.mrb[24].mxu0 }
 0x3e6   :  { %v1128_v11 = vadd.f32 %v1121_v10, %v1060_v12  ;;  %v1765_v29 = vpop.f32.mrb[21].mxu1  ;;  %v1771_v18 = vpop.f32.mrb[25].mxu0 }
 0x3e7   :  { %v1124_v23 = vpop.f32.mrb[22].mxu1  ;;  %v1188_v30 = vpop.f32.mrb[26].mxu0 }
 0x3e8   :  { %v1129_v31 = vadd.f32 %v1124_v23, %v1063_v26  ;;  %v1192_v34 = vadd.f32 %v1185_v13, %v1128_v11  ;;  %v1766_v35 = vpop.f32.mrb[23].mxu1  ;;  %v1772_v36 = vpop.f32.mrb[27].mxu0 }
 0x3ea   :  { %v1193_v39 = vadd.f32 %v1188_v30, %v1129_v31 }
 0x3ed   :  { %v1249_v40 = vpop.f32.mrb[24].mxu1  ;;  %v1313_v41 = vpop.f32.mrb[28].mxu0 }
 0x3ee   :  { %v1256_v42 = vadd.f32 %v1249_v40, %v1192_v34  ;;  %v1777_v43 = vpop.f32.mrb[25].mxu1  ;;  %v1783_v44 = vpop.f32.mrb[29].mxu0 }
 0x3ef   :  { %v1252_v45 = vpop.f32.mrb[26].mxu1  ;;  %v1316_v46 = vpop.f32.mrb[30].mxu0 }
 0x3f0   :  { %v1257_v47 = vadd.f32 %v1252_v45, %v1193_v39  ;;  %v1320_v48 = vadd.f32 %v1313_v41, %v1256_v42  ;;  %v1778_v49 = vpop.f32.mrb[27].mxu1  ;;  %v1784_v50 = vpop.f32.mrb[31].mxu0 }
 0x3f2   :  { %v1321_v51 = vadd.f32 %v1316_v46, %v1257_v47 }
 0x3f5   :  { %v1377_v52 = vpop.f32.mrb[28].mxu1  ;;  %v1441_v53 = vpop.f32.mrb[32].mxu0 }
 0x3f6   :  { %v1384_v54 = vadd.f32 %v1377_v52, %v1320_v48  ;;  %v1789_v55 = vpop.f32.mrb[29].mxu1  ;;  %v1795_v56 = vpop.f32.mrb[33].mxu0 }
 0x3f7   :  { %v1380_v57 = vpop.f32.mrb[30].mxu1  ;;  %v1444_v58 = vpop.f32.mrb[34].mxu0 }
 0x3f8   :  { %v1385_v59 = vadd.f32 %v1380_v57, %v1321_v51  ;;  %v1448_v60 = vadd.f32 %v1441_v53, %v1384_v54  ;;  %v1790_v61 = vpop.f32.mrb[31].mxu1  ;;  %v1796_v62 = vpop.f32.mrb[35].mxu0 }
 0x3fa   :  { %v1449_v63 = vadd.f32 %v1444_v58, %v1385_v59 }
 0x3fd   :  { %v1505_v0 = vpop.f32.mrb[32].mxu1 }
 0x3fe   :  { %v1512_v1 = vadd.f32 %v1505_v0, %v1448_v60  ;;  %v1801_v2 = vpop.f32.mrb[33].mxu1 }
 0x3ff   :  { %v1508_v4 = vpop.f32.mrb[34].mxu1 }
 0x400   :  { %v1526_v5 = vadd.f32 %v1519_v3, %v1512_v1  ;;  %v1513_v6 = vadd.f32 %v1508_v4, %v1449_v63  ;;  %v1802_v7 = vpop.f32.mrb[35].mxu1 }
 0x402   :  { %v1527_v9 = vadd.f32 %v1524_v8, %v1513_v6  ;;  %v1528_v32 = vmax.f32 %v1526_v5, 0.0 }
 0x404   :  { %v1529_v33 = vmax.f32 %v1527_v9, 0.0 }
 0x406   :  { %v1630_v14 = vpack.c.bf16 %v1529_v33, %v1528_v32 }
 0x408   :  { %1631 = vst [vmem:[%s2260_s6] sm:$0xff] %v1630_v14  }

// kernel: thin_dy_unet_forward.13
= control target key start
LH: loop header
LB: loop body
LE: loop exit
PB: predicated region body
PF: predicated region fallthrough
CT: control target
= control target key end

     0   :  { %v95_v0 = vlaneseq  ;;  %s3968_s9 = smov 2   ;;  %s3969_s10 = smov 17   ;;  %vm544_vm0 = vcmask 15360   ;;  %vm186_vm1 = vcmask 1043456   ;;  %vm1008_vm2 = vcmask 138240   ;;  %s5518_s5 = inlined_call_operand.vmem [shape: bf16[9,512], index: 5, kind: input, shape index: {}]   ;;  %s5519_s0 = inlined_call_operand.vmem [shape: bf16[32,546], index: 0, kind: input, shape index: {}]   ;;  %s5520_s1 = inlined_call_operand.vmem [shape: bf16[9,16,32], index: 1, kind: input, shape index: {}]   ;;  %s5521_s2 = inlined_call_operand.vmem [shape: f32[16,1], index: 2, kind: input, shape index: {}]   ;;  %s5522_s3 = inlined_call_operand.vmem [shape: bf16[9,16,16], index: 3, kind: input, shape index: {}]   ;;  %s5523_s4 = inlined_call_operand.vmem [shape: f32[16,1], index: 4, kind: input, shape index: {}]   ;;  %s5524_s7 = inlined_call_operand.vmem [shape: f32[3,1], index: 7, kind: input, shape index: {}]   ;;  %s5525_s6 = inlined_call_operand.vmem [shape: bf16[3,16], index: 6, kind: input, shape index: {}]   ;;  %s5526_s8 = inlined_call_operand.vmem [shape: f32[3,512], index: 8, kind: output, shape index: {}]  }
   0x1   :  { %v42_v1 = vld [vmem:[%s5518_s5] sm:$0xff]  ;;  %v43_v2 = vld [vmem:[%s5518_s5 + $0x8] sm:$0xff]  ;;  %s3970_s11 = smov 1   ;;  %v44_v49 = vld [vmem:[%s5518_s5 + $0x10] sm:$0x11]  ;;  %s3971_s16 = smov 16  }
   0x2   :  { %v3625_v3 = vcombine.low %v42_v1, %v42_v1  ;;  %v3626_v4 = vcombine.high %v42_v1, %v42_v1  ;;  %v96_v5 = vshrl.u32 %v95_v0, 7  ;;  %v3627_v6 = vcombine.low %v43_v2, %v43_v2  ;;  %v45_v53 = vld [vmem:[%s5518_s5 + $0x18] sm:$0x11]  ;;  %s3972_s5 = smov 18   ;;  %s3973_s17 = smov 32  }
   0x3   :  { %v3628_v7 = vcombine.high %v43_v2, %v43_v2  ;;  %v3747_v56 = vcombine.low %v44_v49, %v44_v49  ;;  %v3749_v58 = vcombine.low %v45_v53, %v45_v53  ;;  %v3750_v59 = vcombine.high %v45_v53, %v45_v53  ;;  %s3974_s18 = smov 33   ;;  %s3975_s19 = smov 34  }
   0x4   :  { %v4036_v8 = vpack.i.b16 %v3625_v3, %v3625_v3  ;;  %v4038_v9 = vsub.s32 0, %v96_v5  ;;  %v4040_v10 = vpack.i.b16 %v3626_v4, %v3626_v4  ;;  %v514_v11 = vsub.s32 1, %v96_v5  ;;  %s3976_s21 = smov 126   ;;  %s3977_s26 = smov 111  }
   0x5   :  { %v4042_v12 = vpack.i.b16 %v3627_v6, %v3627_v6  ;;  %v4044_v13 = vpack.i.b16 %v3628_v7, %v3628_v7  ;;  %v978_v14 = vsub.s32 2, %v96_v5  ;;  %v140_v15 = vshrl.u32 %v3625_v3, 16  ;;  %s3979_s12 = smov 112   ;;  %s3981_s13 = smov 110  }
   0x6   :  { %v4047_v16 = vrot.slane %v4036_v8, %v514_v11  ;;  %v4050_v17 = vrot.slane %v4040_v10, %v514_v11  ;;  %v147_v18 = vshrl.u32 %v3626_v4, 16  ;;  %v154_v19 = vshrl.u32 %v3627_v6, 16  ;;  %s3982_s14 = smov 96   ;;  %s3983_s15 = smov 95  }
   0x7   :  { %v4053_v20 = vrot.slane %v4042_v12, %v514_v11  ;;  %v4056_v21 = vrot.slane %v4044_v13, %v514_v11  ;;  %v4059_v22 = vrot.slane %v4036_v8, %v978_v14  ;;  %v4062_v23 = vrot.slane %v4040_v10, %v978_v14  ;;  %s3984_s20 = smov 94  }
   0x8   :  { %5582 = vst [vmem:[#allocation3_spill] sm:$0xff] %v4047_v16  ;;  %5583 = vst [vmem:[#allocation4_spill] sm:$0xff] %v4050_v17  ;;  %v3657_v24 = vcombine.low %v4047_v16, %v4050_v17  ;;  %v141_v25 = vpack.i.b16 %v140_v15, %v140_v15  ;;  %v4069_v27 = vrot.slane %v4042_v12, %v978_v14  ;;  %v161_v33 = vshrl.u32 %v3628_v7, 16 }
   0x9   :  { %5584 = vst [vmem:[#allocation5_spill] sm:$0xff] %v4053_v20  ;;  %5585 = vst [vmem:[#allocation6_spill] sm:$0xff] %v4056_v21  ;;  %v3687_v26 = vcombine.low %v4059_v22, %v4062_v23  ;;  %v148_v28 = vpack.i.b16 %v147_v18, %v147_v18  ;;  %v155_v29 = vpack.i.b16 %v154_v19, %v154_v19  ;;  %v1442_v45 = vsub.s32 3, %v96_v5 }
   0xa   :  { %5586 = vst [vmem:[#allocation7_spill] sm:$0xff] %v4059_v22  ;;  %5587 = vst [vmem:[#allocation8_spill] sm:$0xff] %v4062_v23  ;;  %538 = vrot.lane.b32.xlu1 %v3657_v24, %s3968_s9  ;;  %v3658_v30 = vcombine.low %v4053_v20, %v4056_v21  ;;  %v4075_v31 = vrot.slane %v4044_v13, %v978_v14  ;;  %v4078_v32 = vrot.slane %v141_v25, %v4038_v9  ;;  %vm184_vm3 = vcmask 7168  }
   0xb   :  { %5588 = vst [vmem:[#allocation9_spill] sm:$0xff] %v4069_v27  ;;  %1002 = vrot.lane.b32.xlu0 %v3687_v26, %s3969_s10  ;;  %v4082_v34 = vrot.slane %v148_v28, %v4038_v9  ;;  %v4085_v35 = vrot.slane %v155_v29, %v4038_v9  ;;  %v162_v36 = vpack.i.b16 %v161_v33, %v161_v33  ;;  %vm776_vm4 = vcmask 130048  }
   0xc   :  { %5589 = vst [vmem:[#allocation10_spill] sm:$0xff] %v4075_v31  ;;  %5590 = vst [vmem:[#allocation11_spill] sm:$0xff] %v4078_v32  ;;  %v3688_v38 = vcombine.low %v4069_v27, %v4075_v31  ;;  %v4095_v40 = vrot.slane %v155_v29, %v514_v11  ;;  %v4100_v42 = vrot.slane %v141_v25, %v514_v11  ;;  %vm1240_vm5 = vcmask 146432  }
   0xd   :  { %5591 = vst [vmem:[#allocation12_spill] sm:$0xff] %v4082_v34  ;;  %5592 = vst [vmem:[#allocation13_spill] sm:$0xff] %v4085_v35  ;;  %v3631_v37 = vcombine.low %v4078_v32, %v4082_v34  ;;  %v4093_v39 = vrot.slane %v162_v36, %v4038_v9  ;;  %v4097_v41 = vrot.slane %v162_v36, %v514_v11  ;;  %vm288_vm6 = vcmask 261120  }
   0xe   :  { %540 = vrot.lane.b32.xlu1 %v3658_v30, %s3968_s9  ;;  %5594 = vst [vmem:[#allocation15_spill] sm:$0xff] %v4095_v40  ;;  %5596 = vst [vmem:[#allocation17_spill] sm:$0xff] %v4100_v42  ;;  %v4102_v43 = vrot.slane %v148_v28, %v514_v11  ;;  %v4109_v47 = vrot.slane %v155_v29, %v978_v14  ;;  %v4111_v48 = vrot.slane %v162_v36, %v978_v14  ;;  %vm1704_vm7 = vcmask 269312  }
   0xf   :  { %5593 = vst [vmem:[#allocation14_spill] sm:$0xff] %v4093_v39  ;;  %5595 = vst [vmem:[#allocation16_spill] sm:$0xff] %v4097_v41  ;;  %178 = vrot.lane.b32.xlu0 %v3631_v37, %s3970_s11  ;;  %v3632_v44 = vcombine.low %v4085_v35, %v4093_v39  ;;  %v3673_v46 = vcombine.low %v4095_v40, %v4097_v41  ;;  %v4119_v51 = vrot.slane %v141_v25, %v978_v14  ;;  %vm1958_vm8 = vcmask 277504  }
  0x10   :  { %5597 = vst [vmem:[#allocation18_spill] sm:$0xff] %v4102_v43  ;;  %5598 = vst [vmem:[#allocation19_spill] sm:$0xff] %v4109_v47  ;;  %v3672_v50 = vcombine.low %v4100_v42, %v4102_v43  ;;  %v4121_v52 = vrot.slane %v148_v28, %v978_v14  ;;  %v4127_v54 = vrot.slane %v4042_v12, %v1442_v45  ;;  %vm271_vm9 = vcmask 1039360  }
  0x11   :  { %5599 = vst [vmem:[#allocation20_spill] sm:$0xff] %v4111_v48  ;;  %5600 = vst [vmem:[#allocation21_spill] sm:$0xff] %v4119_v51  ;;  %v4130_v55 = vrot.slane %v4044_v13, %v1442_v45  ;;  %v3703_v57 = vcombine.low %v4109_v47, %v4111_v48  ;;  %v4139_v61 = vrot.slane %v4036_v8, %v1442_v45  ;;  %vm630_vm10 = vcmask 1031168  }
  0x12   :  { %1004 = vrot.lane.b32.xlu1 %v3688_v38, %s3969_s10  ;;  %5601 = vst [vmem:[#allocation22_spill] sm:$0xff] %v4121_v52  ;;  %5602 = vst [vmem:[#allocation23_spill] sm:$0xff] %v4127_v54  ;;  %v3702_v60 = vcombine.low %v4119_v51, %v4121_v52  ;;  %v4142_v62 = vrot.slane %v4040_v10, %v1442_v45  ;;  %v3748_v63 = vcombine.high %v44_v49, %v44_v49  ;;  %v4187_v38 = vld [vmem:[%s5519_s0 + $0x38] sm:$0xf]  ;;  %vm862_vm11 = vcmask 916480  }
  0x13   :  { %180 = vrot.lane.b32.xlu0 %v3632_v44, %s3970_s11  ;;  %5603 = vst [vmem:[#allocation24_spill] sm:$0xff] %v4130_v55  ;;  %5604 = vst [vmem:[#allocation25_spill] sm:$0xff] %v4139_v61  ;;  %v3718_v0 = vcombine.low %v4127_v54, %v4130_v55  ;;  %v1915_v1 = vpack.i.b16 %v3747_v56, %v3747_v56  ;;  %v4147_v2 = vrot.slane %v155_v29, %v1442_v45  ;;  %v4192_v44 = vld [vmem:[%s5519_s0 + $0x4c] sm:$0xf]  ;;  %v4208_v56 = vld [vmem:[%s5519_s0] sm:$0xff]  ;;  %vm1094_vm12 = vcmask 908288  }
  0x14   :  { %5605 = vst [vmem:[#allocation26_spill] sm:$0xff] %v4142_v62  ;;  %v4149_v3 = vrot.slane %v162_v36, %v1442_v45  ;;  %v1929_v4 = vpack.i.b16 %v3749_v58, %v3749_v58  ;;  %v1936_v5 = vpack.i.b16 %v3750_v59, %v3750_v59  ;;  %v3717_v6 = vcombine.low %v4139_v61, %v4142_v62 }
  0x15   :  { %5606 = vst [vmem:[#allocation27_spill] sm:$0xff] %v4147_v2  ;;  %v4154_v7 = vrot.slane %v141_v25, %v1442_v45  ;;  %v4156_v11 = vrot.slane %v148_v28, %v1442_v45  ;;  %v1922_v14 = vpack.i.b16 %v3748_v63, %v3748_v63  ;;  %v4171_v25 = vrot.slane %v1915_v1, %v4038_v9  ;;  %v4197_v45 = vld [vmem:[%s5519_s0 + $0x10] sm:$0xf] }
  0x16   :  { %772 = vrot.lane.b32.xlu1 %v3673_v46, %s3971_s16  ;;  %5607 = vst [vmem:[#allocation28_spill] sm:$0xff] %v4149_v3  ;;  %v3733_v15 = vcombine.low %v4147_v2, %v4149_v3  ;;  %v4162_v18 = vrot.slane %v1929_v4, %v4038_v9  ;;  %v4165_v19 = vrot.slane %v1936_v5, %v4038_v9  ;;  %vm1326_vm13 = vcmask 900096  }
  0x17   :  { %770 = vrot.lane.b32.xlu0 %v3672_v50, %s3971_s16  ;;  %5608 = vst [vmem:[#allocation29_spill] sm:$0xff] %v4154_v7  ;;  %5609 = vst [vmem:[#allocation30_spill] sm:$0xff] %v4156_v11  ;;  %v3732_v24 = vcombine.low %v4154_v7, %v4156_v11  ;;  %v4174_v26 = vrot.slane %v1922_v14, %v4038_v9  ;;  %v4203_v50 = vld [vmem:[%s5519_s0 + $0x24] sm:$0xf]  ;;  %vm1558_vm14 = vcmask 785408   ;;  %vm1790_vm15 = vcmask 777216  }
  0x18   :  { %5610 = vst [vmem:[#allocation31_spill] sm:$0xff] %v4162_v18  ;;  %5611 = vst [vmem:[#allocation32_spill] sm:$0xff] %v4165_v19  ;;  %v3752_v28 = vcombine.low %v4162_v18, %v4165_v19 }
  0x19   :  { %5612 = vst [vmem:[#allocation33_spill] sm:$0xff] %v4171_v25  ;;  %5613 = vst [vmem:[#allocation34_spill] sm:$0xff] %v4174_v26  ;;  %v3751_v29 = vcombine.low %v4171_v25, %v4174_v26 }
  0x1a   :  { %1236 = vrot.lane.b32.xlu1 %v3703_v57, %s3972_s5  ;;  %v4213_v57 = vld [vmem:[%s5519_s0 + $0x14] sm:$0xff] }
  0x1b   :  { %1234 = vrot.lane.b32.xlu0 %v3702_v60, %s3972_s5 }
  0x1e   :  { %1468 = vrot.lane.b32.xlu1 %v3718_v0, %s3973_s17 }
  0x1f   :  { %1466 = vrot.lane.b32.xlu0 %v3717_v6, %s3973_s17 }
  0x22   :  { %1700 = vrot.lane.b32.xlu1 %v3733_v15, %s3974_s18 }
  0x23   :  { %1698 = vrot.lane.b32.xlu0 %v3732_v24, %s3974_s18 }
  0x26   :  { %1954 = vrot.lane.b32.xlu1 %v3752_v28, %s3975_s19  ;;  %v4227_v28 = vld [vmem:[%s5519_s0 + $0x28] sm:$0xff] }
  0x27   :  { %1952 = vrot.lane.b32.xlu0 %v3751_v29, %s3975_s19  ;;  %v4232_v29 = vld [vmem:[%s5519_s0 + $0x3c] sm:$0xff] }
  0x7c   :  { %v539_v30 = vpop.permute.xlu1 %538 }
  0x7d   :  { %v542_v33 = vrot.slane %v539_v30, 4  ;;  %v1003_v36 = vpop.permute.xlu0 %1002 }
  0x7e   :  { %v1006_v63 = vrot.slane %v1003_v36, 4 }
  0x7f   :  { %v545_v46 = vsel %vm544_vm0, %v542_v33, %v539_v30 }
  0x80   :  { %v541_v37 = vpop.permute.xlu1 %540  ;;  %v551_v4 = vmul.bf16 %v545_v46, %v4208_v56  ;;  %v554_v15 = vmul.bf16 %v545_v46, %v4213_v57  ;;  %v4235_v30 = vsel %vm1008_vm2, %v1006_v63, %v1003_v36  ;;  %v557_v36 = vmul.bf16 %v545_v46, %v4227_v28 }
  0x81   :  { %v543_v49 = vrot.slane %v541_v37, 4  ;;  %v179_v53 = vpop.permute.xlu0 %178 }
  0x82   :  { %v182_v18 = vrot.slane %v179_v53, 4  ;;  %v3661_v26 = vcombine.high %v551_v4, %v554_v15  ;;  %v3660_v7 = vcombine.low %v551_v4, %v554_v15 }
  0x83   :  { %v559_v58 = vmul.bf16 %v543_v49, %v4187_v38  ;;  %v562_v59 = vmul.bf16 %v543_v49, %v4192_v44  ;;  %v553_v60 = vmul.bf16 %v543_v49, %v4197_v45  ;;  %v556_v1 = vmul.bf16 %v543_v49, %v4203_v50 }
  0x84   :  { %v1005_v0 = vpop.permute.xlu1 %1004  ;;  %v546_v5 = vsel %vm186_vm1, %v542_v33, %v543_v49  ;;  %v185_v11 = vsel %vm184_vm3, %v182_v18, %v179_v53 }
  0x85   :  { %v4221_v6 = vrot.slane %v1005_v0, 4  ;;  %v3669_v14 = vcombine.low %v559_v58, %v562_v59  ;;  %v181_v24 = vpop.permute.xlu0 %180  ;;  %v3664_v33 = vcombine.low %v553_v60, %v556_v1  ;;  %v547_v19 = vsel %vm544_vm0, %v546_v5, %v541_v37  ;;  %v4249_v1 = vld [vmem:[%s5519_s0 + $0x8] sm:$0xff] }
  0x86   :  { %v183_v59 = vrot.slane %v181_v24, 4  ;;  %v560_v60 = vmul.bf16 %v545_v46, %v4232_v29  ;;  %v4258_v37 = vmul.bf16 %v4235_v30, %v4208_v56  ;;  %v4262_v5 = vmul.bf16 %v4235_v30, %v4213_v57 }
  0x87   :  { %628 = vrot.lane.b32.xlu0 %v3669_v14, %s3976_s21  ;;  %v1017_v49 = vmul.bf16 %v4221_v6, %v4197_v45  ;;  %v1020_v58 = vmul.bf16 %v4221_v6, %v4203_v50  ;;  %618 = vrot.lane.b32.xlu1 %v3664_v33, %s3976_s21  ;;  %v4254_v14 = vld [vmem:[%s5519_s0 + $0x1c] sm:$0xff]  ;;  %v1010_v3 = vsel %vm186_vm1, %v1006_v63, %v4221_v6 }
  0x88   :  { %v773_v33 = vpop.permute.xlu1 %772  ;;  %v187_v2 = vsel %vm186_vm1, %v182_v18, %v183_v59  ;;  %v3666_v63 = vcombine.high %v557_v36, %v560_v60  ;;  %v3665_v61 = vcombine.low %v557_v36, %v560_v60  ;;  %v3691_v62 = vcombine.high %v4258_v37, %v4262_v5 }
  0x89   :  { %v3694_v25 = vcombine.low %v1017_v49, %v1020_v58  ;;  %v771_v46 = vpop.permute.xlu0 %770  ;;  %v4269_v49 = vmul.bf16 %v547_v19, %v4249_v1  ;;  %v4272_v58 = vmul.bf16 %v547_v19, %v4254_v14  ;;  %v775_v54 = vrot.slane %v773_v33, 4 }
  0x8a   :  { %v774_v55 = vrot.slane %v771_v46, 4  ;;  %v3690_v18 = vcombine.low %v4258_v37, %v4262_v5  ;;  %v4291_v53 = vsel %vm1008_vm2, %v1010_v3, %v1005_v0  ;;  %v4294_v4 = vsel %vm184_vm3, %v187_v2, %v181_v24 }
  0x8b   :  { %612 = vrot.lane.b32.xlu0 %v3661_v26, %s3976_s21  ;;  %1082 = vrot.lane.b32.xlu1 %v3694_v25, %s3977_s26  ;;  %v4279_v26 = vld [vmem:[%s5519_s0 + $0x30] sm:$0xff]  ;;  %v4288_v25 = vld [vmem:[%s5519_s0 + $0x44] sm:$0xff]  ;;  %v194_v15 = vmul.bf16 %v183_v59, %v4197_v45  ;;  %v197_v36 = vmul.bf16 %v183_v59, %v4203_v50  ;;  %v200_v37 = vmul.bf16 %v183_v59, %v4187_v38  ;;  %s3978_s0 = smov 127  }
  0x8c   :  { %v203_v5 = vmul.bf16 %v183_v59, %v4192_v44  ;;  %v4304_v48 = vmul.bf16 %v547_v19, %v4279_v26  ;;  %v778_v2 = vsel %vm186_vm1, %v774_v55, %v775_v54  ;;  %v4309_v3 = vmul.bf16 %v547_v19, %v4288_v25  ;;  %v1237_v27 = vpop.permute.xlu1 %1236 }
  0x8d   :  { %v785_v0 = vmul.bf16 %v775_v54, %v4197_v45  ;;  %v4315_v24 = vmul.bf16 %v4291_v53, %v4249_v1  ;;  %v4319_v59 = vmul.bf16 %v4291_v53, %v4254_v14  ;;  %v791_v60 = vmul.bf16 %v775_v54, %v4187_v38  ;;  %v1235_v31 = vpop.permute.xlu0 %1234 }
  0x8e   :  { %v3638_v47 = vcombine.low %v194_v15, %v197_v36  ;;  %v4326_v52 = vmul.bf16 %v185_v11, %v4227_v28  ;;  %v4329_v51 = vmul.bf16 %v185_v11, %v4232_v29  ;;  %v4333_v23 = vsel %vm776_vm4, %v774_v55, %v771_v46 }
  0x8f   :  { %610 = vrot.lane.b32.xlu0 %v3660_v7, %s3976_s21  ;;  %622 = vrot.lane.b32.xlu1 %v3666_v63, %s3976_s21  ;;  %v788_v7 = vmul.bf16 %v775_v54, %v4203_v50  ;;  %v794_v63 = vmul.bf16 %v775_v54, %v4192_v44  ;;  %v3643_v22 = vcombine.low %v200_v37, %v203_v5  ;;  %v1238_v37 = vrot.slane %v1235_v31, 4 }
  0x90   :  { %v4336_v54 = vmul.bf16 %v185_v11, %v4208_v56  ;;  %v4339_v15 = vmul.bf16 %v185_v11, %v4213_v57  ;;  %v779_v36 = vsel %vm776_vm4, %v778_v2, %v773_v33  ;;  %v3668_v19 = vcombine.high %v4304_v48, %v4309_v3  ;;  %v1469_v33 = vpop.permute.xlu1 %1468 }
  0x91   :  { %v4345_v41 = vcombine.low %v785_v0, %v788_v7  ;;  %v4351_v46 = vcombine.low %v791_v60, %v794_v63  ;;  %v1239_v11 = vrot.slane %v1237_v27, 4  ;;  %v4361_v2 = vmul.bf16 %v4333_v23, %v4227_v28 }
  0x92   :  { %v4368_v0 = vmul.bf16 %v4333_v23, %v4232_v29  ;;  %v1241_v7 = vsel %vm1240_vm5, %v1238_v37, %v1235_v31  ;;  %v1026_v60 = vmul.bf16 %v4221_v6, %v4192_v44  ;;  %v4382_v31 = vmul.bf16 %v4333_v23, %v4208_v56 }
  0x93   :  { %1076 = vrot.lane.b32.xlu0 %v3691_v62, %s3977_s26  ;;  %620 = vrot.lane.b32.xlu1 %v3665_v61, %s3976_s21  ;;  %v1242_v63 = vsel %vm186_vm1, %v1238_v37, %v1239_v11  ;;  %v1467_v61 = vpop.permute.xlu0 %1466  ;;  %v1249_v62 = vmul.bf16 %v1239_v11, %v4197_v45  ;;  %v1252_v55 = vmul.bf16 %v1239_v11, %v4203_v50 }
  0x94   :  { %v1243_v37 = vsel %vm1240_vm5, %v1242_v63, %v1237_v27  ;;  %v4392_v40 = vmul.bf16 %v1241_v7, %v4213_v57  ;;  %v1470_v43 = vrot.slane %v1467_v61, 4  ;;  %v4400_v21 = vmul.bf16 %v1241_v7, %v4227_v28  ;;  %v1701_v20 = vpop.permute.xlu1 %1700 }
  0x95   :  { %v4397_v42 = vcombine.low %v1249_v62, %v1252_v55  ;;  %v4403_v27 = vmul.bf16 %v1241_v7, %v4232_v29  ;;  %v1255_v63 = vmul.bf16 %v1239_v11, %v4187_v38  ;;  %v4448_v16 = vmul.bf16 %v779_v36, %v4279_v26 }
  0x96   :  { %v4469_v35 = vmul.bf16 %v1243_v37, %v4279_v26  ;;  %v4476_v34 = vmul.bf16 %v1243_v37, %v4288_v25 }
  0x97   :  { %1074 = vrot.lane.b32.xlu0 %v3690_v18, %s3977_s26  ;;  %259 = vrot.lane.b32.xlu1 %v3638_v47, %s3978_s0  ;;  %v1023_v18 = vmul.bf16 %v4221_v6, %v4187_v38  ;;  %v4387_v47 = vmul.bf16 %v1241_v7, %v4208_v56  ;;  %v4394_v6 = vrot.slane %v1469_v33, 4  ;;  %v1699_v7 = vpop.permute.xlu0 %1698 }
  0x98   :  { %5621 = vst [vmem:[#allocation40_spill] sm:$0xff] %v4469_v35  ;;  %5622 = vst [vmem:[#allocation41_spill] sm:$0xff] %v4476_v34  ;;  %v1702_v32 = vrot.slane %v1699_v7, 4  ;;  %v3681_v34 = vcombine.high %v4361_v2, %v4368_v0 }
  0x99   :  { %v4389_v5 = vcombine.low %v1023_v18, %v1026_v60  ;;  %v5614_v60 = vcombine.low %v4269_v49, %v4272_v58  ;;  %v1474_v55 = vsel %vm186_vm1, %v1470_v43, %v4394_v6  ;;  %v1258_v18 = vmul.bf16 %v1239_v11, %v4192_v44 }
  0x9a   :  { %v1475_v17 = vsel %vm288_vm6, %v1474_v55, %v1469_v33  ;;  %v5615_v33 = vcombine.high %v4269_v49, %v4272_v58  ;;  %v4442_v11 = vmul.bf16 %v779_v36, %v4249_v1  ;;  %v4456_v58 = vmul.bf16 %v779_v36, %v4288_v25 }
  0x9b   :  { %269 = vrot.lane.b32.xlu0 %v3643_v22, %s3978_s0  ;;  %614 = vrot.lane.b32.xlu1 %v5614_v60, %s3976_s21  ;;  %v1473_v22 = vsel %vm288_vm6, %v1470_v43, %v1467_v61  ;;  %v4424_v61 = vmul.bf16 %v1475_v17, %v4249_v1  ;;  %v4427_v43 = vmul.bf16 %v1475_v17, %v4254_v14 }
  0x9c   :  { %v4430_v62 = vmul.bf16 %v1473_v22, %v4208_v56  ;;  %v4433_v39 = vmul.bf16 %v1473_v22, %v4213_v57  ;;  %v4439_v55 = vcombine.low %v1255_v63, %v1258_v18  ;;  %5617 = vst [vmem:[#allocation36_spill] sm:$0xff] %v4442_v11  ;;  %v4445_v60 = vmul.bf16 %v779_v36, %v4254_v14  ;;  %v1953_v18 = vpop.permute.xlu0 %1952 }
  0x9d   :  { %v4459_v63 = vmul.bf16 %v1243_v37, %v4249_v1  ;;  %v1703_v11 = vrot.slane %v1701_v20, 4  ;;  %v1481_v49 = vmul.bf16 %v4394_v6, %v4197_v45  ;;  %v1705_v36 = vsel %vm1704_vm7, %v1702_v32, %v1699_v7 }
  0x9e   :  { %5616 = vst [vmem:[#allocation35_spill] sm:$0xff] %v4439_v55  ;;  %5618 = vst [vmem:[#allocation37_spill] sm:$0xff] %v4445_v60  ;;  %v1955_v55 = vpop.permute.xlu1 %1954  ;;  %v1487_v7 = vmul.bf16 %v4394_v6, %v4187_v38 }
  0x9f   :  { %616 = vrot.lane.b32.xlu0 %v5615_v33, %s3976_s21  ;;  %626 = vrot.lane.b32.xlu1 %v3668_v19, %s3976_s21  ;;  %5619 = vst [vmem:[#allocation38_spill] sm:$0xff] %v4459_v63  ;;  %v4466_v19 = vmul.bf16 %v1243_v37, %v4254_v14  ;;  %v5623_v33 = vcombine.low %v4304_v48, %v4309_v3 }
  0xa0   :  { %v4492_v37 = vmul.bf16 %v4333_v23, %v4213_v57  ;;  %v1706_v60 = vsel %vm186_vm1, %v1702_v32, %v1703_v11  ;;  %v4509_v48 = vmul.bf16 %v1473_v22, %v4227_v28  ;;  %v4512_v3 = vmul.bf16 %v1473_v22, %v4232_v29 }
  0xa1   :  { %5620 = vst [vmem:[#allocation39_spill] sm:$0xff] %v4466_v19  ;;  %v1956_v19 = vrot.slane %v1953_v18, 4  ;;  %v1707_v23 = vsel %vm1704_vm7, %v1706_v60, %v1701_v20  ;;  %v4522_v20 = vmul.bf16 %v1475_v17, %v4279_v26  ;;  %v5628_v60 = vcombine.low %v4315_v24, %v4319_v59 }
  0xa2   :  { %5625 = vst [vmem:[#allocation43_spill] sm:$0xff] %v4509_v48  ;;  %5626 = vst [vmem:[#allocation44_spill] sm:$0xff] %v4512_v3  ;;  %v4545_v35 = vmul.bf16 %v1707_v23, %v4254_v14  ;;  %v4552_v32 = vmul.bf16 %v1705_v36, %v4208_v56  ;;  %v4555_v3 = vmul.bf16 %v1705_v36, %v4213_v57 }
  0xa3   :  { %624 = vrot.lane.b32.xlu0 %v5623_v33, %s3976_s21  ;;  %850 = vrot.lane.b32.xlu1 %v4345_v41, %s3979_s12  ;;  %v1484_v33 = vmul.bf16 %v4394_v6, %v4203_v50  ;;  %v4503_v41 = vrot.slane %v1955_v55, 4  ;;  %5627 = vst [vmem:[#allocation45_spill] sm:$0xff] %v4522_v20  ;;  %v1722_v20 = vmul.bf16 %v1703_v11, %v4192_v44 }
  0xa5   :  { %v4506_v63 = vcombine.low %v1481_v49, %v1484_v33  ;;  %v1960_v22 = vsel %vm186_vm1, %v1956_v19, %v4503_v41  ;;  %v4533_v49 = vmul.bf16 %v1475_v17, %v4288_v25  ;;  %v1490_v33 = vmul.bf16 %v4394_v6, %v4192_v44 }
  0xa6   :  { %v5630_v6 = vcombine.high %v4315_v24, %v4319_v59  ;;  %v1961_v48 = vsel %vm1958_vm8, %v1960_v22, %v1955_v55  ;;  %v1713_v17 = vmul.bf16 %v1703_v11, %v4197_v45  ;;  %v1716_v24 = vmul.bf16 %v1703_v11, %v4203_v50 }
  0xa7   :  { %5624 = vst [vmem:[#allocation42_spill] sm:$0xff] %v4506_v63  ;;  %860 = vrot.lane.b32.xlu0 %v4351_v46, %s3979_s12  ;;  %1078 = vrot.lane.b32.xlu1 %v5628_v60, %s3977_s26  ;;  %5629 = vst [vmem:[#allocation46_spill] sm:$0xff] %v4533_v49  ;;  %v4542_v60 = vmul.bf16 %v1707_v23, %v4249_v1  ;;  %v4562_v63 = vcombine.low %v1487_v7, %v1490_v33  ;;  %vm5581_vm1 = vcmask 769024  }
  0xa8   :  { %v5631_v49 = vcombine.high %v4326_v52, %v4329_v51  ;;  %v4577_v55 = vmul.bf16 %v1705_v36, %v4227_v28  ;;  %v1959_v22 = vsel %vm1958_vm8, %v1956_v19, %v1953_v18  ;;  %v4581_v7 = vmul.bf16 %v1705_v36, %v4232_v29 }
  0xa9   :  { %v4591_v46 = vmul.bf16 %v1707_v23, %v4288_v25  ;;  %v1719_v59 = vmul.bf16 %v1703_v11, %v4187_v38  ;;  %v5633_v18 = vcombine.high %v4336_v54, %v4339_v15  ;;  %v5634_v11 = vcombine.low %v4326_v52, %v4329_v51 }
  0xaa   :  { %5632 = vst [vmem:[#allocation47_spill] sm:$0xff] %v4581_v7  ;;  %v4620_v36 = vmul.bf16 %v1959_v22, %v4208_v56  ;;  %v4625_v7 = vmul.bf16 %v1959_v22, %v4213_v57  ;;  %v1967_v51 = vmul.bf16 %v4503_v41, %v4197_v45  ;;  %v1970_v52 = vmul.bf16 %v4503_v41, %v4203_v50 }
  0xab   :  { %1080 = vrot.lane.b32.xlu0 %v5630_v6, %s3977_s26  ;;  %263 = vrot.lane.b32.xlu1 %v5631_v49, %s3978_s0  ;;  %v4586_v49 = vmul.bf16 %v1707_v23, %v4279_v26  ;;  %v4588_v6 = vcombine.low %v1713_v17, %v1716_v24  ;;  %v4604_v17 = vmul.bf16 %v1961_v48, %v4249_v1 }
  0xac   :  { %v4607_v23 = vmul.bf16 %v1961_v48, %v4254_v14  ;;  %v4617_v19 = vcombine.low %v1719_v59, %v1722_v20  ;;  %v4634_v20 = vmul.bf16 %v1959_v22, %v4227_v28  ;;  %v4637_v59 = vmul.bf16 %v1959_v22, %v4232_v29 }
  0xad   :  { %v4640_v33 = vmul.bf16 %v1961_v48, %v4279_v26  ;;  %v5635_v24 = vcombine.low %v4336_v54, %v4339_v15  ;;  %v3755_v45 = vcombine.high %v4620_v36, %v4625_v7  ;;  %v4648_v50 = vcombine.low %v1967_v51, %v1970_v52 }
  0xae   :  { %v1973_v15 = vmul.bf16 %v4503_v41, %v4187_v38  ;;  %v3676_v51 = vcombine.high %v4382_v31, %v4492_v37  ;;  %v3680_v52 = vcombine.low %v4361_v2, %v4368_v0  ;;  %v193_v54 = vmul.bf16 %v4294_v4, %v4249_v1 }
  0xaf   :  { %253 = vrot.lane.b32.xlu0 %v5633_v18, %s3978_s0  ;;  %261 = vrot.lane.b32.xlu1 %v5634_v11, %s3978_s0  ;;  %v3754_v11 = vcombine.low %v4620_v36, %v4625_v7  ;;  %v4653_v18 = vmul.bf16 %v1961_v48, %v4288_v25  ;;  %v196_v38 = vmul.bf16 %v4294_v4, %v4254_v14 }
  0xb0   :  { %v199_v2 = vmul.bf16 %v4294_v4, %v4279_v26  ;;  %v202_v0 = vmul.bf16 %v4294_v4, %v4288_v25  ;;  %v4701_v4 = vrot.slane %v4040_v10, %v4038_v9 }
  0xb2   :  { %v3641_v10 = vcombine.low %v199_v2, %v202_v0 }
  0xb3   :  { %251 = vrot.lane.b32.xlu0 %v5635_v24, %s3978_s0  ;;  %854 = vrot.lane.b32.xlu1 %v3681_v34, %s3979_s12  ;;  %v1976_v24 = vmul.bf16 %v4503_v41, %v4192_v44  ;;  %v3761_v34 = vcombine.low %v4640_v33, %v4653_v18  ;;  %v1021_v44 = vmul.bf16 %v4235_v30, %v4227_v28 }
  0xb4   :  { %v3675_v41 = vcombine.low %v4382_v31, %v4492_v37  ;;  %v4697_v31 = vrot.slane %v4036_v8, %v4038_v9  ;;  %v3637_v37 = vcombine.high %v193_v54, %v196_v38 }
  0xb5   :  { %v4676_v22 = vcombine.low %v1973_v15, %v1976_v24  ;;  %v1024_v15 = vmul.bf16 %v4235_v30, %v4232_v29  ;;  %v3636_v24 = vcombine.low %v193_v54, %v196_v38  ;;  %v4705_v30 = vrot.slane %v4042_v12, %v4038_v9 }
  0xb6   :  { %v3629_v48 = vcombine.low %v4697_v31, %v4701_v4  ;;  %v1022_v12 = vmul.bf16 %v4291_v53, %v4279_v26  ;;  %v1025_v54 = vmul.bf16 %v4291_v53, %v4288_v25 }
  0xb7   :  { %844 = vrot.lane.b32.xlu0 %v3676_v51, %s3979_s12  ;;  %852 = vrot.lane.b32.xlu1 %v3680_v52, %s3979_s12  ;;  %v3980_v51 = vmov 0   ;;  %v4711_v52 = vrot.slane %v4044_v13, %v4038_v9  ;;  %v3696_v8 = vcombine.high %v1021_v44, %v1024_v15 }
  0xb8   :  { %324 = vmatprep.mubr.bf16.mxu0 %v3980_v51  ;;  %2186 = vst [vmem:[#allocation2] sm:$0xff] %v3980_v51  ;;  %2191 = vst.msk [vmem:[#allocation2 + $0x20] sm:$0xff] %vm1958_vm8, %v3980_v51  ;;  %367 = vmatprep.mubr.bf16.mxu1 %v3980_v51  ;;  %v4725_v13 = vmul.bf16 %v3629_v48, %v4208_v56  ;;  %v4728_v38 = vmul.bf16 %v3629_v48, %v4213_v57 }
  0xb9   :  { %3940 = vset.pattern.permute.xlu0 %v3980_v51  ;;  %3941 = vset.pattern.permute.xlu1 %v3980_v51  ;;  %v3630_v9 = vcombine.low %v4705_v30, %v4711_v52 }
  0xbb   :  { %842 = vrot.lane.b32.xlu0 %v3675_v41, %s3979_s12  ;;  %255 = vrot.lane.b32.xlu1 %v3636_v24, %s3978_s0  ;;  %v3642_v41 = vcombine.high %v199_v2, %v202_v0  ;;  %v4731_v24 = vmul.bf16 %v3629_v48, %v4227_v28  ;;  %v4734_v2 = vmul.bf16 %v3629_v48, %v4232_v29 }
  0xbc   :  { %v4738_v53 = vmul.bf16 %v3630_v9, %v4249_v1  ;;  %v4741_v0 = vmul.bf16 %v3630_v9, %v4254_v14  ;;  %v4744_v56 = vmul.bf16 %v3630_v9, %v4279_v26  ;;  %v4747_v57 = vmul.bf16 %v3630_v9, %v4288_v25 }
  0xbd   :  { %v3648_v28 = vcombine.high %v4725_v13, %v4728_v38  ;;  %v3647_v29 = vcombine.low %v4725_v13, %v4728_v38  ;;  %v3652_v48 = vcombine.high %v4731_v24, %v4734_v2  ;;  %v3698_v9 = vcombine.high %v1022_v12, %v1025_v54 }
  0xbe   :  { %v3650_v14 = vcombine.high %v4738_v53, %v4741_v0  ;;  %v3649_v26 = vcombine.low %v4738_v53, %v4741_v0  ;;  %v3654_v25 = vcombine.high %v4744_v56, %v4747_v57  ;;  %v3695_v1 = vcombine.low %v1021_v44, %v1024_v15  ;;  %v5639_v44 = vld [vmem:[#allocation35_spill] sm:$0xff] }
  0xbf   :  { %257 = vrot.lane.b32.xlu0 %v3637_v37, %s3978_s0  ;;  %267 = vrot.lane.b32.xlu1 %v3642_v41, %s3978_s0  ;;  %v3697_v41 = vcombine.low %v1022_v12, %v1025_v54  ;;  %v5636_v37 = vcombine.high %v4387_v47, %v4392_v40  ;;  %v5640_v15 = vcombine.low %v4400_v21, %v4403_v27 }
  0xc0   :  { %v5648_v54 = vcombine.high %v4448_v16, %v4456_v58  ;;  %v5682_v13 = vcombine.low %v4731_v24, %v4734_v2  ;;  %v5683_v38 = vcombine.low %v4744_v56, %v4747_v57  ;;  %v3951_v24 = vld [vmem:[%s5520_s1] sm:$0xff]  }
  0xc3   :  { %265 = vrot.lane.b32.xlu0 %v3641_v10, %s3978_s0  ;;  %1086 = vrot.lane.b32.xlu1 %v3696_v8, %s3977_s26  ;;  %v5637_v8 = vcombine.low %v4387_v47, %v4392_v40  ;;  %v5642_v40 = vcombine.low %v4424_v61, %v4427_v43  ;;  %v5643_v47 = vld [vmem:[#allocation36_spill] sm:$0xff]  ;;  %v5644_v10 = vld [vmem:[#allocation37_spill] sm:$0xff] }
  0xc4   :  { %v5645_v12 = vcombine.high %v5643_v47, %v5644_v10 }
  0xc7   :  { %1088 = vrot.lane.b32.xlu0 %v3697_v41, %s3977_s26  ;;  %1090 = vrot.lane.b32.xlu1 %v3698_v9, %s3977_s26 }
  0xcb   :  { %1092 = vrot.lane.b32.xlu0 %v4389_v5, %s3977_s26  ;;  %1084 = vrot.lane.b32.xlu1 %v3695_v1, %s3977_s26  ;;  %v5638_v5 = vcombine.high %v4400_v21, %v4403_v27  ;;  %v5646_v21 = vcombine.low %v5643_v47, %v5644_v10  ;;  %v5647_v27 = vcombine.low %v4448_v16, %v4456_v58  ;;  %v5649_v1 = vld [vmem:[#allocation38_spill] sm:$0xff]  ;;  %v5661_v47 = vld [vmem:[#allocation44_spill] sm:$0xff] }
  0xcc   :  { %v5657_v58 = vcombine.high %v4424_v61, %v4427_v43 }
  0xcf   :  { %1308 = vrot.lane.b32.xlu0 %v5636_v37, %s3981_s13  ;;  %1314 = vrot.lane.b32.xlu1 %v4397_v42, %s3981_s13  ;;  %v5641_v42 = vcombine.high %v4430_v62, %v4433_v39  ;;  %v5650_v37 = vld [vmem:[#allocation39_spill] sm:$0xff] }
  0xd0   :  { %v5651_v41 = vcombine.high %v5649_v1, %v5650_v37  ;;  %v5652_v9 = vcombine.low %v5649_v1, %v5650_v37  ;;  %v5668_v37 = vcombine.high %v4552_v32, %v4555_v3 }
  0xd3   :  { %1306 = vrot.lane.b32.xlu0 %v5637_v8, %s3981_s13  ;;  %1318 = vrot.lane.b32.xlu1 %v5638_v5, %s3981_s13  ;;  %v5653_v8 = vld [vmem:[#allocation40_spill] sm:$0xff]  ;;  %v5654_v5 = vld [vmem:[#allocation41_spill] sm:$0xff] }
  0xd4   :  { %v5656_v16 = vcombine.high %v5653_v8, %v5654_v5 }
  0xd7   :  { %1324 = vrot.lane.b32.xlu0 %v5639_v44, %s3981_s13  ;;  %1316 = vrot.lane.b32.xlu1 %v5640_v15, %s3981_s13  ;;  %v5655_v44 = vcombine.low %v5653_v8, %v5654_v5  ;;  %v5658_v15 = vld [vmem:[#allocation42_spill] sm:$0xff]  ;;  %v5670_v8 = vcombine.high %v4542_v60, %v4545_v35 }
  0xdb   :  { %1540 = vrot.lane.b32.xlu0 %v5641_v42, %s3982_s14  ;;  %1542 = vrot.lane.b32.xlu1 %v5642_v40, %s3982_s14  ;;  %v5659_v42 = vcombine.low %v4430_v62, %v4433_v39  ;;  %v5660_v40 = vld [vmem:[#allocation43_spill] sm:$0xff] }
  0xdc   :  { %v5662_v10 = vcombine.high %v5660_v40, %v5661_v47  ;;  %v5667_v39 = vcombine.low %v5660_v40, %v5661_v47 }
  0xdf   :  { %848 = vrot.lane.b32.xlu0 %v5645_v12, %s3979_s12  ;;  %846 = vrot.lane.b32.xlu1 %v5646_v21, %s3979_s12  ;;  %v5663_v12 = vld [vmem:[#allocation45_spill] sm:$0xff]  ;;  %v5664_v21 = vld [vmem:[#allocation46_spill] sm:$0xff] }
  0xe0   :  { %v5666_v61 = vcombine.high %v5663_v12, %v5664_v21 }
  0xe3   :  { %856 = vrot.lane.b32.xlu0 %v5647_v27, %s3979_s12  ;;  %858 = vrot.lane.b32.xlu1 %v5648_v54, %s3979_s12  ;;  %v5665_v27 = vcombine.low %v5663_v12, %v5664_v21  ;;  %v5679_v21 = vcombine.high %v4634_v20, %v4637_v59 }
  0xe7   :  { %1312 = vrot.lane.b32.xlu0 %v5651_v41, %s3981_s13  ;;  %1310 = vrot.lane.b32.xlu1 %v5652_v9, %s3981_s13  ;;  %v5669_v41 = vcombine.low %v4542_v60, %v4545_v35  ;;  %v5674_v60 = vcombine.low %v4586_v49, %v4591_v46 }
  0xeb   :  { %1320 = vrot.lane.b32.xlu0 %v5655_v44, %s3981_s13  ;;  %1322 = vrot.lane.b32.xlu1 %v5656_v16, %s3981_s13  ;;  %v5671_v16 = vcombine.low %v4552_v32, %v4555_v3 }
  0xef   :  { %1544 = vrot.lane.b32.xlu0 %v5657_v58, %s3982_s14  ;;  %1546 = vrot.lane.b32.xlu1 %v5658_v15, %s3982_s14  ;;  %v5672_v58 = vld [vmem:[#allocation47_spill] sm:$0xff] }
  0xf0   :  { %v5673_v15 = vcombine.high %v4577_v55, %v5672_v58  ;;  %v5676_v40 = vcombine.low %v4577_v55, %v5672_v58  ;;  %v5678_v55 = vcombine.high %v4604_v17, %v4607_v23 }
  0xf3   :  { %1538 = vrot.lane.b32.xlu0 %v5659_v42, %s3982_s14  ;;  %1550 = vrot.lane.b32.xlu1 %v5662_v10, %s3982_s14 }
  0xf7   :  { %1552 = vrot.lane.b32.xlu0 %v5665_v27, %s3982_s14  ;;  %1554 = vrot.lane.b32.xlu1 %v5666_v61, %s3982_s14 }
  0xf9   :  { %v4854_v43 = vpop.permute.xlu0 %628  ;;  %v4856_v54 = vpop.permute.xlu1 %618 }
  0xfb   :  { %1556 = vrot.lane.b32.xlu0 %v4562_v63, %s3982_s14  ;;  %1548 = vrot.lane.b32.xlu1 %v5667_v39, %s3982_s14 }
  0xfd   :  { %v4864_v62 = vpop.permute.xlu0 %612  ;;  %v4866_v1 = vpop.permute.xlu1 %1082 }
  0xff   :  { %1772 = vrot.lane.b32.xlu0 %v5668_v37, %s3983_s15  ;;  %1774 = vrot.lane.b32.xlu1 %v5669_v41, %s3983_s15 }
 0x101   :  { %v4876_v63 = vpop.permute.xlu0 %610  ;;  %v4878_v9 = vpop.permute.xlu1 %622 }
 0x102   :  { %v631_v57 = vsel %vm630_vm10, %v4876_v63, %v4864_v62 }
 0x103   :  { %1776 = vrot.lane.b32.xlu0 %v5670_v8, %s3983_s15  ;;  %1778 = vrot.lane.b32.xlu1 %v4588_v6, %s3983_s15  ;;  %v5675_v6 = vcombine.high %v4586_v49, %v4591_v46  ;;  %v5677_v46 = vcombine.low %v4604_v17, %v4607_v23  ;;  %v5680_v23 = vcombine.high %v4640_v33, %v4653_v18  ;;  %v2159_v33 = vld [vmem:[%s5521_s2 + $0x8] sm:$0xff] }
 0x105   :  { %v4886_v5 = vpop.permute.xlu0 %1076  ;;  %v4888_v44 = vpop.permute.xlu1 %620 }
 0x106   :  { %v635_v63 = vsel %vm630_vm10, %v4888_v44, %v4878_v9 }
 0x107   :  { %1770 = vrot.lane.b32.xlu0 %v5671_v16, %s3983_s15  ;;  %1782 = vrot.lane.b32.xlu1 %v5673_v15, %s3983_s15 }
 0x109   :  { %v4898_v42 = vpop.permute.xlu0 %1074  ;;  %v260_v35 = vpop.permute.xlu1 %259 }
 0x10b   :  { %1784 = vrot.lane.b32.xlu0 %v5674_v60, %s3983_s15  ;;  %1786 = vrot.lane.b32.xlu1 %v5675_v6, %s3983_s15 }
 0x10d   :  { %v270_v3 = vpop.permute.xlu0 %269  ;;  %v4908_v32 = vpop.permute.xlu1 %614 }
 0x10e   :  { %v632_v0 = vsel %vm630_vm10, %v4864_v62, %v4908_v32 }
 0x10f   :  { %1788 = vrot.lane.b32.xlu0 %v4617_v19, %s3983_s15  ;;  %1780 = vrot.lane.b32.xlu1 %v5676_v40, %s3983_s15 }
 0x111   :  { %v4916_v47 = vpop.permute.xlu0 %616  ;;  %v4918_v10 = vpop.permute.xlu1 %626 }
 0x112   :  { %v634_v53 = vsel %vm630_vm10, %v4916_v47, %v4856_v54 }
 0x113   :  { %2026 = vrot.lane.b32.xlu0 %v3755_v45, %s3984_s20  ;;  %2028 = vrot.lane.b32.xlu1 %v5677_v46, %s3984_s20 }
 0x115   :  { %v4928_v49 = vpop.permute.xlu0 %624  ;;  %v4930_v19 = vpop.permute.xlu1 %850 }
 0x117   :  { %2030 = vrot.lane.b32.xlu0 %v5678_v55, %s3984_s20  ;;  %2032 = vrot.lane.b32.xlu1 %v4648_v50, %s3984_s20  ;;  %v2158_v50 = vld [vmem:[%s5521_s2] sm:$0xff] }
 0x119   :  { %v4938_v12 = vpop.permute.xlu0 %860  ;;  %v4940_v45 = vpop.permute.xlu1 %1078 }
 0x11b   :  { %2024 = vrot.lane.b32.xlu0 %v3754_v11, %s3984_s20  ;;  %2036 = vrot.lane.b32.xlu1 %v5679_v21, %s3984_s20  ;;  %v5681_v11 = vcombine.low %v4634_v20, %v4637_v59 }
 0x11d   :  { %v4950_v27 = vpop.permute.xlu0 %1080  ;;  %v264_v17 = vpop.permute.xlu1 %263 }
 0x11f   :  { %2038 = vrot.lane.b32.xlu0 %v3761_v34, %s3984_s20  ;;  %2040 = vrot.lane.b32.xlu1 %v5680_v23, %s3984_s20  ;;  %v3952_v23 = vld [vmem:[%s5520_s1 + $0x10] sm:$0xff]  }
 0x121   :  { %v254_v7 = vpop.permute.xlu0 %253  ;;  %v262_v36 = vpop.permute.xlu1 %261 }
 0x122   :  { %v276_v55 = vsel %vm271_vm9, %v262_v36, %v264_v17 }
 0x123   :  { %2042 = vrot.lane.b32.xlu0 %v4676_v22, %s3984_s20  ;;  %2034 = vrot.lane.b32.xlu1 %v5681_v11, %s3984_s20 }
 0x125   :  { %v252_v34 = vpop.permute.xlu0 %251  ;;  %v4972_v18 = vpop.permute.xlu1 %854 }
 0x126   :  { %v272_v37 = vsel %vm271_vm9, %v252_v34, %v254_v7 }
 0x127   :  { %2162 = vperm.xlu0 %3940, %v2158_v50   ;;  %2167 = vperm.xlu1 %3941, %v2159_v33  }
 0x129   :  { %v4974_v61 = vpop.permute.xlu0 %844  ;;  %v4976_v22 = vpop.permute.xlu1 %852 }
 0x12d   :  { %v4978_v39 = vpop.permute.xlu0 %842  ;;  %v256_v20 = vpop.permute.xlu1 %255 }
 0x12e   :  { %v273_v59 = vsel %vm271_vm9, %v254_v7, %v256_v20 }
 0x12f   :  { %292 = vmatprep.subr.bf16.mxu0 %v273_v59  ;;  %v1096_v59 = vsel %vm1094_vm12, %v4886_v5, %v4940_v45 }
 0x130   :  { %293 = vmatpush1.bf16.msra.mxu0 %v272_v37  ;;  %v3953_v37 = vld [vmem:[%s5520_s1 + $0x18] sm:$0xff]  }
 0x131   :  { %v258_v41 = vpop.permute.xlu0 %257  ;;  %v268_v8 = vpop.permute.xlu1 %267 }
 0x132   :  { %v275_v16 = vsel %vm271_vm9, %v258_v41, %v260_v35  ;;  %v274_v58 = vsel %vm271_vm9, %v256_v20, %v258_v41  ;;  %v279_v15 = vsel %vm271_vm9, %v268_v8, %v270_v3  ;;  %v3950_v35 = vld [vmem:[%s5520_s1 + $0x8] sm:$0xff]   ;;  %v1095_v41 = vsel %vm1094_vm12, %v4898_v42, %v4886_v5 }
 0x133   :  { %335 = vmatprep.subr.bf16.mxu1 %v275_v16 }
 0x134   :  { %336 = vmatpush1.bf16.msra.mxu1 %v274_v58 }
 0x135   :  { %337 = vmatprep.subr.bf16.mxu1 %v279_v15  ;;  %v266_v60 = vpop.permute.xlu0 %265  ;;  %v4985_v6 = vpop.permute.xlu1 %1086 }
 0x136   :  { %v277_v40 = vsel %vm271_vm9, %v264_v17, %v266_v60  ;;  %v278_v46 = vsel %vm271_vm9, %v266_v60, %v268_v8 }
 0x137   :  { %294 = vmatprep.subr.bf16.mxu0 %v277_v40 }
 0x138   :  { %295 = vmatpush1.bf16.msra.mxu0 %v276_v55  ;;  %338 = vmatpush1.bf16.msra.mxu1 %v278_v46 }
 0x139   :  { %v4993_v21 = vpop.permute.xlu0 %1088  ;;  %426 = vmatprep.subr.bf16.mxu0 %v3648_v28  ;;  %469 = vmatprep.subr.bf16.mxu1 %v3650_v14  ;;  %v5001_v3 = vpop.permute.xlu1 %1090  ;;  %v633_v14 = vsel %vm630_vm10, %v4908_v32, %v4916_v47  ;;  %v637_v32 = vsel %vm630_vm10, %v4928_v49, %v4918_v10 }
 0x13a   :  { %v1100_v8 = vsel %vm1094_vm12, %v4985_v6, %v4993_v21 }
 0x13b   :  { %3644 = vmatmul.mubr.msk.bf16.vlgmr.msra.gmra.mrb[0].mxu0 %vm288_vm6, %v3950_v35  ;;  %3645 = vmatmul.mubr.msk.bf16.vlgmr.msra.gmra.mrb[0].mxu1 %vm288_vm6, %v3950_v35 }
 0x13c   :  { %427 = vmatpush1.bf16.msra.mxu0 %v3647_v29  ;;  %470 = vmatpush1.bf16.msra.mxu1 %v3649_v26  ;;  %v636_v26 = vsel %vm630_vm10, %v4878_v9, %v4928_v49  ;;  %v863_v49 = vsel %vm862_vm11, %v4978_v39, %v4974_v61  ;;  %v1098_v39 = vsel %vm1094_vm12, %v4950_v27, %v4866_v1 }
 0x13d   :  { %v5011_v17 = vpop.permute.xlu0 %1092  ;;  %428 = vmatprep.subr.bf16.mxu0 %v3652_v48  ;;  %471 = vmatprep.subr.bf16.mxu1 %v3654_v25  ;;  %v5019_v28 = vpop.permute.xlu1 %1084  ;;  %v638_v25 = vsel %vm630_vm10, %v4918_v10, %v4854_v43  ;;  %v1097_v1 = vsel %vm1094_vm12, %v4940_v45, %v4950_v27  ;;  %v1101_v27 = vsel %vm1094_vm12, %v4993_v21, %v5001_v3 }
 0x13e   :  { %458 = vmatprep.mubr.bf16.mxu0 %v3980_v51  ;;  %501 = vmatprep.mubr.bf16.mxu1 %v3980_v51  ;;  %v1102_v16 = vsel %vm1094_vm12, %v5001_v3, %v5011_v17  ;;  %v1099_v45 = vsel %vm1094_vm12, %v5019_v28, %v4985_v6  ;;  %v3954_v6 = vld [vmem:[%s5520_s1 + $0x20] sm:$0xff]  }
 0x140   :  { %429 = vmatpush1.bf16.msra.mxu0 %v5682_v13  ;;  %472 = vmatpush1.bf16.msra.mxu1 %v5683_v38 }
 0x141   :  { %693 = vmatprep.subr.bf16.mxu1 %v634_v53  ;;  %v5035_v29 = vpop.permute.xlu0 %1308  ;;  %650 = vmatprep.subr.bf16.mxu0 %v632_v0  ;;  %v5037_v48 = vpop.permute.xlu1 %1314 }
 0x145   :  { %v5042_v2 = vpop.permute.xlu0 %1306  ;;  %v5044_v56 = vpop.permute.xlu1 %1318 }
 0x146   :  { %v1327_v35 = vsel %vm1326_vm13, %v5042_v2, %v5035_v29  ;;  %v3955_v2 = vld [vmem:[%s5520_s1 + $0x28] sm:$0xff]  }
 0x147   :  { %3655 = vmatmul.mubr.msk.bf16.vlgmr.msra.gmra.mrb[0].mxu0 %vm288_vm6, %v3951_v24  ;;  %3656 = vmatmul.mubr.msk.bf16.vlgmr.msra.gmra.mrb[0].mxu1 %vm288_vm6, %v3951_v24 }
 0x148   :  { %651 = vmatpush1.bf16.msra.mxu0 %v631_v57  ;;  %694 = vmatpush1.bf16.msra.mxu1 %v633_v14 }
 0x149   :  { %652 = vmatprep.subr.bf16.mxu0 %v636_v26  ;;  %695 = vmatprep.subr.bf16.mxu1 %v638_v25  ;;  %v5060_v54 = vpop.permute.xlu0 %1324  ;;  %v5062_v62 = vpop.permute.xlu1 %1316 }
 0x14a   :  { %682 = vmatprep.mubr.bf16.mxu0 %v3980_v51  ;;  %725 = vmatprep.mubr.bf16.mxu1 %v3980_v51  ;;  %v1331_v38 = vsel %vm1326_vm13, %v5062_v62, %v5044_v56 }
 0x14c   :  { %653 = vmatpush1.bf16.msra.mxu0 %v635_v63  ;;  %696 = vmatpush1.bf16.msra.mxu1 %v637_v32 }
 0x14d   :  { %v5072_v43 = vpop.permute.xlu0 %1540  ;;  %v5074_v47 = vpop.permute.xlu1 %1542 }
 0x14e   :  { %v1560_v0 = vsel %vm1558_vm14, %v5072_v43, %v5074_v47 }
 0x151   :  { %v849_v7 = vpop.permute.xlu0 %848  ;;  %v847_v36 = vpop.permute.xlu1 %846 }
 0x152   :  { %v866_v9 = vsel %vm862_vm11, %v849_v7, %v4930_v19  ;;  %v864_v44 = vsel %vm862_vm11, %v4974_v61, %v847_v36  ;;  %v865_v10 = vsel %vm862_vm11, %v847_v36, %v849_v7  ;;  %v867_v61 = vsel %vm862_vm11, %v4976_v22, %v4972_v18 }
 0x153   :  { %3670 = vmatmul.mubr.msk.bf16.vlgmr.msra.gmra.mrb[0].mxu0 %vm288_vm6, %v3952_v23  ;;  %3671 = vmatmul.mubr.msk.bf16.vlgmr.msra.gmra.mrb[0].mxu1 %vm288_vm6, %v3952_v23 }
 0x154   :  { %882 = vmatprep.subr.bf16.mxu0 %v864_v44  ;;  %925 = vmatprep.subr.bf16.mxu1 %v866_v9  ;;  %v3956_v9 = vld [vmem:[%s5520_s1 + $0x30] sm:$0xff]  }
 0x155   :  { %883 = vmatpush1.bf16.msra.mxu0 %v863_v49  ;;  %926 = vmatpush1.bf16.msra.mxu1 %v865_v10  ;;  %v857_v11 = vpop.permute.xlu0 %856  ;;  %v859_v50 = vpop.permute.xlu1 %858 }
 0x156   :  { %v868_v19 = vsel %vm862_vm11, %v4972_v18, %v857_v11  ;;  %914 = vmatprep.mubr.bf16.mxu0 %v3980_v51  ;;  %957 = vmatprep.mubr.bf16.mxu1 %v3980_v51  ;;  %v870_v34 = vsel %vm862_vm11, %v859_v50, %v4938_v12  ;;  %v869_v33 = vsel %vm862_vm11, %v857_v11, %v859_v50 }
 0x157   :  { %884 = vmatprep.subr.bf16.mxu0 %v868_v19  ;;  %927 = vmatprep.subr.bf16.mxu1 %v870_v34 }
 0x159   :  { %885 = vmatpush1.bf16.msra.mxu0 %v867_v61  ;;  %928 = vmatpush1.bf16.msra.mxu1 %v869_v33  ;;  %v1313_v20 = vpop.permute.xlu0 %1312  ;;  %v1311_v12 = vpop.permute.xlu1 %1310 }
 0x15a   :  { %1157 = vmatprep.subr.bf16.mxu1 %v1098_v39  ;;  %1114 = vmatprep.subr.bf16.mxu0 %v1096_v59  ;;  %v1328_v58 = vsel %vm1326_vm13, %v5035_v29, %v1311_v12  ;;  %v1330_v15 = vsel %vm1326_vm13, %v1313_v20, %v5037_v48  ;;  %v1329_v21 = vsel %vm1326_vm13, %v1311_v12, %v1313_v20 }
 0x15d   :  { %v1321_v18 = vpop.permute.xlu0 %1320  ;;  %v1323_v22 = vpop.permute.xlu1 %1322 }
 0x15e   :  { %v1332_v3 = vsel %vm1326_vm13, %v5044_v56, %v1321_v18  ;;  %v1334_v17 = vsel %vm1326_vm13, %v1323_v22, %v5060_v54  ;;  %v1333_v53 = vsel %vm1326_vm13, %v1321_v18, %v1323_v22  ;;  %v3957_v18 = vld [vmem:[%s5520_s1 + $0x38] sm:$0xff]  }
 0x15f   :  { %3685 = vmatmul.mubr.msk.bf16.vlgmr.msra.gmra.mrb[0].mxu0 %vm288_vm6, %v3953_v37  ;;  %3686 = vmatmul.mubr.msk.bf16.vlgmr.msra.gmra.mrb[0].mxu1 %vm288_vm6, %v3953_v37 }
 0x160   :  { %1115 = vmatpush1.bf16.msra.mxu0 %v1095_v41  ;;  %1158 = vmatpush1.bf16.msra.mxu1 %v1097_v1 }
 0x161   :  { %1116 = vmatprep.subr.bf16.mxu0 %v1100_v8  ;;  %1159 = vmatprep.subr.bf16.mxu1 %v1102_v16  ;;  %v1545_v5 = vpop.permute.xlu0 %1544  ;;  %v1547_v42 = vpop.permute.xlu1 %1546 }
 0x162   :  { %1146 = vmatprep.mubr.bf16.mxu0 %v3980_v51  ;;  %1189 = vmatprep.mubr.bf16.mxu1 %v3980_v51  ;;  %v1562_v29 = vsel %vm1558_vm14, %v1545_v5, %v1547_v42  ;;  %v1561_v26 = vsel %vm1558_vm14, %v5074_v47, %v1545_v5 }
 0x164   :  { %1117 = vmatpush1.bf16.msra.mxu0 %v1099_v45  ;;  %1160 = vmatpush1.bf16.msra.mxu1 %v1101_v27 }
 0x165   :  { %1346 = vmatprep.subr.bf16.mxu0 %v1328_v58  ;;  %1389 = vmatprep.subr.bf16.mxu1 %v1330_v15  ;;  %v1539_v60 = vpop.permute.xlu0 %1538  ;;  %v1551_v40 = vpop.permute.xlu1 %1550 }
 0x166   :  { %v1559_v14 = vsel %vm1558_vm14, %v1539_v60, %v5072_v43 }
 0x169   :  { %v1553_v46 = vpop.permute.xlu0 %1552  ;;  %v1555_v55 = vpop.permute.xlu1 %1554 }
 0x16a   :  { %v1564_v25 = vsel %vm1558_vm14, %v1551_v40, %v1553_v46  ;;  %v1565_v43 = vsel %vm1558_vm14, %v1553_v46, %v1555_v55 }
 0x16b   :  { %3700 = vmatmul.mubr.msk.bf16.vlgmr.msra.gmra.mrb[0].mxu0 %vm288_vm6, %v3954_v6  ;;  %3701 = vmatmul.mubr.msk.bf16.vlgmr.msra.gmra.mrb[0].mxu1 %vm288_vm6, %v3954_v6 }
 0x16c   :  { %1347 = vmatpush1.bf16.msra.mxu0 %v1327_v35  ;;  %1390 = vmatpush1.bf16.msra.mxu1 %v1329_v21 }
 0x16d   :  { %1348 = vmatprep.subr.bf16.mxu0 %v1332_v3  ;;  %1391 = vmatprep.subr.bf16.mxu1 %v1334_v17  ;;  %v1557_v28 = vpop.permute.xlu0 %1556  ;;  %v1549_v13 = vpop.permute.xlu1 %1548 }
 0x16e   :  { %1378 = vmatprep.mubr.bf16.mxu0 %v3980_v51  ;;  %1421 = vmatprep.mubr.bf16.mxu1 %v3980_v51  ;;  %v1566_v54 = vsel %vm1558_vm14, %v1555_v55, %v1557_v28  ;;  %v1563_v32 = vsel %vm1558_vm14, %v1549_v13, %v1551_v40  ;;  %v3958_v40 = vld [vmem:[%s5520_s1 + $0x40] sm:$0xff]  }
 0x170   :  { %1349 = vmatpush1.bf16.msra.mxu0 %v1331_v38  ;;  %1392 = vmatpush1.bf16.msra.mxu1 %v1333_v53 }
 0x171   :  { %1578 = vmatprep.subr.bf16.mxu0 %v1560_v0  ;;  %1621 = vmatprep.subr.bf16.mxu1 %v1562_v29  ;;  %v1773_v48 = vpop.permute.xlu0 %1772  ;;  %v1775_v24 = vpop.permute.xlu1 %1774 }
 0x172   :  { %v1792_v47 = vsel %vm1790_vm15, %v1773_v48, %v1775_v24 }
 0x175   :  { %v1777_v57 = vpop.permute.xlu0 %1776  ;;  %v1779_v56 = vpop.permute.xlu1 %1778 }
 0x176   :  { %v1794_v23 = vsel %vm1790_vm15, %v1777_v57, %v1779_v56  ;;  %v1793_v11 = vsel %vm1790_vm15, %v1775_v24, %v1777_v57 }
 0x177   :  { %3715 = vmatmul.mubr.msk.bf16.vlgmr.msra.gmra.mrb[0].mxu0 %vm288_vm6, %v3955_v2  ;;  %3716 = vmatmul.mubr.msk.bf16.vlgmr.msra.gmra.mrb[0].mxu1 %vm288_vm6, %v3955_v2 }
 0x178   :  { %1579 = vmatpush1.bf16.msra.mxu0 %v1559_v14  ;;  %1622 = vmatpush1.bf16.msra.mxu1 %v1561_v26 }
 0x179   :  { %1580 = vmatprep.subr.bf16.mxu0 %v1564_v25  ;;  %1623 = vmatprep.subr.bf16.mxu1 %v1566_v54  ;;  %v1771_v62 = vpop.permute.xlu0 %1770  ;;  %v1783_v63 = vpop.permute.xlu1 %1782 }
 0x17a   :  { %1610 = vmatprep.mubr.bf16.mxu0 %v3980_v51  ;;  %1653 = vmatprep.mubr.bf16.mxu1 %v3980_v51  ;;  %v1791_v50 = vsel %vm1790_vm15, %v1771_v62, %v1773_v48 }
 0x17c   :  { %1581 = vmatpush1.bf16.msra.mxu0 %v1563_v32  ;;  %1624 = vmatpush1.bf16.msra.mxu1 %v1565_v43 }
 0x17d   :  { %1810 = vmatprep.subr.bf16.mxu0 %v1792_v47  ;;  %1853 = vmatprep.subr.bf16.mxu1 %v1794_v23  ;;  %v1785_v7 = vpop.permute.xlu0 %1784  ;;  %v1787_v36 = vpop.permute.xlu1 %1786 }
 0x17e   :  { %v1796_v19 = vsel %vm1790_vm15, %v1783_v63, %v1785_v7  ;;  %v1797_v61 = vsel %vm1790_vm15, %v1785_v7, %v1787_v36 }
 0x181   :  { %v1789_v44 = vpop.permute.xlu0 %1788  ;;  %v1781_v10 = vpop.permute.xlu1 %1780 }
 0x182   :  { %v1798_v49 = vsel %vm1790_vm15, %v1787_v36, %v1789_v44  ;;  %v1795_v39 = vsel %vm1790_vm15, %v1781_v10, %v1783_v63  ;;  %v5685_v44 = vld [vmem:[#allocation12_spill] sm:$0xff]  ;;  %v5686_v10 = vld [vmem:[#allocation13_spill] sm:$0xff] }
 0x183   :  { %3730 = vmatmul.mubr.msk.bf16.vlgmr.msra.gmra.mrb[0].mxu0 %vm288_vm6, %v3956_v9  ;;  %3731 = vmatmul.mubr.msk.bf16.vlgmr.msra.gmra.mrb[0].mxu1 %vm288_vm6, %v3956_v9  ;;  %v5684_v9 = vld [vmem:[#allocation11_spill] sm:$0xff] }
 0x184   :  { %1811 = vmatpush1.bf16.msra.mxu0 %v1791_v50  ;;  %1854 = vmatpush1.bf16.msra.mxu1 %v1793_v11  ;;  %v5688_v11 = vld [vmem:[#allocation3_spill] sm:$0xff]  ;;  %v5689_v50 = vld [vmem:[#allocation4_spill] sm:$0xff] }
 0x185   :  { %1812 = vmatprep.subr.bf16.mxu0 %v1796_v19  ;;  %1855 = vmatprep.subr.bf16.mxu1 %v1798_v49  ;;  %v2027_v34 = vpop.permute.xlu0 %2026  ;;  %v2029_v33 = vpop.permute.xlu1 %2028  ;;  %v5687_v49 = vld [vmem:[#allocation14_spill] sm:$0xff]  ;;  %v5690_v19 = vld [vmem:[#allocation5_spill] sm:$0xff] }
 0x186   :  { %1842 = vmatprep.mubr.bf16.mxu0 %v3980_v51  ;;  %1885 = vmatprep.mubr.bf16.mxu1 %v3980_v51  ;;  %v2046_v20 = vsel %vm5581_vm1, %v2027_v34, %v2029_v33 }
 0x188   :  { %1813 = vmatpush1.bf16.msra.mxu0 %v1795_v39  ;;  %1856 = vmatpush1.bf16.msra.mxu1 %v1797_v61  ;;  %v5693_v61 = vld [vmem:[#allocation18_spill] sm:$0xff]  ;;  %v5694_v39 = vld [vmem:[#allocation15_spill] sm:$0xff] }
 0x189   :  { %2064 = vmatprep.subr.bf16.mxu0 %v2046_v20  ;;  %v2031_v59 = vpop.permute.xlu0 %2030  ;;  %v2033_v12 = vpop.permute.xlu1 %2032  ;;  %v5695_v20 = vld [vmem:[#allocation16_spill] sm:$0xff] }
 0x18a   :  { %v2048_v37 = vsel %vm5581_vm1, %v2031_v59, %v2033_v12  ;;  %v2047_v8 = vsel %vm5581_vm1, %v2029_v33, %v2031_v59  ;;  %v5692_v33 = vld [vmem:[#allocation17_spill] sm:$0xff]  ;;  %v5696_v59 = vld [vmem:[#allocation7_spill] sm:$0xff]  ;;  %v5697_v12 = vld [vmem:[#allocation8_spill] sm:$0xff] }
 0x18b   :  { %2107 = vmatprep.subr.bf16.mxu1 %v2048_v37  ;;  %v5698_v37 = vld [vmem:[#allocation9_spill] sm:$0xff] }
 0x18d   :  { %v2025_v22 = vpop.permute.xlu0 %2024  ;;  %v2037_v41 = vpop.permute.xlu1 %2036 }
 0x18e   :  { %v2045_v1 = vsel %vm5581_vm1, %v2025_v22, %v2027_v34  ;;  %v5691_v34 = vld [vmem:[#allocation6_spill] sm:$0xff]  ;;  %v5700_v22 = vld [vmem:[#allocation21_spill] sm:$0xff] }
 0x18f   :  { %3745 = vmatmul.mubr.msk.bf16.vlgmr.msra.gmra.mrb[0].mxu0 %vm288_vm6, %v3957_v18  ;;  %3746 = vmatmul.mubr.msk.bf16.vlgmr.msra.gmra.mrb[0].mxu1 %vm288_vm6, %v3957_v18  ;;  %v5699_v18 = vld [vmem:[#allocation10_spill] sm:$0xff] }
 0x190   :  { %2065 = vmatpush1.bf16.msra.mxu0 %v2045_v1  ;;  %2108 = vmatpush1.bf16.msra.mxu1 %v2047_v8  ;;  %v5702_v1 = vld [vmem:[#allocation19_spill] sm:$0xff]  ;;  %v5703_v8 = vld [vmem:[#allocation20_spill] sm:$0xff] }
 0x191   :  { %v2039_v16 = vpop.permute.xlu0 %2038  ;;  %2096 = vmatprep.mubr.bf16.mxu0 %v3980_v51  ;;  %2139 = vmatprep.mubr.bf16.mxu1 %v3980_v51  ;;  %v2041_v5 = vpop.permute.xlu1 %2040 }
 0x192   :  { %v2050_v42 = vsel %vm5581_vm1, %v2037_v41, %v2039_v16  ;;  %v2051_v15 = vsel %vm5581_vm1, %v2039_v16, %v2041_v5  ;;  %v5704_v16 = vld [vmem:[#allocation26_spill] sm:$0xff] }
 0x193   :  { %2066 = vmatprep.subr.bf16.mxu0 %v2050_v42  ;;  %v5706_v42 = vld [vmem:[#allocation23_spill] sm:$0xff] }
 0x195   :  { %v2043_v45 = vpop.permute.xlu0 %2042  ;;  %v2035_v27 = vpop.permute.xlu1 %2034 }
 0x196   :  { %v2052_v58 = vsel %vm5581_vm1, %v2041_v5, %v2043_v45  ;;  %v2049_v60 = vsel %vm5581_vm1, %v2035_v27, %v2037_v41  ;;  %v5701_v41 = vld [vmem:[#allocation22_spill] sm:$0xff]  ;;  %v5705_v5 = vld [vmem:[#allocation25_spill] sm:$0xff]  ;;  %vm2216_vm1 = vcmask 1047688  }
 0x197   :  { %2109 = vmatprep.subr.bf16.mxu1 %v2052_v58  ;;  %2067 = vmatpush1.bf16.msra.mxu0 %v2049_v60 }
 0x198   :  { %2110 = vmatpush1.bf16.msra.mxu1 %v2051_v15 }
 0x19b   :  { %3764 = vmatmul.mubr.msk.bf16.vlgmr.msra.gmra.mrb[0].mxu0 %vm288_vm6, %v3958_v40  ;;  %3765 = vmatmul.mubr.msk.bf16.vlgmr.msra.gmra.mrb[0].mxu1 %vm288_vm6, %v3958_v40 }
 0x19c   :  { %2360 = vmatprep.mubr.bf16.mxu1 %v3980_v51  ;;  %2317 = vmatprep.mubr.bf16.mxu0 %v3980_v51 }
 0x1a6   :  { %v2163_v6 = vpop.permute.xlu0 %2162  ;;  %v2168_v46 = vpop.permute.xlu1 %2167 }
 0x26e   :  { %v2141_v55 = vpop.f32.mrb[0].mxu1  ;;  %v2098_v35 = vpop.f32.mrb[0].mxu0 }
 0x26f   :  { %v2170_v21 = vadd.f32 %v2163_v6, %v2098_v35  ;;  %v2100_v3 = vpop.f32.mrb[1].mxu0  ;;  %v2143_v17 = vpop.f32.mrb[1].mxu1  ;;  %v2172_v28 = vadd.f32 %v2163_v6, %v2141_v55 }
 0x270   :  { %v2171_v13 = vadd.f32 %v2163_v6, %v2100_v3  ;;  %v2173_v38 = vadd.f32 %v2163_v6, %v2143_v17  ;;  %v2102_v53 = vpop.f32.mrb[2].mxu0  ;;  %v2145_v0 = vpop.f32.mrb[2].mxu1 }
 0x271   :  { %v2174_v29 = vadd.f32 %v2168_v46, %v2102_v53  ;;  %v2176_v48 = vadd.f32 %v2168_v46, %v2145_v0  ;;  %v2104_v24 = vpop.f32.mrb[3].mxu0  ;;  %v2147_v2 = vpop.f32.mrb[3].mxu1  ;;  %v2178_v14 = vmax.f32 %v2170_v21, 0.0  ;;  %v2180_v25 = vmax.f32 %v2172_v28, 0.0 }
 0x272   :  { %v2175_v57 = vadd.f32 %v2168_v46, %v2104_v24  ;;  %v2177_v56 = vadd.f32 %v2168_v46, %v2147_v2  ;;  %v2179_v62 = vmax.f32 %v2171_v13, 0.0  ;;  %v2181_v63 = vmax.f32 %v2173_v38, 0.0 }
 0x273   :  { %v2182_v26 = vmax.f32 %v2174_v29, 0.0  ;;  %v2184_v54 = vmax.f32 %v2176_v48, 0.0 }
 0x274   :  { %v2183_v32 = vmax.f32 %v2175_v57, 0.0  ;;  %v2185_v43 = vmax.f32 %v2177_v56, 0.0  ;;  %v5707_v56 = vld [vmem:[#allocation24_spill] sm:$0xff] }
 0x275   :  { %v2192_v47 = vpack.c.bf16 %v2182_v26, %v2178_v14  ;;  %v2194_v23 = vpack.c.bf16 %v2184_v54, %v2180_v25  ;;  %v5708_v14 = vld [vmem:[#allocation29_spill] sm:$0xff]  ;;  %v5709_v25 = vld [vmem:[#allocation30_spill] sm:$0xff] }
 0x276   :  { %v2193_v7 = vpack.c.bf16 %v2183_v32, %v2179_v62  ;;  %v2195_v36 = vpack.c.bf16 %v2185_v43, %v2181_v63  ;;  %v5710_v62 = vld [vmem:[#allocation27_spill] sm:$0xff]  ;;  %v5711_v32 = vld [vmem:[#allocation28_spill] sm:$0xff] }
 0x277   :  { %2200 = vrot.lane.b32.xlu1 %v2192_v47, %s3969_s10 }
 0x278   :  { %2202 = vrot.lane.b32.xlu0 %v2193_v7, %s3969_s10 }
 0x27b   :  { %2204 = vrot.lane.b32.xlu1 %v2194_v23, %s3969_s10 }
 0x27c   :  { %2206 = vrot.lane.b32.xlu0 %v2195_v36, %s3969_s10  ;;  %v5712_v36 = vld [vmem:[#allocation34_spill] sm:$0xff] }
 0x27f   :  { %2232 = vrot.lane.b32.xlu1 %v5684_v9, %s3970_s11 }
 0x280   :  { %2234 = vrot.lane.b32.xlu0 %v5685_v44, %s3970_s11 }
 0x283   :  { %2236 = vrot.lane.b32.xlu1 %v5686_v10, %s3970_s11 }
 0x284   :  { %2238 = vrot.lane.b32.xlu0 %v5687_v49, %s3970_s11 }
 0x287   :  { %2465 = vrot.lane.b32.xlu1 %v5688_v11, %s3968_s9  ;;  %v5713_v11 = vld [vmem:[#allocation33_spill] sm:$0xff] }
 0x288   :  { %2467 = vrot.lane.b32.xlu0 %v5689_v50, %s3968_s9 }
 0x28b   :  { %2469 = vrot.lane.b32.xlu1 %v5690_v19, %s3968_s9 }
 0x28c   :  { %2471 = vrot.lane.b32.xlu0 %v5691_v34, %s3968_s9 }
 0x28f   :  { %2611 = vrot.lane.b32.xlu1 %v5692_v33, %s3971_s16 }
 0x290   :  { %2613 = vrot.lane.b32.xlu0 %v5693_v61, %s3971_s16 }
 0x293   :  { %2615 = vrot.lane.b32.xlu1 %v5694_v39, %s3971_s16 }
 0x294   :  { %2617 = vrot.lane.b32.xlu0 %v5695_v20, %s3971_s16 }
 0x297   :  { %2757 = vrot.lane.b32.xlu1 %v5696_v59, %s3969_s10  ;;  %v5714_v59 = vld [vmem:[#allocation31_spill] sm:$0xff] }
 0x298   :  { %2759 = vrot.lane.b32.xlu0 %v5697_v12, %s3969_s10  ;;  %v5715_v12 = vld [vmem:[#allocation32_spill] sm:$0xff] }
 0x29b   :  { %2761 = vrot.lane.b32.xlu1 %v5698_v37, %s3969_s10 }
 0x29c   :  { %2763 = vrot.lane.b32.xlu0 %v5699_v18, %s3969_s10 }
 0x29f   :  { %2903 = vrot.lane.b32.xlu1 %v5700_v22, %s3972_s5 }
 0x2a0   :  { %2905 = vrot.lane.b32.xlu0 %v5701_v41, %s3972_s5 }
 0x2a3   :  { %2907 = vrot.lane.b32.xlu1 %v5702_v1, %s3972_s5 }
 0x2a4   :  { %2909 = vrot.lane.b32.xlu0 %v5703_v8, %s3972_s5 }
 0x2a7   :  { %3051 = vrot.lane.b32.xlu1 %v5704_v16, %s3973_s17 }
 0x2a8   :  { %3049 = vrot.lane.b32.xlu0 %v5705_v5, %s3973_s17 }
 0x2ac   :  { %3053 = vrot.lane.b32.xlu0 %v5706_v42, %s3973_s17 }
 0x2e9   :  { %v2201_v45 = vpop.permute.xlu1 %2200 }
 0x2ea   :  { %2217 = vst.msk [vmem:[#allocation2] sm:$0xff] %vm2216_vm1, %v2201_v45  ;;  %v2203_v27 = vpop.permute.xlu0 %2202 }
 0x2eb   :  { %v5260_v58 = vsel %vm1008_vm2, %v2201_v45, %v2203_v27 }
 0x2ed   :  { %v2205_v15 = vpop.permute.xlu1 %2204 }
 0x2ee   :  { %v5263_v60 = vsel %vm1008_vm2, %v2203_v27, %v2205_v15  ;;  %v2207_v40 = vpop.permute.xlu0 %2206 }
 0x2ef   :  { %v5266_v6 = vsel %vm1008_vm2, %v2205_v15, %v2207_v40  ;;  %2222 = vst.msk [vmem:[#allocation2 + $0x20] sm:$0xff] %vm1008_vm2, %v2207_v40 }
 0x2f1   :  { %v5269_v46 = vld [vmem:[#allocation2] sm:$0xff]  ;;  %v2233_v55 = vpop.permute.xlu1 %2232 }
 0x2f2   :  { %v2248_v35 = vmul.bf16 %v2233_v55, %v5269_v46  ;;  %v2235_v21 = vpop.permute.xlu0 %2234 }
 0x2f3   :  { %v2240_v3 = vsel %vm184_vm3, %v2233_v55, %v2235_v21 }
 0x2f4   :  { %2263 = vrot.lane.b32.xlu1 %v2248_v35, %s3978_s0  ;;  %v2249_v28 = vmul.bf16 %v2240_v3, %v5260_v58 }
 0x2f5   :  { %v2237_v17 = vpop.permute.xlu1 %2236 }
 0x2f6   :  { %v5275_v13 = vld [vmem:[#allocation2 + $0x20] sm:$0xff]  ;;  %v2239_v38 = vpop.permute.xlu0 %2238  ;;  %v2241_v29 = vsel %vm184_vm3, %v2235_v21, %v2237_v17 }
 0x2f7   :  { %v2242_v53 = vsel %vm184_vm3, %v2237_v17, %v2239_v38  ;;  %v2252_v0 = vmul.bf16 %v2239_v38, %v5275_v13  ;;  %v2250_v24 = vmul.bf16 %v2241_v29, %v5263_v60 }
 0x2f8   :  { %2265 = vrot.lane.b32.xlu1 %v2249_v28, %s3978_s0  ;;  %v2251_v48 = vmul.bf16 %v2242_v53, %v5266_v6 }
 0x2f9   :  { %2271 = vrot.lane.b32.xlu0 %v2252_v0, %s3978_s0  ;;  %v2466_v57 = vpop.permute.xlu1 %2465 }
 0x2fa   :  { %v2468_v2 = vpop.permute.xlu0 %2467  ;;  %v2481_v63 = vmul.bf16 %v2466_v57, %v5269_v46 }
 0x2fb   :  { %v2473_v7 = vsel %vm544_vm0, %v2466_v57, %v2468_v2 }
 0x2fc   :  { %2269 = vrot.lane.b32.xlu1 %v2251_v48, %s3978_s0  ;;  %v2482_v9 = vmul.bf16 %v2473_v7, %v5260_v58 }
 0x2fd   :  { %2267 = vrot.lane.b32.xlu0 %v2250_v24, %s3978_s0  ;;  %v2470_v54 = vpop.permute.xlu1 %2469 }
 0x2fe   :  { %v2472_v26 = vpop.permute.xlu0 %2471  ;;  %v2474_v44 = vsel %vm544_vm0, %v2468_v2, %v2470_v54 }
 0x2ff   :  { %v2485_v43 = vmul.bf16 %v2472_v26, %v5275_v13  ;;  %v2475_v10 = vsel %vm544_vm0, %v2470_v54, %v2472_v26  ;;  %v2483_v19 = vmul.bf16 %v2474_v44, %v5263_v60  ;;  %vm5716_vm0 = vcmask 769024  }
 0x300   :  { %3055 = vrot.lane.b32.xlu1 %v5707_v56, %s3973_s17  ;;  %v2484_v34 = vmul.bf16 %v2475_v10, %v5266_v6  ;;  %vm5718_vm3 = vmmov %vm5716_vm0 }
 0x301   :  { %3195 = vrot.lane.b32.xlu0 %v5708_v14, %s3974_s18  ;;  %v2612_v23 = vpop.permute.xlu1 %2611 }
 0x302   :  { %v2614_v47 = vpop.permute.xlu0 %2613  ;;  %v2627_v42 = vmul.bf16 %v2612_v23, %v5269_v46 }
 0x303   :  { %v2619_v61 = vsel %vm776_vm4, %v2612_v23, %v2614_v47 }
 0x304   :  { %3197 = vrot.lane.b32.xlu1 %v5709_v25, %s3974_s18  ;;  %v2628_v37 = vmul.bf16 %v2619_v61, %v5260_v58 }
 0x305   :  { %3199 = vrot.lane.b32.xlu0 %v5710_v62, %s3974_s18  ;;  %v2616_v50 = vpop.permute.xlu1 %2615 }
 0x306   :  { %v2618_v49 = vpop.permute.xlu0 %2617  ;;  %v2620_v20 = vsel %vm776_vm4, %v2614_v47, %v2616_v50 }
 0x307   :  { %v2629_v18 = vmul.bf16 %v2620_v20, %v5263_v60  ;;  %v2621_v22 = vsel %vm776_vm4, %v2616_v50, %v2618_v49  ;;  %v2631_v16 = vmul.bf16 %v2618_v49, %v5275_v13  ;;  %v2231_v49 = vmul.bf16 %v5266_v6, %v4711_v52 }
 0x308   :  { %3201 = vrot.lane.b32.xlu1 %v5711_v32, %s3974_s18  ;;  %v2630_v8 = vmul.bf16 %v2621_v22, %v5266_v6 }
 0x309   :  { %2496 = vrot.lane.b32.xlu0 %v2481_v63, %s3976_s21  ;;  %v2758_v39 = vpop.permute.xlu1 %2757 }
 0x30a   :  { %v2760_v33 = vpop.permute.xlu0 %2759  ;;  %v2773_v38 = vmul.bf16 %v2758_v39, %v5269_v46 }
 0x30b   :  { %v2765_v5 = vsel %vm1008_vm2, %v2758_v39, %v2760_v33  ;;  %v2230_v39 = vmul.bf16 %v5263_v60, %v4705_v30 }
 0x30c   :  { %2504 = vrot.lane.b32.xlu1 %v2485_v43, %s3976_s21  ;;  %v2774_v27 = vmul.bf16 %v2765_v5, %v5260_v58  ;;  %v3960_v5 = vld [vmem:[%s5522_s3] sm:$0xff]  }
 0x30d   :  { %3343 = vrot.lane.b32.xlu0 %v5712_v36, %s3975_s19  ;;  %v2762_v1 = vpop.permute.xlu1 %2761 }
 0x30e   :  { %v2764_v41 = vpop.permute.xlu0 %2763  ;;  %v2766_v15 = vsel %vm1008_vm2, %v2760_v33, %v2762_v1 }
 0x30f   :  { %v2767_v55 = vsel %vm1008_vm2, %v2762_v1, %v2764_v41  ;;  %v2775_v35 = vmul.bf16 %v2766_v15, %v5263_v60  ;;  %v2777_v28 = vmul.bf16 %v2764_v41, %v5275_v13  ;;  %vm5717_vm2 = vmmov %vm5716_vm0 }
 0x310   :  { %3341 = vrot.lane.b32.xlu1 %v5713_v11, %s3975_s19  ;;  %v2776_v21 = vmul.bf16 %v2767_v55, %v5266_v6  ;;  %v3959_v11 = vld [vmem:[%s5522_s3 + $0x8] sm:$0xff]  }
 0x311   :  { %2498 = vrot.lane.b32.xlu0 %v2482_v9, %s3976_s21  ;;  %v2904_v40 = vpop.permute.xlu1 %2903 }
 0x312   :  { %v2906_v45 = vpop.permute.xlu0 %2905  ;;  %v2919_v54 = vmul.bf16 %v2904_v40, %v5269_v46 }
 0x313   :  { %v2911_v53 = vsel %vm1240_vm5, %v2904_v40, %v2906_v45 }
 0x314   :  { %2500 = vrot.lane.b32.xlu1 %v2483_v19, %s3976_s21  ;;  %v2920_v29 = vmul.bf16 %v2911_v53, %v5260_v58  ;;  %v2229_v19 = vmul.bf16 %v5260_v58, %v4701_v4  ;;  %v2228_v4 = vmul.bf16 %v5269_v46, %v4697_v31 }
 0x315   :  { %2502 = vrot.lane.b32.xlu0 %v2484_v34, %s3976_s21  ;;  %v2908_v17 = vpop.permute.xlu1 %2907 }
 0x316   :  { %v2910_v3 = vpop.permute.xlu0 %2909  ;;  %v2912_v0 = vsel %vm1240_vm5, %v2906_v45, %v2908_v17 }
 0x317   :  { %v2921_v24 = vmul.bf16 %v2912_v0, %v5263_v60  ;;  %v2913_v2 = vsel %vm1240_vm5, %v2908_v17, %v2910_v3  ;;  %v2923_v14 = vmul.bf16 %v2910_v3, %v5275_v13  ;;  %vm5719_vm5 = vmmov %vm5716_vm0 }
 0x318   :  { %3345 = vrot.lane.b32.xlu1 %v5714_v59, %s3975_s19  ;;  %v2922_v56 = vmul.bf16 %v2913_v2, %v5266_v6 }
 0x319   :  { %3347 = vrot.lane.b32.xlu0 %v5715_v12, %s3975_s19  ;;  %v3052_v57 = vpop.permute.xlu1 %3051 }
 0x31a   :  { %v3050_v48 = vpop.permute.xlu0 %3049 }
 0x31b   :  { %v3057_v26 = vsel %vm288_vm6, %v3050_v48, %v3052_v57  ;;  %v3065_v30 = vmul.bf16 %v3050_v48, %v5269_v46 }
 0x31c   :  { %2644 = vrot.lane.b32.xlu1 %v2628_v37, %s3979_s12  ;;  %v3066_v62 = vmul.bf16 %v3057_v26, %v5260_v58 }
 0x31d   :  { %2646 = vrot.lane.b32.xlu0 %v2629_v18, %s3979_s12 }
 0x31e   :  { %v3054_v25 = vpop.permute.xlu0 %3053 }
 0x31f   :  { %v3058_v63 = vsel %vm288_vm6, %v3052_v57, %v3054_v25 }
 0x320   :  { %2648 = vrot.lane.b32.xlu1 %v2630_v8, %s3979_s12  ;;  %v3067_v32 = vmul.bf16 %v3058_v63, %v5263_v60  ;;  %v3487_v63 = vld [vmem:[%s5523_s4] sm:$0xff] }
 0x321   :  { %2650 = vrot.lane.b32.xlu0 %v2631_v16, %s3979_s12 }
 0x324   :  { %2642 = vrot.lane.b32.xlu1 %v2627_v42, %s3979_s12 }
 0x325   :  { %2790 = vrot.lane.b32.xlu0 %v2774_v27, %s3977_s26 }
 0x328   :  { %2792 = vrot.lane.b32.xlu1 %v2775_v35, %s3977_s26 }
 0x329   :  { %2794 = vrot.lane.b32.xlu0 %v2776_v21, %s3977_s26 }
 0x32c   :  { %2796 = vrot.lane.b32.xlu1 %v2777_v28, %s3977_s26 }
 0x32d   :  { %2788 = vrot.lane.b32.xlu0 %v2773_v38, %s3977_s26 }
 0x330   :  { %2936 = vrot.lane.b32.xlu1 %v2920_v29, %s3981_s13 }
 0x331   :  { %2938 = vrot.lane.b32.xlu0 %v2921_v24, %s3981_s13 }
 0x334   :  { %2940 = vrot.lane.b32.xlu1 %v2922_v56, %s3981_s13 }
 0x335   :  { %2942 = vrot.lane.b32.xlu0 %v2923_v14, %s3981_s13 }
 0x338   :  { %2934 = vrot.lane.b32.xlu1 %v2919_v54, %s3981_s13 }
 0x339   :  { %3082 = vrot.lane.b32.xlu0 %v3066_v62, %s3982_s14 }
 0x33c   :  { %3084 = vrot.lane.b32.xlu1 %v3067_v32, %s3982_s14 }
 0x366   :  { %v2264_v43 = vpop.permute.xlu1 %2263 }
 0x36a   :  { %v2266_v47 = vpop.permute.xlu1 %2265 }
 0x36b   :  { %v2272_v23 = vpop.permute.xlu0 %2271  ;;  %v2273_v50 = vsel %vm271_vm9, %v2264_v43, %v2266_v47 }
 0x36e   :  { %v2270_v7 = vpop.permute.xlu1 %2269 }
 0x36f   :  { %v2268_v36 = vpop.permute.xlu0 %2267  ;;  %v2276_v9 = vsel %vm271_vm9, %v2270_v7, %v2272_v23 }
 0x370   :  { %v2275_v44 = vsel %vm271_vm9, %v2268_v36, %v2270_v7  ;;  %2328 = vmatprep.subr.bf16.mxu1 %v2276_v9  ;;  %v2274_v10 = vsel %vm271_vm9, %v2266_v47, %v2268_v36  ;;  %v3520_v36 = vld [vmem:[%s5524_s7] sm:$0x7] }
 0x371   :  { %2285 = vmatprep.subr.bf16.mxu0 %v2274_v10  ;;  %2329 = vmatpush1.bf16.msra.mxu1 %v2275_v44 }
 0x372   :  { %v3056_v34 = vpop.permute.xlu1 %3055  ;;  %2286 = vmatpush1.bf16.msra.mxu0 %v2273_v50  ;;  %2422 = vmatprep.subr.bf16.mxu1 %v2231_v49 }
 0x373   :  { %v3059_v33 = vsel %vm288_vm6, %v3054_v25, %v3056_v34  ;;  %v3069_v61 = vmul.bf16 %v3056_v34, %v5275_v13  ;;  %2379 = vmatprep.subr.bf16.mxu0 %v2229_v19  ;;  %v3196_v52 = vpop.permute.xlu0 %3195 }
 0x374   :  { %v3068_v20 = vmul.bf16 %v3059_v33, %v5266_v6  ;;  %3768 = vmatmul.mubr.msk.bf16.vlgmr.msra.gmra.mrb[4].mxu1 %vm776_vm4, %v3959_v11  ;;  %v3211_v27 = vmul.bf16 %v3196_v52, %v5269_v46  ;;  %v3963_v33 = vld [vmem:[%s5522_s3 + $0x20] sm:$0xff]  }
 0x375   :  { %3088 = vrot.lane.b32.xlu1 %v3069_v61, %s3982_s14  ;;  %2423 = vmatpush1.bf16.msra.mxu1 %v2230_v39 }
 0x376   :  { %v3198_v59 = vpop.permute.xlu1 %3197  ;;  %3086 = vrot.lane.b32.xlu0 %v3068_v20, %s3982_s14  ;;  %3767 = vmatmul.mubr.msk.bf16.vlgmr.msra.gmra.mrb[4].mxu0 %vm776_vm4, %v3959_v11 }
 0x377   :  { %v3203_v12 = vsel %vm1704_vm7, %v3196_v52, %v3198_v59  ;;  %2380 = vmatpush1.bf16.msra.mxu0 %v2228_v4  ;;  %v3200_v37 = vpop.permute.xlu0 %3199  ;;  %2454 = vmatprep.mubr.bf16.mxu1 %v3980_v51 }
 0x378   :  { %v3212_v18 = vmul.bf16 %v3203_v12, %v5260_v58  ;;  %2411 = vmatprep.mubr.bf16.mxu0 %v3980_v51  ;;  %v3204_v22 = vsel %vm1704_vm7, %v3198_v59, %v3200_v37 }
 0x379   :  { %v3213_v8 = vmul.bf16 %v3204_v22, %v5263_v60 }
 0x37a   :  { %v3202_v31 = vpop.permute.xlu1 %3201  ;;  %3080 = vrot.lane.b32.xlu0 %v3065_v30, %s3982_s14  ;;  %3228 = vrot.lane.b32.xlu1 %v3212_v18, %s3983_s15  ;;  %v3964_v18 = vld [vmem:[%s5522_s3 + $0x28] sm:$0xff]  }
 0x37b   :  { %v3205_v41 = vsel %vm1704_vm7, %v3200_v37, %v3202_v31  ;;  %v2497_v1 = vpop.permute.xlu0 %2496  ;;  %v3215_v15 = vmul.bf16 %v3202_v31, %v5275_v13 }
 0x37c   :  { %v3214_v16 = vmul.bf16 %v3205_v41, %v5266_v6 }
 0x37e   :  { %v2505_v42 = vpop.permute.xlu1 %2504  ;;  %3232 = vrot.lane.b32.xlu1 %v3214_v16, %s3983_s15  ;;  %3230 = vrot.lane.b32.xlu0 %v3213_v8, %s3983_s15 }
 0x37f   :  { %v3344_v45 = vpop.permute.xlu0 %3343 }
 0x380   :  { %3771 = vmatmul.mubr.msk.bf16.vlgmr.msra.gmra.mrb[4].mxu1 %vm776_vm4, %v3960_v5 }
 0x381   :  { %2592 = vmatprep.mubr.bf16.mxu1 %v3980_v51 }
 0x382   :  { %v3342_v40 = vpop.permute.xlu1 %3341  ;;  %3226 = vrot.lane.b32.xlu1 %v3211_v27, %s3983_s15  ;;  %3234 = vrot.lane.b32.xlu0 %v3215_v15, %s3983_s15 }
 0x383   :  { %v3349_v55 = vsel %vm1958_vm8, %v3342_v40, %v3344_v45  ;;  %v2499_v35 = vpop.permute.xlu0 %2498  ;;  %3770 = vmatmul.mubr.msk.bf16.vlgmr.msra.gmra.mrb[4].mxu0 %vm776_vm4, %v3960_v5 }
 0x384   :  { %v3358_v21 = vmul.bf16 %v3349_v55, %v5260_v58  ;;  %2549 = vmatprep.mubr.bf16.mxu0 %v3980_v51  ;;  %v2506_v38 = vsel %vm630_vm10, %v2497_v1, %v2499_v35  ;;  %v3961_v58 = vld [vmem:[%s5522_s3 + $0x10] sm:$0xff]  }
 0x386   :  { %v2501_v3 = vpop.permute.xlu1 %2500  ;;  %3374 = vrot.lane.b32.xlu0 %v3358_v21, %s3984_s20 }
 0x387   :  { %v2503_v17 = vpop.permute.xlu0 %2502  ;;  %v2507_v28 = vsel %vm630_vm10, %v2499_v35, %v2501_v3 }
 0x388   :  { %v2508_v53 = vsel %vm630_vm10, %v2501_v3, %v2503_v17  ;;  %2517 = vmatprep.subr.bf16.mxu0 %v2507_v28  ;;  %v2509_v0 = vsel %vm630_vm10, %v2503_v17, %v2505_v42  ;;  %v3965_v42 = vld [vmem:[%s5522_s3 + $0x30] sm:$0xff]  }
 0x389   :  { %2518 = vmatpush1.bf16.msra.mxu0 %v2506_v38  ;;  %2560 = vmatprep.subr.bf16.mxu1 %v2509_v0 }
 0x38a   :  { %v3346_v29 = vpop.permute.xlu1 %3345  ;;  %2561 = vmatpush1.bf16.msra.mxu1 %v2508_v53  ;;  %v3966_v53 = vld [vmem:[%s5522_s3 + $0x38] sm:$0xff]  }
 0x38b   :  { %v3350_v48 = vsel %vm1958_vm8, %v3344_v45, %v3346_v29  ;;  %v3348_v24 = vpop.permute.xlu0 %3347 }
 0x38c   :  { %v3359_v2 = vmul.bf16 %v3350_v48, %v5263_v60  ;;  %v3351_v57 = vsel %vm1958_vm8, %v3346_v29, %v3348_v24  ;;  %v3361_v25 = vmul.bf16 %v3348_v24, %v5275_v13  ;;  %v3488_v13 = vld [vmem:[%s5523_s4 + $0x8] sm:$0xff] }
 0x38d   :  { %v3360_v56 = vmul.bf16 %v3351_v57, %v5266_v6  ;;  %3774 = vmatmul.mubr.msk.bf16.vlgmr.msra.gmra.mrb[4].mxu1 %vm776_vm4, %v3961_v58  ;;  %v3357_v6 = vmul.bf16 %v3342_v40, %v5269_v46  ;;  %v3962_v46 = vld [vmem:[%s5522_s3 + $0x18] sm:$0xff]  }
 0x38e   :  { %v2645_v14 = vpop.permute.xlu1 %2644  ;;  %3376 = vrot.lane.b32.xlu1 %v3359_v2, %s3984_s20  ;;  %2738 = vmatprep.mubr.bf16.mxu1 %v3980_v51 }
 0x38f   :  { %3378 = vrot.lane.b32.xlu0 %v3360_v56, %s3984_s20  ;;  %v2647_v26 = vpop.permute.xlu0 %2646  ;;  %3773 = vmatmul.mubr.msk.bf16.vlgmr.msra.gmra.mrb[4].mxu0 %vm776_vm4, %v3961_v58 }
 0x390   :  { %v2653_v60 = vsel %vm862_vm11, %v2645_v14, %v2647_v26  ;;  %2695 = vmatprep.mubr.bf16.mxu0 %v3980_v51 }
 0x391   :  { %2663 = vmatprep.subr.bf16.mxu0 %v2653_v60 }
 0x392   :  { %v2649_v54 = vpop.permute.xlu1 %2648  ;;  %3380 = vrot.lane.b32.xlu1 %v3361_v25, %s3984_s20 }
 0x393   :  { %3372 = vrot.lane.b32.xlu0 %v3357_v6, %s3984_s20  ;;  %v2651_v62 = vpop.permute.xlu0 %2650  ;;  %v2654_v43 = vsel %vm862_vm11, %v2647_v26, %v2649_v54  ;;  %v3967_v26 = vld [vmem:[%s5522_s3 + $0x40] sm:$0xff]  }
 0x394   :  { %v2655_v32 = vsel %vm862_vm11, %v2649_v54, %v2651_v62 }
 0x395   :  { %2706 = vmatprep.subr.bf16.mxu1 %v2655_v32 }
 0x396   :  { %v2643_v47 = vpop.permute.xlu1 %2642  ;;  %3491 = vperm.xlu1 %3941, %v3487_v63   ;;  %2707 = vmatpush1.bf16.msra.mxu1 %v2654_v43 }
 0x397   :  { %v2652_v23 = vsel %vm862_vm11, %v2643_v47, %v2645_v14  ;;  %3496 = vperm.xlu0 %3940, %v3488_v13   ;;  %v2791_v7 = vpop.permute.xlu0 %2790 }
 0x398   :  { %2664 = vmatpush1.bf16.msra.mxu0 %v2652_v23 }
 0x399   :  { %3777 = vmatmul.mubr.msk.bf16.vlgmr.msra.gmra.mrb[4].mxu1 %vm776_vm4, %v3962_v46 }
 0x39a   :  { %v2793_v9 = vpop.permute.xlu1 %2792  ;;  %3523 = vperm.xlu1 %3941, %v3520_v36   ;;  %2884 = vmatprep.mubr.bf16.mxu1 %v3980_v51 }
 0x39b   :  { %v2795_v44 = vpop.permute.xlu0 %2794  ;;  %v2799_v10 = vsel %vm1094_vm12, %v2791_v7, %v2793_v9  ;;  %3776 = vmatmul.mubr.msk.bf16.vlgmr.msra.gmra.mrb[4].mxu0 %vm776_vm4, %v3962_v46 }
 0x39c   :  { %2809 = vmatprep.subr.bf16.mxu0 %v2799_v10  ;;  %2841 = vmatprep.mubr.bf16.mxu0 %v3980_v51  ;;  %v2800_v19 = vsel %vm1094_vm12, %v2793_v9, %v2795_v44 }
 0x39e   :  { %v2797_v49 = vpop.permute.xlu1 %2796 }
 0x39f   :  { %v2789_v11 = vpop.permute.xlu0 %2788  ;;  %v2801_v50 = vsel %vm1094_vm12, %v2795_v44, %v2797_v49 }
 0x3a0   :  { %v2798_v34 = vsel %vm1094_vm12, %v2789_v11, %v2791_v7  ;;  %2852 = vmatprep.subr.bf16.mxu1 %v2801_v50 }
 0x3a1   :  { %2810 = vmatpush1.bf16.msra.mxu0 %v2798_v34  ;;  %2853 = vmatpush1.bf16.msra.mxu1 %v2800_v19 }
 0x3a2   :  { %v2937_v61 = vpop.permute.xlu1 %2936 }
 0x3a3   :  { %v2939_v52 = vpop.permute.xlu0 %2938 }
 0x3a4   :  { %v2945_v39 = vsel %vm1326_vm13, %v2937_v61, %v2939_v52 }
 0x3a5   :  { %2955 = vmatprep.subr.bf16.mxu0 %v2945_v39  ;;  %3780 = vmatmul.mubr.msk.bf16.vlgmr.msra.gmra.mrb[4].mxu1 %vm776_vm4, %v3963_v33 }
 0x3a6   :  { %v2941_v20 = vpop.permute.xlu1 %2940  ;;  %3030 = vmatprep.mubr.bf16.mxu1 %v3980_v51 }
 0x3a7   :  { %v2943_v4 = vpop.permute.xlu0 %2942  ;;  %3779 = vmatmul.mubr.msk.bf16.vlgmr.msra.gmra.mrb[4].mxu0 %vm776_vm4, %v3963_v33  ;;  %v2946_v12 = vsel %vm1326_vm13, %v2939_v52, %v2941_v20 }
 0x3a8   :  { %v2947_v59 = vsel %vm1326_vm13, %v2941_v20, %v2943_v4  ;;  %2987 = vmatprep.mubr.bf16.mxu0 %v3980_v51 }
 0x3a9   :  { %2998 = vmatprep.subr.bf16.mxu1 %v2947_v59 }
 0x3aa   :  { %v2935_v37 = vpop.permute.xlu1 %2934  ;;  %2999 = vmatpush1.bf16.msra.mxu1 %v2946_v12  ;;  %v3515_v12 = vld [vmem:[%s5525_s6] sm:$0x3] }
 0x3ab   :  { %v2944_v30 = vsel %vm1326_vm13, %v2935_v37, %v2937_v61  ;;  %v3083_v22 = vpop.permute.xlu0 %3082 }
 0x3ac   :  { %2956 = vmatpush1.bf16.msra.mxu0 %v2944_v30 }
 0x3ae   :  { %v3085_v31 = vpop.permute.xlu1 %3084 }
 0x3af   :  { %v3091_v41 = vsel %vm1558_vm14, %v3083_v22, %v3085_v31 }
 0x3b0   :  { %3101 = vmatprep.subr.bf16.mxu0 %v3091_v41 }
 0x3b1   :  { %3783 = vmatmul.mubr.msk.bf16.vlgmr.msra.gmra.mrb[4].mxu1 %vm776_vm4, %v3964_v18 }
 0x3b2   :  { %3176 = vmatprep.mubr.bf16.mxu1 %v3980_v51 }
 0x3b3   :  { %3782 = vmatmul.mubr.msk.bf16.vlgmr.msra.gmra.mrb[4].mxu0 %vm776_vm4, %v3964_v18 }
 0x3b4   :  { %3133 = vmatprep.mubr.bf16.mxu0 %v3980_v51 }
 0x3e7   :  { %v3089_v1 = vpop.permute.xlu1 %3088 }
 0x3e8   :  { %v3087_v8 = vpop.permute.xlu0 %3086 }
 0x3e9   :  { %v3092_v16 = vsel %vm1558_vm14, %v3085_v31, %v3087_v8  ;;  %v3093_v5 = vsel %vm1558_vm14, %v3087_v8, %v3089_v1 }
 0x3ea   :  { %3144 = vmatprep.subr.bf16.mxu1 %v3093_v5 }
 0x3eb   :  { %3145 = vmatpush1.bf16.msra.mxu1 %v3092_v16 }
 0x3ec   :  { %v3229_v45 = vpop.permute.xlu1 %3228  ;;  %v3081_v27 = vpop.permute.xlu0 %3080 }
 0x3ed   :  { %v3090_v15 = vsel %vm1558_vm14, %v3081_v27, %v3083_v22 }
 0x3ee   :  { %3102 = vmatpush1.bf16.msra.mxu0 %v3090_v15  ;;  %3786 = vmatmul.mubr.msk.bf16.vlgmr.msra.gmra.mrb[4].mxu1 %vm776_vm4, %v3965_v42 }
 0x3ef   :  { %3322 = vmatprep.mubr.bf16.mxu1 %v3980_v51 }
 0x3f0   :  { %v3233_v40 = vpop.permute.xlu1 %3232  ;;  %v3231_v55 = vpop.permute.xlu0 %3230 }
 0x3f1   :  { %3785 = vmatmul.mubr.msk.bf16.vlgmr.msra.gmra.mrb[4].mxu0 %vm776_vm4, %v3965_v42  ;;  %v3237_v35 = vsel %vm1790_vm15, %v3229_v45, %v3231_v55  ;;  %v3238_v38 = vsel %vm1790_vm15, %v3231_v55, %v3233_v40 }
 0x3f2   :  { %3247 = vmatprep.subr.bf16.mxu0 %v3237_v35  ;;  %3279 = vmatprep.mubr.bf16.mxu0 %v3980_v51 }
 0x3f4   :  { %v3227_v21 = vpop.permute.xlu1 %3226  ;;  %v3235_v3 = vpop.permute.xlu0 %3234 }
 0x3f5   :  { %v3236_v17 = vsel %vm1790_vm15, %v3227_v21, %v3229_v45  ;;  %v3239_v28 = vsel %vm1790_vm15, %v3233_v40, %v3235_v3 }
 0x3f6   :  { %3248 = vmatpush1.bf16.msra.mxu0 %v3236_v17  ;;  %3290 = vmatprep.subr.bf16.mxu1 %v3239_v28 }
 0x3f7   :  { %3291 = vmatpush1.bf16.msra.mxu1 %v3238_v38 }
 0x3f8   :  { %v3375_v0 = vpop.permute.xlu0 %3374 }
 0x3fa   :  { %3789 = vmatmul.mubr.msk.bf16.vlgmr.msra.gmra.mrb[4].mxu1 %vm776_vm4, %v3966_v53 }
 0x3fb   :  { %3468 = vmatprep.mubr.bf16.mxu1 %v3980_v51 }
 0x3fd   :  { %3788 = vmatmul.mubr.msk.bf16.vlgmr.msra.gmra.mrb[4].mxu0 %vm776_vm4, %v3966_v53 }
 0x3fe   :  { %3425 = vmatprep.mubr.bf16.mxu0 %v3980_v51 }
 0x400   :  { %v3377_v58 = vpop.permute.xlu1 %3376 }
 0x401   :  { %v3379_v29 = vpop.permute.xlu0 %3378  ;;  %v3383_v48 = vsel %vm5716_vm0, %v3375_v0, %v3377_v58 }
 0x402   :  { %3393 = vmatprep.subr.bf16.mxu0 %v3383_v48  ;;  %v3384_v56 = vsel %vm5718_vm3, %v3377_v58, %v3379_v29 }
 0x404   :  { %v3381_v24 = vpop.permute.xlu1 %3380 }
 0x405   :  { %v3373_v2 = vpop.permute.xlu0 %3372  ;;  %v3385_v57 = vsel %vm5717_vm2, %v3379_v29, %v3381_v24 }
 0x406   :  { %v3382_v14 = vsel %vm5719_vm5, %v3373_v2, %v3375_v0  ;;  %3436 = vmatprep.subr.bf16.mxu1 %v3385_v57 }
 0x407   :  { %3394 = vmatpush1.bf16.msra.mxu0 %v3382_v14  ;;  %3437 = vmatpush1.bf16.msra.mxu1 %v3384_v56 }
 0x40a   :  { %3791 = vmatmul.mubr.msk.bf16.vlgmr.msra.gmra.mrb[4].mxu0 %vm776_vm4, %v3967_v26  ;;  %3792 = vmatmul.mubr.msk.bf16.vlgmr.msra.gmra.mrb[4].mxu1 %vm776_vm4, %v3967_v26 }
 0x40b   :  { %3561 = vmatprep.mubr.bf16.mxu0 %v3980_v51  ;;  %3602 = vmatprep.mubr.bf16.mxu1 %v3980_v51 }
 0x415   :  { %v3492_v25 = vpop.permute.xlu1 %3491 }
 0x416   :  { %v3497_v60 = vpop.permute.xlu0 %3496 }
 0x419   :  { %v3524_v37 = vpop.permute.xlu1 %3523 }
 0x4dd   :  { %v3427_v6 = vpop.f32.mrb[4].mxu0  ;;  %v3470_v54 = vpop.f32.mrb[4].mxu1 }
 0x4de   :  { %v3499_v62 = vadd.f32 %v3492_v25, %v3427_v6  ;;  %v3501_v63 = vadd.f32 %v3492_v25, %v3470_v54  ;;  %v3429_v32 = vpop.f32.mrb[5].mxu0  ;;  %v3472_v13 = vpop.f32.mrb[5].mxu1 }
 0x4df   :  { %v3500_v43 = vadd.f32 %v3492_v25, %v3429_v32  ;;  %v3502_v46 = vadd.f32 %v3492_v25, %v3472_v13  ;;  %v3431_v47 = vpop.f32.mrb[6].mxu0  ;;  %v3474_v23 = vpop.f32.mrb[6].mxu1 }
 0x4e0   :  { %v3503_v7 = vadd.f32 %v3497_v60, %v3431_v47  ;;  %v3505_v36 = vadd.f32 %v3497_v60, %v3474_v23  ;;  %v3433_v9 = vpop.f32.mrb[7].mxu0  ;;  %v3476_v44 = vpop.f32.mrb[7].mxu1  ;;  %v3507_v11 = vmax.f32 %v3499_v62, 0.0  ;;  %v3509_v51 = vmax.f32 %v3501_v63, 0.0 }
 0x4e1   :  { %v3504_v10 = vadd.f32 %v3497_v60, %v3433_v9  ;;  %v3506_v49 = vadd.f32 %v3497_v60, %v3476_v44  ;;  %v3508_v34 = vmax.f32 %v3500_v43, 0.0  ;;  %v3510_v33 = vmax.f32 %v3502_v46, 0.0 }
 0x4e2   :  { %v3511_v50 = vmax.f32 %v3503_v7, 0.0  ;;  %v3513_v19 = vmax.f32 %v3505_v36, 0.0 }
 0x4e3   :  { %v3512_v61 = vmax.f32 %v3504_v10, 0.0  ;;  %v3514_v52 = vmax.f32 %v3506_v49, 0.0 }
 0x4e4   :  { %v3516_v39 = vpack.c.bf16 %v3511_v50, %v3507_v11  ;;  %v3518_v20 = vpack.c.bf16 %v3513_v19, %v3509_v51 }
 0x4e5   :  { %v3517_v4 = vpack.c.bf16 %v3512_v61, %v3508_v34  ;;  %v3519_v59 = vpack.c.bf16 %v3514_v52, %v3510_v33 }
 0x4e7   :  { %3529 = vmatprep.subr.bf16.mxu0 %v3517_v4  ;;  %3570 = vmatprep.subr.bf16.mxu1 %v3519_v59 }
 0x4e8   :  { %3530 = vmatpush1.bf16.msra.mxu0 %v3516_v39  ;;  %3571 = vmatpush1.bf16.msra.mxu1 %v3518_v20 }
 0x4eb   :  { %3793 = vmatmul.mubr.msk.bf16.vlgmr.msra.gmra.mrb[8].mxu0 %vm776_vm4, %v3515_v12  ;;  %3794 = vmatmul.mubr.msk.bf16.vlgmr.msra.gmra.mrb[8].mxu1 %vm776_vm4, %v3515_v12 }
 0x5be   :  { %v3563_v30 = vpop.f32.mrb[8].mxu0  ;;  %v3604_v18 = vpop.f32.mrb[8].mxu1 }
 0x5bf   :  { %v3564_v22 = vadd.f32 %v3563_v30, %v3524_v37  ;;  %v3605_v31 = vadd.f32 %v3604_v18, %v3524_v37  ;;  %v3565_v41 = vpop.f32.mrb[9].mxu0  ;;  %v3606_v1 = vpop.f32.mrb[9].mxu1 }
 0x5c0   :  { %v3566_v8 = vadd.f32 %v3565_v41, %v3524_v37  ;;  %v3607_v16 = vadd.f32 %v3606_v1, %v3524_v37  ;;  %v3567_v5 = vpop.f32.mrb[10].mxu0  ;;  %v3608_v42 = vpop.f32.mrb[10].mxu1 }
 0x5c1   :  { %v3568_v45 = vpop.f32.mrb[11].mxu0  ;;  %v3609_v27 = vpop.f32.mrb[11].mxu1 }
 0x5c2   :  { %v3615_v15 = vcombine.low %v3564_v22, %v3566_v8  ;;  %v3616_v40 = vcombine.low %v3605_v31, %v3607_v16 }
 0x5c4   :  { %3619 = vst [vmem:[%s5526_s8] sm:$0x77] %v3615_v15  ;;  %3620 = vst [vmem:[%s5526_s8 + $0x8] sm:$0x77] %v3616_v40 }

</bundles_post_ra>
